<compile_context>
chip_gen: v7x
topology: tpu7x:2x2x1
jax: 0.10.0
libtpu: 0.0.40
codegen_flags: <defaults>
</compile_context>

<pallas_src>
import functools

import jax
import jax.numpy as jnp
from jax import lax
from jax.experimental import pallas as pl
from jax.experimental.pallas import tpu as pltpu

_EPS = 1e-5


# ------------------------------- in-kernel helpers -------------------------

def _tap(img_ref, row0, col0, nrows, ncols, stride):
    """(nrows, ncols, C) window of a (1, Hp, Wp, C) ref, strided over H/W."""
    if stride == 1:
        return img_ref[0, pl.ds(row0, nrows), pl.ds(col0, ncols), :]
    # TODO(synk): deinterleave even/odd W columns in the wrapper for stride=2
    # so the kernel reads contiguous sublanes instead of stride-2 gathers.
    return img_ref[0, pl.ds(row0, nrows, stride), pl.ds(col0, ncols, stride), :]


def _partial_stats(v):
    # v: (rows, C) f32 -> (2, C): per-channel [sum, sum of squares].
    # NOTE: single-pass E[x^2]-E[x]^2 variance; fine at bf16-level tolerance.
    return jnp.concatenate(
        [jnp.sum(v, axis=0, keepdims=True),
         jnp.sum(v * v, axis=0, keepdims=True)], axis=0)


# ------------------------------- host-side helpers -------------------------

def _bn_fold(stats, gamma, beta, count):
    # stats: (N, HT, 2, C) partial sums -> per-channel affine (scale, shift)
    # so that bn(x) == x * scale + shift  (training-mode batch stats).
    tot = jnp.sum(stats, axis=(0, 1))                    # (2, C)
    mean = tot[0] / count
    var = jnp.maximum(tot[1] / count - mean * mean, 0.0)
    scale = gamma.reshape(-1) * lax.rsqrt(var + _EPS)
    shift = beta.reshape(-1) - mean * scale
    return scale.reshape(1, -1), shift.reshape(1, -1)


def _pick_row_tile(ho, wo, target=256):
    # Smallest divisor of Ho with TH*Wo >= target (fills v6e/v7x MXU rows) and
    # TH*Wo a multiple of 8 (sublane-aligned block); else whole image height.
    for d in range(1, ho):
        if ho % d == 0 and (d * wo) % 8 == 0 and d * wo >= target:
            return d
    return ho


def _vmem_limit_bytes():
    # Derive the scoped-VMEM budget per generation (v5e/v6e: 128 MiB physical,
    # v7x: 64 MiB); leave headroom for double-buffering.
    try:
        cap = getattr(pltpu.get_tpu_info(), "vmem_capacity_bytes", None)
    except Exception:
        cap = None
    cap = cap or (64 * 1024 * 1024)
    return max(32 * 1024 * 1024, min(cap // 2, 96 * 1024 * 1024))


# ------------------------------- forward pass ------------------------------

def basic_block_forward(x_nchw, params, *, stride=1, use_skip_connection=True):
    x = jnp.transpose(x_nchw, (0, 2, 3, 1)).astype(jnp.float32)   # NCHW -> NHWC
    N, H, W, Cin = x.shape
    Cout = params["w1"].shape[-1]
    Ho = (H - 1) // stride + 1
    Wo = (W - 1) // stride + 1
    TH = _pick_row_tile(Ho, Wo)            # output-row tile
    HT = Ho // TH
    M = N * Ho * Wo                        # total output pixels (BN count)

    proj = use_skip_connection and (stride != 1 or Cin != Cout)

    vlim = _vmem_limit_bytes()
    cparams2 = pltpu.CompilerParams(
        dimension_semantics=("parallel", "parallel"), vmem_limit_bytes=vlim)
    cparams1 = pltpu.CompilerParams(
        dimension_semantics=("parallel",), vmem_limit_bytes=vlim)

    # bf16 MXU operands; accumulation stays f32 in-kernel.
    xp = jnp.pad(x, ((0, 0), (1, 1), (1, 1), (0, 0))).astype(jnp.bfloat16)
    w1 = params["w1"].reshape(9 * Cin, Cout).astype(jnp.bfloat16)   # (dh,dw,ci) flat
    w2 = params["w2"].reshape(9 * Cout, Cout).astype(jnp.bfloat16)

    rows_spec = pl.BlockSpec((1, TH * Wo, Cout), lambda n, t: (n, t, 0))
    stat_spec = pl.BlockSpec((1, 1, 2, Cout), lambda n, t: (n, t, 0, 0))
    vec_spec = pl.BlockSpec((1, Cout), lambda n, t: (0, 0))          # resident
    rows_shape = jax.ShapeDtypeStruct((N, Ho * Wo, Cout), jnp.bfloat16)
    stat_shape = jax.ShapeDtypeStruct((N, HT, 2, Cout), jnp.float32)

    # ---- kernel 1: conv1 (3x3, stride) + optional 1x1 projection conv ------
    def conv1_kernel(*refs):
        if proj:
            xp_ref, w1_ref, wsc_ref, y1_ref, st1_ref, ysc_ref, stsc_ref, pk_ref = refs
        else:
            xp_ref, w1_ref, y1_ref, st1_ref, pk_ref = refs
        oh0 = pl.multiple_of(pl.program_id(1) * TH, TH)
        # In-VMEM im2col of the 9 taps -> a single K = 9*Cin MXU matmul.
        for dh in range(3):
            for dw in range(3):
                k = dh * 3 + dw
                pk_ref[:, :, k * Cin:(k + 1) * Cin] = _tap(
                    xp_ref, oh0 * stride + dh, dw, TH, Wo, stride)
        acc = jnp.dot(pk_ref[...].reshape(TH * Wo, 9 * Cin), w1_ref[...],
                      preferred_element_type=jnp.float32)
        y1_ref[0] = acc.astype(y1_ref.dtype)
        st1_ref[0, 0] = _partial_stats(acc)
        if proj:
            center = _tap(xp_ref, oh0 * stride + 1, 1, TH, Wo, stride)
            sc = jnp.dot(center.reshape(TH * Wo, Cin), wsc_ref[...],
                         preferred_element_type=jnp.float32)
            ysc_ref[0] = sc.astype(ysc_ref.dtype)
            stsc_ref[0, 0] = _partial_stats(sc)

    in_specs = [
        pl.BlockSpec((1, H + 2, W + 2, Cin), lambda n, t: (n, 0, 0, 0)),
        pl.BlockSpec((9 * Cin, Cout), lambda n, t: (0, 0)),
    ]
    args = [xp, w1]
    out_specs = [rows_spec, stat_spec]
    out_shape = [rows_shape, stat_shape]
    if proj:
        in_specs.append(pl.BlockSpec((Cin, Cout), lambda n, t: (0, 0)))
        args.append(params["wsc"].astype(jnp.bfloat16))
        out_specs += [rows_spec, stat_spec]
        out_shape += [rows_shape, stat_shape]

    res = pl.pallas_call(
        conv1_kernel, grid=(N, HT),
        in_specs=in_specs, out_specs=out_specs, out_shape=out_shape,
        scratch_shapes=[pltpu.VMEM((TH, Wo, 9 * Cin), jnp.bfloat16)],
        compiler_params=cparams2)(*args)
    if proj:
        y1, st1, ysc, stsc = res
    else:
        y1, st1 = res

    scale1, shift1 = _bn_fold(st1, params["g1"], params["b1"], M)

    # ---- kernel 2: (BN1 + ReLU, hoisted) + conv2 (3x3, s=1) + BN2 stats -----
    y1img = y1.reshape(N, Ho, Wo, Cout)        # metadata reshape, no HBM copy

    def conv2_kernel(y1_ref, w2_ref, s1_ref, t1_ref, y2_ref, st2_ref,
                     aw_ref, pk_ref):
        t = pl.program_id(1)
        oh0 = pl.multiple_of(t * TH, TH)

        def act(v):                            # BN1 + ReLU, f32
            return jnp.maximum(
                v.astype(jnp.float32) * s1_ref[...] + t1_ref[...], 0.0)

        # Activated halo window built ONCE per tile (zero spatial pad ring).
        aw_ref[:, 0:1, :] = jnp.zeros((TH + 2, 1, Cout), aw_ref.dtype)
        aw_ref[:, Wo + 1:Wo + 2, :] = jnp.zeros((TH + 2, 1, Cout), aw_ref.dtype)
        mid = act(y1_ref[0, pl.ds(oh0, TH), :, :])
        top = jnp.where(
            t > 0, act(y1_ref[0, pl.ds(jnp.maximum(oh0 - 1, 0), 1), :, :]), 0.0)
        bot = jnp.where(
            t < HT - 1,
            act(y1_ref[0, pl.ds(jnp.minimum(oh0 + TH, Ho - 1), 1), :, :]), 0.0)
        aw_ref[1:TH + 1, 1:Wo + 1, :] = mid.astype(aw_ref.dtype)
        aw_ref[0:1, 1:Wo + 1, :] = top.astype(aw_ref.dtype)
        aw_ref[TH + 1:TH + 2, 1:Wo + 1, :] = bot.astype(aw_ref.dtype)

        # In-VMEM im2col on the pre-activated buffer -> single K=9*Cout matmul.
        for dh in range(3):
            for dw in range(3):
                k = dh * 3 + dw
                pk_ref[:, :, k * Cout:(k + 1) * Cout] = (
                    aw_ref[dh:dh + TH, dw:dw + Wo, :])
        acc = jnp.dot(pk_ref[...].reshape(TH * Wo, 9 * Cout), w2_ref[...],
                      preferred_element_type=jnp.float32)
        y2_ref[0] = acc.astype(y2_ref.dtype)
        st2_ref[0, 0] = _partial_stats(acc)

    y2, st2 = pl.pallas_call(
        conv2_kernel, grid=(N, HT),
        in_specs=[
            pl.BlockSpec((1, Ho, Wo, Cout), lambda n, t: (n, 0, 0, 0)),
            pl.BlockSpec((9 * Cout, Cout), lambda n, t: (0, 0)),
            vec_spec, vec_spec],
        out_specs=[rows_spec, stat_spec],
        out_shape=[rows_shape, stat_shape],
        scratch_shapes=[pltpu.VMEM((TH + 2, Wo + 2, Cout), jnp.bfloat16),
                        pltpu.VMEM((TH, Wo, 9 * Cout), jnp.bfloat16)],
        compiler_params=cparams2)(y1img, w2, scale1, shift1)

    scale2, shift2 = _bn_fold(st2, params["g2"], params["b2"], M)

    # ---- kernel 3: BN2 + shortcut(+BN) + residual add + ReLU ----------------
    # Lane-dense layout: (Wo, Cout) folded into the last dim; whole image/step.
    L = Wo * Cout
    y2r = y2.reshape(N, Ho, L)

    def finish_kernel(*refs):
        if proj:
            y2_ref, s2_ref, t2_ref, ysc_ref, ssc_ref, tsc_ref, o_ref = refs
        elif use_skip_connection:
            y2_ref, s2_ref, t2_ref, xid_ref, o_ref = refs
        else:
            y2_ref, s2_ref, t2_ref, o_ref = refs
        v = y2_ref[0].astype(jnp.float32) * s2_ref[...] + t2_ref[...]
        if proj:
            v = v + ysc_ref[0].astype(jnp.float32) * ssc_ref[...] + tsc_ref[...]
        elif use_skip_connection:
            v = v + xid_ref[0]
        o_ref[0] = jnp.maximum(v, 0.0)

    img_spec = pl.BlockSpec((1, Ho, L), lambda n: (n, 0, 0))
    lvec_spec = pl.BlockSpec((1, L), lambda n: (0, 0))
    fin_specs = [img_spec, lvec_spec, lvec_spec]
    fin_args = [y2r, jnp.tile(scale2, (1, Wo)), jnp.tile(shift2, (1, Wo))]
    if proj:
        scale_sc, shift_sc = _bn_fold(stsc, params["gsc"], params["bsc"], M)
        fin_specs += [img_spec, lvec_spec, lvec_spec]
        fin_args += [ysc.reshape(N, Ho, L),
                     jnp.tile(scale_sc, (1, Wo)), jnp.tile(shift_sc, (1, Wo))]
    elif use_skip_connection:
        fin_specs.append(img_spec)                   # identity: Cin==Cout, s==1
        fin_args.append(x.reshape(N, Ho, L))

    out_flat = pl.pallas_call(
        finish_kernel, grid=(N,),
        in_specs=fin_specs, out_specs=img_spec,
        out_shape=jax.ShapeDtypeStruct((N, Ho, L), jnp.float32),
        compiler_params=cparams1)(*fin_args)

    out = out_flat.reshape(N, Ho, Wo, Cout)
    return jnp.transpose(out, (0, 3, 1, 2))          # NHWC -> NCHW


# ------------------------- Pure-JAX reference check ------------------------

def basic_block_reference(x_nchw, params, *, stride=1, use_skip_connection=True):
    x = jnp.transpose(x_nchw, (0, 2, 3, 1)).astype(jnp.float32)

    def bn(y, g, b):
        mean = jnp.mean(y, axis=(0, 1, 2), keepdims=True)
        var = jnp.mean((y - mean) ** 2, axis=(0, 1, 2), keepdims=True)
        return (y - mean) * lax.rsqrt(var + _EPS) * g.reshape(1, 1, 1, -1) + b.reshape(1, 1, 1, -1)

    def conv(inp, w, s, pad):
        dn = lax.conv_dimension_numbers(inp.shape, w.shape, ("NHWC", "HWIO", "NHWC"))
        return lax.conv_general_dilated(inp, w, (s, s), pad, dimension_numbers=dn)

    Cin, Cout = x.shape[-1], params["w1"].shape[-1]
    o = jnp.maximum(bn(conv(x, params["w1"], stride, ((1, 1), (1, 1))),
                       params["g1"], params["b1"]), 0.0)
    o = bn(conv(o, params["w2"], 1, ((1, 1), (1, 1))), params["g2"], params["b2"])
    if use_skip_connection:
        if stride != 1 or Cin != Cout:
            wsc = params["wsc"].reshape(1, 1, Cin, Cout)
            s = bn(conv(x, wsc, stride, ((0, 0), (0, 0))), params["gsc"], params["bsc"])
        else:
            s = x
        o = o + s
    return jnp.transpose(jnp.maximum(o, 0.0), (0, 3, 1, 2))


if __name__ == "__main__":
    key = jax.random.PRNGKey(0)
    ks = jax.random.split(key, 6)

    # ---- case 1: projection shortcut (in_planes != planes), stride 1 -------
    N, Cin, H, W, Cout, stride = 2, 4, 16, 16, 8, 1
    x = jax.random.normal(ks[0], (N, Cin, H, W), jnp.float32)
    params = dict(
        w1=jax.random.normal(ks[1], (3, 3, Cin, Cout), jnp.float32) * 0.1,   # HWIO
        g1=jnp.ones((1, Cout), jnp.float32), b1=jnp.zeros((1, Cout), jnp.float32),
        w2=jax.random.normal(ks[2], (3, 3, Cout, Cout), jnp.float32) * 0.1,
        g2=jnp.ones((1, Cout), jnp.float32), b2=jnp.zeros((1, Cout), jnp.float32),
        wsc=jax.random.normal(ks[3], (Cin, Cout), jnp.float32) * 0.1,        # 1x1
        gsc=jnp.ones((1, Cout), jnp.float32), bsc=jnp.zeros((1, Cout), jnp.float32),
    )
    fwd = jax.jit(functools.partial(basic_block_forward,
                                    stride=stride, use_skip_connection=True))
    out = jax.block_until_ready(fwd(x, params))
    ref = basic_block_reference(x, params, stride=stride, use_skip_connection=True)
    assert out.shape == (N, Cout, H // stride, W // stride), out.shape
    err = float(jnp.max(jnp.abs(out - ref)))
    # bf16 MXU operands + bf16 intermediates (vs f32 reference) -> loosened tol.
    assert err < 1e-1, f"projection case mismatch, max abs err = {err}"

    # ---- case 2: identity shortcut (in_planes == planes), stride 1 ---------
    C = 8
    x2 = jax.random.normal(ks[4], (N, C, H, W), jnp.float32)
    params2 = dict(
        w1=jax.random.normal(ks[5], (3, 3, C, C), jnp.float32) * 0.1,
        g1=jnp.ones((1, C), jnp.float32), b1=jnp.zeros((1, C), jnp.float32),
        w2=jax.random.normal(ks[1], (3, 3, C, C), jnp.float32) * 0.1,
        g2=jnp.ones((1, C), jnp.float32), b2=jnp.zeros((1, C), jnp.float32),
    )
    fwd2 = jax.jit(functools.partial(basic_block_forward,
                                     stride=1, use_skip_connection=True))
    out2 = jax.block_until_ready(fwd2(x2, params2))
    ref2 = basic_block_reference(x2, params2, stride=1, use_skip_connection=True)
    err2 = float(jnp.max(jnp.abs(out2 - ref2)))
    assert err2 < 1e-1, f"identity case mismatch, max abs err = {err2}"

    print("KERNEL_OK")
</pallas_src>

<mosaic_0001>
module attributes {stable_mosaic.version = 11 : i64} {
  func.func @conv1_kernel(%arg0: i32, %arg1: i32, %arg2: memref<1x18x18x4xbf16, #tpu.memory_space<vmem>>, %arg3: memref<36x8xbf16, #tpu.memory_space<vmem>>, %arg4: memref<4x8xbf16, #tpu.memory_space<vmem>>, %arg5: memref<1x256x8xbf16, #tpu.memory_space<vmem>>, %arg6: memref<1x1x2x8xf32, #tpu.memory_space<vmem>>, %arg7: memref<1x256x8xbf16, #tpu.memory_space<vmem>>, %arg8: memref<1x1x2x8xf32, #tpu.memory_space<vmem>>, %arg9: memref<16x16x36xbf16, #tpu.memory_space<vmem>>) attributes {dimension_semantics = [#tpu.dimension_semantics<parallel>, #tpu.dimension_semantics<parallel>], iteration_bounds = array<i64: 2, 1>, scalar_prefetch = 0 : i64, scratch_operands = 1 : i64, tpu.core_type = #tpu.core_type<tc>, window_params = [{transform_indices = @transform_0, window_bounds = array<i64: 1, 18, 18, 4>}, {pipeline_mode = #tpu.pipeline_mode<synchronous>, transform_indices = @transform_1, window_bounds = array<i64: 36, 8>}, {pipeline_mode = #tpu.pipeline_mode<synchronous>, transform_indices = @transform_2, window_bounds = array<i64: 4, 8>}, {transform_indices = @transform_3, window_bounds = array<i64: 1, 256, 8>}, {transform_indices = @transform_4, window_bounds = array<i64: 1, 1, 2, 8>}, {transform_indices = @transform_5, window_bounds = array<i64: 1, 256, 8>}, {transform_indices = @transform_6, window_bounds = array<i64: 1, 1, 2, 8>}]} {
    %c16_i32 = arith.constant 16 : i32
    %0 = arith.muli %arg1, %c16_i32 : i32
    %1 = tpu.assume_multiple %0, 16 : i32
    %c1_i32 = arith.constant 1 : i32
    %2 = arith.muli %1, %c1_i32 : i32
    %c0_i32 = arith.constant 0 : i32
    %3 = arith.addi %2, %c0_i32 : i32
    %c0 = arith.constant 0 : index
    %4 = arith.index_cast %3 : i32 to index
    %c0_0 = arith.constant 0 : index
    %c0_1 = arith.constant 0 : index
    %5 = vector.load %arg2[%c0, %4, %c0_0, %c0_1] : memref<1x18x18x4xbf16, #tpu.memory_space<vmem>>, vector<1x16x16x4xbf16>
    %6 = vector.shape_cast %5 : vector<1x16x16x4xbf16> to vector<16x16x4xbf16>
    %c0_2 = arith.constant 0 : index
    %c0_3 = arith.constant 0 : index
    %c0_4 = arith.constant 0 : index
    %7 = vector.load %arg9[%c0_2, %c0_3, %c0_4] : memref<16x16x36xbf16, #tpu.memory_space<vmem>>, vector<16x16x4xbf16>
    tpu.vector_store %arg9[%c0_2, %c0_3, %c0_4], %6 {strides = array<i32>} : memref<16x16x36xbf16, #tpu.memory_space<vmem>>, vector<16x16x4xbf16>,
    %c1_i32_5 = arith.constant 1 : i32
    %8 = arith.muli %1, %c1_i32_5 : i32
    %c0_i32_6 = arith.constant 0 : i32
    %9 = arith.addi %8, %c0_i32_6 : i32
    %c0_7 = arith.constant 0 : index
    %10 = arith.index_cast %9 : i32 to index
    %c1 = arith.constant 1 : index
    %c0_8 = arith.constant 0 : index
    %11 = vector.load %arg2[%c0_7, %10, %c1, %c0_8] : memref<1x18x18x4xbf16, #tpu.memory_space<vmem>>, vector<1x16x16x4xbf16>
    %12 = vector.shape_cast %11 : vector<1x16x16x4xbf16> to vector<16x16x4xbf16>
    %c0_9 = arith.constant 0 : index
    %c0_10 = arith.constant 0 : index
    %c4 = arith.constant 4 : index
    %13 = vector.load %arg9[%c0_9, %c0_10, %c4] : memref<16x16x36xbf16, #tpu.memory_space<vmem>>, vector<16x16x4xbf16>
    tpu.vector_store %arg9[%c0_9, %c0_10, %c4], %12 {strides = array<i32>} : memref<16x16x36xbf16, #tpu.memory_space<vmem>>, vector<16x16x4xbf16>,
    %c1_i32_11 = arith.constant 1 : i32
    %14 = arith.muli %1, %c1_i32_11 : i32
    %c0_i32_12 = arith.constant 0 : i32
    %15 = arith.addi %14, %c0_i32_12 : i32
    %c0_13 = arith.constant 0 : index
    %16 = arith.index_cast %15 : i32 to index
    %c2 = arith.constant 2 : index
    %c0_14 = arith.constant 0 : index
    %17 = vector.load %arg2[%c0_13, %16, %c2, %c0_14] : memref<1x18x18x4xbf16, #tpu.memory_space<vmem>>, vector<1x16x16x4xbf16>
    %18 = vector.shape_cast %17 : vector<1x16x16x4xbf16> to vector<16x16x4xbf16>
    %c0_15 = arith.constant 0 : index
    %c0_16 = arith.constant 0 : index
    %c8 = arith.constant 8 : index
    %19 = vector.load %arg9[%c0_15, %c0_16, %c8] : memref<16x16x36xbf16, #tpu.memory_space<vmem>>, vector<16x16x4xbf16>
    tpu.vector_store %arg9[%c0_15, %c0_16, %c8], %18 {strides = array<i32>} : memref<16x16x36xbf16, #tpu.memory_space<vmem>>, vector<16x16x4xbf16>,
    %c1_i32_17 = arith.constant 1 : i32
    %20 = arith.muli %1, %c1_i32_17 : i32
    %c1_i32_18 = arith.constant 1 : i32
    %21 = arith.addi %20, %c1_i32_18 : i32
    %c0_19 = arith.constant 0 : index
    %22 = arith.index_cast %21 : i32 to index
    %c0_20 = arith.constant 0 : index
    %c0_21 = arith.constant 0 : index
    %23 = vector.load %arg2[%c0_19, %22, %c0_20, %c0_21] : memref<1x18x18x4xbf16, #tpu.memory_space<vmem>>, vector<1x16x16x4xbf16>
    %24 = vector.shape_cast %23 : vector<1x16x16x4xbf16> to vector<16x16x4xbf16>
    %c0_22 = arith.constant 0 : index
    %c0_23 = arith.constant 0 : index
    %c12 = arith.constant 12 : index
    %25 = vector.load %arg9[%c0_22, %c0_23, %c12] : memref<16x16x36xbf16, #tpu.memory_space<vmem>>, vector<16x16x4xbf16>
    tpu.vector_store %arg9[%c0_22, %c0_23, %c12], %24 {strides = array<i32>} : memref<16x16x36xbf16, #tpu.memory_space<vmem>>, vector<16x16x4xbf16>,
    %c1_i32_24 = arith.constant 1 : i32
    %26 = arith.muli %1, %c1_i32_24 : i32
    %c1_i32_25 = arith.constant 1 : i32
    %27 = arith.addi %26, %c1_i32_25 : i32
    %c0_26 = arith.constant 0 : index
    %28 = arith.index_cast %27 : i32 to index
    %c1_27 = arith.constant 1 : index
    %c0_28 = arith.constant 0 : index
    %29 = vector.load %arg2[%c0_26, %28, %c1_27, %c0_28] : memref<1x18x18x4xbf16, #tpu.memory_space<vmem>>, vector<1x16x16x4xbf16>
    %30 = vector.shape_cast %29 : vector<1x16x16x4xbf16> to vector<16x16x4xbf16>
    %c0_29 = arith.constant 0 : index
    %c0_30 = arith.constant 0 : index
    %c16 = arith.constant 16 : index
    %31 = vector.load %arg9[%c0_29, %c0_30, %c16] : memref<16x16x36xbf16, #tpu.memory_space<vmem>>, vector<16x16x4xbf16>
    tpu.vector_store %arg9[%c0_29, %c0_30, %c16], %30 {strides = array<i32>} : memref<16x16x36xbf16, #tpu.memory_space<vmem>>, vector<16x16x4xbf16>,
    %c1_i32_31 = arith.constant 1 : i32
    %32 = arith.muli %1, %c1_i32_31 : i32
    %c1_i32_32 = arith.constant 1 : i32
    %33 = arith.addi %32, %c1_i32_32 : i32
    %c0_33 = arith.constant 0 : index
    %34 = arith.index_cast %33 : i32 to index
    %c2_34 = arith.constant 2 : index
    %c0_35 = arith.constant 0 : index
    %35 = vector.load %arg2[%c0_33, %34, %c2_34, %c0_35] : memref<1x18x18x4xbf16, #tpu.memory_space<vmem>>, vector<1x16x16x4xbf16>
    %36 = vector.shape_cast %35 : vector<1x16x16x4xbf16> to vector<16x16x4xbf16>
    %c0_36 = arith.constant 0 : index
    %c0_37 = arith.constant 0 : index
    %c20 = arith.constant 20 : index
    %37 = vector.load %arg9[%c0_36, %c0_37, %c20] : memref<16x16x36xbf16, #tpu.memory_space<vmem>>, vector<16x16x4xbf16>
    tpu.vector_store %arg9[%c0_36, %c0_37, %c20], %36 {strides = array<i32>} : memref<16x16x36xbf16, #tpu.memory_space<vmem>>, vector<16x16x4xbf16>,
    %c1_i32_38 = arith.constant 1 : i32
    %38 = arith.muli %1, %c1_i32_38 : i32
    %c2_i32 = arith.constant 2 : i32
    %39 = arith.addi %38, %c2_i32 : i32
    %c0_39 = arith.constant 0 : index
    %40 = arith.index_cast %39 : i32 to index
    %c0_40 = arith.constant 0 : index
    %c0_41 = arith.constant 0 : index
    %41 = vector.load %arg2[%c0_39, %40, %c0_40, %c0_41] : memref<1x18x18x4xbf16, #tpu.memory_space<vmem>>, vector<1x16x16x4xbf16>
    %42 = vector.shape_cast %41 : vector<1x16x16x4xbf16> to vector<16x16x4xbf16>
    %c0_42 = arith.constant 0 : index
    %c0_43 = arith.constant 0 : index
    %c24 = arith.constant 24 : index
    %43 = vector.load %arg9[%c0_42, %c0_43, %c24] : memref<16x16x36xbf16, #tpu.memory_space<vmem>>, vector<16x16x4xbf16>
    tpu.vector_store %arg9[%c0_42, %c0_43, %c24], %42 {strides = array<i32>} : memref<16x16x36xbf16, #tpu.memory_space<vmem>>, vector<16x16x4xbf16>,
    %c1_i32_44 = arith.constant 1 : i32
    %44 = arith.muli %1, %c1_i32_44 : i32
    %c2_i32_45 = arith.constant 2 : i32
    %45 = arith.addi %44, %c2_i32_45 : i32
    %c0_46 = arith.constant 0 : index
    %46 = arith.index_cast %45 : i32 to index
    %c1_47 = arith.constant 1 : index
    %c0_48 = arith.constant 0 : index
    %47 = vector.load %arg2[%c0_46, %46, %c1_47, %c0_48] : memref<1x18x18x4xbf16, #tpu.memory_space<vmem>>, vector<1x16x16x4xbf16>
    %48 = vector.shape_cast %47 : vector<1x16x16x4xbf16> to vector<16x16x4xbf16>
    %c0_49 = arith.constant 0 : index
    %c0_50 = arith.constant 0 : index
    %c28 = arith.constant 28 : index
    %49 = vector.load %arg9[%c0_49, %c0_50, %c28] : memref<16x16x36xbf16, #tpu.memory_space<vmem>>, vector<16x16x4xbf16>
    tpu.vector_store %arg9[%c0_49, %c0_50, %c28], %48 {strides = array<i32>} : memref<16x16x36xbf16, #tpu.memory_space<vmem>>, vector<16x16x4xbf16>,
    %c1_i32_51 = arith.constant 1 : i32
    %50 = arith.muli %1, %c1_i32_51 : i32
    %c2_i32_52 = arith.constant 2 : i32
    %51 = arith.addi %50, %c2_i32_52 : i32
    %c0_53 = arith.constant 0 : index
    %52 = arith.index_cast %51 : i32 to index
    %c2_54 = arith.constant 2 : index
    %c0_55 = arith.constant 0 : index
    %53 = vector.load %arg2[%c0_53, %52, %c2_54, %c0_55] : memref<1x18x18x4xbf16, #tpu.memory_space<vmem>>, vector<1x16x16x4xbf16>
    %54 = vector.shape_cast %53 : vector<1x16x16x4xbf16> to vector<16x16x4xbf16>
    %c0_56 = arith.constant 0 : index
    %c0_57 = arith.constant 0 : index
    %c32 = arith.constant 32 : index
    %55 = vector.load %arg9[%c0_56, %c0_57, %c32] : memref<16x16x36xbf16, #tpu.memory_space<vmem>>, vector<16x16x4xbf16>
    tpu.vector_store %arg9[%c0_56, %c0_57, %c32], %54 {strides = array<i32>} : memref<16x16x36xbf16, #tpu.memory_space<vmem>>, vector<16x16x4xbf16>,
    %c0_58 = arith.constant 0 : index
    %c0_59 = arith.constant 0 : index
    %c0_60 = arith.constant 0 : index
    %56 = vector.load %arg9[%c0_58, %c0_59, %c0_60] : memref<16x16x36xbf16, #tpu.memory_space<vmem>>, vector<16x16x36xbf16>
    %57 = vector.shape_cast %56 : vector<16x16x36xbf16> to vector<256x36xbf16>
    %c0_61 = arith.constant 0 : index
    %c0_62 = arith.constant 0 : index
    %58 = vector.load %arg3[%c0_61, %c0_62] : memref<36x8xbf16, #tpu.memory_space<vmem>>, vector<36x8xbf16>
    %cst = arith.constant dense<0.000000e+00> : vector<256x8xf32>
    %59 = tpu.matmul %57, %58, %cst {dimension_numbers = #tpu.dot_dimension_numbers<[1], [0], [0], [1], [0, 0, 1, 1], [], []>} : vector<256x36xbf16>, vector<36x8xbf16>, vector<256x8xf32> -> vector<256x8xf32>
    %60 = arith.truncf %59 : vector<256x8xf32> to vector<256x8xbf16>
    %c0_63 = arith.constant 0 : index
    %c0_64 = arith.constant 0 : index
    %c0_65 = arith.constant 0 : index
    %61 = vector.load %arg5[%c0_63, %c0_64, %c0_65] : memref<1x256x8xbf16, #tpu.memory_space<vmem>>, vector<1x256x8xbf16>
    %62 = vector.shape_cast %61 : vector<1x256x8xbf16> to vector<256x8xbf16>
    %63 = vector.shape_cast %60 : vector<256x8xbf16> to vector<1x256x8xbf16>
    tpu.vector_store %arg5[%c0_63, %c0_64, %c0_65], %63 {strides = array<i32>} : memref<1x256x8xbf16, #tpu.memory_space<vmem>>, vector<1x256x8xbf16>,
    %cst_66 = arith.constant dense<0.000000e+00> : vector<8xf32>
    %64 = vector.multi_reduction <add>, %59, %cst_66 [0] : vector<256x8xf32> to vector<8xf32>
    %65 = vector.shape_cast %64 : vector<8xf32> to vector<1x8xf32>
    %66 = arith.mulf %59, %59 : vector<256x8xf32>
    %cst_67 = arith.constant dense<0.000000e+00> : vector<8xf32>
    %67 = vector.multi_reduction <add>, %66, %cst_67 [0] : vector<256x8xf32> to vector<8xf32>
    %68 = vector.shape_cast %67 : vector<8xf32> to vector<1x8xf32>
    %69 = tpu.concatenate %65, %68 in 0 : vector<1x8xf32>, vector<1x8xf32> -> vector<2x8xf32>
    %c0_68 = arith.constant 0 : index
    %c0_69 = arith.constant 0 : index
    %c0_70 = arith.constant 0 : index
    %c0_71 = arith.constant 0 : index
    %70 = vector.load %arg6[%c0_68, %c0_69, %c0_70, %c0_71] : memref<1x1x2x8xf32, #tpu.memory_space<vmem>>, vector<1x1x2x8xf32>
    %71 = vector.shape_cast %70 : vector<1x1x2x8xf32> to vector<2x8xf32>
    %72 = vector.shape_cast %69 : vector<2x8xf32> to vector<1x1x2x8xf32>
    tpu.vector_store %arg6[%c0_68, %c0_69, %c0_70, %c0_71], %72 {strides = array<i32>} : memref<1x1x2x8xf32, #tpu.memory_space<vmem>>, vector<1x1x2x8xf32>,
    %c1_i32_72 = arith.constant 1 : i32
    %73 = arith.muli %1, %c1_i32_72 : i32
    %c1_i32_73 = arith.constant 1 : i32
    %74 = arith.addi %73, %c1_i32_73 : i32
    %c0_74 = arith.constant 0 : index
    %75 = arith.index_cast %74 : i32 to index
    %c1_75 = arith.constant 1 : index
    %c0_76 = arith.constant 0 : index
    %76 = vector.load %arg2[%c0_74, %75, %c1_75, %c0_76] : memref<1x18x18x4xbf16, #tpu.memory_space<vmem>>, vector<1x16x16x4xbf16>
    %77 = vector.shape_cast %76 : vector<1x16x16x4xbf16> to vector<16x16x4xbf16>
    %78 = vector.shape_cast %77 : vector<16x16x4xbf16> to vector<256x4xbf16>
    %c0_77 = arith.constant 0 : index
    %c0_78 = arith.constant 0 : index
    %79 = vector.load %arg4[%c0_77, %c0_78] : memref<4x8xbf16, #tpu.memory_space<vmem>>, vector<4x8xbf16>
    %cst_79 = arith.constant dense<0.000000e+00> : vector<256x8xf32>
    %80 = tpu.matmul %78, %79, %cst_79 {dimension_numbers = #tpu.dot_dimension_numbers<[1], [0], [0], [1], [0, 0, 1, 1], [], []>} : vector<256x4xbf16>, vector<4x8xbf16>, vector<256x8xf32> -> vector<256x8xf32>
    %81 = arith.truncf %80 : vector<256x8xf32> to vector<256x8xbf16>
    %c0_80 = arith.constant 0 : index
    %c0_81 = arith.constant 0 : index
    %c0_82 = arith.constant 0 : index
    %82 = vector.load %arg7[%c0_80, %c0_81, %c0_82] : memref<1x256x8xbf16, #tpu.memory_space<vmem>>, vector<1x256x8xbf16>
    %83 = vector.shape_cast %82 : vector<1x256x8xbf16> to vector<256x8xbf16>
    %84 = vector.shape_cast %81 : vector<256x8xbf16> to vector<1x256x8xbf16>
    tpu.vector_store %arg7[%c0_80, %c0_81, %c0_82], %84 {strides = array<i32>} : memref<1x256x8xbf16, #tpu.memory_space<vmem>>, vector<1x256x8xbf16>,
    %cst_83 = arith.constant dense<0.000000e+00> : vector<8xf32>
    %85 = vector.multi_reduction <add>, %80, %cst_83 [0] : vector<256x8xf32> to vector<8xf32>
    %86 = vector.shape_cast %85 : vector<8xf32> to vector<1x8xf32>
    %87 = arith.mulf %80, %80 : vector<256x8xf32>
    %cst_84 = arith.constant dense<0.000000e+00> : vector<8xf32>
    %88 = vector.multi_reduction <add>, %87, %cst_84 [0] : vector<256x8xf32> to vector<8xf32>
    %89 = vector.shape_cast %88 : vector<8xf32> to vector<1x8xf32>
    %90 = tpu.concatenate %86, %89 in 0 : vector<1x8xf32>, vector<1x8xf32> -> vector<2x8xf32>
    %c0_85 = arith.constant 0 : index
    %c0_86 = arith.constant 0 : index
    %c0_87 = arith.constant 0 : index
    %c0_88 = arith.constant 0 : index
    %91 = vector.load %arg8[%c0_85, %c0_86, %c0_87, %c0_88] : memref<1x1x2x8xf32, #tpu.memory_space<vmem>>, vector<1x1x2x8xf32>
    %92 = vector.shape_cast %91 : vector<1x1x2x8xf32> to vector<2x8xf32>
    %93 = vector.shape_cast %90 : vector<2x8xf32> to vector<1x1x2x8xf32>
    tpu.vector_store %arg8[%c0_85, %c0_86, %c0_87, %c0_88], %93 {strides = array<i32>} : memref<1x1x2x8xf32, #tpu.memory_space<vmem>>, vector<1x1x2x8xf32>,
    return
  }
  func.func @transform_0(%arg0: i32, %arg1: i32) -> (i32, i32, i32, i32) {
    %c0_i32 = arith.constant 0 : i32
    %c0_i32_0 = arith.constant 0 : i32
    %c0_i32_1 = arith.constant 0 : i32
    %c0_i32_2 = arith.constant 0 : i32
    return %arg0, %c0_i32, %c0_i32_0, %c0_i32_1 : i32, i32, i32, i32
  }
  func.func @transform_1(%arg0: i32, %arg1: i32) -> (i32, i32) {
    %c0_i32 = arith.constant 0 : i32
    %c0_i32_0 = arith.constant 0 : i32
    %c0_i32_1 = arith.constant 0 : i32
    return %c0_i32, %c0_i32_0 : i32, i32
  }
  func.func @transform_2(%arg0: i32, %arg1: i32) -> (i32, i32) {
    %c0_i32 = arith.constant 0 : i32
    %c0_i32_0 = arith.constant 0 : i32
    %c0_i32_1 = arith.constant 0 : i32
    return %c0_i32, %c0_i32_0 : i32, i32
  }
  func.func @transform_3(%arg0: i32, %arg1: i32) -> (i32, i32, i32) {
    %c0_i32 = arith.constant 0 : i32
    %c0_i32_0 = arith.constant 0 : i32
    return %arg0, %arg1, %c0_i32 : i32, i32, i32
  }
  func.func @transform_4(%arg0: i32, %arg1: i32) -> (i32, i32, i32, i32) {
    %c0_i32 = arith.constant 0 : i32
    %c0_i32_0 = arith.constant 0 : i32
    %c0_i32_1 = arith.constant 0 : i32
    return %arg0, %arg1, %c0_i32, %c0_i32_0 : i32, i32, i32, i32
  }
  func.func @transform_5(%arg0: i32, %arg1: i32) -> (i32, i32, i32) {
    %c0_i32 = arith.constant 0 : i32
    %c0_i32_0 = arith.constant 0 : i32
    return %arg0, %arg1, %c0_i32 : i32, i32, i32
  }
  func.func @transform_6(%arg0: i32, %arg1: i32) -> (i32, i32, i32, i32) {
    %c0_i32 = arith.constant 0 : i32
    %c0_i32_0 = arith.constant 0 : i32
    %c0_i32_1 = arith.constant 0 : i32
    return %arg0, %arg1, %c0_i32, %c0_i32_0 : i32, i32, i32, i32
  }
}

module attributes {stable_mosaic.version = 11 : i64} {
  func.func @finish_kernel(%arg0: i32, %arg1: memref<1x16x128xbf16, #tpu.memory_space<vmem>>, %arg2: memref<1x128xf32, #tpu.memory_space<vmem>>, %arg3: memref<1x128xf32, #tpu.memory_space<vmem>>, %arg4: memref<1x16x128xbf16, #tpu.memory_space<vmem>>, %arg5: memref<1x128xf32, #tpu.memory_space<vmem>>, %arg6: memref<1x128xf32, #tpu.memory_space<vmem>>, %arg7: memref<1x16x128xf32, #tpu.memory_space<vmem>>) attributes {dimension_semantics = [#tpu.dimension_semantics<parallel>], iteration_bounds = array<i64: 2>, scalar_prefetch = 0 : i64, scratch_operands = 0 : i64, tpu.core_type = #tpu.core_type<tc>, window_params = [{transform_indices = @transform_0, window_bounds = array<i64: 1, 16, 128>}, {pipeline_mode = #tpu.pipeline_mode<synchronous>, transform_indices = @transform_1, window_bounds = array<i64: 1, 128>}, {pipeline_mode = #tpu.pipeline_mode<synchronous>, transform_indices = @transform_2, window_bounds = array<i64: 1, 128>}, {transform_indices = @transform_3, window_bounds = array<i64: 1, 16, 128>}, {pipeline_mode = #tpu.pipeline_mode<synchronous>, transform_indices = @transform_4, window_bounds = array<i64: 1, 128>}, {pipeline_mode = #tpu.pipeline_mode<synchronous>, transform_indices = @transform_5, window_bounds = array<i64: 1, 128>}, {transform_indices = @transform_6, window_bounds = array<i64: 1, 16, 128>}]} {
    %c0 = arith.constant 0 : index
    %c0_0 = arith.constant 0 : index
    %c0_1 = arith.constant 0 : index
    %0 = vector.load %arg1[%c0, %c0_0, %c0_1] : memref<1x16x128xbf16, #tpu.memory_space<vmem>>, vector<1x16x128xbf16>
    %1 = vector.shape_cast %0 : vector<1x16x128xbf16> to vector<16x128xbf16>
    %2 = arith.extf %1 : vector<16x128xbf16> to vector<16x128xf32>
    %c0_2 = arith.constant 0 : index
    %c0_3 = arith.constant 0 : index
    %3 = vector.load %arg2[%c0_2, %c0_3] : memref<1x128xf32, #tpu.memory_space<vmem>>, vector<1x128xf32>
    %4 = vector.broadcast %3 : vector<1x128xf32> to vector<16x128xf32>
    %5 = arith.mulf %2, %4 : vector<16x128xf32>
    %c0_4 = arith.constant 0 : index
    %c0_5 = arith.constant 0 : index
    %6 = vector.load %arg3[%c0_4, %c0_5] : memref<1x128xf32, #tpu.memory_space<vmem>>, vector<1x128xf32>
    %7 = vector.broadcast %6 : vector<1x128xf32> to vector<16x128xf32>
    %8 = arith.addf %5, %7 : vector<16x128xf32>
    %c0_6 = arith.constant 0 : index
    %c0_7 = arith.constant 0 : index
    %c0_8 = arith.constant 0 : index
    %9 = vector.load %arg4[%c0_6, %c0_7, %c0_8] : memref<1x16x128xbf16, #tpu.memory_space<vmem>>, vector<1x16x128xbf16>
    %10 = vector.shape_cast %9 : vector<1x16x128xbf16> to vector<16x128xbf16>
    %11 = arith.extf %10 : vector<16x128xbf16> to vector<16x128xf32>
    %c0_9 = arith.constant 0 : index
    %c0_10 = arith.constant 0 : index
    %12 = vector.load %arg5[%c0_9, %c0_10] : memref<1x128xf32, #tpu.memory_space<vmem>>, vector<1x128xf32>
    %13 = vector.broadcast %12 : vector<1x128xf32> to vector<16x128xf32>
    %14 = arith.mulf %11, %13 : vector<16x128xf32>
    %15 = arith.addf %8, %14 : vector<16x128xf32>
    %c0_11 = arith.constant 0 : index
    %c0_12 = arith.constant 0 : index
    %16 = vector.load %arg6[%c0_11, %c0_12] : memref<1x128xf32, #tpu.memory_space<vmem>>, vector<1x128xf32>
    %17 = vector.broadcast %16 : vector<1x128xf32> to vector<16x128xf32>
    %18 = arith.addf %15, %17 : vector<16x128xf32>
    %cst = arith.constant 0.000000e+00 : f32
    %19 = vector.broadcast %cst : f32 to vector<16x128xf32>
    %20 = arith.maximumf %18, %19 : vector<16x128xf32>
    %c0_13 = arith.constant 0 : index
    %c0_14 = arith.constant 0 : index
    %c0_15 = arith.constant 0 : index
    %21 = vector.load %arg7[%c0_13, %c0_14, %c0_15] : memref<1x16x128xf32, #tpu.memory_space<vmem>>, vector<1x16x128xf32>
    %22 = vector.shape_cast %21 : vector<1x16x128xf32> to vector<16x128xf32>
    %23 = vector.shape_cast %20 : vector<16x128xf32> to vector<1x16x128xf32>
    tpu.vector_store %arg7[%c0_13, %c0_14, %c0_15], %23 {strides = array<i32>} : memref<1x16x128xf32, #tpu.memory_space<vmem>>, vector<1x16x128xf32>,
    return
  }
  func.func @transform_0(%arg0: i32) -> (i32, i32, i32) {
    %c0_i32 = arith.constant 0 : i32
    %c0_i32_0 = arith.constant 0 : i32
    %c0_i32_1 = arith.constant 0 : i32
    return %arg0, %c0_i32, %c0_i32_0 : i32, i32, i32
  }
  func.func @transform_1(%arg0: i32) -> (i32, i32) {
    %c0_i32 = arith.constant 0 : i32
    %c0_i32_0 = arith.constant 0 : i32
    %c0_i32_1 = arith.constant 0 : i32
    return %c0_i32, %c0_i32_0 : i32, i32
  }
  func.func @transform_2(%arg0: i32) -> (i32, i32) {
    %c0_i32 = arith.constant 0 : i32
    %c0_i32_0 = arith.constant 0 : i32
    %c0_i32_1 = arith.constant 0 : i32
    return %c0_i32, %c0_i32_0 : i32, i32
  }
  func.func @transform_3(%arg0: i32) -> (i32, i32, i32) {
    %c0_i32 = arith.constant 0 : i32
    %c0_i32_0 = arith.constant 0 : i32
    %c0_i32_1 = arith.constant 0 : i32
    return %arg0, %c0_i32, %c0_i32_0 : i32, i32, i32
  }
  func.func @transform_4(%arg0: i32) -> (i32, i32) {
    %c0_i32 = arith.constant 0 : i32
    %c0_i32_0 = arith.constant 0 : i32
    %c0_i32_1 = arith.constant 0 : i32
    return %c0_i32, %c0_i32_0 : i32, i32
  }
  func.func @transform_5(%arg0: i32) -> (i32, i32) {
    %c0_i32 = arith.constant 0 : i32
    %c0_i32_0 = arith.constant 0 : i32
    %c0_i32_1 = arith.constant 0 : i32
    return %c0_i32, %c0_i32_0 : i32, i32
  }
  func.func @transform_6(%arg0: i32) -> (i32, i32, i32) {
    %c0_i32 = arith.constant 0 : i32
    %c0_i32_0 = arith.constant 0 : i32
    %c0_i32_1 = arith.constant 0 : i32
    return %arg0, %c0_i32, %c0_i32_0 : i32, i32, i32
  }
}

module attributes {stable_mosaic.version = 11 : i64} {
  func.func @conv2_kernel(%arg0: i32, %arg1: i32, %arg2: memref<1x16x16x8xbf16, #tpu.memory_space<vmem>>, %arg3: memref<72x8xbf16, #tpu.memory_space<vmem>>, %arg4: memref<1x8xf32, #tpu.memory_space<vmem>>, %arg5: memref<1x8xf32, #tpu.memory_space<vmem>>, %arg6: memref<1x256x8xbf16, #tpu.memory_space<vmem>>, %arg7: memref<1x1x2x8xf32, #tpu.memory_space<vmem>>, %arg8: memref<18x18x8xbf16, #tpu.memory_space<vmem>>, %arg9: memref<16x16x72xbf16, #tpu.memory_space<vmem>>) attributes {dimension_semantics = [#tpu.dimension_semantics<parallel>, #tpu.dimension_semantics<parallel>], iteration_bounds = array<i64: 2, 1>, scalar_prefetch = 0 : i64, scratch_operands = 2 : i64, tpu.core_type = #tpu.core_type<tc>, window_params = [{transform_indices = @transform_0, window_bounds = array<i64: 1, 16, 16, 8>}, {pipeline_mode = #tpu.pipeline_mode<synchronous>, transform_indices = @transform_1, window_bounds = array<i64: 72, 8>}, {pipeline_mode = #tpu.pipeline_mode<synchronous>, transform_indices = @transform_2, window_bounds = array<i64: 1, 8>}, {pipeline_mode = #tpu.pipeline_mode<synchronous>, transform_indices = @transform_3, window_bounds = array<i64: 1, 8>}, {transform_indices = @transform_4, window_bounds = array<i64: 1, 256, 8>}, {transform_indices = @transform_5, window_bounds = array<i64: 1, 1, 2, 8>}]} {
    %c16_i32 = arith.constant 16 : i32
    %0 = arith.muli %arg1, %c16_i32 : i32
    %1 = tpu.assume_multiple %0, 16 : i32
    %cst = arith.constant 0.000000e+00 : bf16
    %2 = vector.broadcast %cst : bf16 to vector<18x1x8xbf16>
    %c0 = arith.constant 0 : index
    %c0_0 = arith.constant 0 : index
    %c0_1 = arith.constant 0 : index
    %3 = vector.load %arg8[%c0, %c0_0, %c0_1] : memref<18x18x8xbf16, #tpu.memory_space<vmem>>, vector<18x1x8xbf16>
    tpu.vector_store %arg8[%c0, %c0_0, %c0_1], %2 {strides = array<i32>} : memref<18x18x8xbf16, #tpu.memory_space<vmem>>, vector<18x1x8xbf16>,
    %cst_2 = arith.constant 0.000000e+00 : bf16
    %4 = vector.broadcast %cst_2 : bf16 to vector<18x1x8xbf16>
    %c0_3 = arith.constant 0 : index
    %c17 = arith.constant 17 : index
    %c0_4 = arith.constant 0 : index
    %5 = vector.load %arg8[%c0_3, %c17, %c0_4] : memref<18x18x8xbf16, #tpu.memory_space<vmem>>, vector<18x1x8xbf16>
    tpu.vector_store %arg8[%c0_3, %c17, %c0_4], %4 {strides = array<i32>} : memref<18x18x8xbf16, #tpu.memory_space<vmem>>, vector<18x1x8xbf16>,
    %c0_5 = arith.constant 0 : index
    %6 = arith.index_cast %1 : i32 to index
    %c0_6 = arith.constant 0 : index
    %c0_7 = arith.constant 0 : index
    %7 = vector.load %arg2[%c0_5, %6, %c0_6, %c0_7] : memref<1x16x16x8xbf16, #tpu.memory_space<vmem>>, vector<1x16x16x8xbf16>
    %8 = vector.shape_cast %7 : vector<1x16x16x8xbf16> to vector<16x16x8xbf16>
    %9 = arith.extf %8 : vector<16x16x8xbf16> to vector<16x16x8xf32>
    %c0_8 = arith.constant 0 : index
    %c0_9 = arith.constant 0 : index
    %10 = vector.load %arg4[%c0_8, %c0_9] : memref<1x8xf32, #tpu.memory_space<vmem>>, vector<1x8xf32>
    %11 = vector.shape_cast %10 : vector<1x8xf32> to vector<1x1x8xf32>
    %12 = vector.broadcast %11 : vector<1x1x8xf32> to vector<16x16x8xf32>
    %13 = arith.mulf %9, %12 : vector<16x16x8xf32>
    %c0_10 = arith.constant 0 : index
    %c0_11 = arith.constant 0 : index
    %14 = vector.load %arg5[%c0_10, %c0_11] : memref<1x8xf32, #tpu.memory_space<vmem>>, vector<1x8xf32>
    %15 = vector.shape_cast %14 : vector<1x8xf32> to vector<1x1x8xf32>
    %16 = vector.broadcast %15 : vector<1x1x8xf32> to vector<16x16x8xf32>
    %17 = arith.addf %13, %16 : vector<16x16x8xf32>
    %cst_12 = arith.constant 0.000000e+00 : f32
    %18 = vector.broadcast %cst_12 : f32 to vector<16x16x8xf32>
    %19 = arith.maximumf %17, %18 : vector<16x16x8xf32>
    %c0_i32 = arith.constant 0 : i32
    %20 = arith.cmpi sgt, %arg1, %c0_i32 : i32
    %c1_i32 = arith.constant 1 : i32
    %21 = arith.subi %1, %c1_i32 : i32
    %c0_i32_13 = arith.constant 0 : i32
    %22 = arith.maxsi %21, %c0_i32_13 : i32
    %c0_14 = arith.constant 0 : index
    %23 = arith.index_cast %22 : i32 to index
    %c0_15 = arith.constant 0 : index
    %c0_16 = arith.constant 0 : index
    %24 = vector.load %arg2[%c0_14, %23, %c0_15, %c0_16] : memref<1x16x16x8xbf16, #tpu.memory_space<vmem>>, vector<1x1x16x8xbf16>
    %25 = vector.shape_cast %24 : vector<1x1x16x8xbf16> to vector<1x16x8xbf16>
    %26 = arith.extf %25 : vector<1x16x8xbf16> to vector<1x16x8xf32>
    %c0_17 = arith.constant 0 : index
    %c0_18 = arith.constant 0 : index
    %27 = vector.load %arg4[%c0_17, %c0_18] : memref<1x8xf32, #tpu.memory_space<vmem>>, vector<1x8xf32>
    %28 = vector.shape_cast %27 : vector<1x8xf32> to vector<1x1x8xf32>
    %29 = vector.broadcast %28 : vector<1x1x8xf32> to vector<1x16x8xf32>
    %30 = arith.mulf %26, %29 : vector<1x16x8xf32>
    %c0_19 = arith.constant 0 : index
    %c0_20 = arith.constant 0 : index
    %31 = vector.load %arg5[%c0_19, %c0_20] : memref<1x8xf32, #tpu.memory_space<vmem>>, vector<1x8xf32>
    %32 = vector.shape_cast %31 : vector<1x8xf32> to vector<1x1x8xf32>
    %33 = vector.broadcast %32 : vector<1x1x8xf32> to vector<1x16x8xf32>
    %34 = arith.addf %30, %33 : vector<1x16x8xf32>
    %cst_21 = arith.constant 0.000000e+00 : f32
    %35 = vector.broadcast %cst_21 : f32 to vector<1x16x8xf32>
    %36 = arith.maximumf %34, %35 : vector<1x16x8xf32>
    %cst_22 = arith.constant 0.000000e+00 : f32
    %37 = vector.broadcast %cst_22 : f32 to vector<1x16x8xf32>
    %38 = arith.select %20, %36, %37 : vector<1x16x8xf32>
    %c0_i32_23 = arith.constant 0 : i32
    %39 = arith.cmpi slt, %arg1, %c0_i32_23 : i32
    %c16_i32_24 = arith.constant 16 : i32
    %40 = arith.addi %1, %c16_i32_24 : i32
    %c15_i32 = arith.constant 15 : i32
    %41 = arith.minsi %40, %c15_i32 : i32
    %c0_25 = arith.constant 0 : index
    %42 = arith.index_cast %41 : i32 to index
    %c0_26 = arith.constant 0 : index
    %c0_27 = arith.constant 0 : index
    %43 = vector.load %arg2[%c0_25, %42, %c0_26, %c0_27] : memref<1x16x16x8xbf16, #tpu.memory_space<vmem>>, vector<1x1x16x8xbf16>
    %44 = vector.shape_cast %43 : vector<1x1x16x8xbf16> to vector<1x16x8xbf16>
    %45 = arith.extf %44 : vector<1x16x8xbf16> to vector<1x16x8xf32>
    %c0_28 = arith.constant 0 : index
    %c0_29 = arith.constant 0 : index
    %46 = vector.load %arg4[%c0_28, %c0_29] : memref<1x8xf32, #tpu.memory_space<vmem>>, vector<1x8xf32>
    %47 = vector.shape_cast %46 : vector<1x8xf32> to vector<1x1x8xf32>
    %48 = vector.broadcast %47 : vector<1x1x8xf32> to vector<1x16x8xf32>
    %49 = arith.mulf %45, %48 : vector<1x16x8xf32>
    %c0_30 = arith.constant 0 : index
    %c0_31 = arith.constant 0 : index
    %50 = vector.load %arg5[%c0_30, %c0_31] : memref<1x8xf32, #tpu.memory_space<vmem>>, vector<1x8xf32>
    %51 = vector.shape_cast %50 : vector<1x8xf32> to vector<1x1x8xf32>
    %52 = vector.broadcast %51 : vector<1x1x8xf32> to vector<1x16x8xf32>
    %53 = arith.addf %49, %52 : vector<1x16x8xf32>
    %cst_32 = arith.constant 0.000000e+00 : f32
    %54 = vector.broadcast %cst_32 : f32 to vector<1x16x8xf32>
    %55 = arith.maximumf %53, %54 : vector<1x16x8xf32>
    %cst_33 = arith.constant 0.000000e+00 : f32
    %56 = vector.broadcast %cst_33 : f32 to vector<1x16x8xf32>
    %57 = arith.select %39, %55, %56 : vector<1x16x8xf32>
    %58 = arith.truncf %19 : vector<16x16x8xf32> to vector<16x16x8xbf16>
    %c1 = arith.constant 1 : index
    %c1_34 = arith.constant 1 : index
    %c0_35 = arith.constant 0 : index
    %59 = vector.load %arg8[%c1, %c1_34, %c0_35] : memref<18x18x8xbf16, #tpu.memory_space<vmem>>, vector<16x16x8xbf16>
    tpu.vector_store %arg8[%c1, %c1_34, %c0_35], %58 {strides = array<i32>} : memref<18x18x8xbf16, #tpu.memory_space<vmem>>, vector<16x16x8xbf16>,
    %60 = arith.truncf %38 : vector<1x16x8xf32> to vector<1x16x8xbf16>
    %c0_36 = arith.constant 0 : index
    %c1_37 = arith.constant 1 : index
    %c0_38 = arith.constant 0 : index
    %61 = vector.load %arg8[%c0_36, %c1_37, %c0_38] : memref<18x18x8xbf16, #tpu.memory_space<vmem>>, vector<1x16x8xbf16>
    tpu.vector_store %arg8[%c0_36, %c1_37, %c0_38], %60 {strides = array<i32>} : memref<18x18x8xbf16, #tpu.memory_space<vmem>>, vector<1x16x8xbf16>,
    %62 = arith.truncf %57 : vector<1x16x8xf32> to vector<1x16x8xbf16>
    %c17_39 = arith.constant 17 : index
    %c1_40 = arith.constant 1 : index
    %c0_41 = arith.constant 0 : index
    %63 = vector.load %arg8[%c17_39, %c1_40, %c0_41] : memref<18x18x8xbf16, #tpu.memory_space<vmem>>, vector<1x16x8xbf16>
    tpu.vector_store %arg8[%c17_39, %c1_40, %c0_41], %62 {strides = array<i32>} : memref<18x18x8xbf16, #tpu.memory_space<vmem>>, vector<1x16x8xbf16>,
    %c0_42 = arith.constant 0 : index
    %c0_43 = arith.constant 0 : index
    %c0_44 = arith.constant 0 : index
    %64 = vector.load %arg8[%c0_42, %c0_43, %c0_44] : memref<18x18x8xbf16, #tpu.memory_space<vmem>>, vector<16x16x8xbf16>
    %c0_45 = arith.constant 0 : index
    %c0_46 = arith.constant 0 : index
    %c0_47 = arith.constant 0 : index
    %65 = vector.load %arg9[%c0_45, %c0_46, %c0_47] : memref<16x16x72xbf16, #tpu.memory_space<vmem>>, vector<16x16x8xbf16>
    tpu.vector_store %arg9[%c0_45, %c0_46, %c0_47], %64 {strides = array<i32>} : memref<16x16x72xbf16, #tpu.memory_space<vmem>>, vector<16x16x8xbf16>,
    %c0_48 = arith.constant 0 : index
    %c1_49 = arith.constant 1 : index
    %c0_50 = arith.constant 0 : index
    %66 = vector.load %arg8[%c0_48, %c1_49, %c0_50] : memref<18x18x8xbf16, #tpu.memory_space<vmem>>, vector<16x16x8xbf16>
    %c0_51 = arith.constant 0 : index
    %c0_52 = arith.constant 0 : index
    %c8 = arith.constant 8 : index
    %67 = vector.load %arg9[%c0_51, %c0_52, %c8] : memref<16x16x72xbf16, #tpu.memory_space<vmem>>, vector<16x16x8xbf16>
    tpu.vector_store %arg9[%c0_51, %c0_52, %c8], %66 {strides = array<i32>} : memref<16x16x72xbf16, #tpu.memory_space<vmem>>, vector<16x16x8xbf16>,
    %c0_53 = arith.constant 0 : index
    %c2 = arith.constant 2 : index
    %c0_54 = arith.constant 0 : index
    %68 = vector.load %arg8[%c0_53, %c2, %c0_54] : memref<18x18x8xbf16, #tpu.memory_space<vmem>>, vector<16x16x8xbf16>
    %c0_55 = arith.constant 0 : index
    %c0_56 = arith.constant 0 : index
    %c16 = arith.constant 16 : index
    %69 = vector.load %arg9[%c0_55, %c0_56, %c16] : memref<16x16x72xbf16, #tpu.memory_space<vmem>>, vector<16x16x8xbf16>
    tpu.vector_store %arg9[%c0_55, %c0_56, %c16], %68 {strides = array<i32>} : memref<16x16x72xbf16, #tpu.memory_space<vmem>>, vector<16x16x8xbf16>,
    %c1_57 = arith.constant 1 : index
    %c0_58 = arith.constant 0 : index
    %c0_59 = arith.constant 0 : index
    %70 = vector.load %arg8[%c1_57, %c0_58, %c0_59] : memref<18x18x8xbf16, #tpu.memory_space<vmem>>, vector<16x16x8xbf16>
    %c0_60 = arith.constant 0 : index
    %c0_61 = arith.constant 0 : index
    %c24 = arith.constant 24 : index
    %71 = vector.load %arg9[%c0_60, %c0_61, %c24] : memref<16x16x72xbf16, #tpu.memory_space<vmem>>, vector<16x16x8xbf16>
    tpu.vector_store %arg9[%c0_60, %c0_61, %c24], %70 {strides = array<i32>} : memref<16x16x72xbf16, #tpu.memory_space<vmem>>, vector<16x16x8xbf16>,
    %c1_62 = arith.constant 1 : index
    %c1_63 = arith.constant 1 : index
    %c0_64 = arith.constant 0 : index
    %72 = vector.load %arg8[%c1_62, %c1_63, %c0_64] : memref<18x18x8xbf16, #tpu.memory_space<vmem>>, vector<16x16x8xbf16>
    %c0_65 = arith.constant 0 : index
    %c0_66 = arith.constant 0 : index
    %c32 = arith.constant 32 : index
    %73 = vector.load %arg9[%c0_65, %c0_66, %c32] : memref<16x16x72xbf16, #tpu.memory_space<vmem>>, vector<16x16x8xbf16>
    tpu.vector_store %arg9[%c0_65, %c0_66, %c32], %72 {strides = array<i32>} : memref<16x16x72xbf16, #tpu.memory_space<vmem>>, vector<16x16x8xbf16>,
    %c1_67 = arith.constant 1 : index
    %c2_68 = arith.constant 2 : index
    %c0_69 = arith.constant 0 : index
    %74 = vector.load %arg8[%c1_67, %c2_68, %c0_69] : memref<18x18x8xbf16, #tpu.memory_space<vmem>>, vector<16x16x8xbf16>
    %c0_70 = arith.constant 0 : index
    %c0_71 = arith.constant 0 : index
    %c40 = arith.constant 40 : index
    %75 = vector.load %arg9[%c0_70, %c0_71, %c40] : memref<16x16x72xbf16, #tpu.memory_space<vmem>>, vector<16x16x8xbf16>
    tpu.vector_store %arg9[%c0_70, %c0_71, %c40], %74 {strides = array<i32>} : memref<16x16x72xbf16, #tpu.memory_space<vmem>>, vector<16x16x8xbf16>,
    %c2_72 = arith.constant 2 : index
    %c0_73 = arith.constant 0 : index
    %c0_74 = arith.constant 0 : index
    %76 = vector.load %arg8[%c2_72, %c0_73, %c0_74] : memref<18x18x8xbf16, #tpu.memory_space<vmem>>, vector<16x16x8xbf16>
    %c0_75 = arith.constant 0 : index
    %c0_76 = arith.constant 0 : index
    %c48 = arith.constant 48 : index
    %77 = vector.load %arg9[%c0_75, %c0_76, %c48] : memref<16x16x72xbf16, #tpu.memory_space<vmem>>, vector<16x16x8xbf16>
    tpu.vector_store %arg9[%c0_75, %c0_76, %c48], %76 {strides = array<i32>} : memref<16x16x72xbf16, #tpu.memory_space<vmem>>, vector<16x16x8xbf16>,
    %c2_77 = arith.constant 2 : index
    %c1_78 = arith.constant 1 : index
    %c0_79 = arith.constant 0 : index
    %78 = vector.load %arg8[%c2_77, %c1_78, %c0_79] : memref<18x18x8xbf16, #tpu.memory_space<vmem>>, vector<16x16x8xbf16>
    %c0_80 = arith.constant 0 : index
    %c0_81 = arith.constant 0 : index
    %c56 = arith.constant 56 : index
    %79 = vector.load %arg9[%c0_80, %c0_81, %c56] : memref<16x16x72xbf16, #tpu.memory_space<vmem>>, vector<16x16x8xbf16>
    tpu.vector_store %arg9[%c0_80, %c0_81, %c56], %78 {strides = array<i32>} : memref<16x16x72xbf16, #tpu.memory_space<vmem>>, vector<16x16x8xbf16>,
    %c2_82 = arith.constant 2 : index
    %c2_83 = arith.constant 2 : index
    %c0_84 = arith.constant 0 : index
    %80 = vector.load %arg8[%c2_82, %c2_83, %c0_84] : memref<18x18x8xbf16, #tpu.memory_space<vmem>>, vector<16x16x8xbf16>
    %c0_85 = arith.constant 0 : index
    %c0_86 = arith.constant 0 : index
    %c64 = arith.constant 64 : index
    %81 = vector.load %arg9[%c0_85, %c0_86, %c64] : memref<16x16x72xbf16, #tpu.memory_space<vmem>>, vector<16x16x8xbf16>
    tpu.vector_store %arg9[%c0_85, %c0_86, %c64], %80 {strides = array<i32>} : memref<16x16x72xbf16, #tpu.memory_space<vmem>>, vector<16x16x8xbf16>,
    %c0_87 = arith.constant 0 : index
    %c0_88 = arith.constant 0 : index
    %c0_89 = arith.constant 0 : index
    %82 = vector.load %arg9[%c0_87, %c0_88, %c0_89] : memref<16x16x72xbf16, #tpu.memory_space<vmem>>, vector<16x16x72xbf16>
    %83 = vector.shape_cast %82 : vector<16x16x72xbf16> to vector<256x72xbf16>
    %c0_90 = arith.constant 0 : index
    %c0_91 = arith.constant 0 : index
    %84 = vector.load %arg3[%c0_90, %c0_91] : memref<72x8xbf16, #tpu.memory_space<vmem>>, vector<72x8xbf16>
    %cst_92 = arith.constant dense<0.000000e+00> : vector<256x8xf32>
    %85 = tpu.matmul %83, %84, %cst_92 {dimension_numbers = #tpu.dot_dimension_numbers<[1], [0], [0], [1], [0, 0, 1, 1], [], []>} : vector<256x72xbf16>, vector<72x8xbf16>, vector<256x8xf32> -> vector<256x8xf32>
    %86 = arith.truncf %85 : vector<256x8xf32> to vector<256x8xbf16>
    %c0_93 = arith.constant 0 : index
    %c0_94 = arith.constant 0 : index
    %c0_95 = arith.constant 0 : index
    %87 = vector.load %arg6[%c0_93, %c0_94, %c0_95] : memref<1x256x8xbf16, #tpu.memory_space<vmem>>, vector<1x256x8xbf16>
    %88 = vector.shape_cast %87 : vector<1x256x8xbf16> to vector<256x8xbf16>
    %89 = vector.shape_cast %86 : vector<256x8xbf16> to vector<1x256x8xbf16>
    tpu.vector_store %arg6[%c0_93, %c0_94, %c0_95], %89 {strides = array<i32>} : memref<1x256x8xbf16, #tpu.memory_space<vmem>>, vector<1x256x8xbf16>,
    %cst_96 = arith.constant dense<0.000000e+00> : vector<8xf32>
    %90 = vector.multi_reduction <add>, %85, %cst_96 [0] : vector<256x8xf32> to vector<8xf32>
    %91 = vector.shape_cast %90 : vector<8xf32> to vector<1x8xf32>
    %92 = arith.mulf %85, %85 : vector<256x8xf32>
    %cst_97 = arith.constant dense<0.000000e+00> : vector<8xf32>
    %93 = vector.multi_reduction <add>, %92, %cst_97 [0] : vector<256x8xf32> to vector<8xf32>
    %94 = vector.shape_cast %93 : vector<8xf32> to vector<1x8xf32>
    %95 = tpu.concatenate %91, %94 in 0 : vector<1x8xf32>, vector<1x8xf32> -> vector<2x8xf32>
    %c0_98 = arith.constant 0 : index
    %c0_99 = arith.constant 0 : index
    %c0_100 = arith.constant 0 : index
    %c0_101 = arith.constant 0 : index
    %96 = vector.load %arg7[%c0_98, %c0_99, %c0_100, %c0_101] : memref<1x1x2x8xf32, #tpu.memory_space<vmem>>, vector<1x1x2x8xf32>
    %97 = vector.shape_cast %96 : vector<1x1x2x8xf32> to vector<2x8xf32>
    %98 = vector.shape_cast %95 : vector<2x8xf32> to vector<1x1x2x8xf32>
    tpu.vector_store %arg7[%c0_98, %c0_99, %c0_100, %c0_101], %98 {strides = array<i32>} : memref<1x1x2x8xf32, #tpu.memory_space<vmem>>, vector<1x1x2x8xf32>,
    return
  }
  func.func @transform_0(%arg0: i32, %arg1: i32) -> (i32, i32, i32, i32) {
    %c0_i32 = arith.constant 0 : i32
    %c0_i32_0 = arith.constant 0 : i32
    %c0_i32_1 = arith.constant 0 : i32
    %c0_i32_2 = arith.constant 0 : i32
    return %arg0, %c0_i32, %c0_i32_0, %c0_i32_1 : i32, i32, i32, i32
  }
  func.func @transform_1(%arg0: i32, %arg1: i32) -> (i32, i32) {
    %c0_i32 = arith.constant 0 : i32
    %c0_i32_0 = arith.constant 0 : i32
    %c0_i32_1 = arith.constant 0 : i32
    return %c0_i32, %c0_i32_0 : i32, i32
  }
  func.func @transform_2(%arg0: i32, %arg1: i32) -> (i32, i32) {
    %c0_i32 = arith.constant 0 : i32
    %c0_i32_0 = arith.constant 0 : i32
    %c0_i32_1 = arith.constant 0 : i32
    return %c0_i32, %c0_i32_0 : i32, i32
  }
  func.func @transform_3(%arg0: i32, %arg1: i32) -> (i32, i32) {
    %c0_i32 = arith.constant 0 : i32
    %c0_i32_0 = arith.constant 0 : i32
    %c0_i32_1 = arith.constant 0 : i32
    return %c0_i32, %c0_i32_0 : i32, i32
  }
  func.func @transform_4(%arg0: i32, %arg1: i32) -> (i32, i32, i32) {
    %c0_i32 = arith.constant 0 : i32
    %c0_i32_0 = arith.constant 0 : i32
    return %arg0, %arg1, %c0_i32 : i32, i32, i32
  }
  func.func @transform_5(%arg0: i32, %arg1: i32) -> (i32, i32, i32, i32) {
    %c0_i32 = arith.constant 0 : i32
    %c0_i32_0 = arith.constant 0 : i32
    %c0_i32_1 = arith.constant 0 : i32
    return %arg0, %arg1, %c0_i32, %c0_i32_0 : i32, i32, i32, i32
  }
}

</mosaic_0001>

<bundles_post_ra>
// kernel: basic_block_forward.5
= control target key start
LH: loop header
LB: loop body
LE: loop exit
PB: predicated region body
PF: predicated region fallthrough
CT: control target
= control target key end

     0   :  { %s468_s21 = smov 0   ;;  %s500_s0 = inlined_call_operand.vmem [shape: bf16[2,16,128], index: 0, kind: input, shape index: {}]   ;;  %s501_s1 = inlined_call_operand.vmem [shape: f32[1,128], index: 1, kind: input, shape index: {}]   ;;  %s502_s2 = inlined_call_operand.vmem [shape: f32[1,128], index: 2, kind: input, shape index: {}]   ;;  %s503_s3 = inlined_call_operand.vmem [shape: bf16[2,16,128], index: 3, kind: input, shape index: {}]   ;;  %s504_s4 = inlined_call_operand.vmem [shape: f32[1,128], index: 4, kind: input, shape index: {}]   ;;  %s505_s5 = inlined_call_operand.vmem [shape: f32[1,128], index: 5, kind: input, shape index: {}]   ;;  %s506_s6 = inlined_call_operand.vmem [shape: f32[2,16,128], index: 6, kind: output, shape index: {}]  }
   0x1 LB: > { %s389_s22 = sadd.s32 4294967295, %s431_s21   ;;  %p393_p0 = scmp.ge.s32.totalorder %s431_s21, 1  ;;  %s431_s21 = sphi %s468_s21, %s16_s21  }
   0x2   : > { %p222_p1 = scmp.lt.s32.totalorder %s431_s21, 3 }
   0x4   : > { %p223_p2 = pnand %p393_p0, %p222_p1 }
   0x5   : > { %p257_p3 = scmp.lt.s32.totalorder (!%p223_p2), %s389_s22, 1  ;;  %v400_v0 = vld [vmem:[%s501_s1] ss:$0 sm:$0xff] (!%p223_p2) }
   0x6   : > { %226 = sbr.rel (%p223_p2) target bundleno = 30 (0x1e), region = 44  ;;  %v402_v3 = vld [vmem:[%s504_s4] ss:$0 sm:$0xff] (!%p223_p2) }
   0x7   : > { %v401_v8 = vld [vmem:[%s502_s2] ss:$0 sm:$0xff] (!%p223_p2) }
   0x8   : > { %v403_v15 = vld [vmem:[%s505_s5] ss:$0 sm:$0xff] (!%p223_p2) }
   0xd   : > { %s508_s22 = smov (!%p257_p3, %s389_s22), 1 }
   0xe   : > { %s406_s23 = sshll.u32 %s508_s22, 3  ;;  %s408_s14 = sshll.u32 %s508_s22, 4 }
   0xf   : > { %s261_s26 = scalar_lea.vmem %s500_s0, %s406_s23  ;;  %s266_s29 = scalar_lea.vmem %s503_s3, %s406_s23 }
  0x10   : > { %v410_v1 = vld [vmem:[%s261_s26] sm:$0xff]   ;;  %s271_s17 = scalar_lea.vmem %s506_s6, %s408_s14 }
  0x11   : > { %v414_v2 = vld [vmem:[%s266_s29] sm:$0xff]   ;;  %v411_v4 = vunpack.c.l.bf16 %v410_v1  ;;  %v412_v5 = vunpack.c.h.bf16 %v410_v1 }
  0x12   : > { %v415_v6 = vunpack.c.l.bf16 %v414_v2  ;;  %v416_v7 = vunpack.c.h.bf16 %v414_v2 }
  0x13   : > { %v283_v9 = vmul.f32 %v411_v4, %v400_v0  ;;  %v284_v11 = vmul.f32 %v412_v5, %v400_v0 }
  0x14   : > { %v305_v10 = vmul.f32 %v415_v6, %v402_v3  ;;  %v306_v12 = vmul.f32 %v416_v7, %v402_v3 }
  0x15   : > { %v292_v13 = vadd.f32 %v401_v8, %v283_v9  ;;  %v293_v14 = vadd.f32 %v401_v8, %v284_v11 }
  0x17   : > { %v307_v16 = vadd.f32 %v305_v10, %v292_v13  ;;  %v308_v17 = vadd.f32 %v306_v12, %v293_v14 }
  0x19   : > { %v316_v18 = vadd.f32 %v403_v15, %v307_v16  ;;  %v317_v19 = vadd.f32 %v403_v15, %v308_v17 }
  0x1b   : > { %v318_v20 = vmax.f32 %v316_v18, 0.0  ;;  %v319_v21 = vmax.f32 %v317_v19, 0.0 }
  0x1d   : > { %320 = vst [vmem:[%s271_s17] sm:$0xff] %v318_v20  ;;  %321 = vst [vmem:[%s271_s17 + $0x8] sm:$0xff] %v319_v21 }
  0x1e PF: > { %s16_s21 = sadd.s32 1, %s431_s21  }
  0x1f   : > { %p13_p4 = scmp.ge.s32.totalorder %s16_s21, 4  }
  0x21   :  { %15 = sbr.rel (!%p13_p4) target bundleno = 1 (0x1), region = 77 }

// kernel: basic_block_forward.3
= control target key start
LH: loop header
LB: loop body
LE: loop exit
PB: predicated region body
PF: predicated region fallthrough
CT: control target
= control target key end

     0   :  { %s6044_s21 = smov 0   ;;  %s6046_s22 = smov 0   ;;  %s7160_s0 = inlined_call_operand.vmem [shape: bf16[2,18,18,4], index: 0, kind: input, shape index: {}]   ;;  %s7161_s1 = inlined_call_operand.vmem [shape: bf16[36,8], index: 1, kind: input, shape index: {}]   ;;  %s7162_s2 = inlined_call_operand.vmem [shape: bf16[4,8], index: 2, kind: input, shape index: {}]   ;;  %s7163_s3 = inlined_call_operand.vmem [shape: bf16[2,256,8], index: 3, kind: output, shape index: {0}]   ;;  %s7164_s4 = inlined_call_operand.vmem [shape: f32[2,1,2,8], index: 4, kind: output, shape index: {1}]   ;;  %s7165_s5 = inlined_call_operand.vmem [shape: bf16[2,256,8], index: 5, kind: output, shape index: {2}]   ;;  %s7166_s6 = inlined_call_operand.vmem [shape: f32[2,1,2,8], index: 6, kind: output, shape index: {3}]  }
   0x1   :  { %s6048_s23 = smov 0  }
   0x2 LB: > { %s29_s24 = sadd.s32 1, %s5995_s22  ;;  %p4856_p0 = scmp.ge.s32.totalorder %s5999_s23, 1  ;;  %s5999_s23 = sphi %s6048_s23, %s17_s23   ;;  %s5995_s22 = sphi %s6046_s22, %s7170_s22   ;;  %s5991_s21 = sphi %s6044_s21, %s7169_s21  }
   0x3   : > { %p31_p1 = scmp.ge.s32.totalorder %s29_s24, 2  ;;  %p239_p2 = scmp.lt.s32.totalorder %s5999_s23, 3 }
   0x5   : > { %s7172_s24 = smov (%p31_p1, %s29_s24), 0  ;;  %p240_p3 = pnand %p4856_p0, %p239_p2 }
   0x6   : > { %p296_p4 = scmp.lt.s32.totalorder (!%p240_p3), %s5991_s21, 1  ;;  %vm1095_vm0 = vcmask (!%p240_p3), 1046528   ;;  %s6001_s29 = smov (!%p240_p3), 12   ;;  %vm661_vm1 = vsmask.f32 (!%p240_p3), 7424  ;;  %vm468_vm2 = vcmask (!%p240_p3), 31744  }
   0x7   : > { %243 = sbr.rel (%p240_p3) target bundleno = 635 (0x27b), region = 32  ;;  %s6002_s30 = smov (!%p240_p3), 20   ;;  %vm902_vm3 = vcmask (!%p240_p3), 64544   ;;  %vm1192_vm4 = vcmask (!%p240_p3), 97344   ;;  %vm1373_vm5 = vcmask (!%p240_p3), 130144   ;;  %vm1806_vm6 = vcmask (!%p240_p3), 162944  }
   0x8   : > { %s6003_s7 = smov (!%p240_p3), 8   ;;  %s6004_s8 = smov (!%p240_p3), 4   ;;  %vm2095_vm7 = vcmask (!%p240_p3), 195744   ;;  %vm2276_vm8 = vcmask (!%p240_p3), 228544   ;;  %vm2709_vm9 = vcmask (!%p240_p3), 261344   ;;  %vm2998_vm10 = vcmask (!%p240_p3), 294144  }
   0x9   : > { %s6005_s9 = smov (!%p240_p3), 16   ;;  %s6006_s10 = smov (!%p240_p3), 24   ;;  %vm3100_vm11 = vcmask (!%p240_p3), 1041408   ;;  %vm3051_vm12 = vcmask (!%p240_p3), 293888   ;;  %vm3649_vm13 = vsmask.f32 (!%p240_p3), 3328 }
   0xa   : > { %s6007_s11 = smov (!%p240_p3), 28   ;;  %s6008_s12 = smov (!%p240_p3), 32   ;;  %vm3650_vm14 = vsmask.f32 (!%p240_p3), 7440 }
   0xb   : > { %vm6666_vm15 = vmor (!%p240_p3), %vm3649_vm13, %vm3650_vm14 }
   0xe   : > { %s7174_s21 = smov (!%p296_p4, %s5991_s21), 1 }
   0xf   : > { %s5701_s25 = smul.u32 216, %s7174_s21 }
  0x11   : > { %s6068_s28 = scalar_lea.vmem %s7160_s0, %s5701_s25  ;;  %s5525_s25 = sshll.u32 %s7174_s21, 7 }
  0x12   : > { %v5734_v0 = vld [vmem:[%s6068_s28 + $0x18] sm:$0xff]   ;;  %v5735_v1 = vld [vmem:[%s6068_s28 + $0xc] sm:$0xff]   ;;  %v5737_v3 = vld [vmem:[%s6068_s28 + $0x14] ss:$0 sps:$4 sm:$0x11]  }
  0x13   : > { %1327 = vrot.lane.b32.xlu1 %v5734_v0, %s6001_s29  ;;  %1325 = vrot.lane.b32.xlu0 %v5735_v1, %s6001_s29  ;;  %v5736_v2 = vld [vmem:[%s6068_s28 + $0xc] sm:$0xfe]   ;;  %v5742_v4 = vld [vmem:[%s6068_s28] sm:$0xff]   ;;  %v2000_v6 = vrot.slane %v5737_v3, 1 }
  0x14   : > { %v1999_v5 = vrot.slane %v5736_v2, 1  ;;  %v5738_v7 = vld [vmem:[%s6068_s28] sm:$0xfe]   ;;  %v5739_v8 = vld [vmem:[%s6068_s28 + $0x8] ss:$0 sps:$4 sm:$0x11]  }
  0x15   : > { %v663_v9 = vshrl.u32 %v5742_v4, 16  ;;  %v1096_v11 = vrot.slane %v5738_v7, 1  ;;  %v5740_v12 = vld [vmem:[%s6068_s28 + $0xc] sm:$0xfe]   ;;  %v665_v13 = vshll.u32 %v5742_v4, 16  ;;  %v1097_v14 = vrot.slane %v5739_v8, 1 }
  0x16   : > { %v2001_v10 = vsel %vm1095_vm0, %v1999_v5, %v2000_v6  ;;  %v5741_v15 = vld [vmem:[%s6068_s28 + $0x14] ss:$0 sps:$4 sm:$0x11]   ;;  %v1099_v16 = vrot.slane %v5740_v12, 1  ;;  %v5744_v21 = vld [vmem:[%s6068_s28 + $0x18] sm:$0xfe]  }
  0x17   : > { %2047 = vrot.lane.b32.xlu0 %v2001_v10, %s6002_s30  ;;  %v667_v17 = vrot.slane %v665_v13, 1  ;;  %v1098_v18 = vsel %vm1095_vm0, %v1096_v11, %v1097_v14  ;;  %v1100_v19 = vrot.slane %v5741_v15, 1  ;;  %v5743_v20 = vld [vmem:[%s6068_s28 + $0x8] ss:$0 sps:$4 sm:$0x11]   ;;  %v2002_v26 = vrot.slane %v5744_v21, 1 }
  0x18   : > { %1144 = vrot.lane.b32.xlu1 %v1098_v18, %s6003_s7  ;;  %v670_v24 = vshll.u32 %v5743_v20, 16  ;;  %v5745_v25 = vld [vmem:[%s6068_s28 + $0x20] ss:$0 sps:$4 sm:$0x11]   ;;  %v5746_v27 = vld [vmem:[%s6068_s28 + $0xc] sm:$0xff]   ;;  %v5748_v31 = vld [vmem:[%s6068_s28 + $0x18] sm:$0xff]  }
  0x19   : > { %v1101_v22 = vsel %vm1095_vm0, %v1099_v16, %v1100_v19  ;;  %v668_v23 = vor.u32 %v667_v17, %v663_v9  ;;  %v2003_v29 = vrot.slane %v5745_v25, 1  ;;  %v5747_v30 = vld [vmem:[%s6068_s28 + $0x14] ss:$0 sps:$4 sm:$0x11]   ;;  %v675_v32 = vshrl.u32 %v5746_v27, 16  ;;  %v5750_v41 = vld [vmem:[%s6068_s28 + $0xc] sm:$0xff]  }
  0x1a   : > { %v672_v28 = vrot.slane %v670_v24, 1  ;;  %v677_v33 = vshll.u32 %v5746_v27, 16  ;;  %v682_v36 = vshll.u32 %v5747_v30, 16  ;;  %v5749_v37 = vld [vmem:[%s6068_s28 + $0x20] ss:$0 sps:$4 sm:$0x11]  }
  0x1b   : > { %v2004_v35 = vsel %vm1095_vm0, %v2002_v26, %v2003_v29  ;;  %v1579_v39 = vshrl.u32 %v5748_v31, 16  ;;  %v1581_v40 = vshll.u32 %v5748_v31, 16  ;;  %v1586_v43 = vshll.u32 %v5749_v37, 16  ;;  %v5751_v46 = vld [vmem:[%s6068_s28 + $0x14] ss:$0 sps:$4 sm:$0x11]  }
  0x1c   : > { %1146 = vrot.lane.b32.xlu1 %v1101_v22, %s6003_s7  ;;  %v673_v34 = vsel %vm661_vm1, %v668_v23, %v672_v28  ;;  %v679_v38 = vrot.slane %v677_v33, 1  ;;  %v684_v42 = vrot.slane %v682_v36, 1  ;;  %v1567_v47 = vshrl.u32 %v5750_v41, 16  ;;  %v5753_v54 = vld [vmem:[%s6068_s28 + $0x24] sm:$0xff]   ;;  %v5754_v58 = vld [vmem:[%s6068_s28 + $0x18] sm:$0xff]  }
  0x1d   : > { %854 = vrot.lane.b32.xlu0 %v673_v34, %s6004_s8  ;;  %v1583_v45 = vrot.slane %v1581_v40, 1  ;;  %v1569_v48 = vshll.u32 %v5750_v41, 16  ;;  %v1588_v49 = vrot.slane %v1586_v43, 1  ;;  %v1574_v53 = vshll.u32 %v5751_v46, 16  ;;  %v5752_v59 = vld [vmem:[%s6068_s28 + $0x18] sm:$0xff]   ;;  %v5756_v61 = vld [vmem:[%s6068_s28 + $0x24] sm:$0xff]  }
  0x1e   : > { %v680_v44 = vor.u32 %v679_v38, %v675_v32  ;;  %v5755_v60 = vld [vmem:[%s6068_s28 + $0x20] ss:$0 sps:$4 sm:$0x11]   ;;  %v2470_v63 = vshrl.u32 %v5754_v58, 16  ;;  %v2472_v0 = vshll.u32 %v5754_v58, 16  ;;  %v2482_v3 = vshrl.u32 %v5756_v61, 16 }
  0x1f   : > { %v1584_v51 = vor.u32 %v1583_v45, %v1579_v39  ;;  %v1571_v52 = vrot.slane %v1569_v48, 1  ;;  %v1576_v57 = vrot.slane %v1574_v53, 1  ;;  %v2477_v1 = vshll.u32 %v5755_v60, 16  ;;  %v5757_v2 = vld [vmem:[%s6068_s28 + $0x2c] ss:$0 sps:$4 sm:$0x11]  }
  0x20   : > { %2049 = vrot.lane.b32.xlu1 %v2004_v35, %s6002_s30  ;;  %v685_v50 = vsel %vm661_vm1, %v680_v44, %v684_v42  ;;  %v2484_v4 = vshll.u32 %v5756_v61, 16  ;;  %v2474_v5 = vrot.slane %v2472_v0, 1  ;;  %v5760_v6 = vld [vmem:[%s6068_s28 + $0x18] sm:$0xff]   ;;  %v2489_v9 = vshll.u32 %v5757_v2, 16  ;;  %v5764_v11 = vld [vmem:[%s6068_s28 + $0x24] sm:$0xff]   ;;  %v5771_v58 = vld [vmem:[%s6068_s28 + $0x30] sm:$0xff]  }
  0x21   : > { %856 = vrot.lane.b32.xlu0 %v685_v50, %s6004_s8  ;;  %v1589_v55 = vsel %vm661_vm1, %v1584_v51, %v1588_v49  ;;  %v1572_v56 = vor.u32 %v1571_v52, %v1567_v47  ;;  %v2479_v7 = vrot.slane %v2477_v1, 1  ;;  %v5758_v10 = vld [vmem:[%s6068_s28 + $0x18] sm:$0xfe]   ;;  %v5759_v13 = vld [vmem:[%s6068_s28 + $0x20] ss:$0 sps:$4 sm:$0x11]  }
  0x22   : > { %v2486_v8 = vrot.slane %v2484_v4, 1  ;;  %v2475_v12 = vor.u32 %v2474_v5, %v2470_v63  ;;  %v687_v14 = vshrl.u32 %v5760_v6, 16  ;;  %v2491_v16 = vrot.slane %v2489_v9, 1  ;;  %v5761_v20 = vld [vmem:[%s6068_s28 + $0x20] ss:$0 sps:$4 sm:$0x11]  }
  0x23   : > { %v1577_v62 = vsel %vm661_vm1, %v1572_v56, %v1576_v57  ;;  %v2902_v17 = vrot.slane %v5758_v10, 1  ;;  %v2903_v19 = vrot.slane %v5759_v13, 1  ;;  %v689_v21 = vshll.u32 %v5760_v6, 16  ;;  %v5762_v26 = vld [vmem:[%s6068_s28 + $0x24] sm:$0xfe]   ;;  %v5774_v50 = vld [vmem:[%s6068_s28 + $0x30] sm:$0xff]  }
  0x24   : > { %1760 = vrot.lane.b32.xlu1 %v1589_v55, %s6005_s9  ;;  %v2487_v15 = vor.u32 %v2486_v8, %v2482_v3  ;;  %v2480_v18 = vsel %vm661_vm1, %v2475_v12, %v2479_v7  ;;  %v699_v22 = vshrl.u32 %v5764_v11, 16  ;;  %v694_v25 = vshll.u32 %v5761_v20, 16  ;;  %v5763_v27 = vld [vmem:[%s6068_s28 + $0x2c] ss:$0 sps:$4 sm:$0x11]   ;;  %v5772_v47 = vld [vmem:[%s6068_s28 + $0x24] sm:$0xff]  }
  0x25   : > { %1758 = vrot.lane.b32.xlu0 %v1577_v62, %s6005_s9  ;;  %v691_v24 = vrot.slane %v689_v21, 1  ;;  %v701_v28 = vshll.u32 %v5764_v11, 16  ;;  %v2904_v29 = vsel %vm1095_vm0, %v2902_v17, %v2903_v19  ;;  %v2905_v32 = vrot.slane %v5762_v26, 1  ;;  %v5765_v34 = vld [vmem:[%s6068_s28 + $0x2c] ss:$0 sps:$4 sm:$0x11]  }
  0x26   : > { %v2492_v23 = vsel %vm661_vm1, %v2487_v15, %v2491_v16  ;;  %v696_v31 = vrot.slane %v694_v25, 1  ;;  %v2906_v33 = vrot.slane %v5763_v27, 1  ;;  %v5766_v37 = vld [vmem:[%s6068_s28 + $0x18] sm:$0xfe]   ;;  %v706_v39 = vshll.u32 %v5765_v34, 16  ;;  %v5782_v16 = vld [vmem:[%s6068_s28 + $0x30] sm:$0xff]  }
  0x27   : > { %v692_v30 = vor.u32 %v691_v24, %v687_v14  ;;  %v703_v35 = vrot.slane %v701_v28, 1  ;;  %v5767_v40 = vld [vmem:[%s6068_s28 + $0x20] ss:$0 sps:$4 sm:$0x11]   ;;  %v1102_v42 = vrot.slane %v5766_v37, 1  ;;  %v1591_v53 = vshrl.u32 %v5772_v47, 16 }
  0x28   : > { %2230 = vrot.lane.b32.xlu1 %v5753_v54, %s6006_s10  ;;  %v2907_v41 = vsel %vm1095_vm0, %v2905_v32, %v2906_v33  ;;  %v708_v43 = vrot.slane %v706_v39, 1  ;;  %v1103_v44 = vrot.slane %v5767_v40, 1  ;;  %v5768_v45 = vld [vmem:[%s6068_s28 + $0x24] sm:$0xfe]   ;;  %v1593_v56 = vshll.u32 %v5772_v47, 16  ;;  %v5784_v21 = vld [vmem:[%s6068_s28 + $0x3c] sm:$0xff]  }
  0x29   : > { %2228 = vrot.lane.b32.xlu0 %v5752_v59, %s6006_s10  ;;  %v697_v36 = vsel %vm661_vm1, %v692_v30, %v696_v31  ;;  %v704_v38 = vor.u32 %v703_v35, %v699_v22  ;;  %v5769_v46 = vld [vmem:[%s6068_s28 + $0x2c] ss:$0 sps:$4 sm:$0x11]   ;;  %v1105_v49 = vrot.slane %v5768_v45, 1  ;;  %v5770_v54 = vld [vmem:[%s6068_s28 + $0x24] sm:$0xff]   ;;  %v1603_v62 = vshrl.u32 %v5774_v50, 16 }
  0x2a   : > { %v1104_v51 = vsel %vm1095_vm0, %v1102_v42, %v1103_v44  ;;  %v1106_v52 = vrot.slane %v5769_v46, 1  ;;  %v5773_v55 = vld [vmem:[%s6068_s28 + $0x2c] ss:$0 sps:$4 sm:$0x11]   ;;  %v1595_v59 = vrot.slane %v1593_v56, 1  ;;  %v1605_v63 = vshll.u32 %v5774_v50, 16 }
  0x2b   : > { %v709_v48 = vsel %vm661_vm1, %v704_v38, %v708_v43  ;;  %v1598_v60 = vshll.u32 %v5773_v55, 16  ;;  %v5775_v61 = vld [vmem:[%s6068_s28 + $0x38] ss:$0 sps:$4 sm:$0x11]   ;;  %v5776_v3 = vld [vmem:[%s6068_s28 + $0x24] sm:$0xfe]  }
  0x2c   : > { %2663 = vrot.lane.b32.xlu1 %v2492_v23, %s6007_s11  ;;  %v1107_v57 = vsel %vm1095_vm0, %v1105_v49, %v1106_v52  ;;  %v1596_v0 = vor.u32 %v1595_v59, %v1591_v53  ;;  %v1610_v2 = vshll.u32 %v5775_v61, 16  ;;  %v1607_v4 = vrot.slane %v1605_v63, 1  ;;  %v5777_v5 = vld [vmem:[%s6068_s28 + $0x2c] ss:$0 sps:$4 sm:$0x11]   ;;  %v5780_v23 = vld [vmem:[%s6068_s28 + $0x30] sm:$0xff]  }
  0x2d   : > { %2661 = vrot.lane.b32.xlu0 %v2480_v18, %s6007_s11  ;;  %v1600_v1 = vrot.slane %v1598_v60, 1  ;;  %v2005_v7 = vrot.slane %v5776_v3, 1  ;;  %v2006_v10 = vrot.slane %v5777_v5, 1  ;;  %v5778_v11 = vld [vmem:[%s6068_s28 + $0x30] sm:$0xfe]   ;;  %v2494_v19 = vshrl.u32 %v5782_v16, 16 }
  0x2e   : > { %v1612_v6 = vrot.slane %v1610_v2, 1  ;;  %v1608_v9 = vor.u32 %v1607_v4, %v1603_v62  ;;  %v5779_v12 = vld [vmem:[%s6068_s28 + $0x38] ss:$0 sps:$4 sm:$0x11]   ;;  %v2008_v14 = vrot.slane %v5778_v11, 1  ;;  %v2496_v20 = vshll.u32 %v5782_v16, 16 }
  0x2f   : > { %v1601_v8 = vsel %vm661_vm1, %v1596_v0, %v1600_v1  ;;  %v2009_v15 = vrot.slane %v5779_v12, 1  ;;  %v2007_v17 = vsel %vm1095_vm0, %v2005_v7, %v2006_v10  ;;  %v5783_v18 = vld [vmem:[%s6068_s28 + $0x38] ss:$0 sps:$4 sm:$0x11]   ;;  %v5781_v24 = vld [vmem:[%s6068_s28 + $0x3c] sm:$0xff]   ;;  %v2506_v28 = vshrl.u32 %v5784_v21, 16 }
  0x30   : > { %858 = vrot.lane.b32.xlu1 %v697_v36, %s6004_s8  ;;  %v1613_v13 = vsel %vm661_vm1, %v1608_v9, %v1612_v6  ;;  %v2498_v25 = vrot.slane %v2496_v20, 1  ;;  %v2501_v26 = vshll.u32 %v5783_v18, 16  ;;  %v5785_v27 = vld [vmem:[%s6068_s28 + $0x44] ss:$0 sps:$4 sm:$0x11]   ;;  %v5788_v30 = vld [vmem:[%s6068_s28 + $0x30] sm:$0xff]  }
  0x31   : > { %2950 = vrot.lane.b32.xlu0 %v2904_v29, %s6008_s12  ;;  %v2010_v22 = vsel %vm1095_vm0, %v2008_v14, %v2009_v15  ;;  %v2508_v29 = vshll.u32 %v5784_v21, 16  ;;  %v2513_v33 = vshll.u32 %v5785_v27, 16  ;;  %v5786_v34 = vld [vmem:[%s6068_s28 + $0x30] sm:$0xfe]   ;;  %v711_v42 = vshrl.u32 %v5788_v30, 16  ;;  %v5792_v50 = vld [vmem:[%s6068_s28 + $0x3c] sm:$0xff]  }
  0x32   : > { %v2499_v31 = vor.u32 %v2498_v25, %v2494_v19  ;;  %v2503_v32 = vrot.slane %v2501_v26, 1  ;;  %v5787_v36 = vld [vmem:[%s6068_s28 + $0x38] ss:$0 sps:$4 sm:$0x11]   ;;  %v2908_v38 = vrot.slane %v5786_v34, 1  ;;  %v713_v43 = vshll.u32 %v5788_v30, 16 }
  0x33   : > { %v2510_v35 = vrot.slane %v2508_v29, 1  ;;  %v2515_v37 = vrot.slane %v2513_v33, 1  ;;  %v2909_v40 = vrot.slane %v5787_v36, 1  ;;  %v5791_v49 = vld [vmem:[%s6068_s28 + $0x44] ss:$0 sps:$4 sm:$0x11]  }
  0x34   : > { %860 = vrot.lane.b32.xlu1 %v709_v48, %s6004_s8  ;;  %v2504_v44 = vsel %vm661_vm1, %v2499_v31, %v2503_v32  ;;  %v715_v46 = vrot.slane %v713_v43, 1  ;;  %v5790_v48 = vld [vmem:[%s6068_s28 + $0x3c] sm:$0xfe]   ;;  %v2912_v55 = vrot.slane %v5791_v49, 1  ;;  %v5794_v60 = vld [vmem:[%s6068_s28 + $0x30] sm:$0xfe]  }
  0x35   : > { %2952 = vrot.lane.b32.xlu0 %v2907_v41, %s6008_s12  ;;  %v2511_v39 = vor.u32 %v2510_v35, %v2506_v28  ;;  %v5789_v41 = vld [vmem:[%s6068_s28 + $0x38] ss:$0 sps:$4 sm:$0x11]   ;;  %v2911_v53 = vrot.slane %v5790_v48, 1  ;;  %v1108_v0 = vrot.slane %v5794_v60, 1  ;;  %v5800_v7 = vld [vmem:[%s6068_s28 + $0x3c] sm:$0xff]  }
  0x36   : > { %v718_v47 = vshll.u32 %v5789_v41, 16  ;;  %v5793_v56 = vld [vmem:[%s6068_s28 + $0x44] ss:$0 sps:$4 sm:$0x11]   ;;  %v5796_v5 = vld [vmem:[%s6068_s28 + $0x3c] sm:$0xfe]  }
  0x37   : > { %v2516_v45 = vsel %vm661_vm1, %v2511_v39, %v2515_v37  ;;  %v730_v62 = vshll.u32 %v5793_v56, 16  ;;  %v5795_v63 = vld [vmem:[%s6068_s28 + $0x38] ss:$0 sps:$4 sm:$0x11]   ;;  %v2913_v1 = vsel %vm1095_vm0, %v2911_v53, %v2912_v55  ;;  %v1111_v9 = vrot.slane %v5796_v5, 1  ;;  %v5802_v10 = vld [vmem:[%s6068_s28 + $0x48] sm:$0xff]  }
  0x38   : > { %1150 = vrot.lane.b32.xlu1 %v1107_v57, %s6003_s7  ;;  %v720_v52 = vrot.slane %v718_v47, 1  ;;  %v723_v57 = vshrl.u32 %v5792_v50, 16  ;;  %v1109_v4 = vrot.slane %v5795_v63, 1  ;;  %v5797_v6 = vld [vmem:[%s6068_s28 + $0x44] ss:$0 sps:$4 sm:$0x11]  }
  0x39   : > { %1148 = vrot.lane.b32.xlu0 %v1104_v51, %s6003_s7  ;;  %v716_v51 = vor.u32 %v715_v46, %v711_v42  ;;  %v732_v3 = vrot.slane %v730_v62, 1  ;;  %v1112_v11 = vrot.slane %v5797_v6, 1  ;;  %v1615_v12 = vshrl.u32 %v5800_v7, 16  ;;  %v5798_v19 = vld [vmem:[%s6068_s28 + $0x3c] sm:$0xff]   ;;  %v5799_v21 = vld [vmem:[%s6068_s28 + $0x48] sm:$0xff]   ;;  %v5812_v48 = vld [vmem:[%s6068_s28 + $0x54] sm:$0xff]  }
  0x3a   : > { %v1617_v14 = vshll.u32 %v5800_v7, 16  ;;  %v1627_v15 = vshrl.u32 %v5802_v10, 16  ;;  %v1629_v18 = vshll.u32 %v5802_v10, 16  ;;  %v5804_v29 = vld [vmem:[%s6068_s28 + $0x3c] sm:$0xfe]   ;;  %v5810_v31 = vld [vmem:[%s6068_s28 + $0x48] sm:$0xff]  }
  0x3b   : > { %v721_v59 = vsel %vm661_vm1, %v716_v51, %v720_v52  ;;  %v1113_v16 = vsel %vm1095_vm0, %v1111_v9, %v1112_v11  ;;  %v5805_v30 = vld [vmem:[%s6068_s28 + $0x44] ss:$0 sps:$4 sm:$0x11]   ;;  %v2011_v33 = vrot.slane %v5804_v29, 1  ;;  %v5806_v34 = vld [vmem:[%s6068_s28 + $0x48] sm:$0xfe]  }
  0x3c   : > { %1331 = vrot.lane.b32.xlu1 %v5771_v58, %s6001_s29  ;;  %v725_v58 = vshll.u32 %v5792_v50, 16  ;;  %v1619_v20 = vrot.slane %v1617_v14, 1  ;;  %v2012_v36 = vrot.slane %v5805_v30, 1  ;;  %v5807_v37 = vld [vmem:[%s6068_s28 + $0x50] ss:$0 sps:$4 sm:$0x11]  }
  0x3d   : > { %1329 = vrot.lane.b32.xlu0 %v5770_v54, %s6001_s29  ;;  %v2910_v54 = vsel %vm1095_vm0, %v2908_v38, %v2909_v40  ;;  %v2014_v39 = vrot.slane %v5806_v34, 1  ;;  %v2518_v40 = vshrl.u32 %v5810_v31, 16  ;;  %v2015_v41 = vrot.slane %v5807_v37, 1  ;;  %v5808_v47 = vld [vmem:[%s6068_s28 + $0x48] sm:$0xff]   ;;  %v5809_v50 = vld [vmem:[%s6068_s28 + $0x54] sm:$0xff]  }
  0x3e   : > { %v727_v61 = vrot.slane %v725_v58, 1  ;;  %v1620_v25 = vor.u32 %v1619_v20, %v1615_v12  ;;  %v2520_v42 = vshll.u32 %v5810_v31, 16  ;;  %v2013_v43 = vsel %vm1095_vm0, %v2011_v33, %v2012_v36  ;;  %v5813_v49 = vld [vmem:[%s6068_s28 + $0x5c] ss:$0 sps:$4 sm:$0x11]   ;;  %v5816_v55 = vld [vmem:[%s6068_s28 + $0x48] sm:$0xff]  }
  0x3f   : > { %v2016_v46 = vsel %vm1095_vm0, %v2014_v39, %v2015_v41  ;;  %v2530_v52 = vshrl.u32 %v5812_v48, 16  ;;  %v2532_v53 = vshll.u32 %v5812_v48, 16  ;;  %v5814_v58 = vld [vmem:[%s6068_s28 + $0x48] sm:$0xfe]   ;;  %v5818_v6 = vld [vmem:[%s6068_s28 + $0x54] sm:$0xfe]  }
  0x40   : > { %1764 = vrot.lane.b32.xlu1 %v1613_v13, %s6005_s9  ;;  %v728_v2 = vor.u32 %v727_v61, %v723_v57  ;;  %v1110_v13 = vsel %vm1095_vm0, %v1108_v0, %v1109_v4  ;;  %v2914_v62 = vrot.slane %v5814_v58, 1  ;;  %v735_v0 = vshrl.u32 %v5816_v55, 16  ;;  %v5819_v10 = vld [vmem:[%s6068_s28 + $0x5c] ss:$0 sps:$4 sm:$0x11]   ;;  %v5828_v31 = vld [vmem:[%s6068_s28 + $0x54] sm:$0xff]  }
  0x41   : > { %1762 = vrot.lane.b32.xlu0 %v1601_v8, %s6005_s9  ;;  %v2534_v60 = vrot.slane %v2532_v53, 1  ;;  %v737_v4 = vshll.u32 %v5816_v55, 16  ;;  %v2917_v12 = vrot.slane %v5818_v6, 1  ;;  %v5825_v30 = vld [vmem:[%s6068_s28 + $0x5c] ss:$0 sps:$4 sm:$0x11]  }
  0x42   : > { %v733_v8 = vsel %vm661_vm1, %v728_v2, %v732_v3  ;;  %v5817_v3 = vld [vmem:[%s6068_s28 + $0x50] ss:$0 sps:$4 sm:$0x11]   ;;  %v5830_v33 = vld [vmem:[%s6068_s28 + $0x60] sm:$0xff]   ;;  %v1639_v36 = vshrl.u32 %v5828_v31, 16  ;;  %v1641_v39 = vshll.u32 %v5828_v31, 16 }
  0x43   : > { %v2535_v2 = vor.u32 %v2534_v60, %v2530_v52  ;;  %v742_v9 = vshll.u32 %v5817_v3, 16  ;;  %v1651_v41 = vshrl.u32 %v5830_v33, 16  ;;  %v5832_v52 = vld [vmem:[%s6068_s28 + $0x54] sm:$0xfe]   ;;  %v5838_v55 = vld [vmem:[%s6068_s28 + $0x60] sm:$0xff]   ;;  %v5840_v3 = vld [vmem:[%s6068_s28 + $0x6c] sm:$0xff]  }
  0x44   : > { %2053 = vrot.lane.b32.xlu1 %v2010_v22, %s6002_s30  ;;  %v5835_v60 = vld [vmem:[%s6068_s28 + $0x68] ss:$0 sps:$4 sm:$0x11]  }
  0x45   : > { %2051 = vrot.lane.b32.xlu0 %v2007_v17, %s6002_s30  ;;  %v5801_v17 = vld [vmem:[%s6068_s28 + $0x44] ss:$0 sps:$4 sm:$0x11]   ;;  %v5846_v31 = vld [vmem:[%s6068_s28 + $0x68] ss:$0 sps:$4 sm:$0x11]  }
  0x46   : > { %v1622_v22 = vshll.u32 %v5801_v17, 16 }
  0x48   : > { %2234 = vrot.lane.b32.xlu1 %v5781_v24, %s6006_s10  ;;  %v1631_v24 = vrot.slane %v1629_v18, 1  ;;  %v1624_v26 = vrot.slane %v1622_v22, 1  ;;  %v5821_v18 = vld [vmem:[%s6068_s28 + $0x5c] ss:$0 sps:$4 sm:$0x11]  }
  0x49   : > { %2232 = vrot.lane.b32.xlu0 %v5780_v23, %s6006_s10  ;;  %v5803_v23 = vld [vmem:[%s6068_s28 + $0x50] ss:$0 sps:$4 sm:$0x11]  }
  0x4a   : > { %v1632_v27 = vor.u32 %v1631_v24, %v1627_v15  ;;  %v1634_v28 = vshll.u32 %v5803_v23, 16  ;;  %v1625_v35 = vsel %vm661_vm1, %v1620_v25, %v1624_v26  ;;  %v744_v15 = vrot.slane %v742_v9, 1  ;;  %v5823_v24 = vld [vmem:[%s6068_s28 + $0x50] ss:$0 sps:$4 sm:$0x11]  }
  0x4b   : > { %v754_v23 = vshll.u32 %v5821_v18, 16  ;;  %v5824_v26 = vld [vmem:[%s6068_s28 + $0x54] sm:$0xfe]   ;;  %v1115_v29 = vrot.slane %v5823_v24, 1 }
  0x4c   : > { %2667 = vrot.lane.b32.xlu1 %v2516_v45, %s6007_s11  ;;  %v1636_v32 = vrot.slane %v1634_v28, 1  ;;  %v2522_v45 = vrot.slane %v2520_v42, 1  ;;  %v1653_v42 = vshll.u32 %v5830_v33, 16  ;;  %v5847_v33 = vld [vmem:[%s6068_s28 + $0xc] sm:$0xff]  }
  0x4d   : > { %2665 = vrot.lane.b32.xlu0 %v2504_v44, %s6007_s11  ;;  %v5811_v44 = vld [vmem:[%s6068_s28 + $0x50] ss:$0 sps:$4 sm:$0x11]   ;;  %v756_v28 = vrot.slane %v754_v23, 1  ;;  %470 = vst.msk [vmem:[#allocation2 + $0x8] sm:$0xff] %vm468_vm2, %v5847_v33 }
  0x4e   : > { %v1637_v38 = vsel %vm661_vm1, %v1632_v27, %v1636_v32  ;;  %v2525_v51 = vshll.u32 %v5811_v44, 16  ;;  %v2523_v56 = vor.u32 %v2522_v45, %v2518_v40  ;;  %v1117_v32 = vrot.slane %v5824_v26, 1 }
  0x4f   : > { %v1643_v44 = vrot.slane %v1641_v39, 1  ;;  %v1655_v48 = vrot.slane %v1653_v42, 1  ;;  %v5848_v39 = vld [vmem:[%s6068_s28 + $0x6c] sm:$0xfe]  }
  0x50   : > { %862 = vrot.lane.b32.xlu1 %v721_v59, %s6004_s8  ;;  %v2527_v57 = vrot.slane %v2525_v51, 1  ;;  %v5815_v59 = vld [vmem:[%s6068_s28 + $0x50] ss:$0 sps:$4 sm:$0x11]  }
  0x51   : > { %2954 = vrot.lane.b32.xlu0 %v2910_v54, %s6008_s12  ;;  %v2537_v54 = vshll.u32 %v5813_v49, 16  ;;  %v2915_v63 = vrot.slane %v5815_v59, 1  ;;  %v1644_v49 = vor.u32 %v1643_v44, %v1639_v36  ;;  %v1656_v53 = vor.u32 %v1655_v48, %v1651_v41  ;;  %v5834_v59 = vld [vmem:[%s6068_s28 + $0x60] sm:$0xfe]   ;;  %v5850_v41 = vld [vmem:[%s6068_s28 + $0x6c] sm:$0xff]  }
  0x52   : > { %v2528_v5 = vsel %vm661_vm1, %v2523_v56, %v2527_v57  ;;  %v2017_v57 = vrot.slane %v5832_v52, 1  ;;  %v771_v48 = vshrl.u32 %v5850_v41, 16 }
  0x53   : > { %v2539_v61 = vrot.slane %v2537_v54, 1  ;;  %v2916_v17 = vsel %vm1095_vm0, %v2914_v62, %v2915_v63  ;;  %v5833_v54 = vld [vmem:[%s6068_s28 + $0x5c] ss:$0 sps:$4 sm:$0x11]   ;;  %v2020_v63 = vrot.slane %v5834_v59, 1 }
  0x54   : > { %864 = vrot.lane.b32.xlu1 %v733_v8, %s6004_s8  ;;  %v739_v8 = vrot.slane %v737_v4, 1  ;;  %v2018_v58 = vrot.slane %v5833_v54, 1 }
  0x55   : > { %2956 = vrot.lane.b32.xlu0 %v2913_v1, %s6008_s12  ;;  %v5820_v1 = vld [vmem:[%s6068_s28 + $0x54] sm:$0xff]   ;;  %v2540_v7 = vsel %vm661_vm1, %v2535_v2, %v2539_v61  ;;  %v5839_v2 = vld [vmem:[%s6068_s28 + $0x68] ss:$0 sps:$4 sm:$0x11]  }
  0x56   : > { %v747_v11 = vshrl.u32 %v5820_v1, 16  ;;  %v740_v14 = vor.u32 %v739_v8, %v735_v0  ;;  %v2021_v0 = vrot.slane %v5835_v60, 1  ;;  %v2019_v4 = vsel %vm1095_vm0, %v2017_v57, %v2018_v58 }
  0x58   : > { %1154 = vrot.lane.b32.xlu1 %v1113_v16, %s6003_s7  ;;  %v2918_v16 = vrot.slane %v5819_v10, 1  ;;  %v745_v20 = vsel %vm661_vm1, %v740_v14, %v744_v15  ;;  %v2022_v9 = vsel %vm1095_vm0, %v2020_v63, %v2021_v0  ;;  %v5836_v10 = vld [vmem:[%s6068_s28 + $0x60] sm:$0xff]   ;;  %v2556_v14 = vshll.u32 %v5840_v3, 16  ;;  %v5837_v15 = vld [vmem:[%s6068_s28 + $0x6c] sm:$0xff]  }
  0x59   : > { %1152 = vrot.lane.b32.xlu0 %v1110_v13, %s6003_s7  ;;  %v749_v13 = vshll.u32 %v5820_v1, 16  ;;  %v2544_v1 = vshll.u32 %v5838_v55, 16  ;;  %v5854_v63 = vld [vmem:[%s6068_s28 + $0x6c] sm:$0xfe]  }
  0x5a   : > { %v2919_v27 = vsel %vm1095_vm0, %v2917_v12, %v2918_v16  ;;  %v5841_v12 = vld [vmem:[%s6068_s28 + $0x74] ss:$0 sps:$4 sm:$0x11]   ;;  %v5842_v16 = vld [vmem:[%s6068_s28] sm:$0xff]   ;;  %v2558_v18 = vrot.slane %v2556_v14, 1 }
  0x5b   : > { %v2546_v8 = vrot.slane %v2544_v1, 1  ;;  %469 = vst.msk [vmem:[#allocation2] sm:$0xff] %vm468_vm2, %v5842_v16  ;;  %v5855_v0 = vld [vmem:[%s6068_s28 + $0x74] ss:$0 sps:$4 sm:$0x11]  }
  0x5c   : > { %1335 = vrot.lane.b32.xlu1 %v5799_v21, %s6001_s29  ;;  %v5822_v21 = vld [vmem:[%s6068_s28 + $0x48] sm:$0xfe]  }
  0x5d   : > { %1333 = vrot.lane.b32.xlu0 %v5798_v19, %s6001_s29  ;;  %v751_v19 = vrot.slane %v749_v13, 1  ;;  %v1114_v25 = vrot.slane %v5822_v21, 1  ;;  %v2554_v13 = vshrl.u32 %v5840_v3, 16  ;;  %v1123_v3 = vrot.slane %v5854_v63, 1 }
  0x5f   : > { %v752_v22 = vor.u32 %v751_v19, %v747_v11  ;;  %v1116_v37 = vsel %vm1095_vm0, %v1114_v25, %v1115_v29  ;;  %v2549_v11 = vshll.u32 %v5839_v2, 16  ;;  %v2561_v19 = vshll.u32 %v5841_v12, 16  ;;  %v5844_v25 = vld [vmem:[%s6068_s28 + $0x68] ss:$0 sps:$4 sm:$0x11]  }
  0x60   : > { %1768 = vrot.lane.b32.xlu1 %v1637_v38, %s6005_s9  ;;  %v5829_v38 = vld [vmem:[%s6068_s28 + $0x5c] ss:$0 sps:$4 sm:$0x11]   ;;  %v2559_v23 = vor.u32 %v2558_v18, %v2554_v13  ;;  %v5859_v12 = vld [vmem:[%s6068_s28 + $0x74] ss:$0 sps:$4 sm:$0x11]  }
  0x61   : > { %1766 = vrot.lane.b32.xlu0 %v1625_v35, %s6005_s9  ;;  %v757_v34 = vsel %vm661_vm1, %v752_v22, %v756_v28  ;;  %v1118_v35 = vrot.slane %v5825_v30, 1  ;;  %v1646_v45 = vshll.u32 %v5829_v38, 16  ;;  %v5843_v22 = vld [vmem:[%s6068_s28 + $0x60] sm:$0xfe]   ;;  %v2563_v24 = vrot.slane %v2561_v19, 1 }
  0x62   : > { %v2920_v28 = vrot.slane %v5843_v22, 1  ;;  %v2921_v30 = vrot.slane %v5844_v25, 1  ;;  %v1670_v16 = vshll.u32 %v5859_v12, 16  ;;  %v5862_v22 = vld [vmem:[%s7161_s1] sm:$0xff]  }
  0x63   : > { %v1119_v40 = vsel %vm1095_vm0, %v1117_v32, %v1118_v35  ;;  %v2564_v35 = vsel %vm661_vm1, %v2559_v23, %v2563_v24  ;;  %5627 = vmatprep.subr.bf16.mxu0 %v5862_v22 }
  0x64   : > { %2057 = vrot.lane.b32.xlu1 %v2016_v46, %s6002_s30  ;;  %v5831_v46 = vld [vmem:[%s6068_s28 + $0x68] ss:$0 sps:$4 sm:$0x11]   ;;  %v2922_v42 = vsel %vm1095_vm0, %v2920_v28, %v2921_v30  ;;  %v1672_v23 = vrot.slane %v1670_v16, 1  ;;  %v5864_v28 = vld [vmem:[%s6068_s28 + $0x6c] sm:$0xfe]   ;;  %5628 = vmatpush3.bf16.msra.mxu0 %v5862_v22 }
  0x65   : > { %2055 = vrot.lane.b32.xlu0 %v2013_v43, %s6002_s30  ;;  %v5826_v43 = vld [vmem:[%s6068_s28 + $0x54] sm:$0xff]   ;;  %v1658_v51 = vshll.u32 %v5831_v46, 16  ;;  %v2923_v46 = vrot.slane %v5848_v39, 1 }
  0x66   : > { %v5866_v39 = vld [vmem:[%s6068_s28 + $0x78] sm:$0xfe]  }
  0x67   : > { %v1660_v56 = vrot.slane %v1658_v51, 1  ;;  %v5851_v51 = vld [vmem:[%s6068_s28 + $0x74] ss:$0 sps:$4 sm:$0x11]  }
  0x68   : > { %2238 = vrot.lane.b32.xlu1 %v5809_v50, %s6006_s10  ;;  %v1648_v50 = vrot.slane %v1646_v45, 1  ;;  %v778_v54 = vshll.u32 %v5851_v51, 16  ;;  %v5873_v51 = vld [vmem:[%s6068_s28 + $0x78] sm:$0xff]  }
  0x69   : > { %2236 = vrot.lane.b32.xlu0 %v5808_v47, %s6006_s10  ;;  %v5827_v47 = vld [vmem:[%s6068_s28 + $0x60] sm:$0xff]   ;;  %v1661_v62 = vsel %vm661_vm1, %v1656_v53, %v1660_v56  ;;  %v5853_v56 = vld [vmem:[%s6068_s28 + $0x68] ss:$0 sps:$4 sm:$0x11]  }
  0x6a   : > { %v1649_v61 = vsel %vm661_vm1, %v1644_v49, %v1648_v50  ;;  %v773_v49 = vshll.u32 %v5850_v41, 16  ;;  %v780_v60 = vrot.slane %v778_v54, 1  ;;  %v5869_v41 = vld [vmem:[%s6068_s28 + $0x24] sm:$0xff]  }
  0x6b   : > { %472 = vst.msk [vmem:[#allocation2 + $0x18] sm:$0xff] %vm468_vm2, %v5869_v41 }
  0x6c   : > { %2671 = vrot.lane.b32.xlu1 %v2540_v7, %s6007_s11  ;;  %v2542_v7 = vshrl.u32 %v5838_v55, 16  ;;  %v775_v53 = vrot.slane %v773_v49, 1  ;;  %v5852_v55 = vld [vmem:[%s6068_s28 + $0x60] sm:$0xfe]  }
  0x6d   : > { %2669 = vrot.lane.b32.xlu0 %v2528_v5, %s6007_s11  ;;  %v5871_v49 = vld [vmem:[%s6068_s28 + $0x84] sm:$0xff]  }
  0x6e   : > { %v2547_v21 = vor.u32 %v2546_v8, %v2542_v7  ;;  %v776_v58 = vor.u32 %v775_v53, %v771_v48  ;;  %v5856_v8 = vld [vmem:[%s6068_s28 + $0x6c] sm:$0xff]   ;;  %v5874_v53 = vld [vmem:[%s6068_s28 + $0x80] ss:$0 sps:$4 sm:$0x11]  }
  0x70   : > { %866 = vrot.lane.b32.xlu1 %v745_v20, %s6004_s8  ;;  %v5845_v20 = vld [vmem:[%s6068_s28 + $0x60] sm:$0xff]   ;;  %v781_v1 = vsel %vm661_vm1, %v776_v58, %v780_v60  ;;  %v2573_v58 = vshll.u32 %v5874_v53, 16  ;;  %v5876_v60 = vld [vmem:[%s6068_s28 + $0x8c] ss:$0 sps:$4 sm:$0x11]  }
  0x71   : > { %2958 = vrot.lane.b32.xlu0 %v2916_v17, %s6008_s12  ;;  %v2551_v17 = vrot.slane %v2549_v11, 1  ;;  %v759_v29 = vshrl.u32 %v5845_v20, 16  ;;  %v761_v32 = vshll.u32 %v5845_v20, 16  ;;  %v5857_v11 = vld [vmem:[%s6068_s28 + $0x78] sm:$0xff]  }
  0x72   : > { %v2575_v63 = vrot.slane %v2573_v58, 1 }
  0x73   : > { %v763_v36 = vrot.slane %v761_v32, 1  ;;  %v5865_v32 = vld [vmem:[%s6068_s28 + $0x74] ss:$0 sps:$4 sm:$0x11]  }
  0x74   : > { %868 = vrot.lane.b32.xlu1 %v757_v34, %s6004_s8  ;;  %v2552_v34 = vsel %vm661_vm1, %v2547_v21, %v2551_v17  ;;  %v5861_v17 = vld [vmem:[%s6068_s28 + $0x80] ss:$0 sps:$4 sm:$0x11]  }
  0x75   : > { %2960 = vrot.lane.b32.xlu0 %v2919_v27, %s6008_s12  ;;  %v1682_v25 = vshll.u32 %v5861_v17, 16  ;;  %v5880_v17 = vld [vmem:[%s6068_s28 + $0x80] ss:$0 sps:$4 sm:$0x11]  }
  0x78   : > { %1158 = vrot.lane.b32.xlu1 %v1119_v40, %s6003_s7  ;;  %v5849_v40 = vld [vmem:[%s6068_s28 + $0x74] ss:$0 sps:$4 sm:$0x11]  }
  0x79   : > { %1156 = vrot.lane.b32.xlu0 %v1116_v37, %s6003_s7  ;;  %v766_v37 = vshll.u32 %v5846_v31, 16  ;;  %v1684_v31 = vrot.slane %v1682_v25, 1 }
  0x7b   : > { %v768_v44 = vrot.slane %v766_v37, 1 }
  0x7c   : > { %1339 = vrot.lane.b32.xlu1 %v5827_v47, %s6001_s29  ;;  %v2924_v47 = vrot.slane %v5849_v40, 1  ;;  %v5867_v40 = vld [vmem:[%s6068_s28 + $0x80] ss:$0 sps:$4 sm:$0x11]  }
  0x7d   : > { %1337 = vrot.lane.b32.xlu0 %v5826_v43, %s6001_s29  ;;  %v764_v43 = vor.u32 %v763_v36, %v759_v29  ;;  %v5868_v36 = vld [vmem:[%s7161_s1 + $0x8] sm:$0xff]  }
  0x7e   : > { %v2925_v57 = vsel %vm1095_vm0, %v2923_v46, %v2924_v47  ;;  %5629 = vmatprep.subr.bf16.mxu0 %v5868_v36  ;;  %v5870_v47 = vld [vmem:[%s6068_s28 + $0x78] sm:$0xff]  }
  0x7f   : > { %v769_v50 = vsel %vm661_vm1, %v764_v43, %v768_v44  ;;  %v2026_v43 = vrot.slane %v5866_v39, 1  ;;  %v2027_v44 = vrot.slane %v5867_v40, 1  ;;  %5630 = vmatpush3.bf16.msra.mxu0 %v5868_v36  ;;  %v5885_v39 = vld [vmem:[%s6068_s28 + $0x78] sm:$0xfe]  }
  0x80   : > { %1772 = vrot.lane.b32.xlu1 %v1661_v62, %s6005_s9  ;;  %v1121_v62 = vrot.slane %v5853_v56, 1  ;;  %v2568_v56 = vshll.u32 %v5873_v51, 16 }
  0x81   : > { %1770 = vrot.lane.b32.xlu0 %v1649_v61, %s6005_s9  ;;  %v1120_v61 = vrot.slane %v5852_v55, 1  ;;  %v2028_v48 = vsel %vm1095_vm0, %v2026_v43, %v2027_v44  ;;  %v2566_v55 = vshrl.u32 %v5873_v51, 16  ;;  %v5886_v43 = vld [vmem:[%s6068_s28 + $0x80] ss:$0 sps:$4 sm:$0x11]   ;;  %v1126_v44 = vrot.slane %v5885_v39, 1 }
  0x82   : > { %v5888_v51 = vld [vmem:[%s6068_s28 + $0x8c] ss:$0 sps:$4 sm:$0x11]  }
  0x83   : > { %v1130_v58 = vrot.slane %v5888_v51, 1  ;;  %v5907_v51 = vld [vmem:[%s6068_s28 + $0x90] sm:$0xfe]  }
  0x84   : > { %2061 = vrot.lane.b32.xlu1 %v2022_v9, %s6002_s30  ;;  %v5858_v9 = vld [vmem:[%s6068_s28 + $0x6c] sm:$0xff]  }
  0x85   : > { %v6274_v5 = vpop.permute.xlu1 %1327  ;;  %v6276_v6 = vpop.permute.xlu0 %1325  ;;  %2059 = vrot.lane.b32.xlu0 %v2019_v4, %s6002_s30  ;;  %v1122_v4 = vsel %vm1095_vm0, %v1120_v61, %v1121_v62  ;;  %v1663_v14 = vshrl.u32 %v5858_v9, 16  ;;  %v2570_v61 = vrot.slane %v2568_v56, 1  ;;  %v5879_v62 = vld [vmem:[%s6068_s28 + $0x78] sm:$0xff]  }
  0x88   : > { %2242 = vrot.lane.b32.xlu1 %v5837_v15, %s6006_s10  ;;  %v1665_v15 = vshll.u32 %v5858_v9, 16 }
  0x89   : > { %v6289_v26 = vpop.permute.xlu0 %2047  ;;  %2240 = vrot.lane.b32.xlu0 %v5836_v10, %s6006_s10 }
  0x8a   : > { %v1145_v27 = vpop.permute.xlu1 %1144  ;;  %v1667_v21 = vrot.slane %v1665_v15, 1  ;;  %v5883_v15 = vld [vmem:[%s6068_s28 + $0x84] sm:$0xff]  }
  0x8b   : > { %v795_v22 = vshrl.u32 %v5883_v15, 16 }
  0x8c   : > { %2675 = vrot.lane.b32.xlu1 %v2564_v35, %s6007_s11  ;;  %v2023_v35 = vrot.slane %v5864_v28, 1  ;;  %v5882_v28 = vld [vmem:[%s6068_s28 + $0x8c] ss:$0 sps:$4 sm:$0x11]  }
  0x8d   : > { %2673 = vrot.lane.b32.xlu0 %v2552_v34, %s6007_s11 }
  0x8e   : > { %v1147_v38 = vpop.permute.xlu1 %1146 }
  0x8f   : > { %v855_v45 = vpop.permute.xlu0 %854 }
  0x90   : > { %903 = vst.msk [vmem:[#allocation2] sm:$0xff] %vm902_vm3, %v855_v45  ;;  %870 = vrot.lane.b32.xlu1 %v769_v50, %s6004_s8  ;;  %v5872_v50 = vld [vmem:[%s7161_s1 + $0x10] ss:$0 sps:$4 sm:$0x33]  }
  0x91   : > { %1193 = vst.msk [vmem:[#allocation2] sm:$0xff] %vm1192_vm4, %v1145_v27  ;;  %2962 = vrot.lane.b32.xlu0 %v2922_v42, %s6008_s12  ;;  %v1668_v27 = vor.u32 %v1667_v21, %v1663_v14  ;;  %5699 = vmatprep.subr.msk.bf16.mxu0 %vm3100_vm11, %v5872_v50  ;;  %v783_v14 = vshrl.u32 %v5879_v62, 16 }
  0x92   : > { %v2050_v52 = vpop.permute.xlu1 %2049  ;;  %1374 = vst.msk [vmem:[#allocation2] sm:$0xff] %vm1373_vm5, %v6276_v6  ;;  %v1124_v6 = vrot.slane %v5855_v0, 1 }
  0x93   : > { %v857_v59 = vpop.permute.xlu0 %856  ;;  %v1673_v34 = vsel %vm661_vm1, %v1668_v27, %v1672_v23  ;;  %v5881_v27 = vld [vmem:[%s6068_s28 + $0x84] sm:$0xfe]  }
  0x94   : > { %904 = vst.msk [vmem:[#allocation2 + $0x8] sm:$0xff] %vm902_vm3, %v857_v59  ;;  %872 = vrot.lane.b32.xlu1 %v781_v1, %s6004_s8  ;;  %v1125_v10 = vsel %vm1095_vm0, %v1123_v3, %v1124_v6  ;;  %v5875_v59 = vld [vmem:[%s6068_s28 + $0x84] sm:$0xff]   ;;  %v2571_v6 = vor.u32 %v2570_v61, %v2566_v55 }
  0x95   : > { %1194 = vst.msk [vmem:[#allocation2 + $0x8] sm:$0xff] %vm1192_vm4, %v1147_v38  ;;  %2964 = vrot.lane.b32.xlu0 %v2925_v57, %s6008_s12  ;;  %v2024_v38 = vrot.slane %v5865_v32, 1  ;;  %v2578_v0 = vshrl.u32 %v5875_v59, 16  ;;  %v2580_v1 = vshll.u32 %v5875_v59, 16  ;;  %v2929_v32 = vrot.slane %v5881_v27, 1 }
  0x96   : > { %v1761_v2 = vpop.permute.xlu1 %1760  ;;  %1375 = vst.msk [vmem:[#allocation2 + $0x8] sm:$0xff] %vm1373_vm5, %v6274_v5  ;;  %v5860_v5 = vld [vmem:[%s6068_s28 + $0x78] sm:$0xff]   ;;  %v2576_v12 = vsel %vm661_vm1, %v2571_v6, %v2575_v63  ;;  %v5895_v6 = vld [vmem:[%s6068_s28 + $0x30] sm:$0xff]  }
  0x97   : > { %1808 = vst.msk [vmem:[#allocation2 + $0x8] sm:$0xff] %vm1806_vm6, %v1761_v2  ;;  %v1759_v7 = vpop.permute.xlu0 %1758  ;;  %v1675_v18 = vshrl.u32 %v5860_v5, 16  ;;  %v1677_v19 = vshll.u32 %v5860_v5, 16  ;;  %v2025_v42 = vsel %vm1095_vm0, %v2023_v35, %v2024_v38  ;;  %v2585_v2 = vshll.u32 %v5876_v60, 16 }
  0x98   : > { %1807 = vst.msk [vmem:[#allocation2] sm:$0xff] %vm1806_vm6, %v1759_v7  ;;  %1162 = vrot.lane.b32.xlu1 %v1125_v10, %s6003_s7  ;;  %v5877_v7 = vld [vmem:[%s6068_s28 + $0x78] sm:$0xfe]   ;;  %v2582_v10 = vrot.slane %v2580_v1, 1 }
  0x99   : > { %2097 = vst.msk [vmem:[#allocation2 + $0x8] sm:$0xff] %vm2095_vm7, %v2050_v52  ;;  %1160 = vrot.lane.b32.xlu0 %v1122_v4, %s6003_s7  ;;  %2096 = vst.msk [vmem:[#allocation2] sm:$0xff] %vm2095_vm7, %v6289_v26  ;;  %v1679_v24 = vrot.slane %v1677_v19, 1  ;;  %v5863_v26 = vld [vmem:[%s6068_s28 + $0x18] sm:$0xff]   ;;  %v3102_v52 = vsel %vm3100_vm11, %v5872_v50, 0  ;;  %v2926_v5 = vrot.slane %v5877_v7, 1 }
  0x9a   : > { %v2231_v13 = vpop.permute.xlu1 %2230  ;;  %471 = vst.msk [vmem:[#allocation2 + $0x10] sm:$0xff] %vm468_vm2, %v5863_v26  ;;  %5632 = vmatpush3.bf16.msra.mxu0 %v3102_v52  ;;  %v2583_v16 = vor.u32 %v2582_v10, %v2578_v0  ;;  %v790_v26 = vshll.u32 %v5880_v17, 16  ;;  %v5884_v35 = vld [vmem:[%s6068_s28 + $0x8c] ss:$0 sps:$4 sm:$0x11]   ;;  %v5889_v52 = vld [vmem:[%s6068_s28 + $0x84] sm:$0xff]  }
  0x9b   : > { %2278 = vst.msk [vmem:[#allocation2 + $0x8] sm:$0xff] %vm2276_vm8, %v2231_v13  ;;  %v2229_v20 = vpop.permute.xlu0 %2228  ;;  %v1680_v30 = vor.u32 %v1679_v24, %v1675_v18  ;;  %v785_v18 = vshll.u32 %v5879_v62, 16  ;;  %v5892_v60 = vld [vmem:[%s6068_s28 + $0x8c] ss:$0 sps:$4 sm:$0x11]   ;;  %v5890_v0 = vld [vmem:[%s6068_s28 + $0x90] sm:$0xff]  }
  0x9c   : > { %2277 = vst.msk [vmem:[#allocation2] sm:$0xff] %vm2276_vm8, %v2229_v20  ;;  %1343 = vrot.lane.b32.xlu1 %v5857_v11, %s6001_s29  ;;  %v2587_v11 = vrot.slane %v2585_v2, 1  ;;  %v1694_v2 = vshll.u32 %v5892_v60, 16  ;;  %v5900_v17 = vld [vmem:[%s6068_s28 + $0x3c] sm:$0xff]  }
  0x9d   : > { %1341 = vrot.lane.b32.xlu0 %v5856_v8, %s6001_s29  ;;  %v1685_v37 = vsel %vm661_vm1, %v1680_v30, %v1684_v31  ;;  %v5878_v8 = vld [vmem:[%s6068_s28 + $0x80] ss:$0 sps:$4 sm:$0x11]   ;;  %v787_v25 = vrot.slane %v785_v18, 1  ;;  %v792_v31 = vrot.slane %v790_v26, 1  ;;  %473 = vst.msk [vmem:[#allocation2 + $0x20] sm:$0xff] %vm468_vm2, %v5895_v6 }
  0x9e   : > { %v2664_v29 = vpop.permute.xlu1 %2663  ;;  %v2927_v13 = vrot.slane %v5878_v8, 1  ;;  %v2588_v23 = vsel %vm661_vm1, %v2583_v16, %v2587_v11  ;;  %v1696_v8 = vrot.slane %v1694_v2, 1  ;;  %v5897_v16 = vld [vmem:[%s6068_s28 + $0x8c] ss:$0 sps:$4 sm:$0x11]   ;;  %474 = vst.msk [vmem:[#allocation2 + $0x28] sm:$0xff] %vm468_vm2, %v5900_v17 }
  0x9f   : > { %v2662_v33 = vpop.permute.xlu0 %2661  ;;  %2711 = vst.msk [vmem:[#allocation2 + $0x8] sm:$0xff] %vm2709_vm9, %v2664_v29  ;;  %v797_v29 = vshll.u32 %v5883_v15, 16  ;;  %v788_v30 = vor.u32 %v787_v25, %v783_v14  ;;  %v5901_v25 = vld [vmem:[%s6068_s28 + $0x90] sm:$0xff]  }
  0xa0   : > { %2710 = vst.msk [vmem:[#allocation2] sm:$0xff] %vm2709_vm9, %v2662_v33  ;;  %1776 = vrot.lane.b32.xlu1 %v1685_v37, %s6005_s9  ;;  %v2928_v21 = vsel %vm1095_vm0, %v2926_v5, %v2927_v13  ;;  %v5896_v5 = vld [vmem:[%s6068_s28 + $0x84] sm:$0xfe]  }
  0xa1   : > { %1774 = vrot.lane.b32.xlu0 %v1673_v34, %s6005_s9  ;;  %v2930_v34 = vrot.slane %v5882_v28, 1  ;;  %v799_v36 = vrot.slane %v797_v29, 1  ;;  %v793_v37 = vsel %vm661_vm1, %v788_v30, %v792_v31  ;;  %v2029_v18 = vrot.slane %v5896_v5, 1  ;;  %v5903_v29 = vld [vmem:[%s6068_s28 + $0x90] sm:$0xff]  }
  0xa2   : > { %v859_v46 = vpop.permute.xlu1 %858 }
  0xa3   : > { %v2951_v45 = vpop.permute.xlu0 %2950  ;;  %905 = vst.msk [vmem:[#allocation2 + $0x10] sm:$0xff] %vm902_vm3, %v859_v46  ;;  %v2931_v40 = vsel %vm1095_vm0, %v2929_v32, %v2930_v34  ;;  %v800_v41 = vor.u32 %v799_v36, %v795_v22  ;;  %v5898_v22 = vld [vmem:[%s6068_s28 + $0x90] sm:$0xfe]   ;;  %v5902_v34 = vld [vmem:[%s6068_s28 + $0x9c] sm:$0xff]   ;;  %v2590_v36 = vshrl.u32 %v5903_v29, 16 }
  0xa4   : > { %2999 = vst.msk [vmem:[#allocation2] sm:$0xff] %vm2998_vm10, %v2951_v45  ;;  %2065 = vrot.lane.b32.xlu1 %v2028_v48, %s6002_s30  ;;  %v5891_v45 = vld [vmem:[%s6068_s28 + $0x84] sm:$0xff]   ;;  %v1127_v48 = vrot.slane %v5886_v43, 1  ;;  %v2032_v28 = vrot.slane %v5898_v22, 1 }
  0xa5   : > { %2063 = vrot.lane.b32.xlu0 %v2025_v42, %s6002_s30  ;;  %v802_v42 = vshll.u32 %v5884_v35, 16  ;;  %v1687_v53 = vshrl.u32 %v5891_v45, 16  ;;  %v5904_v35 = vld [vmem:[%s6068_s28 + $0x98] ss:$0 sps:$4 sm:$0x11]  }
  0xa6   : > { %v861_v57 = vpop.permute.xlu1 %860  ;;  %v1128_v55 = vsel %vm1095_vm0, %v1126_v44, %v1127_v48  ;;  %v2597_v39 = vshll.u32 %v5904_v35, 16 }
  0xa7   : > { %v2953_v54 = vpop.permute.xlu0 %2952  ;;  %906 = vst.msk [vmem:[#allocation2 + $0x18] sm:$0xff] %vm902_vm3, %v861_v57  ;;  %v804_v46 = vrot.slane %v802_v42, 1  ;;  %v1689_v57 = vshll.u32 %v5891_v45, 16 }
  0xa8   : > { %3000 = vst.msk [vmem:[#allocation2 + $0x8] sm:$0xff] %vm2998_vm10, %v2953_v54  ;;  %2246 = vrot.lane.b32.xlu1 %v5871_v49, %s6006_s10  ;;  %v5887_v49 = vld [vmem:[%s6068_s28 + $0x84] sm:$0xfe]  }
  0xa9   : > { %2244 = vrot.lane.b32.xlu0 %v5870_v47, %s6006_s10  ;;  %v805_v54 = vsel %vm661_vm1, %v800_v41, %v804_v46  ;;  %v1129_v56 = vrot.slane %v5887_v49, 1  ;;  %v1691_v61 = vrot.slane %v1689_v57, 1 }
  0xaa   : > { %v1151_v9 = vpop.permute.xlu1 %1150 }
  0xab   : > { %v1149_v3 = vpop.permute.xlu0 %1148  ;;  %v3015_v4 = vld [vmem:[#allocation2] sm:$0xff]  ;;  %1196 = vst.msk [vmem:[#allocation2 + $0x18] sm:$0xff] %vm1192_vm4, %v1151_v9  ;;  %v1131_v62 = vsel %vm1095_vm0, %v1129_v56, %v1130_v58  ;;  %v1692_v1 = vor.u32 %v1691_v61, %v1687_v53 }
  0xac   : > { %1195 = vst.msk [vmem:[#allocation2 + $0x10] sm:$0xff] %vm1192_vm4, %v1149_v3  ;;  %5633 = vmatprep.mubr.msk.bf16.mxu0 %vm3051_vm12, %v3015_v4  ;;  %2679 = vrot.lane.b32.xlu1 %v2588_v23, %s6007_s11  ;;  %v5893_v3 = vld [vmem:[%s6068_s28 + $0x90] sm:$0xff]   ;;  %v5894_v4 = vld [vmem:[%s6068_s28 + $0x98] ss:$0 sps:$4 sm:$0x11]  }
  0xad   : > { %2677 = vrot.lane.b32.xlu0 %v2576_v12, %s6007_s11  ;;  %v1699_v9 = vshrl.u32 %v5893_v3, 16  ;;  %v1701_v10 = vshll.u32 %v5893_v3, 16  ;;  %v1706_v11 = vshll.u32 %v5894_v4, 16  ;;  %v1697_v13 = vsel %vm661_vm1, %v1692_v1, %v1696_v8  ;;  %v5913_v1 = vld [vmem:[%s6068_s28 + $0x9c] sm:$0xff]  }
  0xae   : > { %v1332_v24 = vpop.permute.xlu1 %1331 }
  0xaf   : > { %v1330_v19 = vpop.permute.xlu0 %1329  ;;  %v3016_v20 = vld [vmem:[#allocation2 + $0x8] sm:$0xff]  ;;  %1377 = vst.msk [vmem:[#allocation2 + $0x18] sm:$0xff] %vm1373_vm5, %v1332_v24  ;;  %v1703_v14 = vrot.slane %v1701_v10, 1  ;;  %v1708_v15 = vrot.slane %v1706_v11, 1  ;;  %v819_v10 = vshrl.u32 %v5913_v1, 16 }
  0xb0   : > { %1376 = vst.msk [vmem:[#allocation2 + $0x10] sm:$0xff] %vm1373_vm5, %v1330_v19  ;;  %5634 = vmatmul.mubr.msk.bf16.vlgmr.msra.gmra.mrb[0].mxu0 %vm3051_vm12, %v3016_v20  ;;  %874 = vrot.lane.b32.xlu1 %v793_v37, %s6004_s8  ;;  %v5899_v24 = vld [vmem:[%s6068_s28 + $0x98] ss:$0 sps:$4 sm:$0x11]   ;;  %v2592_v37 = vshll.u32 %v5903_v29, 16 }
  0xb1   : > { %2966 = vrot.lane.b32.xlu0 %v2928_v21, %s6008_s12  ;;  %v1704_v19 = vor.u32 %v1703_v14, %v1699_v9  ;;  %v2030_v21 = vrot.slane %v5897_v16, 1  ;;  %v2033_v30 = vrot.slane %v5899_v24, 1  ;;  %v5912_v9 = vld [vmem:[%s6068_s28 + $0xa4] ss:$0 sps:$4 sm:$0x11]   ;;  %v821_v14 = vshll.u32 %v5913_v1, 16 }
  0xb2   : > { %v1765_v38 = vpop.permute.xlu1 %1764  ;;  %v2594_v43 = vrot.slane %v2592_v37, 1  ;;  %v5914_v16 = vld [vmem:[%s6068_s28 + $0xa4] ss:$0 sps:$4 sm:$0x11]  }
  0xb3   : > { %v1763_v33 = vpop.permute.xlu0 %1762  ;;  %1810 = vst.msk [vmem:[#allocation2 + $0x18] sm:$0xff] %vm1806_vm6, %v1765_v38  ;;  %v1709_v26 = vsel %vm661_vm1, %v1704_v19, %v1708_v15  ;;  %v2031_v27 = vsel %vm1095_vm0, %v2029_v18, %v2030_v21  ;;  %v2034_v32 = vsel %vm1095_vm0, %v2032_v28, %v2033_v30  ;;  %v5905_v38 = vld [vmem:[%s6068_s28 + $0x9c] sm:$0xff]   ;;  %v2936_v15 = vrot.slane %v5912_v9, 1  ;;  %v5916_v24 = vld [vmem:[%s6068_s28 + $0x98] ss:$0 sps:$4 sm:$0x11]  }
  0xb4   : > { %1809 = vst.msk [vmem:[#allocation2 + $0x10] sm:$0xff] %vm1806_vm6, %v1763_v33  ;;  %876 = vrot.lane.b32.xlu1 %v805_v54, %s6004_s8  ;;  %v2602_v44 = vshrl.u32 %v5905_v38, 16  ;;  %v2604_v45 = vshll.u32 %v5905_v38, 16  ;;  %v2595_v49 = vor.u32 %v2594_v43, %v2590_v36  ;;  %v5909_v54 = vld [vmem:[%s6068_s28 + $0x90] sm:$0xff]   ;;  %v823_v18 = vrot.slane %v821_v14, 1  ;;  %v5921_v19 = vld [vmem:[%s6068_s28 + $0x9c] sm:$0xff]  }
  0xb5   : > { %2968 = vrot.lane.b32.xlu0 %v2931_v40, %s6008_s12  ;;  %v5906_v40 = vld [vmem:[%s6068_s28 + $0xa4] ss:$0 sps:$4 sm:$0x11]   ;;  %v826_v21 = vshll.u32 %v5914_v16, 16  ;;  %v1133_v29 = vrot.slane %v5916_v24, 1 }
  0xb6   : > { %v2054_v50 = vpop.permute.xlu1 %2053  ;;  %v2609_v48 = vshll.u32 %v5906_v40, 16  ;;  %v5917_v30 = vld [vmem:[%s6068_s28 + $0x9c] sm:$0xfe]   ;;  %v5934_v16 = vld [vmem:[%s6068_s28 + $0xb0] ss:$0 sps:$4 sm:$0x11]  }
  0xb7   : > { %v2052_v47 = vpop.permute.xlu0 %2051  ;;  %2099 = vst.msk [vmem:[#allocation2 + $0x18] sm:$0xff] %vm2095_vm7, %v2054_v50  ;;  %v2606_v50 = vrot.slane %v2604_v45, 1  ;;  %v1135_v37 = vrot.slane %v5917_v30, 1  ;;  %v5922_v45 = vld [vmem:[%s6068_s28 + $0xa4] ss:$0 sps:$4 sm:$0x11]  }
  0xb8   : > { %2098 = vst.msk [vmem:[#allocation2 + $0x10] sm:$0xff] %vm2095_vm7, %v2052_v47  ;;  %1166 = vrot.lane.b32.xlu1 %v1131_v62, %s6003_s7  ;;  %v2599_v47 = vrot.slane %v2597_v39, 1  ;;  %v2611_v53 = vrot.slane %v2609_v48, 1  ;;  %v5910_v62 = vld [vmem:[%s6068_s28 + $0x98] ss:$0 sps:$4 sm:$0x11]  }
  0xb9   : > { %1164 = vrot.lane.b32.xlu0 %v1128_v55, %s6003_s7  ;;  %v2607_v56 = vor.u32 %v2606_v50, %v2602_v44  ;;  %v814_v6 = vshll.u32 %v5910_v62, 16  ;;  %v5923_v39 = vld [vmem:[%s6068_s28 + $0xa8] sm:$0xff]   ;;  %v5924_v48 = vld [vmem:[%s6068_s28 + $0xb0] ss:$0 sps:$4 sm:$0x11]  }
  0xba   : > { %v2235_v63 = vpop.permute.xlu1 %2234  ;;  %v2600_v55 = vsel %vm661_vm1, %v2595_v49, %v2599_v47  ;;  %v5920_v44 = vld [vmem:[%s6068_s28 + $0xa8] sm:$0xff]   ;;  %v1725_v49 = vshll.u32 %v5923_v39, 16  ;;  %v5927_v62 = vld [vmem:[%s6068_s28 + $0xa4] ss:$0 sps:$4 sm:$0x11]  }
  0xbb   : > { %v2233_v59 = vpop.permute.xlu0 %2232  ;;  %2280 = vst.msk [vmem:[#allocation2 + $0x18] sm:$0xff] %vm2276_vm8, %v2235_v63  ;;  %v807_v63 = vshrl.u32 %v5909_v54, 16  ;;  %v2612_v2 = vsel %vm661_vm1, %v2607_v56, %v2611_v53  ;;  %v5930_v56 = vld [vmem:[%s6068_s28 + $0x54] sm:$0xff]   ;;  %v5937_v30 = vld [vmem:[%s6068_s28 + $0xa8] sm:$0xfe]  }
  0xbc   : > { %2279 = vst.msk [vmem:[#allocation2 + $0x10] sm:$0xff] %vm2276_vm8, %v2233_v59  ;;  %1347 = vrot.lane.b32.xlu1 %v5890_v0, %s6001_s29  ;;  %v2932_v59 = vrot.slane %v5907_v51, 1  ;;  %v809_v0 = vshll.u32 %v5909_v54, 16  ;;  %v1727_v53 = vrot.slane %v1725_v49, 1  ;;  %v1730_v54 = vshll.u32 %v5924_v48, 16 }
  0xbd   : > { %1345 = vrot.lane.b32.xlu0 %v5889_v52, %s6001_s29  ;;  %v5908_v52 = vld [vmem:[%s6068_s28 + $0x98] ss:$0 sps:$4 sm:$0x11]   ;;  %476 = vst.msk [vmem:[#allocation2 + $0x38] sm:$0xff] %vm468_vm2, %v5930_v56 }
  0xbe   : > { %v2668_v12 = vpop.permute.xlu1 %2667  ;;  %v2933_v60 = vrot.slane %v5908_v52, 1  ;;  %v811_v4 = vrot.slane %v809_v0, 1  ;;  %v1718_v52 = vshll.u32 %v5922_v45, 16  ;;  %v5940_v45 = vld [vmem:[%s6068_s28 + $0xb0] ss:$0 sps:$4 sm:$0x11]  }
  0xbf   : > { %v2666_v7 = vpop.permute.xlu0 %2665  ;;  %2713 = vst.msk [vmem:[#allocation2 + $0x18] sm:$0xff] %vm2709_vm9, %v2668_v12  ;;  %v816_v12 = vrot.slane %v814_v6, 1  ;;  %v5929_v6 = vld [vmem:[%s6068_s28 + $0xb0] ss:$0 sps:$4 sm:$0x11]  }
  0xc0   : > { %2712 = vst.msk [vmem:[#allocation2 + $0x10] sm:$0xff] %vm2709_vm9, %v2666_v7  ;;  %1780 = vrot.lane.b32.xlu1 %v1709_v26, %s6005_s9  ;;  %v2934_v3 = vsel %vm1095_vm0, %v2932_v59, %v2933_v60  ;;  %v5911_v7 = vld [vmem:[%s6068_s28 + $0x9c] sm:$0xfe]   ;;  %v812_v11 = vor.u32 %v811_v4, %v807_v63  ;;  %v1732_v59 = vrot.slane %v1730_v54, 1  ;;  %v5928_v4 = vld [vmem:[%s6068_s28 + $0xa8] sm:$0xfe]  }
  0xc1   : > { %1778 = vrot.lane.b32.xlu0 %v1697_v13, %s6005_s9  ;;  %v2935_v13 = vrot.slane %v5911_v7, 1  ;;  %v5941_v54 = vld [vmem:[%s6068_s28 + $0xb4] sm:$0xfe]  }
  0xc2   : > { %v863_v23 = vpop.permute.xlu1 %862  ;;  %v817_v17 = vsel %vm661_vm1, %v812_v11, %v816_v12  ;;  %v5933_v11 = vld [vmem:[%s6068_s28 + $0xa8] sm:$0xff]   ;;  %v2039_v12 = vrot.slane %v5929_v6, 1 }
  0xc3   : > { %v2955_v20 = vpop.permute.xlu0 %2954  ;;  %907 = vst.msk [vmem:[#allocation2 + $0x20] sm:$0xff] %vm902_vm3, %v863_v23  ;;  %v5915_v23 = vld [vmem:[%s6068_s28 + $0x90] sm:$0xfe]  }
  0xc4   : > { %3001 = vst.msk [vmem:[#allocation2 + $0x10] sm:$0xff] %vm2998_vm10, %v2955_v20  ;;  %2069 = vrot.lane.b32.xlu1 %v2034_v32, %s6002_s30  ;;  %v2937_v20 = vsel %vm1095_vm0, %v2935_v13, %v2936_v15  ;;  %v1132_v28 = vrot.slane %v5915_v23, 1  ;;  %v5918_v32 = vld [vmem:[%s6068_s28 + $0xa4] ss:$0 sps:$4 sm:$0x11]   ;;  %v5935_v13 = vld [vmem:[%s6068_s28 + $0xb4] sm:$0xff]  }
  0xc5   : > { %2067 = vrot.lane.b32.xlu0 %v2031_v27, %s6002_s30  ;;  %v828_v27 = vrot.slane %v826_v21, 1  ;;  %v1136_v40 = vrot.slane %v5918_v32, 1  ;;  %v5932_v15 = vld [vmem:[%s6068_s28 + $0xb4] sm:$0xff]  }
  0xc6   : > { %v865_v33 = vpop.permute.xlu1 %864  ;;  %v1134_v36 = vsel %vm1095_vm0, %v1132_v28, %v1133_v29 }
  0xc7   : > { %v2957_v31 = vpop.permute.xlu0 %2956  ;;  %908 = vst.msk [vmem:[#allocation2 + $0x28] sm:$0xff] %vm902_vm3, %v865_v33  ;;  %v5919_v33 = vld [vmem:[%s6068_s28 + $0x9c] sm:$0xff]   ;;  %v1137_v43 = vsel %vm1095_vm0, %v1135_v37, %v1136_v40  ;;  %v5943_v37 = vld [vmem:[%s6068_s28 + $0xb4] sm:$0xff]   ;;  %v2938_v40 = vrot.slane %v5937_v30, 1 }
  0xc8   : > { %3002 = vst.msk [vmem:[#allocation2 + $0x18] sm:$0xff] %vm2998_vm10, %v2957_v31  ;;  %2250 = vrot.lane.b32.xlu1 %v5902_v34, %s6006_s10  ;;  %v1711_v31 = vshrl.u32 %v5921_v19, 16  ;;  %v1713_v34 = vshll.u32 %v5921_v19, 16  ;;  %v2626_v19 = vshrl.u32 %v5935_v13, 16 }
  0xc9   : > { %2248 = vrot.lane.b32.xlu0 %v5901_v25, %s6006_s10  ;;  %v824_v25 = vor.u32 %v823_v18, %v819_v10  ;;  %v5931_v10 = vld [vmem:[%s6068_s28 + $0xa8] sm:$0xff]   ;;  %v2616_v18 = vshll.u32 %v5933_v11, 16 }
  0xca   : > { %v1155_v46 = vpop.permute.xlu1 %1154  ;;  %v5954_v30 = vld [vmem:[%s6068_s28 + $0xc8] ss:$0 sps:$4 sm:$0x11]  }
  0xcb   : > { %v1153_v41 = vpop.permute.xlu0 %1152  ;;  %v3017_v42 = vld [vmem:[#allocation2 + $0x10] sm:$0xff]  ;;  %1198 = vst.msk [vmem:[#allocation2 + $0x28] sm:$0xff] %vm1192_vm4, %v1155_v46  ;;  %v829_v35 = vsel %vm661_vm1, %v824_v25, %v828_v27  ;;  %v1723_v46 = vshrl.u32 %v5923_v39, 16  ;;  %v2618_v24 = vrot.slane %v2616_v18, 1  ;;  %v2621_v25 = vshll.u32 %v5934_v16, 16 }
  0xcc   : > { %1197 = vst.msk [vmem:[#allocation2 + $0x20] sm:$0xff] %vm1192_vm4, %v1153_v41  ;;  %5637 = vmatprep.mubr.msk.bf16.mxu0 %vm3051_vm12, %v3017_v42  ;;  %2683 = vrot.lane.b32.xlu1 %v2612_v2, %s6007_s11  ;;  %v1715_v42 = vrot.slane %v1713_v34, 1 }
  0xcd   : > { %2681 = vrot.lane.b32.xlu0 %v2600_v55, %s6007_s11  ;;  %v5925_v55 = vld [vmem:[%s6068_s28 + $0x48] sm:$0xff]   ;;  %v2623_v29 = vrot.slane %v2621_v25, 1  ;;  %v5953_v25 = vld [vmem:[%s6068_s28 + $0xc0] sm:$0xff]  }
  0xce   : > { %v1336_v61 = vpop.permute.xlu1 %1335  ;;  %v1716_v51 = vor.u32 %v1715_v42, %v1711_v31  ;;  %475 = vst.msk [vmem:[#allocation2 + $0x30] sm:$0xff] %vm468_vm2, %v5925_v55  ;;  %v5939_v31 = vld [vmem:[%s6068_s28 + $0xa8] sm:$0xff]   ;;  %v5942_v55 = vld [vmem:[%s6068_s28 + $0xbc] ss:$0 sps:$4 sm:$0x11]  }
  0xcf   : > { %v1334_v57 = vpop.permute.xlu0 %1333  ;;  %v3018_v58 = vld [vmem:[#allocation2 + $0x18] sm:$0xff]  ;;  %1379 = vst.msk [vmem:[#allocation2 + $0x28] sm:$0xff] %vm1373_vm5, %v1336_v61 }
  0xd0   : > { %1378 = vst.msk [vmem:[#allocation2 + $0x20] sm:$0xff] %vm1373_vm5, %v1334_v57  ;;  %5638 = vmatmul.mubr.msk.bf16.gmra.mrb[4].mxu0 %vm3051_vm12, %v3018_v58  ;;  %878 = vrot.lane.b32.xlu1 %v817_v17, %s6004_s8  ;;  %v1720_v57 = vrot.slane %v1718_v52, 1  ;;  %v1728_v58 = vor.u32 %v1727_v53, %v1723_v46  ;;  %v5926_v61 = vld [vmem:[%s6068_s28 + $0x9c] sm:$0xfe]   ;;  %v2614_v17 = vshrl.u32 %v5933_v11, 16  ;;  %v843_v46 = vshrl.u32 %v5943_v37, 16 }
  0xd1   : > { %2970 = vrot.lane.b32.xlu0 %v2934_v3, %s6008_s12  ;;  %v2035_v2 = vrot.slane %v5926_v61, 1  ;;  %v2036_v3 = vrot.slane %v5927_v62, 1  ;;  %v838_v52 = vshll.u32 %v5940_v45, 16  ;;  %v5947_v11 = vld [vmem:[%s6068_s28 + $0xb4] sm:$0xfe]  }
  0xd2   : > { %v1769_v5 = vpop.permute.xlu1 %1768  ;;  %v1721_v63 = vsel %vm661_vm1, %v1716_v51, %v1720_v57  ;;  %v1733_v1 = vsel %vm661_vm1, %v1728_v58, %v1732_v59  ;;  %v2619_v28 = vor.u32 %v2618_v24, %v2614_v17  ;;  %v845_v51 = vshll.u32 %v5943_v37, 16  ;;  %v5952_v24 = vld [vmem:[%s6068_s28 + $0xbc] ss:$0 sps:$4 sm:$0x11]  }
  0xd3   : > { %v1767_v8 = vpop.permute.xlu0 %1766  ;;  %1812 = vst.msk [vmem:[#allocation2 + $0x28] sm:$0xff] %vm1806_vm6, %v1769_v5  ;;  %v2037_v7 = vsel %vm1095_vm0, %v2035_v2, %v2036_v3  ;;  %v840_v57 = vrot.slane %v838_v52, 1  ;;  %v2941_v58 = vrot.slane %v5941_v54, 1  ;;  %v2942_v59 = vrot.slane %v5942_v55, 1  ;;  %v5945_v3 = vld [vmem:[%s6068_s28 + $0xa8] sm:$0xfe]  }
  0xd4   : > { %1811 = vst.msk [vmem:[#allocation2 + $0x20] sm:$0xff] %vm1806_vm6, %v1767_v8  ;;  %880 = vrot.lane.b32.xlu1 %v829_v35, %s6004_s8  ;;  %v2038_v8 = vrot.slane %v5928_v4, 1  ;;  %v847_v61 = vrot.slane %v845_v51, 1  ;;  %v5951_v4 = vld [vmem:[%s6068_s28 + $0xb4] sm:$0xff]   ;;  %v1141_v17 = vrot.slane %v5947_v11, 1 }
  0xd5   : > { %2972 = vrot.lane.b32.xlu0 %v2937_v20, %s6008_s12 }
  0xd6   : > { %v2058_v26 = vpop.permute.xlu1 %2057  ;;  %v2040_v14 = vsel %vm1095_vm0, %v2038_v8, %v2039_v12  ;;  %v848_v6 = vor.u32 %v847_v61, %v843_v46  ;;  %v5948_v12 = vld [vmem:[%s6068_s28 + $0xbc] ss:$0 sps:$4 sm:$0x11]   ;;  %v5958_v46 = vld [vmem:[%s6068_s28 + $0xc0] sm:$0xfe]  }
  0xd7   : > { %v2056_v22 = vpop.permute.xlu0 %2055  ;;  %2101 = vst.msk [vmem:[#allocation2 + $0x28] sm:$0xff] %vm2095_vm7, %v2058_v26  ;;  %v5936_v26 = vld [vmem:[%s6068_s28 + $0xbc] ss:$0 sps:$4 sm:$0x11]   ;;  %v1142_v18 = vrot.slane %v5948_v12, 1  ;;  %v2044_v51 = vrot.slane %v5958_v46, 1 }
  0xd8   : > { %2100 = vst.msk [vmem:[#allocation2 + $0x20] sm:$0xff] %vm2095_vm7, %v2056_v22  ;;  %1170 = vrot.lane.b32.xlu1 %v1137_v43, %s6003_s7  ;;  %v2628_v22 = vshll.u32 %v5935_v13, 16  ;;  %v831_v43 = vshrl.u32 %v5939_v31, 16  ;;  %v5964_v61 = vld [vmem:[%s6068_s28 + $0xc8] ss:$0 sps:$4 sm:$0x11]  }
  0xd9   : > { %1168 = vrot.lane.b32.xlu0 %v1134_v36, %s6003_s7  ;;  %v5938_v36 = vld [vmem:[%s6068_s28 + $0xb0] ss:$0 sps:$4 sm:$0x11]   ;;  %v5414_v46 = vld [vmem:[%s6068_s28 + $0x18] sm:$0xf] }
  0xda   : > { %v2239_v41 = vpop.permute.xlu1 %2238  ;;  %v2630_v27 = vrot.slane %v2628_v22, 1  ;;  %v2939_v42 = vrot.slane %v5938_v36, 1  ;;  %v5950_v22 = vld [vmem:[%s6068_s28 + $0xc0] sm:$0xff]   ;;  %v1754_v36 = vshll.u32 %v5954_v30, 16 }
  0xdb   : > { %v2237_v38 = vpop.permute.xlu0 %2236  ;;  %2282 = vst.msk [vmem:[#allocation2 + $0x28] sm:$0xff] %vm2276_vm8, %v2239_v41 }
  0xdc   : > { %2281 = vst.msk [vmem:[#allocation2 + $0x20] sm:$0xff] %vm2276_vm8, %v2237_v38  ;;  %1351 = vrot.lane.b32.xlu1 %v5920_v44, %s6001_s29  ;;  %v2631_v32 = vor.u32 %v2630_v27, %v2626_v19  ;;  %v2624_v38 = vsel %vm661_vm1, %v2619_v28, %v2623_v29  ;;  %v833_v44 = vshll.u32 %v5939_v31, 16  ;;  %v2940_v48 = vsel %vm1095_vm0, %v2938_v40, %v2939_v42  ;;  %v5955_v28 = vld [vmem:[%s6068_s28 + $0x60] sm:$0xff]   ;;  %v5956_v40 = vld [vmem:[%s6068_s28 + $0xb4] sm:$0xfe]  }
  0xdd   : > { %1349 = vrot.lane.b32.xlu0 %v5919_v33, %s6001_s29  ;;  %v2633_v33 = vshll.u32 %v5936_v26, 16  ;;  %v1735_v19 = vshrl.u32 %v5951_v4, 16  ;;  %v1742_v29 = vshll.u32 %v5952_v24, 16  ;;  %v1747_v31 = vshrl.u32 %v5953_v25, 16  ;;  %477 = vst.msk [vmem:[#allocation2 + $0x40] sm:$0xff] %vm468_vm2, %v5955_v28 }
  0xde   : > { %v2672_v50 = vpop.permute.xlu1 %2671  ;;  %v835_v49 = vrot.slane %v833_v44, 1  ;;  %v5957_v44 = vld [vmem:[%s6068_s28 + $0xbc] ss:$0 sps:$4 sm:$0x11]   ;;  %v2041_v45 = vrot.slane %v5956_v40, 1 }
  0xdf   : > { %v2670_v47 = vpop.permute.xlu0 %2669  ;;  %2715 = vst.msk [vmem:[#allocation2 + $0x28] sm:$0xff] %vm2709_vm9, %v2672_v50  ;;  %v2635_v41 = vrot.slane %v2633_v33, 1  ;;  %v5970_v24 = vld [vmem:[%s6068_s28 + $0xd4] ss:$0 sps:$4 sm:$0x11]  }
  0xe0   : > { %2714 = vst.msk [vmem:[#allocation2 + $0x20] sm:$0xff] %vm2709_vm9, %v2670_v47  ;;  %1784 = vrot.lane.b32.xlu1 %v1733_v1, %s6005_s9  ;;  %v836_v56 = vor.u32 %v835_v49, %v831_v43  ;;  %v1756_v43 = vrot.slane %v1754_v36, 1  ;;  %v5959_v49 = vld [vmem:[%s6068_s28 + $0xc8] ss:$0 sps:$4 sm:$0x11]  }
  0xe1   : > { %1782 = vrot.lane.b32.xlu0 %v1721_v63, %s6005_s9  ;;  %v2636_v47 = vsel %vm661_vm1, %v2631_v32, %v2635_v41  ;;  %v1749_v32 = vshll.u32 %v5953_v25, 16  ;;  %v2045_v55 = vrot.slane %v5959_v49, 1 }
  0xe2   : > { %v867_v0 = vpop.permute.xlu1 %866  ;;  %v841_v63 = vsel %vm661_vm1, %v836_v56, %v840_v57  ;;  %v5963_v56 = vld [vmem:[%s6068_s28 + $0xc0] sm:$0xff]  }
  0xe3   : > { %v2959_v60 = vpop.permute.xlu0 %2958  ;;  %909 = vst.msk [vmem:[#allocation2 + $0x30] sm:$0xff] %vm902_vm3, %v867_v0  ;;  %v2943_v0 = vsel %vm1095_vm0, %v2941_v58, %v2942_v59  ;;  %v2046_v57 = vsel %vm1095_vm0, %v2044_v51, %v2045_v55  ;;  %v5962_v58 = vld [vmem:[%s6068_s28 + $0xcc] sm:$0xff]   ;;  %v5416_v51 = vld [vmem:[%s6068_s28 + $0x20] sm:$0x1] }
  0xe4   : > { %3003 = vst.msk [vmem:[#allocation2 + $0x20] sm:$0xff] %vm2998_vm10, %v2959_v60  ;;  %2073 = vrot.lane.b32.xlu1 %v2040_v14, %s6002_s30  ;;  %v5944_v60 = vld [vmem:[%s6068_s28 + $0xbc] ss:$0 sps:$4 sm:$0x11]  }
  0xe5   : > { %2071 = vrot.lane.b32.xlu0 %v2037_v7, %s6002_s30  ;;  %v850_v1 = vshll.u32 %v5944_v60, 16  ;;  %v5946_v7 = vld [vmem:[%s6068_s28 + $0xb0] ss:$0 sps:$4 sm:$0x11]  }
  0xe6   : > { %v869_v5 = vpop.permute.xlu1 %868 }
  0xe7   : > { %v2961_v9 = vpop.permute.xlu0 %2960  ;;  %910 = vst.msk [vmem:[#allocation2 + $0x38] sm:$0xff] %vm902_vm3, %v869_v5  ;;  %v852_v8 = vrot.slane %v850_v1, 1  ;;  %v2645_v1 = vshll.u32 %v5964_v61, 16 }
  0xe8   : > { %3004 = vst.msk [vmem:[#allocation2 + $0x28] sm:$0xff] %vm2998_vm10, %v2961_v9  ;;  %2254 = vrot.lane.b32.xlu1 %v5932_v15, %s6006_s10  ;;  %v1138_v9 = vrot.slane %v5945_v3, 1  ;;  %v5949_v15 = vld [vmem:[%s6068_s28 + $0xb4] sm:$0xff]  }
  0xe9   : > { %2252 = vrot.lane.b32.xlu0 %v5931_v10, %s6006_s10  ;;  %v1139_v10 = vrot.slane %v5946_v7, 1  ;;  %v853_v13 = vsel %vm661_vm1, %v848_v6, %v852_v8  ;;  %v2647_v6 = vrot.slane %v2645_v1, 1 }
  0xea   : > { %v1159_v23 = vpop.permute.xlu1 %1158 }
  0xeb   : > { %v1157_v20 = vpop.permute.xlu0 %1156  ;;  %v3019_v21 = vld [vmem:[#allocation2 + $0x20] sm:$0xff]  ;;  %1200 = vst.msk [vmem:[#allocation2 + $0x38] sm:$0xff] %vm1192_vm4, %v1159_v23  ;;  %v1140_v16 = vsel %vm1095_vm0, %v1138_v9, %v1139_v10 }
  0xec   : > { %1199 = vst.msk [vmem:[#allocation2 + $0x30] sm:$0xff] %vm1192_vm4, %v1157_v20  ;;  %5641 = vmatprep.mubr.msk.bf16.mxu0 %vm3051_vm12, %v3019_v21  ;;  %2687 = vrot.lane.b32.xlu1 %v2636_v47, %s6007_s11  ;;  %v1737_v20 = vshll.u32 %v5951_v4, 16  ;;  %v1143_v21 = vsel %vm1095_vm0, %v1141_v17, %v1142_v18  ;;  %v5966_v4 = vld [vmem:[%s6068_s28 + $0xd4] ss:$0 sps:$4 sm:$0x11]  }
  0xed   : > { %2685 = vrot.lane.b32.xlu0 %v2624_v38, %s6007_s11  ;;  %v5960_v38 = vld [vmem:[%s6068_s28 + $0x6c] sm:$0xff]   ;;  %v2657_v12 = vshll.u32 %v5966_v4, 16  ;;  %v5418_v4 = vld [vmem:[%s6068_s28 + $0x28] sm:$0xf] }
  0xee   : > { %v1340_v39 = vpop.permute.xlu1 %1339  ;;  %v1739_v27 = vrot.slane %v1737_v20, 1  ;;  %478 = vst.msk [vmem:[#allocation2 + $0x48] sm:$0xff] %vm468_vm2, %v5960_v38  ;;  %v5412_v38 = vld [vmem:[%s6068_s28 + $0x10] sm:$0xf] }
  0xef   : > { %v1338_v34 = vpop.permute.xlu0 %1337  ;;  %v3020_v35 = vld [vmem:[#allocation2 + $0x28] sm:$0xff]  ;;  %1381 = vst.msk [vmem:[#allocation2 + $0x38] sm:$0xff] %vm1373_vm5, %v1340_v39  ;;  %v2659_v18 = vrot.slane %v2657_v12, 1 }
  0xf0   : > { %1380 = vst.msk [vmem:[#allocation2 + $0x30] sm:$0xff] %vm1373_vm5, %v1338_v34  ;;  %5642 = vmatmul.mubr.msk.bf16.gmra.mrb[8].mxu0 %vm3051_vm12, %v3020_v35  ;;  %882 = vrot.lane.b32.xlu1 %v841_v63, %s6004_s8  ;;  %v1740_v33 = vor.u32 %v1739_v27, %v1735_v19  ;;  %v1744_v34 = vrot.slane %v1742_v29, 1  ;;  %v1751_v35 = vrot.slane %v1749_v32, 1  ;;  %v2638_v63 = vshrl.u32 %v5963_v56, 16  ;;  %v4036_v32 = vld [vmem:[%s7162_s2] sm:$0x3] }
  0xf1   : > { %2974 = vrot.lane.b32.xlu0 %v2940_v48, %s6008_s12  ;;  %v2042_v48 = vrot.slane %v5957_v44, 1  ;;  %5700 = vmatprep.subr.msk.bf16.mxu1 %vm3100_vm11, %v4036_v32  ;;  %v3666_v44 = vshrl.u32 %v5412_v38, 16 }
  0xf2   : > { %v1773_v53 = vpop.permute.xlu1 %1772  ;;  %v1745_v41 = vsel %vm661_vm1, %v1740_v33, %v1744_v34  ;;  %v1752_v42 = vor.u32 %v1751_v35, %v1747_v31  ;;  %v2948_v31 = vrot.slane %v5970_v24, 1  ;;  %v4134_v33 = vsel %vm3100_vm11, %v4036_v32, 0  ;;  %v5974_v34 = vld [vmem:[%s6068_s28 + $0x9c] sm:$0xff]   ;;  %v5421_v24 = vld [vmem:[%s6068_s28 + $0x34] sm:$0xf] }
  0xf3   : > { %v1771_v50 = vpop.permute.xlu0 %1770  ;;  %1814 = vst.msk [vmem:[#allocation2 + $0x38] sm:$0xff] %vm1806_vm6, %v1773_v53  ;;  %v5961_v53 = vld [vmem:[%s6068_s28 + $0xc0] sm:$0xff]   ;;  %v2043_v54 = vsel %vm1095_vm0, %v2041_v45, %v2042_v48  ;;  %5666 = vmatpush3.bf16.msra.mxu1 %v4134_v33 }
  0xf4   : > { %1813 = vst.msk [vmem:[#allocation2 + $0x30] sm:$0xff] %vm1806_vm6, %v1771_v50  ;;  %884 = vrot.lane.b32.xlu1 %v853_v13, %s6004_s8  ;;  %v1757_v47 = vsel %vm661_vm1, %v1752_v42, %v1756_v43  ;;  %v5967_v13 = vld [vmem:[%s6068_s28 + $0xc0] sm:$0xfe]   ;;  %v3662_v43 = vshll.u32 %v5412_v38, 16  ;;  %s4860_s8 = sshll.u32 %s7174_s21, 1 }
  0xf5   : > { %2976 = vrot.lane.b32.xlu0 %v2943_v0, %s6008_s12  ;;  %v2640_v0 = vshll.u32 %v5963_v56, 16  ;;  %v2944_v19 = vrot.slane %v5967_v13, 1  ;;  %482 = vst.msk [vmem:[#allocation2 + $0x68] sm:$0xff] %vm468_vm2, %v5974_v34  ;;  %v3677_v56 = vshrl.u32 %v5414_v46, 16  ;;  %s317_s14 = scalar_lea.vmem %s7164_s4, %s4860_s8 }
  0xf6   : > { %v2062_v2 = vpop.permute.xlu1 %2061 }
  0xf7   : > { %v2060_v62 = vpop.permute.xlu0 %2059  ;;  %2103 = vst.msk [vmem:[#allocation2 + $0x38] sm:$0xff] %vm2095_vm7, %v2062_v2  ;;  %v5965_v2 = vld [vmem:[%s6068_s28 + $0xcc] sm:$0xff]   ;;  %v2642_v3 = vrot.slane %v2640_v0, 1  ;;  %v3679_v1 = vrot.slane %v3677_v56, 4 }
  0xf8   : > { %2102 = vst.msk [vmem:[#allocation2 + $0x30] sm:$0xff] %vm2095_vm7, %v2060_v62  ;;  %1174 = vrot.lane.b32.xlu1 %v1143_v21, %s6003_s7  ;;  %v2650_v7 = vshrl.u32 %v5965_v2, 16  ;;  %v2652_v8 = vshll.u32 %v5965_v2, 16  ;;  %v5972_v21 = vld [vmem:[%s6068_s28 + $0x84] sm:$0xff]   ;;  %v3696_v2 = vshll.u32 %v5416_v51, 16 }
  0xf9   : > { %1172 = vrot.lane.b32.xlu0 %v1140_v16, %s6003_s7  ;;  %v2643_v11 = vor.u32 %v2642_v3, %v2638_v63  ;;  %v5971_v16 = vld [vmem:[%s6068_s28 + $0x78] sm:$0xff]   ;;  %480 = vst.msk [vmem:[#allocation2 + $0x58] sm:$0xff] %vm468_vm2, %v5972_v21  ;;  %v5417_v3 = vld [vmem:[%s6068_s28 + $0x24] sm:$0xf]  ;;  %s6930_s7 = scalar_lea.vmem %s7165_s5, %s5525_s25 }
  0xfa   : > { %v2243_v14 = vpop.permute.xlu1 %2242  ;;  %479 = vst.msk [vmem:[#allocation2 + $0x50] sm:$0xff] %vm468_vm2, %v5971_v16  ;;  %v3701_v12 = vshrl.u32 %v5417_v3, 16 }
  0xfb   : > { %v2241_v5 = vpop.permute.xlu0 %2240  ;;  %2284 = vst.msk [vmem:[#allocation2 + $0x38] sm:$0xff] %vm2276_vm8, %v2243_v14  ;;  %v5968_v14 = vld [vmem:[%s6068_s28 + $0xc8] ss:$0 sps:$4 sm:$0x11]   ;;  %v2648_v17 = vsel %vm661_vm1, %v2643_v11, %v2647_v6  ;;  %v3698_v11 = vrot.slane %v3696_v2, 5 }
  0xfc   : > { %2283 = vst.msk [vmem:[#allocation2 + $0x30] sm:$0xff] %vm2276_vm8, %v2241_v5  ;;  %1355 = vrot.lane.b32.xlu1 %v5950_v22, %s6001_s29  ;;  %v2945_v20 = vrot.slane %v5968_v14, 1  ;;  %v3703_v21 = vrot.slane %v3701_v12, 4 }
  0xfd   : > { %1353 = vrot.lane.b32.xlu0 %v5949_v15, %s6001_s29  ;;  %v2654_v15 = vrot.slane %v2652_v8, 1 }
  0xfe   : > { %v2676_v26 = vpop.permute.xlu1 %2675  ;;  %v2946_v27 = vsel %vm1095_vm0, %v2944_v19, %v2945_v20  ;;  %v5420_v19 = vld [vmem:[%s6068_s28 + $0x30] sm:$0xf] }
  0xff   : > { %v2674_v23 = vpop.permute.xlu0 %2673  ;;  %2717 = vst.msk [vmem:[#allocation2 + $0x38] sm:$0xff] %vm2709_vm9, %v2676_v26  ;;  %v2655_v22 = vor.u32 %v2654_v15, %v2650_v7  ;;  %v5973_v26 = vld [vmem:[%s6068_s28 + $0x90] sm:$0xff]   ;;  %v3725_v33 = vshrl.u32 %v5420_v19, 16  ;;  %v3728_v38 = vshll.u32 %v5420_v19, 16 }
 0x100   : > { %2716 = vst.msk [vmem:[#allocation2 + $0x30] sm:$0xff] %vm2709_vm9, %v2674_v23  ;;  %1788 = vrot.lane.b32.xlu1 %v1757_v47, %s6005_s9  ;;  %v5969_v23 = vld [vmem:[%s6068_s28 + $0xcc] sm:$0xfe]  }
 0x101   : > { %1786 = vrot.lane.b32.xlu0 %v1745_v41, %s6005_s9  ;;  %v2660_v29 = vsel %vm661_vm1, %v2655_v22, %v2659_v18  ;;  %v2947_v30 = vrot.slane %v5969_v23, 1  ;;  %481 = vst.msk [vmem:[#allocation2 + $0x60] sm:$0xff] %vm468_vm2, %v5973_v26  ;;  %v5975_v47 = vld [vmem:[%s6068_s28 + $0xa8] sm:$0xff]   ;;  %v3710_v18 = vshll.u32 %v5418_v4, 16  ;;  %v3714_v23 = vshrl.u32 %v5418_v4, 16 }
 0x102   : > { %v871_v39 = vpop.permute.xlu1 %870  ;;  %483 = vst.msk [vmem:[#allocation2 + $0x70] sm:$0xff] %vm468_vm2, %v5975_v47  ;;  %v3730_v47 = vrot.slane %v3728_v38, 5  ;;  %vm3426_vm1 = vcmask 64512  }
 0x103   : > { %v2963_v37 = vpop.permute.xlu0 %2962  ;;  %911 = vst.msk [vmem:[#allocation2 + $0x40] sm:$0xff] %vm902_vm3, %v871_v39  ;;  %v2949_v35 = vsel %vm1095_vm0, %v2947_v30, %v2948_v31  ;;  %v5413_v39 = vld [vmem:[%s6068_s28 + $0x14] sm:$0x1]  ;;  %v3716_v31 = vrot.slane %v3714_v23, 4  ;;  %vm3393_vm0 = vcmask 60416  }
 0x104   : > { %3005 = vst.msk [vmem:[#allocation2 + $0x30] sm:$0xff] %vm2998_vm10, %v2963_v37  ;;  %2077 = vrot.lane.b32.xlu1 %v2046_v57, %s6002_s30  ;;  %v5411_v37 = vld [vmem:[%s6068_s28 + $0xc] sm:$0xf]  ;;  %v3672_v45 = vshll.u32 %v5413_v39, 16  ;;  %v3734_v39 = vshll.u32 %v5421_v24, 16 }
 0x105   : > { %2075 = vrot.lane.b32.xlu0 %v2043_v54, %s6002_s30  ;;  %v3653_v41 = vshrl.u32 %v5411_v37, 16  ;;  %v3656_v42 = vshll.u32 %v5411_v37, 16  ;;  %v3668_v54 = vrot.slane %v3666_v44, 4  ;;  %v5422_v37 = vld [vmem:[%s6068_s28 + $0x38] sm:$0x1] }
 0x106   : > { %v873_v52 = vpop.permute.xlu1 %872  ;;  %v3674_v55 = vrot.slane %v3672_v45, 5  ;;  %v5424_v45 = vld [vmem:[%s6068_s28 + $0x40] sm:$0xf] }
 0x107   : > { %v2965_v50 = vpop.permute.xlu0 %2964  ;;  %912 = vst.msk [vmem:[#allocation2 + $0x48] sm:$0xff] %vm902_vm3, %v873_v52  ;;  %v3655_v48 = vrot.slane %v3653_v41, 4  ;;  %v3658_v49 = vrot.slane %v3656_v42, 5  ;;  %v3762_v2 = vshrl.u32 %v5424_v45, 16 }
 0x108   : > { %3006 = vst.msk [vmem:[#allocation2 + $0x38] sm:$0xff] %vm2998_vm10, %v2965_v50  ;;  %2258 = vrot.lane.b32.xlu1 %v5962_v58, %s6006_s10  ;;  %v5415_v50 = vld [vmem:[%s6068_s28 + $0x1c] sm:$0xf] }
 0x109   : > { %2256 = vrot.lane.b32.xlu0 %v5961_v53, %s6006_s10  ;;  %v3664_v53 = vrot.slane %v3662_v43, 5  ;;  %v3659_v58 = vor.u32 %v3658_v49, %v3655_v48  ;;  %v3690_v61 = vshrl.u32 %v5415_v50, 16  ;;  %v3736_v48 = vrot.slane %v3734_v39, 5 }
 0x10a   : > { %v1163_v62 = vpop.permute.xlu1 %1162  ;;  %v3738_v49 = vshrl.u32 %v5421_v24, 16  ;;  %v5429_v24 = vld [vmem:[%s6068_s28 + $0x54] sm:$0xf] }
 0x10b   : > { %v1161_v59 = vpop.permute.xlu0 %1160  ;;  %v3021_v60 = vld [vmem:[#allocation2 + $0x30] sm:$0xff]  ;;  %1202 = vst.msk [vmem:[#allocation2 + $0x48] sm:$0xff] %vm1192_vm4, %v1163_v62  ;;  %v3669_v0 = vor.u32 %v3668_v54, %v3664_v53  ;;  %v3660_v6 = vrot.slane %v3659_v58, 4  ;;  %v5425_v54 = vld [vmem:[%s6068_s28 + $0x44] sm:$0x1] }
 0x10c   : > { %1201 = vst.msk [vmem:[#allocation2 + $0x40] sm:$0xff] %vm1192_vm4, %v1161_v59  ;;  %5645 = vmatprep.mubr.msk.bf16.mxu0 %vm3051_vm12, %v3021_v60  ;;  %2691 = vrot.lane.b32.xlu1 %v2660_v29, %s6007_s11  ;;  %v3680_v59 = vshll.u32 %v5414_v46, 16  ;;  %v3686_v60 = vshll.u32 %v5415_v50, 16  ;;  %v5976_v62 = vld [vmem:[%s6068_s28 + $0xb4] sm:$0xff]   ;;  %v3727_v46 = vrot.slane %v3725_v33, 4  ;;  %v3740_v58 = vrot.slane %v3738_v49, 4 }
 0x10d   : > { %2689 = vrot.lane.b32.xlu0 %v2648_v17, %s6007_s11  ;;  %484 = vst.msk [vmem:[#allocation2 + $0x78] sm:$0xff] %vm468_vm2, %v5976_v62  ;;  %v3665_v14 = vsel %vm6666_vm15, %v3660_v6, %v3664_v53  ;;  %v5419_v17 = vld [vmem:[%s6068_s28 + $0x2c] sm:$0x1]  ;;  %v3744_v53 = vshll.u32 %v5422_v37, 16  ;;  %s334_s11 = scalar_lea.vmem %s7166_s6, %s4860_s8 }
 0x10e   : > { %v1344_v5 = vpop.permute.xlu1 %1343  ;;  %v3682_v7 = vrot.slane %v3680_v59, 5  ;;  %v3688_v8 = vrot.slane %v3686_v60, 5  ;;  %v3720_v32 = vshll.u32 %v5419_v17, 16  ;;  %v3758_v60 = vshll.u32 %v5424_v45, 16 }
 0x10f   : > { %v1342_v9 = vpop.permute.xlu0 %1341  ;;  %v3022_v10 = vld [vmem:[#allocation2 + $0x38] sm:$0xff]  ;;  %1383 = vst.msk [vmem:[#allocation2 + $0x48] sm:$0xff] %vm1373_vm5, %v1344_v5  ;;  %v3704_v5 = vshll.u32 %v5417_v3, 16  ;;  %v3741_v6 = vor.u32 %v3740_v58, %v3736_v48  ;;  %v3800_v45 = vshll.u32 %v5429_v24, 16 }
 0x110   : > { %1382 = vst.msk [vmem:[#allocation2 + $0x40] sm:$0xff] %vm1373_vm5, %v1342_v9  ;;  %5646 = vmatmul.mubr.msk.bf16.gmra.mrb[12].mxu0 %vm3051_vm12, %v3022_v10  ;;  %2980 = vrot.lane.b32.xlu1 %v2949_v35, %s6008_s12  ;;  %v3692_v9 = vrot.slane %v3690_v61, 4  ;;  %v3670_v10 = vrot.slane %v3669_v0, 4  ;;  %v3683_v15 = vor.u32 %v3682_v7, %v3679_v1  ;;  %v3722_v44 = vrot.slane %v3720_v32, 5  ;;  %v5426_v61 = vld [vmem:[%s6068_s28 + $0x48] sm:$0xf] }
 0x111   : > { %2978 = vrot.lane.b32.xlu0 %v2946_v27, %s6008_s12  ;;  %v3706_v22 = vrot.slane %v3704_v5, 5  ;;  %v3746_v0 = vrot.slane %v3744_v53, 5  ;;  %v3773_v12 = vshrl.u32 %v5426_v61, 16  ;;  %v3776_v19 = vshll.u32 %v5426_v61, 16 }
 0x112   : > { %v1777_v28 = vpop.permute.xlu1 %1776  ;;  %v3693_v16 = vor.u32 %v3692_v9, %v3688_v8  ;;  %v3675_v20 = vsel %vm6666_vm15, %v3670_v10, %v3674_v55  ;;  %v3684_v26 = vrot.slane %v3683_v15, 4  ;;  %v3760_v9 = vrot.slane %v3758_v60, 5  ;;  %v5434_v60 = vld [vmem:[%s6068_s28 + $0x68] sm:$0x1] }
 0x113   : > { %v1775_v25 = vpop.permute.xlu0 %1774  ;;  %1816 = vst.msk [vmem:[#allocation2 + $0x48] sm:$0xff] %vm1806_vm6, %v1777_v28  ;;  %v3712_v28 = vrot.slane %v3710_v18, 5  ;;  %v3707_v30 = vor.u32 %v3706_v22, %v3703_v21  ;;  %v3764_v10 = vrot.slane %v3762_v2, 4  ;;  %v5428_v18 = vld [vmem:[%s6068_s28 + $0x50] sm:$0x1]  ;;  %v3775_v22 = vrot.slane %v3773_v12, 4 }
 0x114   : > { %1815 = vst.msk [vmem:[#allocation2 + $0x40] sm:$0xff] %vm1806_vm6, %v1775_v25  ;;  %v5459_v25 = vcombine.low %v3665_v14, %v3675_v20  ;;  %v3694_v27 = vrot.slane %v3693_v16, 4  ;;  %v3689_v35 = vsel %vm6666_vm15, %v3684_v26, %v3688_v8  ;;  %v5427_v8 = vld [vmem:[%s6068_s28 + $0x4c] sm:$0xf]  ;;  %v3742_v16 = vrot.slane %v3741_v6, 4 }
 0x115   : > { %v3708_v42 = vrot.slane %v3707_v30, 4  ;;  %v3717_v43 = vor.u32 %v3716_v31, %v3712_v28  ;;  %v3765_v20 = vor.u32 %v3764_v10, %v3760_v9  ;;  %v3782_v23 = vshll.u32 %v5427_v8, 16  ;;  %v5436_v10 = vld [vmem:[%s6068_s28 + $0x70] sm:$0xf] }
 0x116   : > { %v2066_v40 = vpop.permute.xlu1 %2065  ;;  %5667 = vmatprep.mubr.msk.bf16.mxu1 %vm468_vm2, %v5459_v25  ;;  %v3747_v25 = vsel %vm6666_vm15, %v3742_v16, %v3746_v0  ;;  %v3792_v33 = vshll.u32 %v5428_v18, 16  ;;  %v3840_v18 = vshll.u32 %v5434_v60, 16 }
 0x117   : > { %v2064_v36 = vpop.permute.xlu0 %2063  ;;  %2105 = vst.msk [vmem:[#allocation2 + $0x48] sm:$0xff] %vm2095_vm7, %v2066_v40  ;;  %v5423_v40 = vld [vmem:[%s6068_s28 + $0x3c] sm:$0xf]  ;;  %v3713_v51 = vsel %vm6666_vm15, %v3708_v42, %v3712_v28  ;;  %v3786_v28 = vshrl.u32 %v5427_v8, 16  ;;  %v3766_v31 = vrot.slane %v3765_v20, 4  ;;  %v3784_v32 = vrot.slane %v3782_v23, 5 }
 0x118   : > { %2104 = vst.msk [vmem:[#allocation2 + $0x40] sm:$0xff] %vm2095_vm7, %v2064_v36  ;;  %v3699_v36 = vsel %vm6666_vm15, %v3694_v27, %v3698_v11  ;;  %v3749_v55 = vshrl.u32 %v5423_v40, 16  ;;  %v3752_v59 = vshll.u32 %v5423_v40, 16  ;;  %v3768_v11 = vshll.u32 %v5425_v54, 16  ;;  %v5432_v42 = vld [vmem:[%s6068_s28 + $0x60] sm:$0xf] }
 0x119   : > { %v5460_v41 = vcombine.low %v3689_v35, %v3699_v36  ;;  %v3778_v27 = vrot.slane %v3776_v19, 5  ;;  %v3788_v40 = vrot.slane %v3786_v28, 4  ;;  %v3821_v61 = vshrl.u32 %v5432_v42, 16 }
 0x11a   : > { %v2247_v57 = vpop.permute.xlu1 %2246  ;;  %v3751_v1 = vrot.slane %v3749_v55, 4  ;;  %v3754_v7 = vrot.slane %v3752_v59, 5  ;;  %v3770_v21 = vrot.slane %v3768_v11, 5 }
 0x11b   : > { %v2245_v52 = vpop.permute.xlu0 %2244  ;;  %2286 = vst.msk [vmem:[#allocation2 + $0x48] sm:$0xff] %vm2276_vm8, %v2247_v57  ;;  %5668 = vmatmul.mubr.msk.bf16.vlgmr.msra.gmra.mrb[0].mxu1 %vm468_vm2, %v5460_v41  ;;  %v3731_v57 = vor.u32 %v3730_v47, %v3727_v46  ;;  %v3779_v39 = vor.u32 %v3778_v27, %v3775_v22  ;;  %v3797_v41 = vshrl.u32 %v5429_v24, 16  ;;  %v5433_v47 = vld [vmem:[%s6068_s28 + $0x64] sm:$0xf]  ;;  %v5437_v22 = vld [vmem:[%s6068_s28 + $0x74] sm:$0x1] }
 0x11c   : > { %2285 = vst.msk [vmem:[#allocation2 + $0x40] sm:$0xff] %vm2276_vm8, %v2245_v52  ;;  %v3718_v52 = vrot.slane %v3717_v43, 4  ;;  %v3755_v17 = vor.u32 %v3754_v7, %v3751_v1  ;;  %v3771_v43 = vsel %vm6666_vm15, %v3766_v31, %v3770_v21  ;;  %v3823_v7 = vrot.slane %v3821_v61, 4 }
 0x11d   : > { %v3732_v4 = vrot.slane %v3731_v57, 4  ;;  %v3780_v49 = vrot.slane %v3779_v39, 4  ;;  %v3854_v24 = vshll.u32 %v5436_v10, 16  ;;  %v3842_v27 = vrot.slane %v3840_v18, 5 }
 0x11e   : > { %v2680_v29 = vpop.permute.xlu1 %2679  ;;  %v3723_v62 = vsel %vm6666_vm15, %v3718_v52, %v3722_v44  ;;  %v3756_v26 = vrot.slane %v3755_v17, 4  ;;  %v3794_v44 = vrot.slane %v3792_v33, 5  ;;  %v3802_v52 = vrot.slane %v3800_v45, 5 }
 0x11f   : > { %v2678_v13 = vpop.permute.xlu0 %2677  ;;  %2719 = vst.msk [vmem:[#allocation2 + $0x48] sm:$0xff] %vm2709_vm9, %v2680_v29  ;;  %v5461_v3 = vcombine.low %v3713_v51, %v3723_v62  ;;  %v3737_v15 = vsel %vm6666_vm15, %v3732_v4, %v3736_v48  ;;  %v5430_v29 = vld [vmem:[%s6068_s28 + $0x58] sm:$0xf]  ;;  %v3799_v51 = vrot.slane %v3797_v41, 4  ;;  %v3785_v58 = vsel %vm6666_vm15, %v3780_v49, %v3784_v32  ;;  %v5435_v4 = vld [vmem:[%s6068_s28 + $0x6c] sm:$0xf] }
 0x120   : > { %2718 = vst.msk [vmem:[#allocation2 + $0x40] sm:$0xff] %vm2709_vm9, %v2678_v13  ;;  %v5462_v30 = vcombine.low %v3737_v15, %v3747_v25  ;;  %v3761_v38 = vsel %vm6666_vm15, %v3756_v26, %v3760_v9  ;;  %v3806_v46 = vshll.u32 %v5430_v29, 16  ;;  %v3810_v54 = vshrl.u32 %v5430_v29, 16  ;;  %v5438_v29 = vld [vmem:[%s6068_s28 + $0x78] sm:$0xf] }
 0x121   : > { %5671 = vmatprep.mubr.msk.bf16.mxu1 %vm468_vm2, %v5461_v3  ;;  %v5463_v48 = vcombine.low %v3761_v38, %v3771_v43  ;;  %v3824_v62 = vshll.u32 %v5432_v42, 16  ;;  %v3803_v0 = vor.u32 %v3802_v52, %v3799_v51  ;;  %v3830_v3 = vshll.u32 %v5433_v47, 16  ;;  %v5440_v43 = vld [vmem:[%s6068_s28 + $0x80] sm:$0x1] }
 0x122   : > { %v875_v50 = vpop.permute.xlu1 %874  ;;  %v3808_v53 = vrot.slane %v3806_v46, 5  ;;  %v3812_v1 = vrot.slane %v3810_v54, 4  ;;  %v3834_v9 = vshrl.u32 %v5433_v47, 16  ;;  %v3845_v19 = vshrl.u32 %v5435_v4, 16 }
 0x123   : > { %v2967_v34 = vpop.permute.xlu0 %2966  ;;  %913 = vst.msk [vmem:[#allocation2 + $0x50] sm:$0xff] %vm902_vm3, %v875_v50  ;;  %5672 = vmatmul.mubr.msk.bf16.gmra.mrb[4].mxu1 %vm468_vm2, %v5462_v30  ;;  %v3789_v50 = vor.u32 %v3788_v40, %v3784_v32  ;;  %v3826_v8 = vrot.slane %v3824_v62, 5  ;;  %v3804_v12 = vrot.slane %v3803_v0, 4  ;;  %v3848_v23 = vshll.u32 %v5435_v4, 16 }
 0x124   : > { %3007 = vst.msk [vmem:[#allocation2 + $0x40] sm:$0xff] %vm2998_vm10, %v2967_v34  ;;  %v5431_v34 = vld [vmem:[%s6068_s28 + $0x5c] sm:$0x1]  ;;  %5675 = vmatprep.mubr.msk.bf16.mxu1 %vm468_vm2, %v5463_v48  ;;  %v3836_v17 = vrot.slane %v3834_v9, 4  ;;  %v3847_v28 = vrot.slane %v3845_v19, 4  ;;  %v3856_v32 = vrot.slane %v3854_v24, 5 }
 0x125   : > { %v3816_v55 = vshll.u32 %v5431_v34, 16  ;;  %v3790_v59 = vrot.slane %v3789_v50, 4  ;;  %v3827_v16 = vor.u32 %v3826_v8, %v3823_v7  ;;  %v3809_v20 = vsel %vm6666_vm15, %v3804_v12, %v3808_v53  ;;  %v5439_v34 = vld [vmem:[%s6068_s28 + $0x7c] sm:$0xf]  ;;  %v5441_v50 = vld [vmem:[%s6068_s28 + $0x84] sm:$0xf] }
 0x126   : > { %v877_v5 = vpop.permute.xlu1 %876  ;;  %v3850_v31 = vrot.slane %v3848_v23, 5  ;;  %v3858_v33 = vshrl.u32 %v5436_v10, 16  ;;  %v3864_v40 = vshll.u32 %v5437_v22, 16  ;;  %v3872_v45 = vshll.u32 %v5438_v29, 16  ;;  %v5443_v7 = vld [vmem:[%s6068_s28 + $0x8c] sm:$0x1] }
 0x127   : > { %v2969_v56 = vpop.permute.xlu0 %2968  ;;  %914 = vst.msk [vmem:[#allocation2 + $0x58] sm:$0xff] %vm902_vm3, %v877_v5  ;;  %v3818_v2 = vrot.slane %v3816_v55, 5  ;;  %v3795_v6 = vsel %vm6666_vm15, %v3790_v59, %v3794_v44  ;;  %v3813_v5 = vor.u32 %v3812_v1, %v3808_v53  ;;  %v3828_v25 = vrot.slane %v3827_v16, 4  ;;  %v5442_v55 = vld [vmem:[%s6068_s28 + $0x88] sm:$0xf] }
 0x128   : > { %3008 = vst.msk [vmem:[#allocation2 + $0x48] sm:$0xff] %vm2998_vm10, %v2969_v56  ;;  %v5464_v11 = vcombine.low %v3785_v58, %v3795_v6  ;;  %v3851_v41 = vor.u32 %v3850_v31, %v3847_v28  ;;  %v3860_v42 = vrot.slane %v3858_v33, 4  ;;  %v3869_v44 = vshrl.u32 %v5438_v29, 16  ;;  %v5444_v9 = vld [vmem:[%s6068_s28 + $0x90] sm:$0xf] }
 0x129   : > { %v3814_v21 = vrot.slane %v3813_v5, 4  ;;  %v3866_v47 = vrot.slane %v3864_v40, 5  ;;  %v3878_v48 = vshll.u32 %v5439_v34, 16  ;;  %v3882_v49 = vshrl.u32 %v5439_v34, 16  ;;  %v5447_v29 = vld [vmem:[%s6068_s28 + $0x9c] sm:$0xf] }
 0x12a   : > { %v1167_v35 = vpop.permute.xlu1 %1166  ;;  %v3852_v52 = vrot.slane %v3851_v41, 4  ;;  %v3861_v53 = vor.u32 %v3860_v42, %v3856_v32  ;;  %v3871_v54 = vrot.slane %v3869_v44, 4  ;;  %v3888_v60 = vshll.u32 %v5440_v43, 16  ;;  %v5448_v34 = vld [vmem:[%s6068_s28 + $0xa0] sm:$0xf] }
 0x12b   : > { %v1165_v13 = vpop.permute.xlu0 %1164  ;;  %v3023_v14 = vld [vmem:[#allocation2 + $0x40] sm:$0xff]  ;;  %1204 = vst.msk [vmem:[#allocation2 + $0x58] sm:$0xff] %vm1192_vm4, %v1167_v35  ;;  %5676 = vmatmul.mubr.msk.bf16.gmra.mrb[8].mxu1 %vm468_vm2, %v5464_v11  ;;  %v3819_v30 = vsel %vm6666_vm15, %v3814_v21, %v3818_v2  ;;  %v3880_v58 = vrot.slane %v3878_v48, 5  ;;  %v3884_v59 = vrot.slane %v3882_v49, 4  ;;  %v3893_v0 = vshrl.u32 %v5441_v50, 16 }
 0x12c   : > { %1203 = vst.msk [vmem:[#allocation2 + $0x50] sm:$0xff] %vm1192_vm4, %v1165_v13  ;;  %5649 = vmatprep.mubr.msk.bf16.mxu0 %vm3051_vm12, %v3023_v14  ;;  %v3832_v13 = vrot.slane %v3830_v3, 5  ;;  %v3857_v61 = vsel %vm6666_vm15, %v3852_v52, %v3856_v32  ;;  %v3862_v62 = vrot.slane %v3861_v53, 4  ;;  %v3896_v1 = vshll.u32 %v5441_v50, 16  ;;  %v5449_v43 = vld [vmem:[%s6068_s28 + $0xa4] sm:$0x1] }
 0x12d   : > { %v3885_v4 = vor.u32 %v3884_v59, %v3880_v58  ;;  %v3890_v6 = vrot.slane %v3888_v60, 5  ;;  %v3902_v8 = vshll.u32 %v5442_v55, 16  ;;  %v3895_v11 = vrot.slane %v3893_v0, 4  ;;  %v5450_v50 = vld [vmem:[%s6068_s28 + $0xa8] sm:$0xf] }
 0x12e   : > { %v1348_v56 = vpop.permute.xlu1 %1347  ;;  %v3837_v26 = vor.u32 %v3836_v17, %v3832_v13  ;;  %v3833_v38 = vsel %vm6666_vm15, %v3828_v25, %v3832_v13  ;;  %v3867_v10 = vsel %vm6666_vm15, %v3862_v62, %v3866_v47  ;;  %v3898_v12 = vrot.slane %v3896_v1, 5  ;;  %v5445_v13 = vld [vmem:[%s6068_s28 + $0x94] sm:$0xf]  ;;  %v5451_v59 = vld [vmem:[%s6068_s28 + $0xac] sm:$0xf] }
 0x12f   : > { %v1346_v36 = vpop.permute.xlu0 %1345  ;;  %v3024_v37 = vld [vmem:[#allocation2 + $0x48] sm:$0xff]  ;;  %1385 = vst.msk [vmem:[#allocation2 + $0x58] sm:$0xff] %vm1373_vm5, %v1348_v56  ;;  %v3906_v5 = vshrl.u32 %v5442_v55, 16  ;;  %v3886_v17 = vrot.slane %v3885_v4, 4  ;;  %v3904_v18 = vrot.slane %v3902_v8, 5  ;;  %v3912_v21 = vshll.u32 %v5443_v7, 16 }
 0x130   : > { %1384 = vst.msk [vmem:[#allocation2 + $0x50] sm:$0xff] %vm1373_vm5, %v1346_v36  ;;  %5650 = vmatmul.mubr.msk.bf16.gmra.mrb[16].mxu0 %vm3051_vm12, %v3024_v37  ;;  %v5465_v37 = vcombine.low %v3809_v20, %v3819_v30  ;;  %v3838_v39 = vrot.slane %v3837_v26, 4  ;;  %v3899_v19 = vor.u32 %v3898_v12, %v3895_v11  ;;  %v3917_v22 = vshrl.u32 %v5444_v9, 16  ;;  %v5446_v26 = vld [vmem:[%s6068_s28 + $0x98] sm:$0x1] }
 0x131   : > { %v3908_v20 = vrot.slane %v3906_v5, 4  ;;  %v3891_v25 = vsel %vm6666_vm15, %v3886_v17, %v3890_v6  ;;  %v3926_v28 = vshll.u32 %v5445_v13, 16  ;;  %v3914_v33 = vrot.slane %v3912_v21, 5  ;;  %v5452_v8 = vld [vmem:[%s6068_s28 + $0xb0] sm:$0x1] }
 0x132   : > { %v1781_v14 = vpop.permute.xlu1 %1780  ;;  %5679 = vmatprep.mubr.msk.bf16.mxu1 %vm468_vm2, %v5465_v37  ;;  %v3843_v46 = vsel %vm6666_vm15, %v3838_v39, %v3842_v27  ;;  %v3920_v27 = vshll.u32 %v5444_v9, 16  ;;  %v3900_v31 = vrot.slane %v3899_v19, 4  ;;  %v3936_v42 = vshll.u32 %v5446_v26, 16 }
 0x133   : > { %v1779_v57 = vpop.permute.xlu0 %1778  ;;  %1818 = vst.msk [vmem:[#allocation2 + $0x58] sm:$0xff] %vm1806_vm6, %v1781_v14  ;;  %v5466_v51 = vcombine.low %v3833_v38, %v3843_v46  ;;  %v3909_v32 = vor.u32 %v3908_v20, %v3904_v18  ;;  %v3928_v37 = vrot.slane %v3926_v28, 5  ;;  %v3930_v38 = vshrl.u32 %v5445_v13, 16  ;;  %v5453_v13 = vld [vmem:[%s6068_s28 + $0xb4] sm:$0xf] }
 0x134   : > { %1817 = vst.msk [vmem:[#allocation2 + $0x50] sm:$0xff] %vm1806_vm6, %v1779_v57  ;;  %v3874_v57 = vrot.slane %v3872_v45, 5  ;;  %v3905_v40 = vsel %vm6666_vm15, %v3900_v31, %v3904_v18  ;;  %v3941_v44 = vshrl.u32 %v5447_v29, 16  ;;  %v3944_v48 = vshll.u32 %v5447_v29, 16  ;;  %v5454_v18 = vld [vmem:[%s6068_s28 + $0xb8] sm:$0xf] }
 0x135   : > { %5680 = vmatmul.mubr.msk.bf16.gmra.mrb[12].mxu1 %vm468_vm2, %v5466_v51  ;;  %v3910_v41 = vrot.slane %v3909_v32, 4  ;;  %v3932_v47 = vrot.slane %v3930_v38, 4  ;;  %v3950_v49 = vshll.u32 %v5448_v34, 16  ;;  %v3938_v52 = vrot.slane %v3936_v42, 5  ;;  %v5455_v29 = vld [vmem:[%s6068_s28 + $0xbc] sm:$0x1] }
 0x136   : > { %v2070_v35 = vpop.permute.xlu1 %2069  ;;  %v3875_v3 = vor.u32 %v3874_v57, %v3871_v54  ;;  %v3943_v53 = vrot.slane %v3941_v44, 4  ;;  %v3954_v54 = vshrl.u32 %v5448_v34, 16  ;;  %v3960_v62 = vshll.u32 %v5449_v43, 16 }
 0x137   : > { %v2068_v15 = vpop.permute.xlu0 %2067  ;;  %2107 = vst.msk [vmem:[#allocation2 + $0x58] sm:$0xff] %vm2095_vm7, %v2070_v35  ;;  %v3919_v35 = vrot.slane %v3917_v22, 4  ;;  %v3915_v51 = vsel %vm6666_vm15, %v3910_v41, %v3914_v33  ;;  %v3933_v57 = vor.u32 %v3932_v47, %v3928_v37  ;;  %v3952_v60 = vrot.slane %v3950_v49, 5 }
 0x138   : > { %2106 = vst.msk [vmem:[#allocation2 + $0x50] sm:$0xff] %vm2095_vm7, %v2068_v15  ;;  %v5467_v15 = vcombine.low %v3857_v61, %v3867_v10  ;;  %v3876_v16 = vrot.slane %v3875_v3, 4  ;;  %v5469_v55 = vcombine.low %v3905_v40, %v3915_v51  ;;  %v3956_v61 = vrot.slane %v3954_v54, 4  ;;  %v5457_v40 = vld [vmem:[%s6068_s28 + $0xc4] sm:$0xf] }
 0x139   : > { %v3965_v0 = vshrl.u32 %v5450_v50, 16  ;;  %v3934_v6 = vrot.slane %v3933_v57, 4  ;;  %v3968_v9 = vshll.u32 %v5450_v50, 16  ;;  %v3962_v11 = vrot.slane %v3960_v62, 5  ;;  %v5458_v54 = vld [vmem:[%s6068_s28 + $0xc8] sm:$0x1] }
 0x13a   : > { %v2251_v56 = vpop.permute.xlu1 %2250  ;;  %5683 = vmatprep.mubr.msk.bf16.mxu1 %vm468_vm2, %v5467_v15  ;;  %v3881_v24 = vsel %vm6666_vm15, %v3876_v16, %v3880_v58  ;;  %v3946_v58 = vrot.slane %v3944_v48, 5  ;;  %v3957_v10 = vor.u32 %v3956_v61, %v3952_v60  ;;  %v3974_v5 = vshll.u32 %v5451_v59, 16 }
 0x13b   : > { %v2249_v36 = vpop.permute.xlu0 %2248  ;;  %2288 = vst.msk [vmem:[#allocation2 + $0x58] sm:$0xff] %vm2276_vm8, %v2251_v56  ;;  %v5468_v30 = vcombine.low %v3881_v24, %v3891_v25  ;;  %v3967_v12 = vrot.slane %v3965_v0, 4  ;;  %v3970_v16 = vrot.slane %v3968_v9, 5  ;;  %v3978_v17 = vshrl.u32 %v5451_v59, 16 }
 0x13c   : > { %2287 = vst.msk [vmem:[#allocation2 + $0x50] sm:$0xff] %vm2276_vm8, %v2249_v36  ;;  %v3922_v36 = vrot.slane %v3920_v27, 5  ;;  %v3947_v7 = vor.u32 %v3946_v58, %v3943_v53  ;;  %v3958_v20 = vrot.slane %v3957_v10, 4  ;;  %v3976_v21 = vrot.slane %v3974_v5, 5 }
 0x13d   : > { %5684 = vmatmul.mubr.msk.bf16.gmra.mrb[16].mxu1 %vm468_vm2, %v5468_v30  ;;  %v3984_v22 = vshll.u32 %v5452_v8, 16  ;;  %v3971_v27 = vor.u32 %v3970_v16, %v3967_v12  ;;  %v3980_v28 = vrot.slane %v3978_v17, 4  ;;  %v3989_v30 = vshrl.u32 %v5453_v13, 16 }
 0x13e   : > { %v2684_v14 = vpop.permute.xlu1 %2683  ;;  %v3923_v46 = vor.u32 %v3922_v36, %v3919_v35  ;;  %5687 = vmatprep.mubr.msk.bf16.mxu1 %vm468_vm2, %v5469_v55  ;;  %v3948_v15 = vrot.slane %v3947_v7, 4  ;;  %v3963_v31 = vsel %vm6666_vm15, %v3958_v20, %v3962_v11  ;;  %v3992_v33 = vshll.u32 %v5453_v13, 16  ;;  %v5456_v35 = vld [vmem:[%s6068_s28 + $0xc0] sm:$0xf]  ;;  %s6852_s28 = scalar_lea.vmem %s7163_s3, %s5525_s25 }
 0x13f   : > { %v2682_v2 = vpop.permute.xlu0 %2681  ;;  %2721 = vst.msk [vmem:[#allocation2 + $0x58] sm:$0xff] %vm2709_vm9, %v2684_v14  ;;  %v3939_v14 = vsel %vm6666_vm15, %v3934_v6, %v3938_v52  ;;  %v3986_v32 = vrot.slane %v3984_v22, 5  ;;  %v3998_v34 = vshll.u32 %v5454_v18, 16  ;;  %v3981_v38 = vor.u32 %v3980_v28, %v3976_v21 }
 0x140   : > { %2720 = vst.msk [vmem:[#allocation2 + $0x50] sm:$0xff] %vm2709_vm9, %v2682_v2  ;;  %v3924_v56 = vrot.slane %v3923_v46, 4  ;;  %v3953_v26 = vsel %vm6666_vm15, %v3948_v15, %v3952_v60  ;;  %v3994_v41 = vrot.slane %v3992_v33, 5  ;;  %v4002_v43 = vshrl.u32 %v5454_v18, 16 }
 0x141   : > { %v5471_v36 = vcombine.low %v3953_v26, %v3963_v31  ;;  %v4000_v42 = vrot.slane %v3998_v34, 5  ;;  %v4008_v44 = vshll.u32 %v5455_v29, 16  ;;  %v3982_v47 = vrot.slane %v3981_v38, 4 }
 0x142   : > { %v879_v39 = vpop.permute.xlu1 %878  ;;  %v3929_v4 = vsel %vm6666_vm15, %v3924_v56, %v3928_v37  ;;  %v3972_v37 = vrot.slane %v3971_v27, 4  ;;  %v4013_v48 = vshrl.u32 %v5456_v35, 16  ;;  %v4016_v49 = vshll.u32 %v5456_v35, 16 }
 0x143   : > { %v2971_v23 = vpop.permute.xlu0 %2970  ;;  %915 = vst.msk [vmem:[#allocation2 + $0x60] sm:$0xff] %vm902_vm3, %v879_v39  ;;  %v5470_v19 = vcombine.low %v3929_v4, %v3939_v14  ;;  %v3991_v39 = vrot.slane %v3989_v30, 4  ;;  %v4004_v52 = vrot.slane %v4002_v43, 4  ;;  %v4010_v53 = vrot.slane %v4008_v44, 5 }
 0x144   : > { %3009 = vst.msk [vmem:[#allocation2 + $0x50] sm:$0xff] %vm2998_vm10, %v2971_v23  ;;  %v3977_v46 = vsel %vm6666_vm15, %v3972_v37, %v3976_v21  ;;  %v4022_v55 = vshll.u32 %v5457_v40, 16  ;;  %v3987_v56 = vsel %vm6666_vm15, %v3982_v47, %v3986_v32  ;;  %v4015_v57 = vrot.slane %v4013_v48, 4 }
 0x145   : > { %5688 = vmatmul.mubr.msk.bf16.gmra.mrb[20].mxu1 %vm468_vm2, %v5470_v19  ;;  %v3995_v51 = vor.u32 %v3994_v41, %v3991_v39  ;;  %v4018_v58 = vrot.slane %v4016_v49, 5  ;;  %v4026_v59 = vshrl.u32 %v5457_v40, 16  ;;  %v5472_v60 = vcombine.low %v3977_v46, %v3987_v56 }
 0x146   : > { %v881_v1 = vpop.permute.xlu1 %880  ;;  %5691 = vmatprep.mubr.msk.bf16.mxu1 %vm468_vm2, %v5471_v36  ;;  %v4005_v62 = vor.u32 %v4004_v52, %v4000_v42  ;;  %v4024_v0 = vrot.slane %v4022_v55, 5  ;;  %v4032_v4 = vshll.u32 %v5458_v54, 16 }
 0x147   : > { %v2973_v45 = vpop.permute.xlu0 %2972  ;;  %916 = vst.msk [vmem:[#allocation2 + $0x68] sm:$0xff] %vm902_vm3, %v881_v1  ;;  %v3996_v61 = vrot.slane %v3995_v51, 4 }
 0x148   : > { %3010 = vst.msk [vmem:[#allocation2 + $0x58] sm:$0xff] %vm2998_vm10, %v2973_v45  ;;  %v4006_v8 = vrot.slane %v4005_v62, 4  ;;  %v4034_v11 = vrot.slane %v4032_v4, 5 }
 0x149   : > { %v4001_v7 = vsel %vm6666_vm15, %v3996_v61, %v4000_v42 }
 0x14a   : > { %v1171_v23 = vpop.permute.xlu1 %1170  ;;  %v4011_v12 = vsel %vm6666_vm15, %v4006_v8, %v4010_v53 }
 0x14b   : > { %v1169_v2 = vpop.permute.xlu0 %1168  ;;  %v3025_v3 = vld [vmem:[#allocation2 + $0x50] sm:$0xff]  ;;  %1206 = vst.msk [vmem:[#allocation2 + $0x68] sm:$0xff] %vm1192_vm4, %v1171_v23  ;;  %v5473_v13 = vcombine.low %v4001_v7, %v4011_v12 }
 0x14c   : > { %1205 = vst.msk [vmem:[#allocation2 + $0x60] sm:$0xff] %vm1192_vm4, %v1169_v2  ;;  %5653 = vmatprep.mubr.msk.bf16.mxu0 %vm3051_vm12, %v3025_v3  ;;  %v4019_v2 = vor.u32 %v4018_v58, %v4015_v57  ;;  %v4028_v3 = vrot.slane %v4026_v59, 4 }
 0x14d   : > { %5692 = vmatmul.mubr.msk.bf16.gmra.mrb[24].mxu1 %vm468_vm2, %v5472_v60 }
 0x14e   : > { %v1352_v45 = vpop.permute.xlu1 %1351  ;;  %v4020_v9 = vrot.slane %v4019_v2, 4  ;;  %v4029_v10 = vor.u32 %v4028_v3, %v4024_v0  ;;  %5695 = vmatprep.mubr.msk.bf16.mxu1 %vm468_vm2, %v5473_v13 }
 0x14f   : > { %v1350_v24 = vpop.permute.xlu0 %1349  ;;  %v3026_v25 = vld [vmem:[#allocation2 + $0x58] sm:$0xff]  ;;  %1387 = vst.msk [vmem:[#allocation2 + $0x68] sm:$0xff] %vm1373_vm5, %v1352_v45 }
 0x150   : > { %1386 = vst.msk [vmem:[#allocation2 + $0x60] sm:$0xff] %vm1373_vm5, %v1350_v24  ;;  %5654 = vmatmul.mubr.msk.bf16.gmra.mrb[20].mxu0 %vm3051_vm12, %v3026_v25  ;;  %v4025_v14 = vsel %vm6666_vm15, %v4020_v9, %v4024_v0  ;;  %v4030_v15 = vrot.slane %v4029_v10, 4 }
 0x152   : > { %v1785_v1 = vpop.permute.xlu1 %1784  ;;  %v4035_v17 = vsel %vm6666_vm15, %v4030_v15, %v4034_v11 }
 0x153   : > { %v1783_v50 = vpop.permute.xlu0 %1782  ;;  %1820 = vst.msk [vmem:[#allocation2 + $0x68] sm:$0xff] %vm1806_vm6, %v1785_v1  ;;  %v5474_v18 = vcombine.low %v4025_v14, %v4035_v17 }
 0x154   : > { %1819 = vst.msk [vmem:[#allocation2 + $0x60] sm:$0xff] %vm1806_vm6, %v1783_v50 }
 0x155   : > { %5696 = vmatmul.mubr.msk.bf16.gmra.mrb[28].mxu1 %vm468_vm2, %v5474_v18  ;;  %vm3597_vm2 = vcmask 1040384  }
 0x156   : > { %v2074_v5 = vpop.permute.xlu1 %2073 }
 0x157   : > { %v2072_v6 = vpop.permute.xlu0 %2071  ;;  %2109 = vst.msk [vmem:[#allocation2 + $0x68] sm:$0xff] %vm2095_vm7, %v2074_v5 }
 0x158   : > { %2108 = vst.msk [vmem:[#allocation2 + $0x60] sm:$0xff] %vm2095_vm7, %v2072_v6 }
 0x15a   : > { %v2255_v19 = vpop.permute.xlu1 %2254 }
 0x15b   : > { %v2253_v16 = vpop.permute.xlu0 %2252  ;;  %2290 = vst.msk [vmem:[#allocation2 + $0x68] sm:$0xff] %vm2276_vm8, %v2255_v19 }
 0x15c   : > { %2289 = vst.msk [vmem:[#allocation2 + $0x60] sm:$0xff] %vm2276_vm8, %v2253_v16 }
 0x15e   : > { %v2688_v21 = vpop.permute.xlu1 %2687 }
 0x15f   : > { %v2686_v20 = vpop.permute.xlu0 %2685  ;;  %2723 = vst.msk [vmem:[#allocation2 + $0x68] sm:$0xff] %vm2709_vm9, %v2688_v21 }
 0x160   : > { %2722 = vst.msk [vmem:[#allocation2 + $0x60] sm:$0xff] %vm2709_vm9, %v2686_v20 }
 0x162   : > { %v883_v23 = vpop.permute.xlu1 %882 }
 0x163   : > { %v2975_v22 = vpop.permute.xlu0 %2974  ;;  %917 = vst.msk [vmem:[#allocation2 + $0x70] sm:$0xff] %vm902_vm3, %v883_v23 }
 0x164   : > { %3011 = vst.msk [vmem:[#allocation2 + $0x60] sm:$0xff] %vm2998_vm10, %v2975_v22 }
 0x166   : > { %v885_v63 = vpop.permute.xlu1 %884 }
 0x167   : > { %v2977_v24 = vpop.permute.xlu0 %2976  ;;  %918 = vst.msk [vmem:[#allocation2 + $0x78] sm:$0xff] %vm902_vm3, %v885_v63  ;;  %vm3599_vm3 = vcmask 58368  }
 0x168   : > { %3012 = vst.msk [vmem:[#allocation2 + $0x68] sm:$0xff] %vm2998_vm10, %v2977_v24 }
 0x16a   : > { %v1175_v27 = vpop.permute.xlu1 %1174 }
 0x16b   : > { %v3027_v25 = vld [vmem:[#allocation2 + $0x60] sm:$0xff]  ;;  %v1173_v26 = vpop.permute.xlu0 %1172  ;;  %1208 = vst.msk [vmem:[#allocation2 + $0x78] sm:$0xff] %vm1192_vm4, %v1175_v27 }
 0x16c   : > { %5657 = vmatprep.mubr.msk.bf16.mxu0 %vm3051_vm12, %v3027_v25  ;;  %1207 = vst.msk [vmem:[#allocation2 + $0x70] sm:$0xff] %vm1192_vm4, %v1173_v26 }
 0x16e   : > { %v1356_v30 = vpop.permute.xlu1 %1355 }
 0x16f   : > { %v3028_v28 = vld [vmem:[#allocation2 + $0x68] sm:$0xff]  ;;  %v1354_v29 = vpop.permute.xlu0 %1353  ;;  %1389 = vst.msk [vmem:[#allocation2 + $0x78] sm:$0xff] %vm1373_vm5, %v1356_v30 }
 0x170   : > { %5658 = vmatmul.mubr.msk.bf16.gmra.mrb[24].mxu0 %vm3051_vm12, %v3028_v28  ;;  %1388 = vst.msk [vmem:[#allocation2 + $0x70] sm:$0xff] %vm1373_vm5, %v1354_v29 }
 0x172   : > { %v1789_v32 = vpop.permute.xlu1 %1788 }
 0x173   : > { %v1787_v31 = vpop.permute.xlu0 %1786  ;;  %1822 = vst.msk [vmem:[#allocation2 + $0x78] sm:$0xff] %vm1806_vm6, %v1789_v32 }
 0x174   : > { %1821 = vst.msk [vmem:[#allocation2 + $0x70] sm:$0xff] %vm1806_vm6, %v1787_v31 }
 0x176   : > { %v2078_v34 = vpop.permute.xlu1 %2077 }
 0x177   : > { %v2076_v33 = vpop.permute.xlu0 %2075  ;;  %2111 = vst.msk [vmem:[#allocation2 + $0x78] sm:$0xff] %vm2095_vm7, %v2078_v34 }
 0x178   : > { %2110 = vst.msk [vmem:[#allocation2 + $0x70] sm:$0xff] %vm2095_vm7, %v2076_v33 }
 0x17a   : > { %v2259_v36 = vpop.permute.xlu1 %2258 }
 0x17b   : > { %v2257_v35 = vpop.permute.xlu0 %2256  ;;  %2292 = vst.msk [vmem:[#allocation2 + $0x78] sm:$0xff] %vm2276_vm8, %v2259_v36 }
 0x17c   : > { %2291 = vst.msk [vmem:[#allocation2 + $0x70] sm:$0xff] %vm2276_vm8, %v2257_v35 }
 0x17e   : > { %v2692_v51 = vpop.permute.xlu1 %2691 }
 0x17f   : > { %v2690_v40 = vpop.permute.xlu0 %2689  ;;  %2725 = vst.msk [vmem:[#allocation2 + $0x78] sm:$0xff] %vm2709_vm9, %v2692_v51 }
 0x180   : > { %2724 = vst.msk [vmem:[#allocation2 + $0x70] sm:$0xff] %vm2709_vm9, %v2690_v40 }
 0x182   : > { %v2981_v62 = vpop.permute.xlu1 %2980 }
 0x183   : > { %v5635_v37 = vpop.f32.mrb[0].mxu0  ;;  %v2979_v53 = vpop.permute.xlu0 %2978  ;;  %3014 = vst.msk [vmem:[#allocation2 + $0x78] sm:$0xff] %vm2998_vm10, %v2981_v62 }
 0x184   : > { %v5529_v38 = vpack.c.bf16 %v5635_v37, %v5635_v37  ;;  %v3138_v39 = vpop.f32.mrb[1].mxu0  ;;  %v3498_v44 = vmul.f32 %v5635_v37, %v5635_v37  ;;  %v3430_v54 = vsel %vm3426_vm1, %v5635_v37, 0.0  ;;  %3013 = vst.msk [vmem:[#allocation2 + $0x70] sm:$0xff] %vm2998_vm10, %v2979_v53 }
 0x185   : > { %v5527_v41 = vpack.c.bf16 %v3138_v39, %v3138_v39  ;;  %v3496_v42 = vmul.f32 %v3138_v39, %v3138_v39  ;;  %v5636_v43 = vpop.f32.mrb[2].mxu0  ;;  %v3427_v47 = vsel %vm3426_vm1, %v3138_v39, 0.0 }
 0x186   : > { %3396 = vst.msk [vmem:[%s6852_s28 + $0x8] sm:$0xf] %vm3393_vm0, %v5529_v38  ;;  %v5530_v45 = vpack.c.bf16 %v5636_v43, %v5636_v43  ;;  %v3141_v46 = vpop.f32.mrb[3].mxu0  ;;  %v3499_v56 = vmul.f32 %v5636_v43, %v5636_v43  ;;  %v3531_v60 = vsel %vm3426_vm1, %v3498_v44, 0.0  ;;  %v3432_v61 = vsel %vm3426_vm1, %v5636_v43, 0.0 }
 0x187   : > { %3394 = vst.msk [vmem:[%s6852_s28] sm:$0xf] %vm3393_vm0, %v5527_v41  ;;  %v5528_v48 = vpack.c.bf16 %v3141_v46, %v3141_v46  ;;  %v3428_v49 = vsel %vm3426_vm1, %v3141_v46, 0.0  ;;  %v3497_v50 = vmul.f32 %v3141_v46, %v3141_v46  ;;  %v3528_v55 = vsel %vm3426_vm1, %v3496_v42, 0.0 }
 0x188   : > { %3397 = vst.msk [vmem:[%s6852_s28 + $0xc] sm:$0xf] %vm3393_vm0, %v5530_v45  ;;  %v3429_v52 = vadd.f32 %v3428_v49, %v3427_v47  ;;  %v3533_v2 = vsel %vm3426_vm1, %v3499_v56, 0.0 }
 0x189   : > { %3395 = vst.msk [vmem:[%s6852_s28 + $0x4] sm:$0xf] %vm3393_vm0, %v5528_v48  ;;  %v3529_v57 = vsel %vm3426_vm1, %v3497_v50, 0.0 }
 0x18a   : > { %v3431_v58 = vadd.f32 %v3430_v54, %v3429_v52  ;;  %v3530_v59 = vadd.f32 %v3529_v57, %v3528_v55  ;;  %v3030_v6 = vld [vmem:[#allocation2 + $0x78] sm:$0xff] }
 0x18b   : > { %v3029_v4 = vld [vmem:[#allocation2 + $0x70] sm:$0xff] }
 0x18c   : > { %v3532_v0 = vadd.f32 %v3531_v60, %v3530_v59  ;;  %v3433_v1 = vadd.f32 %v3432_v61, %v3431_v58  ;;  %5661 = vmatprep.mubr.msk.bf16.mxu0 %vm3051_vm12, %v3029_v4 }
 0x18d   : > { %5662 = vmatmul.mubr.msk.bf16.gmra.mrb[28].mxu0 %vm3051_vm12, %v3030_v6 }
 0x18e   : > { %v3534_v3 = vadd.f32 %v3533_v2, %v3532_v0 }
 0x1a3   : > { %v5639_v7 = vpop.f32.mrb[4].mxu0 }
 0x1a4   : > { %v5533_v8 = vpack.c.bf16 %v5639_v7, %v5639_v7  ;;  %v3154_v9 = vpop.f32.mrb[5].mxu0  ;;  %v3502_v19 = vmul.f32 %v5639_v7, %v5639_v7  ;;  %v3438_v23 = vsel %vm3426_vm1, %v5639_v7, 0.0 }
 0x1a5   : > { %v5531_v10 = vpack.c.bf16 %v3154_v9, %v3154_v9  ;;  %v3434_v11 = vsel %vm3426_vm1, %v3154_v9, 0.0  ;;  %v3500_v12 = vmul.f32 %v3154_v9, %v3154_v9  ;;  %v5640_v5 = vpop.f32.mrb[6].mxu0 }
 0x1a6   : > { %3400 = vst.msk [vmem:[%s6852_s28 + $0x18] sm:$0xf] %vm3393_vm0, %v5533_v8  ;;  %v3435_v13 = vadd.f32 %v3434_v11, %v3433_v1  ;;  %v5534_v14 = vpack.c.bf16 %v5640_v5, %v5640_v5  ;;  %v3157_v15 = vpop.f32.mrb[7].mxu0  ;;  %v3503_v24 = vmul.f32 %v5640_v5, %v5640_v5  ;;  %v3440_v26 = vsel %vm3426_vm1, %v5640_v5, 0.0 }
 0x1a7   : > { %3398 = vst.msk [vmem:[%s6852_s28 + $0x10] sm:$0xf] %vm3393_vm0, %v5531_v10  ;;  %v3535_v16 = vsel %vm3426_vm1, %v3500_v12, 0.0  ;;  %v5532_v17 = vpack.c.bf16 %v3157_v15, %v3157_v15  ;;  %v3436_v18 = vsel %vm3426_vm1, %v3157_v15, 0.0  ;;  %v3501_v22 = vmul.f32 %v3157_v15, %v3157_v15 }
 0x1a8   : > { %v3536_v20 = vadd.f32 %v3535_v16, %v3534_v3  ;;  %3401 = vst.msk [vmem:[%s6852_s28 + $0x1c] sm:$0xf] %vm3393_vm0, %v5534_v14  ;;  %v3437_v21 = vadd.f32 %v3436_v18, %v3435_v13  ;;  %v3539_v28 = vsel %vm3426_vm1, %v3502_v19, 0.0  ;;  %v3541_v31 = vsel %vm3426_vm1, %v3503_v24, 0.0 }
 0x1a9   : > { %3399 = vst.msk [vmem:[%s6852_s28 + $0x14] sm:$0xf] %vm3393_vm0, %v5532_v17  ;;  %v3537_v25 = vsel %vm3426_vm1, %v3501_v22, 0.0 }
 0x1aa   : > { %v3439_v63 = vadd.f32 %v3438_v23, %v3437_v21  ;;  %v3538_v27 = vadd.f32 %v3537_v25, %v3536_v20 }
 0x1ac   : > { %v3441_v29 = vadd.f32 %v3440_v26, %v3439_v63  ;;  %v3540_v30 = vadd.f32 %v3539_v28, %v3538_v27 }
 0x1ae   : > { %v3542_v32 = vadd.f32 %v3541_v31, %v3540_v30 }
 0x1c3   : > { %v5643_v33 = vpop.f32.mrb[8].mxu0 }
 0x1c4   : > { %v5537_v34 = vpack.c.bf16 %v5643_v33, %v5643_v33  ;;  %v3170_v35 = vpop.f32.mrb[9].mxu0  ;;  %v3506_v46 = vmul.f32 %v5643_v33, %v5643_v33  ;;  %v3446_v50 = vsel %vm3426_vm1, %v5643_v33, 0.0 }
 0x1c5   : > { %v5535_v36 = vpack.c.bf16 %v3170_v35, %v3170_v35  ;;  %v3442_v37 = vsel %vm3426_vm1, %v3170_v35, 0.0  ;;  %v3504_v38 = vmul.f32 %v3170_v35, %v3170_v35  ;;  %v5644_v39 = vpop.f32.mrb[10].mxu0 }
 0x1c6   : > { %3404 = vst.msk [vmem:[%s6852_s28 + $0x28] sm:$0xf] %vm3393_vm0, %v5537_v34  ;;  %v3443_v40 = vadd.f32 %v3442_v37, %v3441_v29  ;;  %v5538_v41 = vpack.c.bf16 %v5644_v39, %v5644_v39  ;;  %v3173_v42 = vpop.f32.mrb[11].mxu0  ;;  %v3507_v51 = vmul.f32 %v5644_v39, %v5644_v39  ;;  %v3448_v54 = vsel %vm3426_vm1, %v5644_v39, 0.0 }
 0x1c7   : > { %3402 = vst.msk [vmem:[%s6852_s28 + $0x20] sm:$0xf] %vm3393_vm0, %v5535_v36  ;;  %v3543_v43 = vsel %vm3426_vm1, %v3504_v38, 0.0  ;;  %v5536_v44 = vpack.c.bf16 %v3173_v42, %v3173_v42  ;;  %v3444_v45 = vsel %vm3426_vm1, %v3173_v42, 0.0  ;;  %v3505_v49 = vmul.f32 %v3173_v42, %v3173_v42 }
 0x1c8   : > { %v3544_v47 = vadd.f32 %v3543_v43, %v3542_v32  ;;  %3405 = vst.msk [vmem:[%s6852_s28 + $0x2c] sm:$0xf] %vm3393_vm0, %v5538_v41  ;;  %v3445_v48 = vadd.f32 %v3444_v45, %v3443_v40  ;;  %v3547_v56 = vsel %vm3426_vm1, %v3506_v46, 0.0  ;;  %v3549_v59 = vsel %vm3426_vm1, %v3507_v51, 0.0 }
 0x1c9   : > { %3403 = vst.msk [vmem:[%s6852_s28 + $0x24] sm:$0xf] %vm3393_vm0, %v5536_v44  ;;  %v3545_v53 = vsel %vm3426_vm1, %v3505_v49, 0.0 }
 0x1ca   : > { %v3447_v52 = vadd.f32 %v3446_v50, %v3445_v48  ;;  %v3546_v55 = vadd.f32 %v3545_v53, %v3544_v47 }
 0x1cc   : > { %v3449_v57 = vadd.f32 %v3448_v54, %v3447_v52  ;;  %v3548_v58 = vadd.f32 %v3547_v56, %v3546_v55 }
 0x1ce   : > { %v3550_v60 = vadd.f32 %v3549_v59, %v3548_v58 }
 0x1e3   : > { %v5647_v61 = vpop.f32.mrb[12].mxu0 }
 0x1e4   : > { %v5541_v62 = vpack.c.bf16 %v5647_v61, %v5647_v61  ;;  %v3186_v0 = vpop.f32.mrb[13].mxu0  ;;  %v3510_v12 = vmul.f32 %v5647_v61, %v5647_v61  ;;  %v3454_v15 = vsel %vm3426_vm1, %v5647_v61, 0.0 }
 0x1e5   : > { %v5539_v1 = vpack.c.bf16 %v3186_v0, %v3186_v0  ;;  %v3450_v2 = vsel %vm3426_vm1, %v3186_v0, 0.0  ;;  %v3508_v3 = vmul.f32 %v3186_v0, %v3186_v0  ;;  %v5648_v4 = vpop.f32.mrb[14].mxu0 }
 0x1e6   : > { %3408 = vst.msk [vmem:[%s6852_s28 + $0x38] sm:$0xf] %vm3393_vm0, %v5541_v62  ;;  %v3451_v6 = vadd.f32 %v3450_v2, %v3449_v57  ;;  %v5542_v7 = vpack.c.bf16 %v5648_v4, %v5648_v4  ;;  %v3189_v8 = vpop.f32.mrb[15].mxu0  ;;  %v3511_v16 = vmul.f32 %v5648_v4, %v5648_v4  ;;  %v3456_v19 = vsel %vm3426_vm1, %v5648_v4, 0.0 }
 0x1e7   : > { %3406 = vst.msk [vmem:[%s6852_s28 + $0x30] sm:$0xf] %vm3393_vm0, %v5539_v1  ;;  %v3551_v9 = vsel %vm3426_vm1, %v3508_v3, 0.0  ;;  %v5540_v10 = vpack.c.bf16 %v3189_v8, %v3189_v8  ;;  %v3452_v11 = vsel %vm3426_vm1, %v3189_v8, 0.0  ;;  %v3509_v14 = vmul.f32 %v3189_v8, %v3189_v8 }
 0x1e8   : > { %v3552_v5 = vadd.f32 %v3551_v9, %v3550_v60  ;;  %3409 = vst.msk [vmem:[%s6852_s28 + $0x3c] sm:$0xf] %vm3393_vm0, %v5542_v7  ;;  %v3453_v13 = vadd.f32 %v3452_v11, %v3451_v6  ;;  %v3555_v21 = vsel %vm3426_vm1, %v3510_v12, 0.0  ;;  %v3557_v24 = vsel %vm3426_vm1, %v3511_v16, 0.0 }
 0x1e9   : > { %3407 = vst.msk [vmem:[%s6852_s28 + $0x34] sm:$0xf] %vm3393_vm0, %v5540_v10  ;;  %v3553_v18 = vsel %vm3426_vm1, %v3509_v14, 0.0 }
 0x1ea   : > { %v3455_v17 = vadd.f32 %v3454_v15, %v3453_v13  ;;  %v3554_v20 = vadd.f32 %v3553_v18, %v3552_v5 }
 0x1ec   : > { %v3457_v22 = vadd.f32 %v3456_v19, %v3455_v17  ;;  %v3556_v23 = vadd.f32 %v3555_v21, %v3554_v20 }
 0x1ee   : > { %v3558_v63 = vadd.f32 %v3557_v24, %v3556_v23  ;;  %v5669_v25 = vpop.f32.mrb[0].mxu1 }
 0x1ef   : > { %v5561_v26 = vpack.c.bf16 %v5669_v25, %v5669_v25  ;;  %v4170_v27 = vpop.f32.mrb[1].mxu1  ;;  %v4528_v28 = vmul.f32 %v5669_v25, %v5669_v25  ;;  %v4460_v33 = vsel %vm3426_vm1, %v5669_v25, 0.0 }
 0x1f0   : > { %v5559_v29 = vpack.c.bf16 %v4170_v27, %v4170_v27  ;;  %v4457_v30 = vsel %vm3426_vm1, %v4170_v27, 0.0  ;;  %v4526_v31 = vmul.f32 %v4170_v27, %v4170_v27  ;;  %v5670_v32 = vpop.f32.mrb[2].mxu1 }
 0x1f1   : > { %4427 = vst.msk [vmem:[%s6930_s7 + $0x8] sm:$0xf] %vm3393_vm0, %v5561_v26  ;;  %v5562_v34 = vpack.c.bf16 %v5670_v32, %v5670_v32  ;;  %v4173_v35 = vpop.f32.mrb[3].mxu1  ;;  %v4561_v41 = vsel %vm3426_vm1, %v4528_v28, 0.0  ;;  %v4462_v42 = vsel %vm3426_vm1, %v5670_v32, 0.0  ;;  %v4529_v46 = vmul.f32 %v5670_v32, %v5670_v32 }
 0x1f2   : > { %4425 = vst.msk [vmem:[%s6930_s7] sm:$0xf] %vm3393_vm0, %v5559_v29  ;;  %v4558_v36 = vsel %vm3426_vm1, %v4526_v31, 0.0  ;;  %v5560_v37 = vpack.c.bf16 %v4173_v35, %v4173_v35  ;;  %v4458_v38 = vsel %vm3426_vm1, %v4173_v35, 0.0  ;;  %v4527_v39 = vmul.f32 %v4173_v35, %v4173_v35 }
 0x1f3   : > { %4428 = vst.msk [vmem:[%s6930_s7 + $0xc] sm:$0xf] %vm3393_vm0, %v5562_v34  ;;  %v4459_v40 = vadd.f32 %v4458_v38, %v4457_v30  ;;  %v4563_v59 = vsel %vm3426_vm1, %v4529_v46, 0.0 }
 0x1f4   : > { %4426 = vst.msk [vmem:[%s6930_s7 + $0x4] sm:$0xf] %vm3393_vm0, %v5560_v37  ;;  %v4559_v43 = vsel %vm3426_vm1, %v4527_v39, 0.0 }
 0x1f5   : > { %v4461_v44 = vadd.f32 %v4460_v33, %v4459_v40  ;;  %v4560_v45 = vadd.f32 %v4559_v43, %v4558_v36 }
 0x1f6   : > { %v5673_v50 = vpop.f32.mrb[4].mxu1 }
 0x1f7   : > { %v4562_v47 = vadd.f32 %v4561_v41, %v4560_v45  ;;  %v4463_v48 = vadd.f32 %v4462_v42, %v4461_v44  ;;  %v5565_v53 = vpack.c.bf16 %v5673_v50, %v5673_v50  ;;  %v4186_v54 = vpop.f32.mrb[5].mxu1  ;;  %v4468_v8 = vsel %vm3426_vm1, %v5673_v50, 0.0 }
 0x1f8   : > { %v5674_v60 = vpop.f32.mrb[6].mxu1  ;;  %v5563_v13 = vpack.c.bf16 %v4186_v54, %v4186_v54  ;;  %v4464_v14 = vsel %vm3426_vm1, %v4186_v54, 0.0  ;;  %v4530_v15 = vmul.f32 %v4186_v54, %v4186_v54  ;;  %v4532_v18 = vmul.f32 %v5673_v50, %v5673_v50 }
 0x1f9   : > { %4431 = vst.msk [vmem:[%s6930_s7 + $0x18] sm:$0xf] %vm3393_vm0, %v5565_v53  ;;  %v4189_v3 = vpop.f32.mrb[7].mxu1  ;;  %v4465_v19 = vadd.f32 %v4464_v14, %v4463_v48  ;;  %v4564_v21 = vadd.f32 %v4563_v59, %v4562_v47  ;;  %v5566_v23 = vpack.c.bf16 %v5674_v60, %v5674_v60  ;;  %v4533_v25 = vmul.f32 %v5674_v60, %v5674_v60 }
 0x1fa   : > { %4429 = vst.msk [vmem:[%s6930_s7 + $0x10] sm:$0xf] %vm3393_vm0, %v5563_v13  ;;  %v5564_v27 = vpack.c.bf16 %v4189_v3, %v4189_v3  ;;  %v4466_v31 = vsel %vm3426_vm1, %v4189_v3, 0.0  ;;  %v4531_v32 = vmul.f32 %v4189_v3, %v4189_v3  ;;  %v4569_v35 = vsel %vm3426_vm1, %v4532_v18, 0.0 }
 0x1fb   : > { %4432 = vst.msk [vmem:[%s6930_s7 + $0x1c] sm:$0xf] %vm3393_vm0, %v5566_v23  ;;  %v4467_v36 = vadd.f32 %v4466_v31, %v4465_v19  ;;  %v4470_v39 = vsel %vm3426_vm1, %v5674_v60, 0.0  ;;  %v4571_v46 = vsel %vm3426_vm1, %v4533_v25, 0.0 }
 0x1fc   : > { %4430 = vst.msk [vmem:[%s6930_s7 + $0x14] sm:$0xf] %vm3393_vm0, %v5564_v27  ;;  %v4567_v41 = vsel %vm3426_vm1, %v4531_v32, 0.0 }
 0x1fd   : > { %v4469_v43 = vadd.f32 %v4468_v8, %v4467_v36 }
 0x1fe   : > { %v5677_v24 = vpop.f32.mrb[8].mxu1 }
 0x1ff   : > { %v4202_v28 = vpop.f32.mrb[9].mxu1  ;;  %v5569_v37 = vpack.c.bf16 %v5677_v24, %v5677_v24  ;;  %v4471_v50 = vadd.f32 %v4470_v39, %v4469_v43 }
 0x200   : > { %v5678_v33 = vpop.f32.mrb[10].mxu1  ;;  %v5567_v42 = vpack.c.bf16 %v4202_v28, %v4202_v28  ;;  %v4534_v45 = vmul.f32 %v4202_v28, %v4202_v28  ;;  %v4472_v47 = vsel %vm3426_vm1, %v4202_v28, 0.0 }
 0x201   : > { %v4205_v38 = vpop.f32.mrb[11].mxu1  ;;  %4435 = vst.msk [vmem:[%s6930_s7 + $0x28] sm:$0xf] %vm3393_vm0, %v5569_v37  ;;  %v5570_v48 = vpack.c.bf16 %v5678_v33, %v5678_v33 }
 0x202   : > { %4433 = vst.msk [vmem:[%s6930_s7 + $0x20] sm:$0xf] %vm3393_vm0, %v5567_v42  ;;  %v4573_v53 = vsel %vm3426_vm1, %v4534_v45, 0.0  ;;  %v4474_v54 = vsel %vm3426_vm1, %v4205_v38, 0.0 }
 0x203   : > { %v5651_v49 = vpop.f32.mrb[16].mxu0  ;;  %4436 = vst.msk [vmem:[%s6930_s7 + $0x2c] sm:$0xf] %vm3393_vm0, %v5570_v48 }
 0x204   : > { %v5545_v51 = vpack.c.bf16 %v5651_v49, %v5651_v49  ;;  %v3202_v52 = vpop.f32.mrb[17].mxu0  ;;  %v3462_v61 = vsel %vm3426_vm1, %v5651_v49, 0.0  ;;  %v3514_v62 = vmul.f32 %v5651_v49, %v5651_v49 }
 0x205   : > { %v5543_v55 = vpack.c.bf16 %v3202_v52, %v3202_v52  ;;  %v3458_v56 = vsel %vm3426_vm1, %v3202_v52, 0.0  ;;  %v3512_v57 = vmul.f32 %v3202_v52, %v3202_v52  ;;  %v5652_v58 = vpop.f32.mrb[18].mxu0  ;;  %v4536_v52 = vmul.f32 %v5677_v24, %v5677_v24 }
 0x206   : > { %3412 = vst.msk [vmem:[%s6852_s28 + $0x48] sm:$0xf] %vm3393_vm0, %v5545_v51  ;;  %v3459_v0 = vadd.f32 %v3458_v56, %v3457_v22  ;;  %v5546_v1 = vpack.c.bf16 %v5652_v58, %v5652_v58  ;;  %v3205_v2 = vpop.f32.mrb[19].mxu0  ;;  %v3464_v10 = vsel %vm3426_vm1, %v5652_v58, 0.0  ;;  %v3515_v5 = vmul.f32 %v5652_v58, %v5652_v58 }
 0x207   : > { %3410 = vst.msk [vmem:[%s6852_s28 + $0x40] sm:$0xf] %vm3393_vm0, %v5543_v55  ;;  %v3559_v4 = vsel %vm3426_vm1, %v3512_v57, 0.0  ;;  %v5544_v6 = vpack.c.bf16 %v3205_v2, %v3205_v2  ;;  %v3460_v7 = vsel %vm3426_vm1, %v3205_v2, 0.0  ;;  %v3513_v12 = vmul.f32 %v3205_v2, %v3205_v2 }
 0x208   : > { %v3560_v9 = vadd.f32 %v3559_v4, %v3558_v63  ;;  %3413 = vst.msk [vmem:[%s6852_s28 + $0x4c] sm:$0xf] %vm3393_vm0, %v5546_v1  ;;  %v3461_v11 = vadd.f32 %v3460_v7, %v3459_v0  ;;  %v4565_v22 = vsel %vm3426_vm1, %v4530_v15, 0.0  ;;  %v3563_v63 = vsel %vm3426_vm1, %v3514_v62, 0.0  ;;  %v5681_v56 = vpop.f32.mrb[12].mxu1 }
 0x209   : > { %3411 = vst.msk [vmem:[%s6852_s28 + $0x44] sm:$0xf] %vm3393_vm0, %v5544_v6  ;;  %v3561_v17 = vsel %vm3426_vm1, %v3513_v12, 0.0  ;;  %v4566_v30 = vadd.f32 %v4565_v22, %v4564_v21  ;;  %v3565_v34 = vsel %vm3426_vm1, %v3515_v5, 0.0  ;;  %v5568_v51 = vpack.c.bf16 %v4205_v38, %v4205_v38  ;;  %v4218_v60 = vpop.f32.mrb[13].mxu1 }
 0x20a   : > { %v3463_v16 = vadd.f32 %v3462_v61, %v3461_v11  ;;  %v3562_v20 = vadd.f32 %v3561_v17, %v3560_v9  ;;  %v4535_v55 = vmul.f32 %v4205_v38, %v4205_v38  ;;  %v4473_v57 = vadd.f32 %v4472_v47, %v4471_v50  ;;  %v5682_v2 = vpop.f32.mrb[14].mxu1 }
 0x20b   : > { %v4568_v44 = vadd.f32 %v4567_v41, %v4566_v30  ;;  %4434 = vst.msk [vmem:[%s6930_s7 + $0x24] sm:$0xf] %vm3393_vm0, %v5568_v51  ;;  %v5573_v59 = vpack.c.bf16 %v5681_v56, %v5681_v56  ;;  %v4476_v61 = vsel %vm3426_vm1, %v5677_v24, 0.0  ;;  %v4537_v62 = vmul.f32 %v5678_v33, %v5678_v33  ;;  %v4221_v7 = vpop.f32.mrb[15].mxu1 }
 0x20c   : > { %v6970_v26 = vadd.f32 %v3464_v10, %v3463_v16  ;;  %v3564_v29 = vadd.f32 %v3563_v63, %v3562_v20  ;;  %v4575_v0 = vsel %vm3426_vm1, %v4535_v55, 0.0  ;;  %v5571_v1 = vpack.c.bf16 %v4218_v60, %v4218_v60 }
 0x20d   : > { %v4570_v49 = vadd.f32 %v4569_v35, %v4568_v44  ;;  %v4475_v4 = vadd.f32 %v4474_v54, %v4473_v57  ;;  %4439 = vst.msk [vmem:[%s6930_s7 + $0x38] sm:$0xf] %vm3393_vm0, %v5573_v59  ;;  %v5574_v6 = vpack.c.bf16 %v5682_v2, %v5682_v2  ;;  %v4577_v8 = vsel %vm3426_vm1, %v4536_v52, 0.0 }
 0x20e   : > { %v6980_v40 = vadd.f32 %v3565_v34, %v3564_v29  ;;  %v4478_v9 = vsel %vm3426_vm1, %v5678_v33, 0.0  ;;  %4437 = vst.msk [vmem:[%s6930_s7 + $0x30] sm:$0xf] %vm3393_vm0, %v5571_v1  ;;  %v4538_v10 = vmul.f32 %v4218_v60, %v4218_v60  ;;  %v5572_v11 = vpack.c.bf16 %v4221_v7, %v4221_v7 }
 0x20f   : > { %v4572_v58 = vadd.f32 %v4571_v46, %v4570_v49  ;;  %v4477_v12 = vadd.f32 %v4476_v61, %v4475_v4  ;;  %4440 = vst.msk [vmem:[%s6930_s7 + $0x3c] sm:$0xf] %vm3393_vm0, %v5574_v6  ;;  %v4579_v13 = vsel %vm3426_vm1, %v4537_v62, 0.0  ;;  %v4480_v14 = vsel %vm3426_vm1, %v4218_v60, 0.0 }
 0x210   : > { %4438 = vst.msk [vmem:[%s6930_s7 + $0x34] sm:$0xf] %vm3393_vm0, %v5572_v11  ;;  %v4539_v15 = vmul.f32 %v4221_v7, %v4221_v7  ;;  %v4540_v18 = vmul.f32 %v5681_v56, %v5681_v56  ;;  %v4581_v19 = vsel %vm3426_vm1, %v4538_v10, 0.0  ;;  %v4482_v20 = vsel %vm3426_vm1, %v4221_v7, 0.0  ;;  %v5685_v21 = vpop.f32.mrb[16].mxu1 }
 0x211   : > { %v4574_v3 = vadd.f32 %v4573_v53, %v4572_v58  ;;  %v4479_v17 = vadd.f32 %v4478_v9, %v4477_v12  ;;  %v5577_v24 = vpack.c.bf16 %v5685_v21, %v5685_v21  ;;  %v4234_v63 = vpop.f32.mrb[17].mxu1  ;;  %v4484_v25 = vsel %vm3426_vm1, %v5681_v56, 0.0 }
 0x212   : > { %v4541_v27 = vmul.f32 %v5682_v2, %v5682_v2  ;;  %v4583_v28 = vsel %vm3426_vm1, %v4539_v15, 0.0  ;;  %v5575_v29 = vpack.c.bf16 %v4234_v63, %v4234_v63  ;;  %v5686_v30 = vpop.f32.mrb[18].mxu1  ;;  %v4585_v35 = vsel %vm3426_vm1, %v4540_v18, 0.0 }
 0x213   : > { %v4576_v5 = vadd.f32 %v4575_v0, %v4574_v3  ;;  %v4481_v22 = vadd.f32 %v4480_v14, %v4479_v17  ;;  %4443 = vst.msk [vmem:[%s6930_s7 + $0x48] sm:$0xf] %vm3393_vm0, %v5577_v24  ;;  %v5578_v33 = vpack.c.bf16 %v5686_v30, %v5686_v30  ;;  %v4237_v34 = vpop.f32.mrb[19].mxu1  ;;  %v4486_v36 = vsel %vm3426_vm1, %v5682_v2, 0.0 }
 0x214   : > { %4441 = vst.msk [vmem:[%s6930_s7 + $0x40] sm:$0xf] %vm3393_vm0, %v5575_v29  ;;  %v4542_v37 = vmul.f32 %v4234_v63, %v4234_v63  ;;  %v5576_v38 = vpack.c.bf16 %v4237_v34, %v4237_v34  ;;  %v4587_v42 = vsel %vm3426_vm1, %v4541_v27, 0.0  ;;  %v4488_v43 = vsel %vm3426_vm1, %v4234_v63, 0.0 }
 0x215   : > { %v4578_v16 = vadd.f32 %v4577_v8, %v4576_v5  ;;  %v4483_v32 = vadd.f32 %v4482_v20, %v4481_v22  ;;  %4444 = vst.msk [vmem:[%s6930_s7 + $0x4c] sm:$0xf] %vm3393_vm0, %v5578_v33  ;;  %v4544_v45 = vmul.f32 %v5685_v21, %v5685_v21  ;;  %v4545_v48 = vmul.f32 %v5686_v30, %v5686_v30 }
 0x216   : > { %4442 = vst.msk [vmem:[%s6930_s7 + $0x44] sm:$0xf] %vm3393_vm0, %v5576_v38  ;;  %v4589_v47 = vsel %vm3426_vm1, %v4542_v37, 0.0  ;;  %v4490_v51 = vsel %vm3426_vm1, %v4237_v34, 0.0  ;;  %v4543_v52 = vmul.f32 %v4237_v34, %v4237_v34  ;;  %v4492_v54 = vsel %vm3426_vm1, %v5685_v21, 0.0 }
 0x217   : > { %v4580_v23 = vadd.f32 %v4579_v13, %v4578_v16  ;;  %v4485_v39 = vadd.f32 %v4484_v25, %v4483_v32  ;;  %v4494_v55 = vsel %vm3426_vm1, %v5686_v30, 0.0  ;;  %v4593_v60 = vsel %vm3426_vm1, %v4544_v45, 0.0 }
 0x218   : > { %v5689_v56 = vpop.f32.mrb[20].mxu1  ;;  %v4595_v10 = vsel %vm3426_vm1, %v4545_v48, 0.0  ;;  %v4591_v11 = vsel %vm3426_vm1, %v4543_v52, 0.0 }
 0x219   : > { %v4582_v31 = vadd.f32 %v4581_v19, %v4580_v23  ;;  %v4487_v46 = vadd.f32 %v4486_v36, %v4485_v39  ;;  %v4250_v62 = vpop.f32.mrb[21].mxu1  ;;  %v5581_v22 = vpack.c.bf16 %v5689_v56, %v5689_v56  ;;  %v4500_v32 = vsel %vm3426_vm1, %v5689_v56, 0.0 }
 0x21a   : > { %v5690_v6 = vpop.f32.mrb[22].mxu1  ;;  %v5579_v63 = vpack.c.bf16 %v4250_v62, %v4250_v62  ;;  %v4496_v29 = vsel %vm3426_vm1, %v4250_v62, 0.0  ;;  %v4546_v33 = vmul.f32 %v4250_v62, %v4250_v62  ;;  %v4548_v37 = vmul.f32 %v5689_v56, %v5689_v56 }
 0x21b   : > { %v4584_v41 = vadd.f32 %v4583_v28, %v4582_v31  ;;  %v4489_v49 = vadd.f32 %v4488_v43, %v4487_v46  ;;  %v4253_v12 = vpop.f32.mrb[23].mxu1  ;;  %4447 = vst.msk [vmem:[%s6930_s7 + $0x58] sm:$0xf] %vm3393_vm0, %v5581_v22  ;;  %v5582_v34 = vpack.c.bf16 %v5690_v6, %v5690_v6  ;;  %v4549_v48 = vmul.f32 %v5690_v6, %v5690_v6 }
 0x21c   : > { %4445 = vst.msk [vmem:[%s6930_s7 + $0x50] sm:$0xf] %vm3393_vm0, %v5579_v63  ;;  %v4498_v45 = vsel %vm3426_vm1, %v4253_v12, 0.0  ;;  %v4547_v52 = vmul.f32 %v4253_v12, %v4253_v12 }
 0x21d   : > { %v4586_v44 = vadd.f32 %v4585_v35, %v4584_v41  ;;  %v4491_v4 = vadd.f32 %v4490_v51, %v4489_v49  ;;  %4448 = vst.msk [vmem:[%s6930_s7 + $0x5c] sm:$0xf] %vm3393_vm0, %v5582_v34  ;;  %v4502_v51 = vsel %vm3426_vm1, %v5690_v6, 0.0 }
 0x21f   : > { %v4588_v50 = vadd.f32 %v4587_v42, %v4586_v44  ;;  %v4493_v18 = vadd.f32 %v4492_v54, %v4491_v4  ;;  %v4597_v42 = vsel %vm3426_vm1, %v4546_v33, 0.0  ;;  %v5580_v44 = vpack.c.bf16 %v4253_v12, %v4253_v12 }
 0x220   : > { %v5693_v30 = vpop.f32.mrb[24].mxu1  ;;  %v4601_v54 = vsel %vm3426_vm1, %v4548_v37, 0.0 }
 0x221   : > { %v4590_v61 = vadd.f32 %v4589_v47, %v4588_v50  ;;  %v4495_v28 = vadd.f32 %v4494_v55, %v4493_v18  ;;  %v4266_v35 = vpop.f32.mrb[25].mxu1  ;;  %4446 = vst.msk [vmem:[%s6930_s7 + $0x54] sm:$0xf] %vm3393_vm0, %v5580_v44  ;;  %v4552_v12 = vmul.f32 %v5693_v30, %v5693_v30 }
 0x222   : > { %v5694_v41 = vpop.f32.mrb[26].mxu1  ;;  %v5583_v56 = vpack.c.bf16 %v4266_v35, %v4266_v35 }
 0x223   : > { %v5655_v53 = vpop.f32.mrb[20].mxu0  ;;  %v4592_v21 = vadd.f32 %v4591_v11, %v4590_v61  ;;  %v4497_v38 = vadd.f32 %v4496_v29, %v4495_v28  ;;  %v4269_v46 = vpop.f32.mrb[27].mxu1  ;;  %v4603_v61 = vsel %vm3426_vm1, %v4549_v48, 0.0  ;;  %v4508_v11 = vsel %vm3426_vm1, %v5693_v30, 0.0 }
 0x224   : > { %v5549_v57 = vpack.c.bf16 %v5655_v53, %v5655_v53  ;;  %v3518_v58 = vmul.f32 %v5655_v53, %v5655_v53  ;;  %v3218_v59 = vpop.f32.mrb[21].mxu0  ;;  %v3470_v19 = vsel %vm3426_vm1, %v5655_v53, 0.0  ;;  %v5585_v53 = vpack.c.bf16 %v5693_v30, %v5693_v30  ;;  %4449 = vst.msk [vmem:[%s6930_s7 + $0x60] sm:$0xf] %vm3393_vm0, %v5583_v56 }
 0x225   : > { %v5547_v0 = vpack.c.bf16 %v3218_v59, %v3218_v59  ;;  %v3466_v1 = vsel %vm3426_vm1, %v3218_v59, 0.0  ;;  %v3516_v2 = vmul.f32 %v3218_v59, %v3218_v59  ;;  %v5656_v3 = vpop.f32.mrb[22].mxu0  ;;  %v4594_v27 = vadd.f32 %v4593_v60, %v4592_v21 }
 0x226   : > { %3416 = vst.msk [vmem:[%s6852_s28 + $0x58] sm:$0xf] %vm3393_vm0, %v5549_v57  ;;  %v3467_v7 = vadd.f32 %v3466_v1, %v6970_v26  ;;  %v5550_v8 = vpack.c.bf16 %v5656_v3, %v5656_v3  ;;  %v3221_v9 = vpop.f32.mrb[23].mxu0  ;;  %v3519_v13 = vmul.f32 %v5656_v3, %v5656_v3  ;;  %v3571_v20 = vsel %vm3426_vm1, %v3518_v58, 0.0  ;;  %4451 = vst.msk [vmem:[%s6930_s7 + $0x68] sm:$0xf] %vm3393_vm0, %v5585_v53 }
 0x227   : > { %3414 = vst.msk [vmem:[%s6852_s28 + $0x50] sm:$0xf] %vm3393_vm0, %v5547_v0  ;;  %v3567_v5 = vsel %vm3426_vm1, %v3516_v2, 0.0  ;;  %v5548_v14 = vpack.c.bf16 %v3221_v9, %v3221_v9  ;;  %v3468_v15 = vsel %vm3426_vm1, %v3221_v9, 0.0  ;;  %v3517_v17 = vmul.f32 %v3221_v9, %v3221_v9 }
 0x228   : > { %v3568_v16 = vadd.f32 %v3567_v5, %v6980_v40  ;;  %3417 = vst.msk [vmem:[%s6852_s28 + $0x5c] sm:$0xf] %vm3393_vm0, %v5550_v8  ;;  %v3469_v26 = vadd.f32 %v3468_v15, %v3467_v7  ;;  %v3472_v23 = vsel %vm3426_vm1, %v5656_v3, 0.0  ;;  %v3573_v31 = vsel %vm3426_vm1, %v3519_v13, 0.0  ;;  %v5697_v1 = vpop.f32.mrb[28].mxu1 }
 0x229   : > { %3415 = vst.msk [vmem:[%s6852_s28 + $0x54] sm:$0xf] %vm3393_vm0, %v5548_v14  ;;  %v3569_v40 = vsel %vm3426_vm1, %v3517_v17, 0.0  ;;  %v4596_v39 = vadd.f32 %v4595_v10, %v4594_v27  ;;  %v4499_v50 = vadd.f32 %v4498_v45, %v4497_v38  ;;  %v4599_v57 = vsel %vm3426_vm1, %v4547_v52, 0.0  ;;  %v4282_v7 = vpop.f32.mrb[29].mxu1 }
 0x22a   : > { %v3471_v24 = vadd.f32 %v3470_v19, %v3469_v26  ;;  %v3570_v25 = vadd.f32 %v3569_v40, %v3568_v16  ;;  %v4504_v58 = vsel %vm3426_vm1, %v4266_v35, 0.0  ;;  %v4550_v59 = vmul.f32 %v4266_v35, %v4266_v35  ;;  %v5698_v10 = vpop.f32.mrb[30].mxu1 }
 0x22b   : > { %v4598_v47 = vadd.f32 %v4597_v42, %v4596_v39  ;;  %v4501_v55 = vadd.f32 %v4500_v32, %v4499_v50  ;;  %v5586_v60 = vpack.c.bf16 %v5694_v41, %v5694_v41  ;;  %v5584_v2 = vpack.c.bf16 %v4269_v46, %v4269_v46  ;;  %v4285_v14 = vpop.f32.mrb[31].mxu1 }
 0x22c   : > { %v3572_v36 = vadd.f32 %v3571_v20, %v3570_v25  ;;  %v7059_v43 = vadd.f32 %v3472_v23, %v3471_v24  ;;  %v4506_v3 = vsel %vm3426_vm1, %v4269_v46, 0.0  ;;  %v4551_v4 = vmul.f32 %v4269_v46, %v4269_v46 }
 0x22d   : > { %v4600_v62 = vadd.f32 %v4599_v57, %v4598_v47  ;;  %v4503_v0 = vadd.f32 %v4502_v51, %v4501_v55  ;;  %4452 = vst.msk [vmem:[%s6930_s7 + $0x6c] sm:$0xf] %vm3393_vm0, %v5586_v60  ;;  %v5589_v6 = vpack.c.bf16 %v5697_v1, %v5697_v1  ;;  %v4605_v5 = vsel %vm3426_vm1, %v4550_v59, 0.0  ;;  %4450 = vst.msk [vmem:[%s6930_s7 + $0x64] sm:$0xf] %vm3393_vm0, %v5584_v2 }
 0x22e   : > { %v7062_v49 = vadd.f32 %v3573_v31, %v3572_v36  ;;  %v5587_v13 = vpack.c.bf16 %v4282_v7, %v4282_v7  ;;  %v5590_v26 = vpack.c.bf16 %v5698_v10, %v5698_v10  ;;  %v4510_v17 = vsel %vm3426_vm1, %v5694_v41, 0.0 }
 0x22f   : > { %v4602_v8 = vadd.f32 %v4601_v54, %v4600_v62  ;;  %v4505_v9 = vadd.f32 %v4504_v58, %v4503_v0  ;;  %4455 = vst.msk [vmem:[%s6930_s7 + $0x78] sm:$0xf] %vm3393_vm0, %v5589_v6  ;;  %v4553_v18 = vmul.f32 %v5694_v41, %v5694_v41  ;;  %v4607_v19 = vsel %vm3426_vm1, %v4551_v4, 0.0 }
 0x230   : > { %4453 = vst.msk [vmem:[%s6930_s7 + $0x70] sm:$0xf] %vm3393_vm0, %v5587_v13  ;;  %v5588_v20 = vpack.c.bf16 %v4285_v14, %v4285_v14  ;;  %4456 = vst.msk [vmem:[%s6930_s7 + $0x7c] sm:$0xf] %vm3393_vm0, %v5590_v26  ;;  %v4609_v23 = vsel %vm3426_vm1, %v4552_v12, 0.0  ;;  %v4512_v24 = vsel %vm3426_vm1, %v4282_v7, 0.0  ;;  %v4554_v40 = vmul.f32 %v4282_v7, %v4282_v7 }
 0x231   : > { %v4604_v15 = vadd.f32 %v4603_v61, %v4602_v8  ;;  %v4507_v16 = vadd.f32 %v4506_v3, %v4505_v9  ;;  %v4611_v27 = vsel %vm3426_vm1, %v4553_v18, 0.0  ;;  %v4514_v28 = vsel %vm3426_vm1, %v4285_v14, 0.0 }
 0x232   : > { %4454 = vst.msk [vmem:[%s6930_s7 + $0x74] sm:$0xf] %vm3393_vm0, %v5588_v20  ;;  %v4555_v29 = vmul.f32 %v4285_v14, %v4285_v14  ;;  %v4516_v32 = vsel %vm3426_vm1, %v5697_v1, 0.0  ;;  %v4613_v33 = vsel %vm3426_vm1, %v4554_v40, 0.0  ;;  %v4556_v34 = vmul.f32 %v5697_v1, %v5697_v1 }
 0x233   : > { %v4606_v21 = vadd.f32 %v4605_v5, %v4604_v15  ;;  %v4509_v22 = vadd.f32 %v4508_v11, %v4507_v16  ;;  %v4518_v37 = vsel %vm3426_vm1, %v5698_v10, 0.0  ;;  %v4557_v44 = vmul.f32 %v5698_v10, %v5698_v10 }
 0x234   : > { %v4615_v38 = vsel %vm3426_vm1, %v4555_v29, 0.0  ;;  %v4617_v42 = vsel %vm3426_vm1, %v4556_v34, 0.0 }
 0x235   : > { %v4608_v63 = vadd.f32 %v4607_v19, %v4606_v21  ;;  %v4511_v25 = vadd.f32 %v4510_v17, %v4509_v22  ;;  %v4619_v60 = vsel %vm3426_vm1, %v4557_v44, 0.0 }
 0x237   : > { %v4610_v30 = vadd.f32 %v4609_v23, %v4608_v63  ;;  %v4513_v31 = vadd.f32 %v4512_v24, %v4511_v25 }
 0x239   : > { %v4612_v35 = vadd.f32 %v4611_v27, %v4610_v30  ;;  %v4515_v36 = vadd.f32 %v4514_v28, %v4513_v31 }
 0x23b   : > { %v4614_v39 = vadd.f32 %v4613_v33, %v4612_v35  ;;  %v4517_v41 = vadd.f32 %v4516_v32, %v4515_v36 }
 0x23d   : > { %v4519_v45 = vadd.f32 %v4518_v37, %v4517_v41  ;;  %v4616_v46 = vadd.f32 %v4615_v38, %v4614_v39 }
 0x23f   : > { %v4520_v51 = vrot.slane %v4519_v45, 4  ;;  %v4618_v56 = vadd.f32 %v4617_v42, %v4616_v46 }
 0x241   : > { %v4521_v6 = vadd.f32 %v4520_v51, %v4519_v45  ;;  %v4620_v7 = vadd.f32 %v4619_v60, %v4618_v56 }
 0x243   : > { %v5659_v47 = vpop.f32.mrb[24].mxu0  ;;  %v4522_v11 = vrot.slane %v4521_v6, 2 }
 0x244   : > { %v5553_v48 = vpack.c.bf16 %v5659_v47, %v5659_v47  ;;  %v3234_v50 = vpop.f32.mrb[25].mxu0  ;;  %v3522_v61 = vmul.f32 %v5659_v47, %v5659_v47 }
 0x245   : > { %v5551_v52 = vpack.c.bf16 %v3234_v50, %v3234_v50  ;;  %v3474_v53 = vsel %vm3426_vm1, %v3234_v50, 0.0  ;;  %v3520_v54 = vmul.f32 %v3234_v50, %v3234_v50  ;;  %v5660_v55 = vpop.f32.mrb[26].mxu0  ;;  %v4523_v14 = vadd.f32 %v4522_v11, %v4521_v6 }
 0x246   : > { %3420 = vst.msk [vmem:[%s6852_s28 + $0x68] sm:$0xf] %vm3393_vm0, %v5553_v48  ;;  %v3475_v57 = vadd.f32 %v3474_v53, %v7059_v43  ;;  %v5554_v58 = vpack.c.bf16 %v5660_v55, %v5660_v55  ;;  %v3237_v59 = vpop.f32.mrb[27].mxu0  ;;  %v3478_v43 = vsel %vm3426_vm1, %v5659_v47, 0.0  ;;  %v3523_v8 = vmul.f32 %v5660_v55, %v5660_v55 }
 0x247   : > { %3418 = vst.msk [vmem:[%s6852_s28 + $0x60] sm:$0xf] %vm3393_vm0, %v5551_v52  ;;  %v3575_v62 = vsel %vm3426_vm1, %v3520_v54, 0.0  ;;  %v5552_v0 = vpack.c.bf16 %v3237_v59, %v3237_v59  ;;  %v3476_v1 = vsel %vm3426_vm1, %v3237_v59, 0.0  ;;  %v3521_v4 = vmul.f32 %v3237_v59, %v3237_v59 }
 0x248   : > { %v3576_v2 = vadd.f32 %v3575_v62, %v7062_v49  ;;  %3421 = vst.msk [vmem:[%s6852_s28 + $0x6c] sm:$0xf] %vm3393_vm0, %v5554_v58  ;;  %v3477_v3 = vadd.f32 %v3476_v1, %v3475_v57  ;;  %v3480_v12 = vsel %vm3426_vm1, %v5660_v55, 0.0  ;;  %v4621_v49 = vrot.slane %v4620_v7, 4 }
 0x249   : > { %3419 = vst.msk [vmem:[%s6852_s28 + $0x64] sm:$0xf] %vm3393_vm0, %v5552_v0  ;;  %v3577_v10 = vsel %vm3426_vm1, %v3521_v4, 0.0  ;;  %v3579_v13 = vsel %vm3426_vm1, %v3522_v61, 0.0  ;;  %v3581_v17 = vsel %vm3426_vm1, %v3523_v8, 0.0  ;;  %v4524_v18 = vrot.slane %v4523_v14, 1 }
 0x24a   : > { %v3479_v9 = vadd.f32 %v3478_v43, %v3477_v3  ;;  %v3578_v5 = vadd.f32 %v3577_v10, %v3576_v2  ;;  %v4622_v26 = vadd.f32 %v4621_v49, %v4620_v7 }
 0x24b   : > { %v4525_v22 = vadd.f32 %v4524_v18, %v4523_v14 }
 0x24c   : > { %v3481_v15 = vadd.f32 %v3480_v12, %v3479_v9  ;;  %v3580_v16 = vadd.f32 %v3579_v13, %v3578_v5  ;;  %v4623_v19 = vrot.slane %v4622_v26, 2 }
 0x24e   : > { %v3582_v20 = vadd.f32 %v3581_v17, %v3580_v16  ;;  %v4624_v21 = vadd.f32 %v4623_v19, %v4622_v26 }
 0x250   : > { %v4625_v23 = vrot.slane %v4624_v21, 1 }
 0x252   : > { %v4626_v24 = vadd.f32 %v4625_v23, %v4624_v21 }
 0x254   : > { %v4627_v40 = vsel %vm3597_vm2, %v4525_v22, %v4626_v24 }
 0x255   : > { %4628 = vst.msk [vmem:[%s334_s11] sm:$0x3] %vm3599_vm3, %v4627_v40 }
 0x260   : > { %v5663_v63 = vpop.f32.mrb[28].mxu0 }
 0x261   : > { %v5557_v25 = vpack.c.bf16 %v5663_v63, %v5663_v63  ;;  %v3250_v27 = vpop.f32.mrb[29].mxu0  ;;  %v3526_v38 = vmul.f32 %v5663_v63, %v5663_v63  ;;  %v3486_v44 = vsel %vm3426_vm1, %v5663_v63, 0.0 }
 0x262   : > { %v5555_v28 = vpack.c.bf16 %v3250_v27, %v3250_v27  ;;  %v3482_v29 = vsel %vm3426_vm1, %v3250_v27, 0.0  ;;  %v3524_v30 = vmul.f32 %v3250_v27, %v3250_v27  ;;  %v5664_v31 = vpop.f32.mrb[30].mxu0 }
 0x263   : > { %3424 = vst.msk [vmem:[%s6852_s28 + $0x78] sm:$0xf] %vm3393_vm0, %v5557_v25  ;;  %v3483_v32 = vadd.f32 %v3482_v29, %v3481_v15  ;;  %v5558_v33 = vpack.c.bf16 %v5664_v31, %v5664_v31  ;;  %v3253_v34 = vpop.f32.mrb[31].mxu0  ;;  %v3527_v45 = vmul.f32 %v5664_v31, %v5664_v31  ;;  %v3488_v48 = vsel %vm3426_vm1, %v5664_v31, 0.0 }
 0x264   : > { %3422 = vst.msk [vmem:[%s6852_s28 + $0x70] sm:$0xf] %vm3393_vm0, %v5555_v28  ;;  %v3583_v35 = vsel %vm3426_vm1, %v3524_v30, 0.0  ;;  %v5556_v36 = vpack.c.bf16 %v3253_v34, %v3253_v34  ;;  %v3484_v37 = vsel %vm3426_vm1, %v3253_v34, 0.0  ;;  %v3525_v42 = vmul.f32 %v3253_v34, %v3253_v34 }
 0x265   : > { %v3584_v39 = vadd.f32 %v3583_v35, %v3582_v20  ;;  %3425 = vst.msk [vmem:[%s6852_s28 + $0x7c] sm:$0xf] %vm3393_vm0, %v5558_v33  ;;  %v3485_v41 = vadd.f32 %v3484_v37, %v3483_v32  ;;  %v3587_v51 = vsel %vm3426_vm1, %v3526_v38, 0.0  ;;  %v3589_v54 = vsel %vm3426_vm1, %v3527_v45, 0.0 }
 0x266   : > { %3423 = vst.msk [vmem:[%s6852_s28 + $0x74] sm:$0xf] %vm3393_vm0, %v5556_v36  ;;  %v3585_v47 = vsel %vm3426_vm1, %v3525_v42, 0.0 }
 0x267   : > { %v3487_v46 = vadd.f32 %v3486_v44, %v3485_v41  ;;  %v3586_v50 = vadd.f32 %v3585_v47, %v3584_v39 }
 0x269   : > { %v3489_v52 = vadd.f32 %v3488_v48, %v3487_v46  ;;  %v3588_v53 = vadd.f32 %v3587_v51, %v3586_v50 }
 0x26b   : > { %v3490_v55 = vrot.slane %v3489_v52, 4  ;;  %v3590_v56 = vadd.f32 %v3589_v54, %v3588_v53 }
 0x26d   : > { %v3491_v57 = vadd.f32 %v3490_v55, %v3489_v52  ;;  %v3591_v58 = vrot.slane %v3590_v56, 4 }
 0x26f   : > { %v3492_v59 = vrot.slane %v3491_v57, 2  ;;  %v3592_v60 = vadd.f32 %v3591_v58, %v3590_v56 }
 0x271   : > { %v3493_v61 = vadd.f32 %v3492_v59, %v3491_v57  ;;  %v3593_v62 = vrot.slane %v3592_v60, 2 }
 0x273   : > { %v3494_v0 = vrot.slane %v3493_v61, 1  ;;  %v3594_v1 = vadd.f32 %v3593_v62, %v3592_v60 }
 0x275   : > { %v3595_v2 = vrot.slane %v3594_v1, 1  ;;  %v3495_v3 = vadd.f32 %v3494_v0, %v3493_v61 }
 0x277   : > { %v3596_v4 = vadd.f32 %v3595_v2, %v3594_v1 }
 0x279   : > { %v3598_v6 = vsel %vm3597_vm2, %v3495_v3, %v3596_v4 }
 0x27a   : > { %3600 = vst.msk [vmem:[%s317_s14] sm:$0x3] %vm3599_vm3, %v3598_v6 }
 0x27b PF: > { %s17_s23 = sadd.s32 1, %s5999_s23   ;;  %s7169_s21 = smov %s5995_s22 }
 0x27c   : > { %p14_p5 = scmp.ge.s32.totalorder %s17_s23, 4   ;;  %s7170_s22 = smov %s7172_s24 }
 0x27e   :  { %16 = sbr.rel (!%p14_p5) target bundleno = 2 (0x2), region = 101 }

// kernel: basic_block_forward.4
= control target key start
LH: loop header
LB: loop body
LE: loop exit
PB: predicated region body
PF: predicated region fallthrough
CT: control target
= control target key end

     0   :  { %s5512_s18 = smov 0   ;;  %s5514_s19 = smov 0   ;;  %s6641_s0 = inlined_call_operand.vmem [shape: bf16[2,16,16,8], index: 0, kind: input, shape index: {}]   ;;  %s6642_s1 = inlined_call_operand.vmem [shape: bf16[72,8], index: 1, kind: input, shape index: {}]   ;;  %s6643_s2 = inlined_call_operand.vmem [shape: f32[1,8], index: 2, kind: input, shape index: {}]   ;;  %s6644_s3 = inlined_call_operand.vmem [shape: f32[1,8], index: 3, kind: input, shape index: {}]   ;;  %s6645_s4 = inlined_call_operand.vmem [shape: bf16[2,256,8], index: 4, kind: output, shape index: {0}]   ;;  %s6646_s5 = inlined_call_operand.vmem [shape: f32[2,1,2,8], index: 5, kind: output, shape index: {1}]  }
   0x1   :  { %s5516_s20 = smov 0  }
   0x2 LB: > { %s28_s21 = sadd.s32 1, %s5467_s19  ;;  %p4604_p0 = scmp.ge.s32.totalorder %s5471_s20, 1  ;;  %s5471_s20 = sphi %s5516_s20, %s16_s20   ;;  %s5467_s19 = sphi %s5514_s19, %s6684_s19   ;;  %s5463_s18 = sphi %s5512_s18, %s6683_s18  }
   0x3   : > { %p30_p1 = scmp.ge.s32.totalorder %s28_s21, 2  ;;  %p206_p2 = scmp.lt.s32.totalorder %s5471_s20, 3 }
   0x5   : > { %s6686_s21 = smov (%p30_p1, %s28_s21), 0  ;;  %p207_p3 = pnand %p4604_p0, %p206_p2 }
   0x6   : > { %vm269_vm0 = vcmask (!%p207_p3), 57344   ;;  %vm270_vm1 = vsmask.f32 (!%p207_p3), 256  ;;  %v272_v0 = vld [vmem:[#allocation2] sm:$0x1] (!%p207_p3)  ;;  %v5473_v6 = vmov (!%p207_p3), 0.0|0.0  }
   0x7   : > { %210 = sbr.rel (%p207_p3) target bundleno = 696 (0x2b8), region = 36  ;;  %vm5533_vm2 = vmand (!%p207_p3), %vm269_vm0, %vm270_vm1  ;;  %vm326_vm3 = vsmask.f32 (!%p207_p3), 7938  ;;  %v328_v2 = vld [vmem:[#allocation2 + $0x8] sm:$0x1] (!%p207_p3)  ;;  %v4646_v7 = vcombine.low (!%p207_p3), %v5473_v6, %v5473_v6  ;;  %v4647_v8 = vcombine.high (!%p207_p3), %v5473_v6, %v5473_v6  ;;  %p245_p4 = scmp.lt.s32.totalorder (!%p207_p3), %s5463_s18, 1 }
   0x8   : > { %v273_v3 = vsel (!%p207_p3), %vm5533_vm2, 0, %v272_v0  ;;  %vm5540_vm4 = vmand (!%p207_p3), %vm269_vm0, %vm326_vm3  ;;  %v278_v9 = vld [vmem:[#allocation2 + $0x18] sm:$0x1] (!%p207_p3)  ;;  %vm699_vm5 = vsmask.f32 (!%p207_p3), 4368  ;;  %vm1022_vm6 = vcmask (!%p207_p3), 60416  }
   0x9   : > { %274 = vst [vmem:[#allocation2] sm:$0x1] (!%p207_p3), %v273_v3  ;;  %v329_v5 = vsel (!%p207_p3), %vm5540_vm4, 0, %v328_v2  ;;  %v279_v10 = vsel (!%p207_p3), %vm5533_vm2, 0, %v278_v9  ;;  %v1144_v11 = vshrl.u32 (!%p207_p3), %v4646_v7, 16  ;;  %v1147_v12 = vshll.u32 (!%p207_p3), %v4646_v7, 16  ;;  %vm5553_vm7 = vmor (!%p207_p3), %vm270_vm1, %vm699_vm5 }
   0xa   : > { %330 = vst [vmem:[#allocation2 + $0x8] sm:$0x1] (!%p207_p3), %v329_v5  ;;  %v1152_v13 = vshrl.u32 (!%p207_p3), %v4647_v8, 16  ;;  %v1155_v14 = vshll.u32 (!%p207_p3), %v4647_v8, 16  ;;  %280 = vst [vmem:[#allocation2 + $0x18] sm:$0x1] (!%p207_p3), %v279_v10 }
   0xb   : > { %v275_v15 = vld [vmem:[#allocation2 + $0xc] sm:$0x1] (!%p207_p3)  ;;  %v281_v16 = vld [vmem:[#allocation2 + $0x24] sm:$0x1] (!%p207_p3)  ;;  %v1146_v18 = vrot.slane (!%p207_p3), %v1144_v11, 7  ;;  %vm5566_vm8 = vmand (!%p207_p3), %vm1022_vm6, %vm326_vm3  ;;  %vm1959_vm9 = vcmask (!%p207_p3), 1046528  }
   0xc   : > { %v5557_v19 = vrot.slane (!%p207_p3), %v1152_v13, 7  ;;  %v276_v20 = vsel (!%p207_p3), %vm5533_vm2, 0, %v275_v15  ;;  %v282_v21 = vsel (!%p207_p3), %vm5533_vm2, 0, %v281_v16  ;;  %v5580_v23 = vld [vmem:[%s6643_s2] ss:$0 sm:$0xff] (!%p207_p3)  ;;  %s5474_s30 = smov (!%p207_p3), 16  }
   0xd   : > { %277 = vst [vmem:[#allocation2 + $0xc] sm:$0x1] (!%p207_p3), %v276_v20  ;;  %283 = vst [vmem:[#allocation2 + $0x24] sm:$0x1] (!%p207_p3), %v282_v21  ;;  %v5582_v24 = vor.u32 (!%p207_p3), %v1147_v12, %v1146_v18  ;;  %v1150_v25 = vrot.slane (!%p207_p3), %v1146_v18, 4  ;;  %s5475_s6 = smov (!%p207_p3), 8  }
   0xe   : > { %s6688_s18 = smov (!%p245_p4, %s5463_s18), 1  ;;  %v1157_v26 = vor.u32 %v1155_v14, %v5557_v19  ;;  %v1159_v27 = vrot.slane %v5557_v19, 4  ;;  %v284_v36 = vld [vmem:[#allocation2 + $0x30] sm:$0x1]  ;;  %v5597_v40 = vld [vmem:[%s6644_s3] ss:$0 sm:$0xff] }
   0xf   : > { %s4945_s22 = sshll.u32 %s6688_s18, 7  ;;  %v285_v51 = vsel %vm5533_vm2, 0, %v284_v36  ;;  %vm1525_vm10 = vsmask.f32 7424  ;;  %s5476_s7 = smov 24   ;;  %vm1332_vm11 = vcmask 64512  }
  0x10   : > { %s5575_s25 = scalar_lea.vmem %s6641_s0, %s4945_s22  ;;  %v1163_v31 = vld [vmem:[#allocation2] sm:$0xf]  ;;  %v1158_v37 = vsel %vm5553_vm7, %v1150_v25, %v1157_v26  ;;  %286 = vst [vmem:[#allocation2 + $0x30] sm:$0x1] %v285_v51  ;;  %s5477_s8 = smov 48   ;;  %vm6647_vm12 = vcmask 130112  }
  0x11   : > { %v5075_v28 = vld [vmem:[%s5575_s25 + $0x8] sm:$0xff]   ;;  %v5012_v29 = vld [vmem:[%s5575_s25] sm:$0xff]   ;;  %v5076_v30 = vld [vmem:[%s5575_s25 + $0x10] sm:$0xff]   ;;  %v1164_v38 = vsel %vm5566_vm8, %v5582_v24, %v1163_v31  ;;  %1166 = vst.msk [vmem:[#allocation2 + $0x4] sm:$0xf] %vm1022_vm6, %v1158_v37  ;;  %s5478_s9 = smov 40  }
  0x12   : > { %v5017_v32 = vunpack.c.l.bf16 %v5075_v28  ;;  %v5018_v33 = vunpack.c.h.bf16 %v5075_v28  ;;  %v5013_v34 = vunpack.c.l.bf16 %v5012_v29  ;;  %v5014_v35 = vunpack.c.h.bf16 %v5012_v29  ;;  %v1167_v39 = vld [vmem:[#allocation2 + $0x8] sm:$0x1]  ;;  %v5077_v43 = vld [vmem:[%s5575_s25 + $0x18] sm:$0xff]   ;;  %1165 = vst [vmem:[#allocation2] sm:$0xf] %v1164_v38  ;;  %v5622_v5 = vld [vmem:[%s5575_s25 + $0x20] sm:$0xff]  }
  0x13   : > { %v5021_v41 = vunpack.c.l.bf16 %v5076_v30  ;;  %v5022_v42 = vunpack.c.h.bf16 %v5076_v30  ;;  %v1168_v44 = vsel %vm5533_vm2, %v1159_v27, %v1167_v39  ;;  %1200 = vst.msk [vmem:[#allocation2 + $0xd0] sm:$0xf] %vm1022_vm6, %v1158_v37  ;;  %v5025_v55 = vunpack.c.l.bf16 %v5077_v43  ;;  %v1032_v37 = vld [vmem:[#allocation2 + $0x18] sm:$0xf]  ;;  %s5479_s10 = smov 64   ;;  %s5480_s11 = smov 32  }
  0x14   : > { %v458_v45 = vmul.f32 %v5017_v32, %v5580_v23  ;;  %v459_v46 = vmul.f32 %v5018_v33, %v5580_v23  ;;  %v456_v47 = vmul.f32 %v5013_v34, %v5580_v23  ;;  %1169 = vst [vmem:[#allocation2 + $0x8] sm:$0x1] %v1168_v44  ;;  %v457_v48 = vmul.f32 %v5014_v35, %v5580_v23  ;;  %s5481_s12 = smov 56  }
  0x15   : > { %v460_v49 = vmul.f32 %v5021_v41, %v5580_v23  ;;  %v461_v50 = vmul.f32 %v5022_v42, %v5580_v23  ;;  %v5026_v59 = vunpack.c.h.bf16 %v5077_v43  ;;  %v462_v63 = vmul.f32 %v5025_v55, %v5580_v23  ;;  %v331_v55 = vld [vmem:[#allocation2 + $0x14] sm:$0x1] }
  0x16   : > { %v497_v52 = vadd.f32 %v5597_v40, %v458_v45  ;;  %v498_v53 = vadd.f32 %v5597_v40, %v459_v46  ;;  %v495_v54 = vadd.f32 %v5597_v40, %v456_v47  ;;  %v496_v56 = vadd.f32 %v5597_v40, %v457_v48 }
  0x17   : > { %v499_v57 = vadd.f32 %v5597_v40, %v460_v49  ;;  %v500_v58 = vadd.f32 %v5597_v40, %v461_v50  ;;  %v463_v7 = vmul.f32 %v5026_v59, %v5580_v23  ;;  %v5626_v13 = vadd.f32 %v5597_v40, %v462_v63  ;;  %v340_v63 = vld [vmem:[#allocation2 + $0x38] sm:$0x1] }
  0x18   : > { %v529_v60 = vmax.f32 %v497_v52, 0.0  ;;  %v530_v61 = vmax.f32 %v498_v53, 0.0  ;;  %v527_v62 = vmax.f32 %v495_v54, 0.0  ;;  %v528_v0 = vmax.f32 %v496_v56, 0.0  ;;  %v1024_v53 = vld [vmem:[#allocation2 + $0xc] sm:$0xf] }
  0x19   : > { %v531_v2 = vmax.f32 %v499_v57, 0.0  ;;  %v532_v3 = vmax.f32 %v500_v58, 0.0  ;;  %v5198_v8 = vld [vmem:[#allocation2] sm:$0xfe]   ;;  %v5631_v26 = vadd.f32 %v5597_v40, %v463_v7  ;;  %v5029_v28 = vunpack.c.l.bf16 %v5622_v5  ;;  %v334_v56 = vld [vmem:[#allocation2 + $0x20] sm:$0x1] }
  0x1a   : > { %v4949_v6 = vpack.c.bf16 %v529_v60, %v529_v60  ;;  %v5200_v10 = vld [vmem:[#allocation2] sm:$0xff]   ;;  %v4950_v11 = vpack.c.bf16 %v530_v61, %v530_v61  ;;  %v4947_v12 = vpack.c.bf16 %v527_v62, %v527_v62  ;;  %v1960_v14 = vrot.slane %v5198_v8, 1  ;;  %v337_v62 = vld [vmem:[#allocation2 + $0x2c] sm:$0x1] }
  0x1b   : > { %v5199_v9 = vld [vmem:[#allocation2 + $0x8] ss:$0 sps:$4 sm:$0x11]   ;;  %v4948_v16 = vpack.c.bf16 %v528_v0, %v528_v0  ;;  %v4951_v18 = vpack.c.bf16 %v531_v2, %v531_v2  ;;  %v5628_v25 = vpack.c.bf16 %v532_v3, %v532_v3  ;;  %v1527_v29 = vshrl.u32 %v5200_v10, 16 }
  0x1c   : > { %v719_v15 = vshrl.u32 %v4949_v6, 16  ;;  %v1961_v20 = vrot.slane %v5199_v9, 1  ;;  %v5201_v21 = vld [vmem:[#allocation2 + $0x8] ss:$0 sps:$4 sm:$0x11]   ;;  %v1529_v30 = vshll.u32 %v5200_v10, 16  ;;  %v464_v57 = vmul.f32 %v5029_v28, %v5580_v23 }
  0x1d   : > { %v722_v32 = vshll.u32 %v4949_v6, 16  ;;  %v1534_v34 = vshll.u32 %v5201_v21, 16  ;;  %v727_v35 = vshrl.u32 %v4950_v11, 16  ;;  %v730_v36 = vshll.u32 %v4950_v11, 16  ;;  %v1039_v10 = vld [vmem:[#allocation2 + $0x24] sm:$0xf] }
  0x1e   : > { %v721_v31 = vrot.slane %v719_v15, 7  ;;  %v1962_v33 = vsel %vm1959_vm9, %v1960_v14, %v1961_v20  ;;  %v1531_v38 = vrot.slane %v1529_v30, 1  ;;  %v702_v42 = vshrl.u32 %v4947_v12, 16 }
  0x1f   : > { %2008 = vrot.lane.b32.xlu1 %v1962_v33, %s5474_s30  ;;  %v1536_v43 = vrot.slane %v1534_v34, 1  ;;  %v5636_v44 = vrot.slane %v727_v35, 7  ;;  %v705_v45 = vshll.u32 %v4947_v12, 16  ;;  %v710_v46 = vshrl.u32 %v4948_v16, 16 }
  0x20   : > { %v724_v39 = vor.u32 %v722_v32, %v721_v31  ;;  %v725_v41 = vrot.slane %v721_v31, 4  ;;  %v1532_v47 = vor.u32 %v1531_v38, %v1527_v29  ;;  %v704_v49 = vrot.slane %v702_v42, 7  ;;  %v1046_v38 = vld [vmem:[#allocation2 + $0x30] sm:$0xf] }
  0x21   : > { %v713_v50 = vshll.u32 %v4948_v16, 16  ;;  %v732_v51 = vor.u32 %v730_v36, %v5636_v44  ;;  %v5641_v52 = vrot.slane %v710_v46, 7  ;;  %v736_v54 = vshrl.u32 %v4951_v18, 16 }
  0x22   : > { %v1033_v48 = vsel %vm5566_vm8, %v724_v39, %v1032_v37  ;;  %v1537_v58 = vsel %vm1525_vm10, %v1532_v47, %v1536_v43  ;;  %v707_v59 = vor.u32 %v705_v45, %v704_v49  ;;  %v708_v60 = vrot.slane %v704_v49, 4 }
  0x23   : > { %1034 = vst [vmem:[#allocation2 + $0x18] sm:$0xf] %v1033_v48  ;;  %v739_v61 = vshll.u32 %v4951_v18, 16  ;;  %1718 = vrot.lane.b32.xlu0 %v1537_v58, %s5475_s6  ;;  %v733_v0 = vsel %vm5553_vm7, %v725_v41, %v732_v51  ;;  %v734_v2 = vrot.slane %v5636_v44, 4  ;;  %v715_v3 = vor.u32 %v713_v50, %v5641_v52 }
  0x24   : > { %v738_v6 = vrot.slane %v736_v54, 7  ;;  %1035 = vst.msk [vmem:[#allocation2 + $0x1c] sm:$0xf] %vm1022_vm6, %v733_v0  ;;  %v1025_v7 = vsel %vm5566_vm8, %v707_v59, %v1024_v53  ;;  %v744_v8 = vshrl.u32 %v5628_v25, 16  ;;  %v747_v9 = vshll.u32 %v5628_v25, 16 }
  0x25   : > { %v533_v11 = vmax.f32 %v5626_v13, 0.0  ;;  %v716_v12 = vsel %vm5553_vm7, %v708_v60, %v715_v3  ;;  %1026 = vst [vmem:[#allocation2 + $0xc] sm:$0xf] %v1025_v7  ;;  %v534_v16 = vmax.f32 %v5631_v26, 0.0  ;;  %v332_v21 = vsel %vm5540_vm4, 0, %v331_v55 }
  0x26   : > { %v741_v14 = vor.u32 %v739_v61, %v738_v6  ;;  %v742_v15 = vrot.slane %v738_v6, 4  ;;  %1028 = vst.msk [vmem:[#allocation2 + $0x10] sm:$0xf] %vm1022_vm6, %v716_v12  ;;  %v5660_v18 = vrot.slane %v744_v8, 7  ;;  %v335_v25 = vsel %vm5540_vm4, 0, %v334_v56 }
  0x27   : > { %v4953_v20 = vpack.c.bf16 %v533_v11, %v533_v11  ;;  %v287_v13 = vld [vmem:[#allocation2 + $0x3c] sm:$0x1]  ;;  %v4954_v29 = vpack.c.bf16 %v534_v16, %v534_v16  ;;  %333 = vst [vmem:[#allocation2 + $0x14] sm:$0x1] %v332_v21  ;;  %336 = vst [vmem:[#allocation2 + $0x20] sm:$0x1] %v335_v25  ;;  %v5675_v34 = vadd.f32 %v5597_v40, %v464_v57  ;;  %v5030_v47 = vunpack.c.h.bf16 %v5622_v5 }
  0x28   : > { %v1040_v28 = vsel %vm5566_vm8, %v741_v14, %v1039_v10  ;;  %v338_v26 = vsel %vm5540_vm4, 0, %v337_v62  ;;  %v341_v30 = vsel %vm5540_vm4, 0, %v340_v63  ;;  %v717_v31 = vrot.slane %v5641_v52, 4 }
  0x29   : > { %v749_v32 = vor.u32 %v747_v9, %v5660_v18  ;;  %1041 = vst [vmem:[#allocation2 + $0x24] sm:$0xf] %v1040_v28  ;;  %v753_v33 = vshrl.u32 %v4953_v20, 16  ;;  %339 = vst [vmem:[#allocation2 + $0x2c] sm:$0x1] %v338_v26  ;;  %v756_v35 = vshll.u32 %v4953_v20, 16  ;;  %v465_v59 = vmul.f32 %v5030_v47, %v5580_v23 }
  0x2a   : > { %342 = vst [vmem:[#allocation2 + $0x38] sm:$0x1] %v341_v30  ;;  %v761_v36 = vshrl.u32 %v4954_v29, 16  ;;  %v764_v37 = vshll.u32 %v4954_v29, 16  ;;  %v288_v39 = vsel %vm5533_vm2, 0, %v287_v13  ;;  %v751_v42 = vrot.slane %v5660_v18, 4 }
  0x2b   : > { %v750_v41 = vsel %vm5553_vm7, %v742_v15, %v749_v32  ;;  %v755_v43 = vrot.slane %v753_v33, 7  ;;  %289 = vst [vmem:[#allocation2 + $0x3c] sm:$0x1] %v288_v39  ;;  %v5202_v45 = vld [vmem:[#allocation2 + $0x18] sm:$0xff]   ;;  %v535_v50 = vmax.f32 %v5675_v34, 0.0  ;;  %v5705_v12 = vadd.f32 %v5597_v40, %v465_v59 }
  0x2c   : > { %1042 = vst.msk [vmem:[#allocation2 + $0x28] sm:$0xf] %vm1022_vm6, %v750_v41  ;;  %v5683_v46 = vrot.slane %v761_v36, 7  ;;  %2187 = vrot.lane.b32.xlu1 %v5202_v45, %s5476_s7  ;;  %v5205_v52 = vld [vmem:[#allocation2 + $0x18] sm:$0xff]   ;;  %vm2056_vm13 = vcmask 195712   ;;  %vm2233_vm14 = vcmask 261312  }
  0x2d   : > { %v758_v48 = vor.u32 %v756_v35, %v755_v43  ;;  %v759_v49 = vrot.slane %v755_v43, 4  ;;  %v5203_v51 = vld [vmem:[#allocation2 + $0xc] sm:$0xff]   ;;  %v5222_v63 = vld [vmem:[#allocation2 + $0x18] sm:$0xff]   ;;  %v536_v25 = vmax.f32 %v5705_v12, 0.0  ;;  %vm2666_vm15 = vcmask 326912  }
  0x2e   : > { %v766_v53 = vor.u32 %v764_v37, %v5683_v46  ;;  %v768_v54 = vrot.slane %v5683_v46, 4  ;;  %v1029_v56 = vld [vmem:[#allocation2 + $0x14] sm:$0x1]  ;;  %v5208_v57 = vld [vmem:[#allocation2 + $0xc] sm:$0xfe]   ;;  %2185 = vrot.lane.b32.xlu0 %v5203_v51, %s5476_s7  ;;  %v2439_v15 = vshrl.u32 %v5222_v63, 16 }
  0x2f   : > { %v1047_v55 = vsel %vm5566_vm8, %v758_v48, %v1046_v38  ;;  %v1030_v58 = vsel %vm5533_vm2, %v717_v31, %v1029_v56  ;;  %v2859_v60 = vrot.slane %v5208_v57, 1  ;;  %v5210_v61 = vld [vmem:[#allocation2 + $0xc] sm:$0xfe]   ;;  %v1036_v62 = vld [vmem:[#allocation2 + $0x20] sm:$0x1]  ;;  %v2441_v20 = vshll.u32 %v5222_v63, 16 }
  0x30   : > { %v767_v5 = vsel %vm5553_vm7, %v759_v49, %v766_v53  ;;  %1048 = vst [vmem:[#allocation2 + $0x30] sm:$0xf] %v1047_v55  ;;  %1031 = vst [vmem:[#allocation2 + $0x14] sm:$0x1] %v1030_v58  ;;  %v1037_v0 = vsel %vm5533_vm2, %v734_v2, %v1036_v62  ;;  %v5212_v3 = vld [vmem:[#allocation2 + $0x18] sm:$0xfe]  }
  0x31   : > { %1049 = vst.msk [vmem:[#allocation2 + $0x34] sm:$0xf] %vm1022_vm6, %v767_v5  ;;  %v1963_v7 = vrot.slane %v5210_v61, 1  ;;  %1038 = vst [vmem:[#allocation2 + $0x20] sm:$0x1] %v1037_v0  ;;  %v3759_v9 = vrot.slane %v5212_v3, 1 }
  0x32   : > { %3085 = vrot.lane.b32.xlu0 %v5205_v52, %s5477_s8  ;;  %v5214_v10 = vld [vmem:[#allocation2 + $0x18] sm:$0xfe]   ;;  %v1043_v11 = vld [vmem:[#allocation2 + $0x2c] sm:$0x1]  ;;  %v2443_v26 = vrot.slane %v2441_v20, 1  ;;  %vm2955_vm0 = vcmask 392512  }
  0x33   : > { %v5204_v6 = vld [vmem:[#allocation2 + $0x24] sm:$0xff]   ;;  %v1044_v44 = vsel %vm5533_vm2, %v751_v42, %v1043_v11  ;;  %v2862_v14 = vrot.slane %v5214_v10, 1  ;;  %v5220_v45 = vld [vmem:[#allocation2 + $0x18] sm:$0xfe]   ;;  %v5226_v58 = vld [vmem:[#allocation2 + $0xc] sm:$0xff]   ;;  %vm6649_vm1 = vcmask 458112  }
  0x34   : > { %v5207_v8 = vld [vmem:[#allocation2 + $0x24] sm:$0xff]   ;;  %3087 = vrot.lane.b32.xlu1 %v5204_v6, %s5477_s8  ;;  %1045 = vst [vmem:[#allocation2 + $0x2c] sm:$0x1] %v1044_v44  ;;  %v1966_v52 = vrot.slane %v5220_v45, 1  ;;  %v1539_v0 = vshrl.u32 %v5226_v58, 16  ;;  %v5234_v45 = vld [vmem:[#allocation2 + $0x18] sm:$0xff]  }
  0x35   : > { %v5216_v2 = vld [vmem:[#allocation2 + $0x24] sm:$0xfe]   ;;  %vm3566_vm3 = vcmask 523712   ;;  %vm6648_vm5 = vcmask 589312  }
  0x36   : > { %v3762_v16 = vrot.slane %v5216_v2, 1  ;;  %v5218_v18 = vld [vmem:[#allocation2 + $0x24] sm:$0xfe]   ;;  %2189 = vrot.lane.b32.xlu0 %v5207_v8, %s5476_s7  ;;  %v1541_v8 = vshll.u32 %v5226_v58, 16 }
  0x37   : > { %v5209_v13 = vld [vmem:[#allocation2 + $0x14] ss:$0 sps:$4 sm:$0x11]   ;;  %v1969_v28 = vrot.slane %v5218_v18, 1  ;;  %v5224_v47 = vld [vmem:[#allocation2 + $0x24] sm:$0xff]   ;;  %v5230_v18 = vld [vmem:[#allocation2 + $0xc] sm:$0xff]  }
  0x38   : > { %v5206_v21 = vld [vmem:[#allocation2 + $0x30] sm:$0xff]   ;;  %v2860_v30 = vrot.slane %v5209_v13, 1  ;;  %v5213_v31 = vld [vmem:[#allocation2 + $0x20] ss:$0 sps:$4 sm:$0x11]   ;;  %v3339_v53 = vshrl.u32 %v5224_v47, 16 }
  0x39   : > { %2191 = vrot.lane.b32.xlu1 %v5206_v21, %s5476_s7  ;;  %v5211_v29 = vld [vmem:[#allocation2 + $0x14] ss:$0 sps:$4 sm:$0x11]   ;;  %v5215_v33 = vld [vmem:[#allocation2 + $0x20] ss:$0 sps:$4 sm:$0x11]  }
  0x3a   : > { %v1964_v32 = vrot.slane %v5211_v29, 1  ;;  %v2861_v35 = vsel %vm1959_vm9, %v2859_v60, %v2860_v30  ;;  %v3760_v36 = vrot.slane %v5213_v31, 1  ;;  %v2863_v39 = vrot.slane %v5215_v33, 1  ;;  %v5221_v51 = vld [vmem:[#allocation2 + $0x20] ss:$0 sps:$4 sm:$0x11]  }
  0x3b   : > { %v5217_v37 = vld [vmem:[#allocation2 + $0x2c] ss:$0 sps:$4 sm:$0x11]   ;;  %2907 = vrot.lane.b32.xlu0 %v2861_v35, %s5478_s9  ;;  %v1967_v55 = vrot.slane %v5221_v51, 1  ;;  %v3341_v5 = vshll.u32 %v5224_v47, 16  ;;  %v2444_v60 = vor.u32 %v2443_v26, %v2439_v15  ;;  %v1543_v2 = vrot.slane %v1541_v8, 1 }
  0x3c   : > { %v1965_v38 = vsel %vm1959_vm9, %v1963_v7, %v1964_v32  ;;  %v5219_v41 = vld [vmem:[#allocation2 + $0x2c] ss:$0 sps:$4 sm:$0x11]   ;;  %v3761_v42 = vsel %vm1959_vm9, %v3759_v9, %v3760_v36  ;;  %v3763_v43 = vrot.slane %v5217_v37, 1  ;;  %v2864_v48 = vsel %vm1959_vm9, %v2862_v14, %v2863_v39  ;;  %v5228_v15 = vld [vmem:[#allocation2 + $0x18] sm:$0xff]   ;;  %v5232_v35 = vld [vmem:[#allocation2 + $0x24] sm:$0xff]  }
  0x3d   : > { %2010 = vrot.lane.b32.xlu1 %v1965_v38, %s5474_s30  ;;  %v1970_v49 = vrot.slane %v5219_v41, 1  ;;  %v5223_v56 = vld [vmem:[#allocation2 + $0x20] ss:$0 sps:$4 sm:$0x11]   ;;  %v3343_v63 = vrot.slane %v3341_v5, 1  ;;  %v1968_v9 = vsel %vm1959_vm9, %v1966_v52, %v1967_v55  ;;  %v1544_v20 = vor.u32 %v1543_v2, %v1539_v0  ;;  %v5236_v58 = vld [vmem:[#allocation2 + $0x24] sm:$0xff]  }
  0x3e   : > { %v3764_v57 = vsel %vm1959_vm9, %v3762_v16, %v3763_v43  ;;  %v2446_v61 = vshll.u32 %v5223_v56, 16  ;;  %v5225_v62 = vld [vmem:[#allocation2 + $0x2c] ss:$0 sps:$4 sm:$0x11]   ;;  %v1551_v13 = vshrl.u32 %v5228_v15, 16  ;;  %v2427_v30 = vshrl.u32 %v5230_v18, 16 }
  0x3f   : > { %3807 = vrot.lane.b32.xlu0 %v3761_v42, %s5479_s10  ;;  %v1971_v59 = vsel %vm1959_vm9, %v1969_v28, %v1970_v49  ;;  %v3346_v6 = vshll.u32 %v5225_v62, 16  ;;  %v5227_v7 = vld [vmem:[#allocation2 + $0x14] ss:$0 sps:$4 sm:$0x11]   ;;  %v3344_v10 = vor.u32 %v3343_v63, %v3339_v53  ;;  %v1553_v28 = vshll.u32 %v5228_v15, 16 }
  0x40   : > { %v2448_v3 = vrot.slane %v2446_v61, 1  ;;  %v1546_v14 = vshll.u32 %v5227_v7, 16  ;;  %v5229_v16 = vld [vmem:[#allocation2 + $0x20] ss:$0 sps:$4 sm:$0x11]   ;;  %v2429_v33 = vshll.u32 %v5230_v18, 16 }
  0x41   : > { %2909 = vrot.lane.b32.xlu1 %v2864_v48, %s5478_s9  ;;  %v3348_v44 = vrot.slane %v3346_v6, 1  ;;  %v1558_v29 = vshll.u32 %v5229_v16, 16  ;;  %v5231_v26 = vld [vmem:[#allocation2 + $0x14] ss:$0 sps:$4 sm:$0x11]   ;;  %v1555_v36 = vrot.slane %v1553_v28, 1 }
  0x42   : > { %v2449_v11 = vsel %vm1525_vm10, %v2444_v60, %v2448_v3  ;;  %v1548_v21 = vrot.slane %v1546_v14, 1  ;;  %v2434_v38 = vshll.u32 %v5231_v26, 16  ;;  %v5233_v39 = vld [vmem:[#allocation2 + $0x2c] ss:$0 sps:$4 sm:$0x11]   ;;  %v2431_v41 = vrot.slane %v2429_v33, 1 }
  0x43   : > { %3809 = vrot.lane.b32.xlu0 %v3764_v57, %s5479_s10  ;;  %v3349_v31 = vsel %vm1525_vm10, %v3344_v10, %v3348_v44  ;;  %v1560_v37 = vrot.slane %v1558_v29, 1  ;;  %v1563_v42 = vshrl.u32 %v5232_v35, 16  ;;  %v1565_v43 = vshll.u32 %v5232_v35, 16  ;;  %v5235_v53 = vld [vmem:[#allocation2 + $0x20] ss:$0 sps:$4 sm:$0x11]  }
  0x44   : > { %v1549_v32 = vsel %vm1525_vm10, %v1544_v20, %v1548_v21  ;;  %v1556_v47 = vor.u32 %v1555_v36, %v1551_v13  ;;  %v2436_v48 = vrot.slane %v2434_v38, 1  ;;  %v1570_v49 = vshll.u32 %v5233_v39, 16  ;;  %v1050_v63 = vld [vmem:[#allocation2 + $0x38] sm:$0x1]  ;;  %v5238_v8 = vld [vmem:[#allocation2 + $0x30] sm:$0xff]   ;;  %v5079_v18 = vld [vmem:[%s5575_s25 + $0x28] sm:$0xff]  }
  0x45   : > { %2014 = vrot.lane.b32.xlu1 %v1971_v59, %s5474_s30  ;;  %v2432_v51 = vor.u32 %v2431_v41, %v2427_v30  ;;  %v1567_v52 = vrot.slane %v1565_v43, 1  ;;  %v3327_v55 = vshrl.u32 %v5234_v45, 16  ;;  %v3329_v56 = vshll.u32 %v5234_v45, 16  ;;  %v5237_v0 = vld [vmem:[#allocation2 + $0x2c] ss:$0 sps:$4 sm:$0x11]  }
  0x46   : > { %v1561_v57 = vsel %vm1525_vm10, %v1556_v47, %v1560_v37  ;;  %v1572_v5 = vrot.slane %v1570_v49, 1  ;;  %v3334_v62 = vshll.u32 %v5235_v53, 16  ;;  %v2451_v3 = vshrl.u32 %v5236_v58, 16  ;;  %v5240_v20 = vld [vmem:[#allocation2 + $0x24] sm:$0xfe]  }
  0x47   : > { %2012 = vrot.lane.b32.xlu0 %v1968_v9, %s5474_s30  ;;  %v2437_v59 = vsel %vm1525_vm10, %v2432_v51, %v2436_v48  ;;  %v1568_v60 = vor.u32 %v1567_v52, %v1563_v42  ;;  %v3331_v61 = vrot.slane %v3329_v56, 1  ;;  %v2453_v6 = vshll.u32 %v5236_v58, 16  ;;  %v5241_v13 = vld [vmem:[#allocation2 + $0x2c] ss:$0 sps:$4 sm:$0x11]   ;;  %v5246_v56 = vld [vmem:[#allocation2 + $0x30] sm:$0xff]  }
  0x48   : > { %v1051_v7 = vsel %vm5533_vm2, %v768_v54, %v1050_v63  ;;  %v4955_v9 = vpack.c.bf16 %v535_v50, %v535_v50  ;;  %v3336_v44 = vrot.slane %v3334_v62, 1  ;;  %v2458_v14 = vshll.u32 %v5237_v0, 16  ;;  %v343_v35 = vld [vmem:[#allocation2 + $0x44] sm:$0x1]  ;;  %v1053_v36 = vld [vmem:[#allocation2 + $0x3c] sm:$0xf] }
  0x49   : > { %2620 = vrot.lane.b32.xlu1 %v2449_v11, %s5480_s11  ;;  %v1573_v10 = vsel %vm1525_vm10, %v1568_v60, %v1572_v5  ;;  %v3332_v11 = vor.u32 %v3331_v61, %v3327_v55  ;;  %1052 = vst [vmem:[#allocation2 + $0x38] sm:$0x1] %v1051_v7  ;;  %v2455_v2 = vrot.slane %v2453_v6, 1  ;;  %v2463_v15 = vshrl.u32 %v5238_v8, 16  ;;  %v5244_v55 = vld [vmem:[#allocation2 + $0x30] sm:$0xff]  }
  0x4a   : > { %v2465_v16 = vshll.u32 %v5238_v8, 16  ;;  %v4956_v54 = vpack.c.bf16 %v536_v25, %v536_v25  ;;  %v2460_v50 = vrot.slane %v2458_v14, 1  ;;  %v770_v28 = vshrl.u32 %v4955_v9, 16  ;;  %v290_v25 = vld [vmem:[#allocation2 + $0x48] sm:$0x1] }
  0x4b   : > { %1720 = vrot.lane.b32.xlu0 %v1549_v32, %s5475_s6  ;;  %v3337_v46 = vsel %vm1525_vm10, %v3332_v11, %v3336_v44  ;;  %v2456_v34 = vor.u32 %v2455_v2, %v2451_v3  ;;  %v2865_v29 = vrot.slane %v5240_v20, 1  ;;  %v773_v26 = vshll.u32 %v4955_v9, 16  ;;  %v5242_v32 = vld [vmem:[#allocation2 + $0x30] sm:$0xfe]  }
  0x4c   : > { %v2467_v21 = vrot.slane %v2465_v16, 1  ;;  %v772_v33 = vrot.slane %v770_v28, 7  ;;  %v778_v12 = vshrl.u32 %v4956_v54, 16  ;;  %v5033_v37 = vunpack.c.l.bf16 %v5079_v18  ;;  %v5250_v8 = vld [vmem:[#allocation2 + $0x30] sm:$0xfe]  }
  0x4d   : > { %3520 = vrot.lane.b32.xlu1 %v3349_v31, %s5481_s12  ;;  %v2461_v30 = vsel %vm1525_vm10, %v2456_v34, %v2460_v50  ;;  %v2866_v31 = vrot.slane %v5241_v13, 1  ;;  %v781_v41 = vshll.u32 %v4956_v54, 16  ;;  %v5034_v47 = vunpack.c.h.bf16 %v5079_v18  ;;  %v5252_v9 = vld [vmem:[#allocation2 + $0x30] sm:$0xff]  }
  0x4e   : > { %v775_v39 = vor.u32 %v773_v26, %v772_v33  ;;  %v776_v45 = vrot.slane %v772_v33, 4  ;;  %v2468_v48 = vor.u32 %v2467_v21, %v2463_v15  ;;  %v780_v51 = vrot.slane %v778_v12, 7  ;;  %v5080_v34 = vld [vmem:[%s5575_s25 + $0x30] sm:$0xff]  }
  0x4f   : > { %2618 = vrot.lane.b32.xlu0 %v2437_v59, %s5480_s11  ;;  %v2867_v42 = vsel %vm1959_vm9, %v2865_v29, %v2866_v31  ;;  %v2868_v53 = vrot.slane %v5242_v32, 1  ;;  %v466_v5 = vmul.f32 %v5033_v37, %v5580_v23  ;;  %v291_v62 = vsel %vm5533_vm2, 0, %v290_v25  ;;  %v5258_v33 = vld [vmem:[#allocation2 + $0x30] sm:$0xfe]  }
  0x50   : > { %v5239_v38 = vld [vmem:[#allocation2 + $0x38] ss:$0 sps:$4 sm:$0x11]   ;;  %v1054_v52 = vsel %vm5566_vm8, %v775_v39, %v1053_v36  ;;  %v783_v60 = vor.u32 %v781_v41, %v780_v51  ;;  %v3351_v63 = vshrl.u32 %v5246_v56, 16  ;;  %v3353_v0 = vshll.u32 %v5246_v56, 16 }
  0x51   : > { %1722 = vrot.lane.b32.xlu1 %v1561_v57, %s5475_s6  ;;  %v5243_v43 = vld [vmem:[#allocation2 + $0x38] ss:$0 sps:$4 sm:$0x11]   ;;  %v2470_v49 = vshll.u32 %v5239_v38, 16  ;;  %1055 = vst [vmem:[#allocation2 + $0x3c] sm:$0xf] %v1054_v52  ;;  %v505_v2 = vadd.f32 %v5597_v40, %v466_v5  ;;  %v5037_v26 = vunpack.c.l.bf16 %v5080_v34 }
  0x52   : > { %v344_v57 = vsel %vm5540_vm4, 0, %v343_v35  ;;  %v2869_v59 = vrot.slane %v5243_v43, 1  ;;  %v5247_v61 = vld [vmem:[#allocation2 + $0x38] ss:$0 sps:$4 sm:$0x11]   ;;  %v784_v6 = vsel %vm5553_vm7, %v776_v45, %v783_v60  ;;  %v3355_v11 = vrot.slane %v3353_v0, 1 }
  0x53   : > { %3518 = vrot.lane.b32.xlu0 %v3337_v46, %s5481_s12  ;;  %v2472_v58 = vrot.slane %v2470_v49, 1  ;;  %345 = vst [vmem:[#allocation2 + $0x44] sm:$0x1] %v344_v57  ;;  %292 = vst [vmem:[#allocation2 + $0x48] sm:$0x1] %v291_v62  ;;  %v3358_v7 = vshll.u32 %v5247_v61, 16 }
  0x54   : > { %1056 = vst.msk [vmem:[#allocation2 + $0x40] sm:$0xf] %vm1022_vm6, %v784_v6  ;;  %v5251_v44 = vld [vmem:[#allocation2 + $0x38] ss:$0 sps:$4 sm:$0x11]   ;;  %v2870_v14 = vsel %vm1959_vm9, %v2868_v53, %v2869_v59  ;;  %v785_v15 = vrot.slane %v780_v51, 4  ;;  %v3356_v18 = vor.u32 %v3355_v11, %v3351_v63 }
  0x55   : > { %1724 = vrot.lane.b32.xlu1 %v1573_v10, %s5475_s6  ;;  %v2473_v3 = vsel %vm1525_vm10, %v2468_v48, %v2472_v58  ;;  %v467_v10 = vmul.f32 %v5034_v47, %v5580_v23  ;;  %v3360_v16 = vrot.slane %v3358_v7, 1  ;;  %v3765_v46 = vrot.slane %v5250_v8, 1  ;;  %v5253_v54 = vld [vmem:[#allocation2 + $0x38] ss:$0 sps:$4 sm:$0x11]  }
  0x56   : > { %v3766_v20 = vrot.slane %v5251_v44, 1  ;;  %v1577_v13 = vshll.u32 %v5252_v9, 16  ;;  %v537_v28 = vmax.f32 %v505_v2, 0.0  ;;  %v1582_v32 = vshll.u32 %v5253_v54, 16  ;;  %v5790_v57 = vld [vmem:[%s5575_s25 + $0x38] sm:$0xff]  }
  0x57   : > { %2622 = vrot.lane.b32.xlu0 %v2461_v30, %s5480_s11  ;;  %v506_v23 = vadd.f32 %v5597_v40, %v467_v10  ;;  %v3361_v50 = vsel %vm1525_vm10, %v3356_v18, %v3360_v16  ;;  %v5038_v30 = vunpack.c.h.bf16 %v5080_v34  ;;  %v5259_v40 = vld [vmem:[#allocation2 + $0x38] ss:$0 sps:$4 sm:$0x11]   ;;  %v1575_v38 = vshrl.u32 %v5252_v9, 16  ;;  %v346_v10 = vld [vmem:[#allocation2 + $0x50] sm:$0x1] }
  0x58   : > { %v3767_v31 = vsel %vm1959_vm9, %v3765_v46, %v3766_v20  ;;  %v4957_v37 = vpack.c.bf16 %v537_v28, %v537_v28  ;;  %v1579_v48 = vrot.slane %v1577_v13, 1  ;;  %v1584_v49 = vrot.slane %v1582_v32, 1  ;;  %v5797_v11 = vld [vmem:[%s6644_s3] ss:$0 sm:$0xff] }
  0x59   : > { %2624 = vrot.lane.b32.xlu1 %v2473_v3, %s5480_s11  ;;  %v538_v12 = vmax.f32 %v506_v23, 0.0  ;;  %v1972_v51 = vrot.slane %v5258_v33, 1  ;;  %v1973_v56 = vrot.slane %v5259_v40, 1  ;;  %v5041_v16 = vunpack.c.l.bf16 %v5790_v57  ;;  %v349_v40 = vld [vmem:[#allocation2 + $0x5c] sm:$0x1] }
  0x5a   : > { %v1057_v21 = vld [vmem:[#allocation2 + $0x44] sm:$0x1]  ;;  %v787_v59 = vshrl.u32 %v4957_v37, 16  ;;  %v790_v60 = vshll.u32 %v4957_v37, 16  ;;  %v1580_v0 = vor.u32 %v1579_v48, %v1575_v38  ;;  %v5042_v18 = vunpack.c.h.bf16 %v5790_v57  ;;  %v1060_v23 = vld [vmem:[#allocation2 + $0x48] sm:$0xf] }
  0x5b   : > { %2911 = vrot.lane.b32.xlu0 %v2867_v42, %s5478_s9  ;;  %v1058_v29 = vsel %vm5533_vm2, %v785_v15, %v1057_v21  ;;  %v5245_v35 = vld [vmem:[#allocation2 + $0x3c] sm:$0xff]   ;;  %v4958_v41 = vpack.c.bf16 %v538_v12, %v538_v12  ;;  %v1974_v28 = vsel %vm1959_vm9, %v1972_v51, %v1973_v56  ;;  %v347_v38 = vsel %vm5540_vm4, 0, %v346_v10  ;;  %v352_v48 = vld [vmem:[#allocation2 + $0x68] sm:$0x1] }
  0x5c   : > { %1059 = vst [vmem:[#allocation2 + $0x44] sm:$0x1] %v1058_v29  ;;  %v5248_v36 = vld [vmem:[#allocation2 + $0x3c] sm:$0xff]   ;;  %v789_v54 = vrot.slane %v787_v59, 7  ;;  %v1585_v21 = vsel %vm1525_vm10, %v1580_v0, %v1584_v49  ;;  %348 = vst [vmem:[#allocation2 + $0x50] sm:$0x1] %v347_v38 }
  0x5d   : > { %2913 = vrot.lane.b32.xlu1 %v2870_v14, %s5478_s9  ;;  %v5254_v25 = vld [vmem:[#allocation2 + $0x3c] sm:$0xfe]   ;;  %v3365_v47 = vshll.u32 %v5248_v36, 16  ;;  %v3363_v52 = vshrl.u32 %v5248_v36, 16  ;;  %v795_v63 = vshrl.u32 %v4958_v41, 16  ;;  %v798_v29 = vshll.u32 %v4958_v41, 16 }
  0x5e   : > { %v5256_v39 = vld [vmem:[#allocation2 + $0x3c] sm:$0xff]   ;;  %v3768_v53 = vrot.slane %v5254_v25, 1  ;;  %v793_v32 = vrot.slane %v789_v54, 4  ;;  %v350_v0 = vsel %vm5540_vm4, 0, %v349_v40 }
  0x5f   : > { %3089 = vrot.lane.b32.xlu0 %v5244_v55, %s5477_s8  ;;  %v5785_v42 = vld [vmem:[%s6643_s2] ss:$0 sm:$0xff]  ;;  %v1589_v55 = vshll.u32 %v5256_v39, 16  ;;  %v3367_v5 = vrot.slane %v3365_v47, 1  ;;  %v1587_v58 = vshrl.u32 %v5256_v39, 16  ;;  %v5805_v34 = vrot.slane %v795_v63, 7 }
  0x60   : > { %v468_v43 = vmul.f32 %v5785_v42, %v5037_v26  ;;  %v469_v45 = vmul.f32 %v5785_v42, %v5038_v30  ;;  %v5792_v62 = vld [vmem:[#allocation2 + $0x3c] sm:$0xfe]   ;;  %v470_v56 = vmul.f32 %v5785_v42, %v5041_v16  ;;  %351 = vst [vmem:[#allocation2 + $0x5c] sm:$0x1] %v350_v0 }
  0x61   : > { %3091 = vrot.lane.b32.xlu1 %v5245_v35, %s5477_s8  ;;  %v1591_v6 = vrot.slane %v1589_v55, 1  ;;  %v3368_v7 = vor.u32 %v3367_v5, %v3363_v52  ;;  %v1975_v30 = vrot.slane %v5792_v62, 1  ;;  %v5264_v33 = vld [vmem:[#allocation2 + $0x3c] sm:$0xff]   ;;  %v800_v25 = vor.u32 %v798_v29, %v5805_v34 }
  0x62   : > { %v507_v44 = vadd.f32 %v5797_v11, %v468_v43  ;;  %v508_v15 = vadd.f32 %v5797_v11, %v469_v45  ;;  %v296_v35 = vld [vmem:[#allocation2 + $0x60] sm:$0x1]  ;;  %v2475_v45 = vshrl.u32 %v5264_v33, 16  ;;  %v2477_v47 = vshll.u32 %v5264_v33, 16 }
  0x63   : > { %3522 = vrot.lane.b32.xlu0 %v3361_v50, %s5481_s12  ;;  %v5249_v61 = vld [vmem:[#allocation2 + $0x44] ss:$0 sps:$4 sm:$0x11]   ;;  %v293_v50 = vld [vmem:[#allocation2 + $0x54] sm:$0x1]  ;;  %v1592_v39 = vor.u32 %v1591_v6, %v1587_v58  ;;  %v5262_v41 = vld [vmem:[#allocation2 + $0x3c] sm:$0xff]   ;;  %v801_v51 = vsel %vm5553_vm7, %v793_v32, %v800_v25  ;;  %v5842_v16 = vadd.f32 %v5797_v11, %v470_v56 }
  0x64   : > { %v5255_v3 = vld [vmem:[#allocation2 + $0x44] ss:$0 sps:$4 sm:$0x11]   ;;  %v3370_v8 = vshll.u32 %v5249_v61, 16  ;;  %v294_v55 = vsel %vm5533_vm2, 0, %v293_v50  ;;  %v2479_v57 = vrot.slane %v2477_v47, 1 }
  0x65   : > { %v5257_v9 = vld [vmem:[#allocation2 + $0x44] ss:$0 sps:$4 sm:$0x11]   ;;  %v3769_v2 = vrot.slane %v5255_v3, 1  ;;  %1063 = vst.msk [vmem:[#allocation2 + $0x4c] sm:$0xf] %vm1022_vm6, %v801_v51 }
  0x66   : > { %v5800_v14 = vld [vmem:[#allocation2 + $0x44] ss:$0 sps:$4 sm:$0x11]   ;;  %v3372_v46 = vrot.slane %v3370_v8, 1  ;;  %v1594_v20 = vshll.u32 %v5257_v9, 16  ;;  %v539_v58 = vmax.f32 %v507_v44, 0.0 }
  0x67   : > { %3811 = vrot.lane.b32.xlu0 %v3767_v31, %s5479_s10  ;;  %v3770_v13 = vsel %vm1959_vm9, %v3768_v53, %v3769_v2  ;;  %v792_v31 = vor.u32 %v790_v60, %v789_v54  ;;  %v1976_v36 = vrot.slane %v5800_v14, 1  ;;  %v5265_v37 = vld [vmem:[#allocation2 + $0x44] ss:$0 sps:$4 sm:$0x11]   ;;  %v5268_v53 = vld [vmem:[#allocation2 + $0x3c] sm:$0xfe]   ;;  %v471_v60 = vmul.f32 %v5785_v42, %v5042_v18 }
  0x68   : > { %v3373_v26 = vsel %vm1525_vm10, %v3368_v7, %v3372_v46  ;;  %v1596_v12 = vrot.slane %v1594_v20, 1  ;;  %v5300_v49 = vld [vmem:[#allocation2] sm:$0xff]   ;;  %v2482_v52 = vshll.u32 %v5265_v37, 16  ;;  %295 = vst [vmem:[#allocation2 + $0x54] sm:$0x1] %v294_v55  ;;  %v540_v59 = vmax.f32 %v508_v15, 0.0 }
  0x69   : > { %3524 = vrot.lane.b32.xlu1 %v3373_v26, %s5481_s12  ;;  %v1061_v43 = vsel %vm5566_vm8, %v792_v31, %v1060_v23  ;;  %v5269_v5 = vld [vmem:[#allocation2 + $0x44] ss:$0 sps:$4 sm:$0x11]   ;;  %v802_v61 = vrot.slane %v5805_v34, 4  ;;  %v297_v3 = vsel %vm5533_vm2, 0, %v296_v35  ;;  %v2480_v7 = vor.u32 %v2479_v57, %v2475_v45  ;;  %1333 = vst.msk [vmem:[#allocation3] sm:$0xff] %vm1332_vm11, %v5300_v49 }
  0x6a   : > { %1062 = vst [vmem:[#allocation2 + $0x48] sm:$0xf] %v1061_v43  ;;  %v2484_v63 = vrot.slane %v2482_v52, 1  ;;  %v1597_v6 = vsel %vm1525_vm10, %v1592_v39, %v1596_v12  ;;  %v4959_v8 = vpack.c.bf16 %v539_v58, %v539_v58  ;;  %v4960_v9 = vpack.c.bf16 %v540_v59, %v540_v59  ;;  %298 = vst [vmem:[#allocation2 + $0x60] sm:$0x1] %v297_v3  ;;  %v5327_v10 = vld [vmem:[%s6642_s1] sm:$0xff]  }
  0x6b   : > { %3813 = vrot.lane.b32.xlu0 %v3770_v13, %s5479_s10  ;;  %v353_v44 = vsel %vm5540_vm4, 0, %v352_v48  ;;  %v2871_v2 = vrot.slane %v5268_v53, 1  ;;  %v2872_v14 = vrot.slane %v5269_v5, 1  ;;  %5111 = vmatprep.subr.bf16.mxu0 %v5327_v10  ;;  %v5330_v18 = vld [vmem:[#allocation2 + $0xc] sm:$0xff]   ;;  %v1977_v13 = vsel %vm1959_vm9, %v1975_v30, %v1976_v36  ;;  %v1071_v53 = vld [vmem:[#allocation2 + $0x5c] sm:$0x1] }
  0x6c   : > { %v804_v15 = vshrl.u32 %v4959_v8, 16  ;;  %354 = vst [vmem:[#allocation2 + $0x68] sm:$0x1] %v353_v44  ;;  %v5332_v46 = vld [vmem:[%s6642_s1 + $0x8] sm:$0xff]   ;;  %v2485_v20 = vsel %vm1525_vm10, %v2480_v7, %v2484_v63  ;;  %v1064_v54 = vld [vmem:[#allocation2 + $0x50] sm:$0x1]  ;;  %5112 = vmatpush3.bf16.msra.mxu0 %v5327_v10  ;;  %v5856_v29 = vadd.f32 %v5797_v11, %v471_v60  ;;  %5153 = vmatprep.subr.bf16.mxu1 %v5327_v10 }
  0x6d   : > { %1726 = vrot.lane.b32.xlu1 %v1585_v21, %s5475_s6  ;;  %v807_v34 = vshll.u32 %v4959_v8, 16  ;;  %v812_v23 = vshrl.u32 %v4960_v9, 16  ;;  %v815_v50 = vshll.u32 %v4960_v9, 16  ;;  %v5334_v21 = vld [vmem:[#allocation2 + $0x18] sm:$0xff]   ;;  %1334 = vst.msk [vmem:[#allocation3 + $0x8] sm:$0xff] %vm1332_vm11, %v5330_v18  ;;  %5113 = vmatprep.subr.bf16.mxu0 %v5332_v46  ;;  %v541_v30 = vmax.f32 %v5842_v16, 0.0 }
  0x6e   : > { %v806_v26 = vrot.slane %v804_v15, 7  ;;  %1335 = vst.msk [vmem:[#allocation3 + $0x10] sm:$0xff] %vm1332_vm11, %v5334_v21  ;;  %5158 = vmatpush3.bf16.msra.mxu1 %v5327_v10  ;;  %v2873_v33 = vsel %vm1959_vm9, %v2871_v2, %v2872_v14  ;;  %v5337_v55 = vld [vmem:[%s6642_s1 + $0x10] sm:$0xff]   ;;  %v5082_v21 = vld [vmem:[%s5575_s25 + $0x40] sm:$0xff]  }
  0x6f   : > { %2016 = vrot.lane.b32.xlu0 %v1974_v28, %s5474_s30  ;;  %v1065_v28 = vsel %vm5533_vm2, %v802_v61, %v1064_v54  ;;  %v814_v31 = vrot.slane %v812_v23, 7  ;;  %5154 = vmatprep.subr.bf16.mxu1 %v5332_v46  ;;  %v1067_v38 = vld [vmem:[#allocation2 + $0x54] sm:$0xf] }
  0x70   : > { %1066 = vst [vmem:[#allocation2 + $0x50] sm:$0x1] %v1065_v28  ;;  %v809_v35 = vor.u32 %v807_v34, %v806_v26  ;;  %v810_v12 = vrot.slane %v806_v26, 4  ;;  %5114 = vmatpush3.bf16.msra.mxu0 %v5332_v46 }
  0x71   : > { %1728 = vrot.lane.b32.xlu1 %v1597_v6, %s5475_s6  ;;  %v5266_v62 = vld [vmem:[#allocation2 + $0x48] sm:$0xff]   ;;  %v817_v37 = vor.u32 %v815_v50, %v814_v31  ;;  %v819_v45 = vrot.slane %v814_v31, 4  ;;  %5115 = vmatprep.subr.bf16.mxu0 %v5337_v55 }
  0x72   : > { %v5263_v32 = vld [vmem:[#allocation2 + $0x48] sm:$0xff]   ;;  %v2489_v36 = vshll.u32 %v5266_v62, 16  ;;  %v2487_v43 = vshrl.u32 %v5266_v62, 16  ;;  %v1068_v47 = vsel %vm5566_vm8, %v809_v35, %v1067_v38  ;;  %5159 = vmatpush3.bf16.msra.mxu1 %v5332_v46 }
  0x73   : > { %2193 = vrot.lane.b32.xlu0 %v5262_v41, %s5476_s7  ;;  %v5270_v40 = vld [vmem:[#allocation2 + $0x48] sm:$0xfe]   ;;  %v542_v41 = vmax.f32 %v5856_v29, 0.0  ;;  %v818_v49 = vsel %vm5553_vm7, %v810_v12, %v817_v37  ;;  %1069 = vst [vmem:[#allocation2 + $0x54] sm:$0xf] %v1068_v47  ;;  %v1072_v56 = vsel %vm5533_vm2, %v819_v45, %v1071_v53  ;;  %5155 = vmatprep.subr.bf16.mxu1 %v5337_v55  ;;  %v5045_v45 = vunpack.c.l.bf16 %v5082_v21 }
  0x74   : > { %v5272_v25 = vld [vmem:[#allocation2 + $0x48] sm:$0xff]   ;;  %v2491_v48 = vrot.slane %v2489_v36, 1  ;;  %1070 = vst.msk [vmem:[#allocation2 + $0x58] sm:$0xf] %vm1022_vm6, %v818_v49  ;;  %1073 = vst [vmem:[#allocation2 + $0x5c] sm:$0x1] %v1072_v56  ;;  %5116 = vmatpush3.bf16.msra.mxu0 %v5337_v55  ;;  %v4961_v36 = vpack.c.bf16 %v541_v30, %v541_v30  ;;  %v5046_v30 = vunpack.c.h.bf16 %v5082_v21 }
  0x75   : > { %2018 = vrot.lane.b32.xlu1 %v1977_v13, %s5474_s30  ;;  %v5274_v39 = vld [vmem:[#allocation2 + $0x48] sm:$0xff]   ;;  %v2874_v60 = vrot.slane %v5270_v40, 1 }
  0x76   : > { %v3375_v51 = vshrl.u32 %v5274_v39, 16  ;;  %v3377_v52 = vshll.u32 %v5274_v39, 16  ;;  %v5278_v57 = vld [vmem:[#allocation2 + $0x48] sm:$0xfe]   ;;  %5160 = vmatpush3.bf16.msra.mxu1 %v5337_v55  ;;  %v2492_v61 = vor.u32 %v2491_v48, %v2487_v43  ;;  %v821_v55 = vshrl.u32 %v4961_v36, 16 }
  0x77   : > { %2626 = vrot.lane.b32.xlu0 %v2485_v20, %s5480_s11  ;;  %v5267_v5 = vld [vmem:[#allocation2 + $0x50] ss:$0 sps:$4 sm:$0x11]   ;;  %v5280_v3 = vld [vmem:[#allocation2 + $0x48] sm:$0xff]   ;;  %v3771_v44 = vrot.slane %v5278_v57, 1 }
  0x78   : > { %v3379_v58 = vrot.slane %v3377_v52, 1  ;;  %v5271_v59 = vld [vmem:[#allocation2 + $0x50] ss:$0 sps:$4 sm:$0x11]   ;;  %v2494_v63 = vshll.u32 %v5267_v5, 16  ;;  %v1599_v18 = vshrl.u32 %v5280_v3, 16 }
  0x79   : > { %2195 = vrot.lane.b32.xlu1 %v5263_v32, %s5476_s7  ;;  %v5275_v0 = vld [vmem:[#allocation2 + $0x50] ss:$0 sps:$4 sm:$0x11]   ;;  %v2875_v6 = vrot.slane %v5271_v59, 1  ;;  %v1601_v50 = vshll.u32 %v5280_v3, 16  ;;  %v5891_v52 = vld [vmem:[%s5575_s25 + $0x48] sm:$0xff]  }
  0x7a   : > { %v5279_v7 = vld [vmem:[#allocation2 + $0x50] ss:$0 sps:$4 sm:$0x11]   ;;  %v2496_v8 = vrot.slane %v2494_v63, 1  ;;  %v3380_v9 = vor.u32 %v3379_v58, %v3375_v51  ;;  %v3382_v10 = vshll.u32 %v5275_v0, 16  ;;  %v823_v63 = vrot.slane %v821_v55, 7 }
  0x7b   : > { %2915 = vrot.lane.b32.xlu0 %v2873_v33, %s5478_s9  ;;  %v3772_v2 = vrot.slane %v5279_v7, 1  ;;  %v5276_v46 = vld [vmem:[#allocation2 + $0x54] sm:$0xff]   ;;  %v5277_v20 = vld [vmem:[#allocation2 + $0x5c] ss:$0 sps:$4 sm:$0x11]   ;;  %v2876_v54 = vsel %vm1959_vm9, %v2874_v60, %v2875_v6  ;;  %v1603_v35 = vrot.slane %v1601_v50, 1  ;;  %v472_v7 = vmul.f32 %v5785_v42, %v5045_v45 }
  0x7c   : > { %v2497_v14 = vsel %vm1525_vm10, %v2492_v61, %v2496_v8  ;;  %v3384_v15 = vrot.slane %v3382_v10, 1  ;;  %v5281_v23 = vld [vmem:[#allocation2 + $0x50] ss:$0 sps:$4 sm:$0x11]   ;;  %v5273_v13 = vld [vmem:[#allocation2 + $0x54] sm:$0xff]   ;;  %v3387_v28 = vshrl.u32 %v5276_v46, 16  ;;  %v4962_v61 = vpack.c.bf16 %v542_v41, %v542_v41 }
  0x7d   : > { %2628 = vrot.lane.b32.xlu1 %v2497_v14, %s5480_s11  ;;  %v3389_v26 = vshll.u32 %v5276_v46, 16  ;;  %v3394_v62 = vshll.u32 %v5277_v20, 16  ;;  %v3773_v31 = vsel %vm1959_vm9, %v3771_v44, %v3772_v2  ;;  %v1606_v32 = vshll.u32 %v5281_v23, 16  ;;  %v5284_v33 = vld [vmem:[#allocation2 + $0x54] sm:$0xff]   ;;  %v5286_v58 = vld [vmem:[#allocation2 + $0x48] sm:$0xfe]  }
  0x7e   : > { %v3385_v34 = vsel %vm1525_vm10, %v3380_v9, %v3384_v15  ;;  %v5282_v12 = vld [vmem:[#allocation2 + $0x54] sm:$0xfe]   ;;  %v5283_v37 = vld [vmem:[#allocation2 + $0x5c] ss:$0 sps:$4 sm:$0x11]   ;;  %v1611_v49 = vshrl.u32 %v5284_v33, 16  ;;  %v1604_v53 = vor.u32 %v1603_v35, %v1599_v18  ;;  %v473_v2 = vmul.f32 %v5785_v42, %v5046_v30 }
  0x7f   : > { %3093 = vrot.lane.b32.xlu0 %v5272_v25, %s5477_s8  ;;  %v3391_v40 = vrot.slane %v3389_v26, 1  ;;  %v3396_v25 = vrot.slane %v3394_v62, 1  ;;  %v3774_v39 = vrot.slane %v5282_v12, 1  ;;  %v5285_v43 = vld [vmem:[#allocation2 + $0x5c] ss:$0 sps:$4 sm:$0x11]   ;;  %v5049_v14 = vunpack.c.l.bf16 %v5891_v52 }
  0x80   : > { %v1608_v47 = vrot.slane %v1606_v32, 1  ;;  %v3775_v48 = vrot.slane %v5283_v37, 1  ;;  %v1613_v51 = vshll.u32 %v5284_v33, 16  ;;  %v1618_v16 = vshll.u32 %v5285_v43, 16  ;;  %v5288_v6 = vld [vmem:[#allocation2 + $0x54] sm:$0xfe]  }
  0x81   : > { %2917 = vrot.lane.b32.xlu1 %v2876_v54, %s5478_s9  ;;  %v3392_v38 = vor.u32 %v3391_v40, %v3387_v28  ;;  %v5287_v59 = vld [vmem:[#allocation2 + $0x50] ss:$0 sps:$4 sm:$0x11]   ;;  %v1978_v0 = vrot.slane %v5286_v58, 1  ;;  %v5290_v10 = vld [vmem:[#allocation2 + $0x54] sm:$0xff]   ;;  %v824_v44 = vshll.u32 %v4961_v36, 16  ;;  %v511_v62 = vadd.f32 %v5797_v11, %v472_v7 }
  0x82   : > { %v3776_v57 = vsel %vm1959_vm9, %v3774_v39, %v3775_v48  ;;  %v1615_v5 = vrot.slane %v1613_v51, 1  ;;  %v1620_v60 = vrot.slane %v1618_v16, 1  ;;  %v1979_v3 = vrot.slane %v5287_v59, 1  ;;  %v5289_v9 = vld [vmem:[#allocation2 + $0x5c] ss:$0 sps:$4 sm:$0x11]  }
  0x83   : > { %3526 = vrot.lane.b32.xlu0 %v3385_v34, %s5481_s12  ;;  %v3397_v56 = vsel %vm1525_vm10, %v3392_v38, %v3396_v25  ;;  %v1609_v8 = vsel %vm1525_vm10, %v1604_v53, %v1608_v47  ;;  %v1981_v15 = vrot.slane %v5288_v6, 1  ;;  %v827_v18 = vrot.slane %v823_v63, 4  ;;  %v1074_v46 = vld [vmem:[#allocation2 + $0x60] sm:$0xf]  ;;  %v5292_v21 = vld [vmem:[#allocation2 + $0x54] sm:$0xff]   ;;  %v5340_v35 = vld [vmem:[#allocation2 + $0x24] sm:$0xff]  }
  0x84   : > { %v1616_v29 = vor.u32 %v1615_v5, %v1611_v49  ;;  %v1980_v41 = vsel %vm1959_vm9, %v1978_v0, %v1979_v3  ;;  %v1982_v54 = vrot.slane %v5289_v9, 1  ;;  %v826_v34 = vor.u32 %v824_v44, %v823_v63  ;;  %v299_v28 = vld [vmem:[#allocation2 + $0x6c] sm:$0x1]  ;;  %v1078_v26 = vld [vmem:[#allocation2 + $0x68] sm:$0x1]  ;;  %1336 = vst.msk [vmem:[#allocation3 + $0x18] sm:$0xff] %vm1332_vm11, %v5340_v35 }
  0x85   : > { %3095 = vrot.lane.b32.xlu1 %v5273_v13, %s5477_s8  ;;  %v829_v23 = vshrl.u32 %v4962_v61, 16  ;;  %v832_v50 = vshll.u32 %v4962_v61, 16  ;;  %v5293_v33 = vld [vmem:[#allocation2 + $0x5c] ss:$0 sps:$4 sm:$0x11]   ;;  %v2499_v40 = vshrl.u32 %v5292_v21, 16  ;;  %v512_v25 = vadd.f32 %v5797_v11, %v473_v2 }
  0x86   : > { %v1075_v32 = vsel %vm5566_vm8, %v826_v34, %v1074_v46  ;;  %v1621_v12 = vsel %vm1525_vm10, %v1616_v29, %v1620_v60  ;;  %v2501_v36 = vshll.u32 %v5292_v21, 16  ;;  %v355_v37 = vld [vmem:[#allocation2 + $0x74] sm:$0x1]  ;;  %v302_v38 = vld [vmem:[#allocation2 + $0x78] sm:$0x1]  ;;  %v2506_v45 = vshll.u32 %v5293_v33, 16 }
  0x87   : > { %3815 = vrot.lane.b32.xlu0 %v3773_v31, %s5479_s10  ;;  %v831_v31 = vrot.slane %v829_v23, 7  ;;  %1076 = vst [vmem:[#allocation2 + $0x60] sm:$0xf] %v1075_v32  ;;  %v5296_v47 = vld [vmem:[#allocation2 + $0x54] sm:$0xfe]   ;;  %v474_v48 = vmul.f32 %v5785_v42, %v5049_v14  ;;  %v1983_v49 = vsel %vm1959_vm9, %v1981_v15, %v1982_v54  ;;  %v300_v16 = vsel %vm5533_vm2, 0, %v299_v28 }
  0x88   : > { %v2503_v51 = vrot.slane %v2501_v36, 1  ;;  %v5297_v53 = vld [vmem:[#allocation2 + $0x5c] ss:$0 sps:$4 sm:$0x11]   ;;  %v543_v55 = vmax.f32 %v511_v62, 0.0  ;;  %v2877_v58 = vrot.slane %v5296_v47, 1 }
  0x89   : > { %3528 = vrot.lane.b32.xlu1 %v3397_v56, %s5481_s12  ;;  %v834_v39 = vor.u32 %v832_v50, %v831_v31  ;;  %v836_v43 = vrot.slane %v831_v31, 4  ;;  %301 = vst [vmem:[#allocation2 + $0x6c] sm:$0x1] %v300_v16  ;;  %v2878_v61 = vrot.slane %v5297_v53, 1  ;;  %v544_v63 = vmax.f32 %v512_v25, 0.0 }
  0x8a   : > { %v2504_v60 = vor.u32 %v2503_v51, %v2499_v40  ;;  %v4963_v0 = vpack.c.bf16 %v543_v55, %v543_v55  ;;  %v356_v3 = vsel %vm5540_vm4, 0, %v355_v37  ;;  %v303_v6 = vsel %vm5533_vm2, 0, %v302_v38 }
  0x8b   : > { %3817 = vrot.lane.b32.xlu0 %v3776_v57, %s5479_s10  ;;  %v835_v56 = vsel %vm5553_vm7, %v827_v18, %v834_v39  ;;  %v2508_v57 = vrot.slane %v2506_v45, 1  ;;  %v1079_v5 = vsel %vm5533_vm2, %v836_v43, %v1078_v26  ;;  %357 = vst [vmem:[#allocation2 + $0x74] sm:$0x1] %v356_v3  ;;  %304 = vst [vmem:[#allocation2 + $0x78] sm:$0x1] %v303_v6 }
  0x8c   : > { %1077 = vst.msk [vmem:[#allocation2 + $0x64] sm:$0xf] %vm1022_vm6, %v835_v56  ;;  %1080 = vst [vmem:[#allocation2 + $0x68] sm:$0x1] %v1079_v5  ;;  %v838_v9 = vshrl.u32 %v4963_v0, 16  ;;  %v2879_v44 = vsel %vm1959_vm9, %v2877_v58, %v2878_v61  ;;  %v513_v14 = vadd.f32 %v5797_v11, %v474_v48 }
  0x8d   : > { %1730 = vrot.lane.b32.xlu1 %v1609_v8, %s5475_s6  ;;  %v2509_v7 = vsel %vm1525_vm10, %v2504_v60, %v2508_v57  ;;  %v4964_v8 = vpack.c.bf16 %v544_v63, %v544_v63 }
  0x8e   : > { %v840_v29 = vrot.slane %v838_v9, 7  ;;  %v545_v28 = vmax.f32 %v513_v14, 0.0 }
  0x8f   : > { %2020 = vrot.lane.b32.xlu0 %v1980_v41, %s5474_s30  ;;  %v841_v41 = vshll.u32 %v4963_v0, 16  ;;  %v846_v15 = vshrl.u32 %v4964_v8, 16  ;;  %v849_v18 = vshll.u32 %v4964_v8, 16 }
  0x90   : > { %v844_v34 = vrot.slane %v840_v29, 4  ;;  %v1081_v50 = vld [vmem:[#allocation2 + $0x6c] sm:$0xf] }
  0x91   : > { %v2009_v20 = vpop.permute.xlu1 %2008  ;;  %1732 = vrot.lane.b32.xlu1 %v1621_v12, %s5475_s6  ;;  %v843_v54 = vor.u32 %v841_v41, %v840_v29  ;;  %v848_v23 = vrot.slane %v846_v15, 7 }
  0x92   : > { %v1085_v5 = vld [vmem:[#allocation2 + $0x74] sm:$0x1] }
  0x93   : > { %2197 = vrot.lane.b32.xlu0 %v5290_v10, %s5476_s7  ;;  %v5343_v10 = vld [vmem:[%s6642_s1 + $0x18] sm:$0xff]   ;;  %v5291_v21 = vld [vmem:[#allocation2 + $0x60] sm:$0xff]   ;;  %v5295_v62 = vld [vmem:[#allocation2 + $0x68] ss:$0 sps:$4 sm:$0x11]   ;;  %v851_v31 = vor.u32 %v849_v18, %v848_v23  ;;  %v1082_v32 = vsel %vm5566_vm8, %v843_v54, %v1081_v50  ;;  %v853_v39 = vrot.slane %v848_v23, 4 }
  0x94   : > { %5117 = vmatprep.subr.bf16.mxu0 %v5343_v10  ;;  %5156 = vmatprep.subr.bf16.mxu1 %v5343_v10  ;;  %v5294_v26 = vld [vmem:[#allocation2 + $0x60] sm:$0xff]   ;;  %1083 = vst [vmem:[#allocation2 + $0x6c] sm:$0xf] %v1082_v32  ;;  %v2518_v36 = vshll.u32 %v5295_v62, 16  ;;  %v5084_v32 = vld [vmem:[%s5575_s25 + $0x50] sm:$0xff]  }
  0x95   : > { %v1719_v13 = vpop.permute.xlu0 %1718  ;;  %2022 = vrot.lane.b32.xlu1 %v1983_v49, %s5474_s30  ;;  %5118 = vmatpush3.bf16.msra.mxu0 %v5343_v10  ;;  %v2511_v35 = vshrl.u32 %v5294_v26, 16  ;;  %v2513_v12 = vshll.u32 %v5294_v26, 16  ;;  %v5299_v25 = vld [vmem:[#allocation2 + $0x68] ss:$0 sps:$4 sm:$0x11]   ;;  %v852_v37 = vsel %vm5553_vm7, %v844_v34, %v851_v31  ;;  %v5301_v38 = vld [vmem:[#allocation2 + $0x60] sm:$0xff]   ;;  %v1086_v61 = vsel %vm5533_vm2, %v853_v39, %v1085_v5 }
  0x96   : > { %1767 = vst.msk [vmem:[#allocation3] sm:$0xff] %vm6647_vm12, %v1719_v13  ;;  %5161 = vmatpush3.bf16.msra.mxu1 %v5343_v10  ;;  %v5303_v43 = vld [vmem:[#allocation2 + $0x60] sm:$0xff]   ;;  %v2520_v47 = vrot.slane %v2518_v36, 1  ;;  %v2881_v51 = vrot.slane %v5299_v25, 1  ;;  %1087 = vst [vmem:[#allocation2 + $0x74] sm:$0x1] %v1086_v61 }
  0x97   : > { %2057 = vst.msk [vmem:[#allocation3] sm:$0xff] %vm2056_vm13, %v2009_v20  ;;  %2630 = vrot.lane.b32.xlu0 %v2509_v7, %s5480_s11  ;;  %v5050_v20 = vunpack.c.h.bf16 %v5891_v52  ;;  %v5298_v52 = vld [vmem:[#allocation2 + $0x60] sm:$0xfe]   ;;  %v2515_v45 = vrot.slane %v2513_v12, 1  ;;  %v3399_v56 = vshrl.u32 %v5303_v43, 16  ;;  %v3401_v57 = vshll.u32 %v5303_v43, 16 }
  0x98   : > { %1084 = vst.msk [vmem:[#allocation2 + $0x70] sm:$0xf] %vm1022_vm6, %v852_v37  ;;  %v2880_v48 = vrot.slane %v5298_v52, 1  ;;  %v5959_v49 = vld [vmem:[#allocation2 + $0x60] sm:$0xff]  }
  0x99   : > { %2199 = vrot.lane.b32.xlu1 %v5291_v21, %s5476_s7  ;;  %v475_v40 = vmul.f32 %v5785_v42, %v5050_v20  ;;  %v5304_v42 = vld [vmem:[#allocation2 + $0x68] ss:$0 sps:$4 sm:$0x11]   ;;  %v2516_v55 = vor.u32 %v2515_v45, %v2511_v35  ;;  %v5307_v63 = vld [vmem:[#allocation2 + $0x60] sm:$0xfe]   ;;  %v1625_v0 = vshll.u32 %v5959_v49, 16 }
  0x9a   : > { %v3406_v60 = vshll.u32 %v5304_v42, 16  ;;  %v3403_v6 = vrot.slane %v3401_v57, 1  ;;  %v5308_v8 = vld [vmem:[#allocation2 + $0x68] ss:$0 sps:$4 sm:$0x11]   ;;  %v3777_v9 = vrot.slane %v5307_v63, 1  ;;  %v2882_v14 = vsel %vm1959_vm9, %v2880_v48, %v2881_v51 }
  0x9b   : > { %2919 = vrot.lane.b32.xlu0 %v2879_v44, %s5478_s9  ;;  %v5965_v16 = vadd.f32 %v5797_v11, %v475_v40  ;;  %v2521_v3 = vsel %vm1525_vm10, %v2516_v55, %v2520_v47  ;;  %v1623_v11 = vshrl.u32 %v5959_v49, 16  ;;  %v1627_v41 = vrot.slane %v1625_v0, 1  ;;  %v5310_v50 = vld [vmem:[#allocation2 + $0x68] ss:$0 sps:$4 sm:$0x11]  }
  0x9c   : > { %v3408_v7 = vrot.slane %v3406_v60, 1  ;;  %v3404_v29 = vor.u32 %v3403_v6, %v3399_v56  ;;  %v3778_v34 = vrot.slane %v5308_v8, 1  ;;  %v1630_v40 = vshll.u32 %v5310_v50, 16  ;;  %v5315_v5 = vld [vmem:[#allocation2 + $0x60] sm:$0xfe]  }
  0x9d   : > { %2632 = vrot.lane.b32.xlu1 %v2521_v3, %s5480_s11  ;;  %v546_v44 = vmax.f32 %v5965_v16, 0.0  ;;  %v5306_v36 = vld [vmem:[#allocation2 + $0x74] ss:$0 sps:$4 sm:$0x11]   ;;  %v5053_v16 = vunpack.c.l.bf16 %v5084_v32  ;;  %v1628_v56 = vor.u32 %v1627_v41, %v1623_v11  ;;  %v5054_v0 = vunpack.c.h.bf16 %v5084_v32  ;;  %v1088_v32 = vld [vmem:[#allocation2 + $0x78] sm:$0xf] }
  0x9e   : > { %v5920_v30 = vpop.permute.xlu1 %2187  ;;  %v3409_v23 = vsel %vm1525_vm10, %v3404_v29, %v3408_v7  ;;  %v3779_v52 = vsel %vm1959_vm9, %v3777_v9, %v3778_v34  ;;  %v1632_v37 = vrot.slane %v1630_v40, 1  ;;  %v3418_v43 = vshll.u32 %v5306_v36, 16  ;;  %v5314_v51 = vld [vmem:[#allocation2 + $0x74] ss:$0 sps:$4 sm:$0x11]  }
  0x9f   : > { %3097 = vrot.lane.b32.xlu0 %v5301_v38, %s5477_s8  ;;  %v5302_v20 = vld [vmem:[#allocation2 + $0x6c] sm:$0xff]   ;;  %v5312_v38 = vld [vmem:[#allocation2 + $0x74] ss:$0 sps:$4 sm:$0x11]   ;;  %v1642_v61 = vshll.u32 %v5314_v51, 16  ;;  %v1984_v6 = vrot.slane %v5315_v5, 1  ;;  %v4966_v7 = vpack.c.bf16 %v546_v44, %v546_v44 }
  0xa0   : > { %v2186_v59 = vpop.permute.xlu0 %2185  ;;  %v5305_v54 = vld [vmem:[#allocation2 + $0x6c] sm:$0xff]   ;;  %v3781_v49 = vrot.slane %v5312_v38, 1  ;;  %v3420_v55 = vrot.slane %v3418_v43, 1  ;;  %v5316_v63 = vld [vmem:[#allocation2 + $0x68] ss:$0 sps:$4 sm:$0x11]  }
  0xa1   : > { %2234 = vst.msk [vmem:[#allocation3] sm:$0xff] %vm2233_vm14, %v2186_v59  ;;  %v5969_v59 = vpack.c.bf16 %v545_v28, %v545_v28  ;;  %v5313_v21 = vld [vmem:[#allocation2 + $0x6c] sm:$0xff]   ;;  %2921 = vrot.lane.b32.xlu1 %v2882_v14, %s5478_s9  ;;  %v3411_v28 = vshrl.u32 %v5305_v54, 16  ;;  %v3413_v26 = vshll.u32 %v5305_v54, 16  ;;  %v358_v9 = vld [vmem:[#allocation2 + $0x80] sm:$0x1] }
  0xa2   : > { %v5311_v62 = vld [vmem:[#allocation2 + $0x6c] sm:$0xfe]   ;;  %v1635_v35 = vshrl.u32 %v5313_v21, 16  ;;  %v1637_v47 = vshll.u32 %v5313_v21, 16  ;;  %v1644_v11 = vrot.slane %v1642_v61, 1  ;;  %v1985_v29 = vrot.slane %v5316_v63, 1 }
  0xa3   : > { %v855_v18 = vshrl.u32 %v5969_v59, 16  ;;  %3530 = vrot.lane.b32.xlu0 %v3409_v23, %s5481_s12  ;;  %v3415_v25 = vrot.slane %v3413_v26, 1  ;;  %v3780_v45 = vrot.slane %v5311_v62, 1  ;;  %v5317_v41 = vld [vmem:[#allocation2 + $0x6c] sm:$0xfe]   ;;  %v858_v21 = vshll.u32 %v5969_v59, 16 }
  0xa4   : > { %v5941_v2 = vpop.permute.xlu0 %3085  ;;  %v1639_v57 = vrot.slane %v1637_v47, 1  ;;  %v6011_v54 = vld [vmem:[%s6643_s2] ss:$0 sm:$0xff]  ;;  %v5318_v23 = vld [vmem:[#allocation2 + $0x74] ss:$0 sps:$4 sm:$0x11]  }
  0xa5   : > { %3099 = vrot.lane.b32.xlu1 %v5302_v20, %s5477_s8  ;;  %v3416_v39 = vor.u32 %v3415_v25, %v3411_v28  ;;  %v3782_v60 = vsel %vm1959_vm9, %v3780_v45, %v3781_v49  ;;  %v6002_v8 = vrot.slane %v855_v18, 7  ;;  %v476_v44 = vmul.f32 %v6011_v54, %v5053_v16  ;;  %v5319_v50 = vld [vmem:[#allocation2 + $0x6c] sm:$0xff]   ;;  %v305_v16 = vld [vmem:[#allocation2 + $0x84] sm:$0x1]  ;;  %v6051_v63 = vld [vmem:[%s6642_s1 + $0x20] ss:$0 sps:$4 sm:$0xff]  }
  0xa6   : > { %v5944_v46 = vpop.permute.xlu1 %3087  ;;  %v1633_v18 = vsel %vm1525_vm10, %v1628_v56, %v1632_v37  ;;  %v1640_v34 = vor.u32 %v1639_v57, %v1635_v35  ;;  %v1986_v28 = vsel %vm1959_vm9, %v1984_v6, %v1985_v29  ;;  %v1987_v26 = vrot.slane %v5317_v41, 1  ;;  %v5321_v25 = vld [vmem:[#allocation2 + $0x6c] sm:$0xff]   ;;  %v5326_v6 = vld [vmem:[#allocation2 + $0x74] ss:$0 sps:$4 sm:$0x11]  }
  0xa7   : > { %3819 = vrot.lane.b32.xlu0 %v3779_v52, %s5479_s10  ;;  %v3421_v3 = vsel %vm1525_vm10, %v3416_v39, %v3420_v55  ;;  %v861_v62 = vrot.slane %v6002_v8, 4  ;;  %v477_v52 = vmul.f32 %v6011_v54, %v5054_v0  ;;  %v1988_v40 = vrot.slane %v5318_v23, 1  ;;  %v6043_v5 = vld [vmem:[#allocation2 + $0x6c] sm:$0xfe]   ;;  %v361_v61 = vld [vmem:[#allocation2 + $0x8c] sm:$0x1] }
  0xa8   : > { %v5948_v13 = vpop.permute.xlu0 %2189  ;;  %v860_v35 = vor.u32 %v858_v21, %v6002_v8  ;;  %v863_v59 = vshrl.u32 %v4966_v7, 16  ;;  %v866_v36 = vshll.u32 %v4966_v7, 16  ;;  %v359_v37 = vsel %vm5540_vm4, 0, %v358_v9  ;;  %v5391_v21 = vld [vmem:[#allocation2 + $0x48] sm:$0xff]  }
  0xa9   : > { %3532 = vrot.lane.b32.xlu1 %v3421_v3, %s5481_s12  ;;  %v1645_v45 = vsel %vm1525_vm10, %v1640_v34, %v1644_v11  ;;  %v2523_v51 = vshrl.u32 %v5321_v25, 16  ;;  %360 = vst [vmem:[#allocation2 + $0x80] sm:$0x1] %v359_v37  ;;  %v1989_v55 = vsel %vm1959_vm9, %v1987_v26, %v1988_v40  ;;  %v2525_v56 = vshll.u32 %v5321_v25, 16  ;;  %v5361_v11 = vld [vmem:[#allocation2 + $0x30] sm:$0xff]   ;;  %1339 = vst.msk [vmem:[#allocation3 + $0x30] sm:$0xff] %vm1332_vm11, %v5391_v21 }
  0xaa   : > { %v6037_v47 = vrot.slane %v863_v59, 7  ;;  %v1089_v49 = vsel %vm5566_vm8, %v860_v35, %v1088_v32  ;;  %v2883_v8 = vrot.slane %v6043_v5, 1  ;;  %v2884_v41 = vrot.slane %v5326_v6, 1  ;;  %1337 = vst.msk [vmem:[#allocation3 + $0x20] sm:$0xff] %vm1332_vm11, %v5361_v11  ;;  %v5085_v6 = vld [vmem:[%s5575_s25 + $0x58] sm:$0xff]  }
  0xab   : > { %v5953_v33 = vpop.permute.xlu1 %2191  ;;  %3821 = vrot.lane.b32.xlu0 %v3782_v60, %s5479_s10  ;;  %1090 = vst [vmem:[#allocation2 + $0x78] sm:$0xf] %v1089_v49 }
  0xac   : > { %v868_v0 = vor.u32 %v866_v36, %v6037_v47  ;;  %v870_v3 = vrot.slane %v6037_v47, 4 }
  0xad   : > { %v5962_v53 = vpop.permute.xlu0 %2907  ;;  %1734 = vrot.lane.b32.xlu1 %v1633_v18, %s5475_s6 }
  0xae   : > { %v869_v29 = vsel %vm5553_vm7, %v861_v62, %v868_v0 }
  0xaf   : > { %v5967_v58 = vpop.permute.xlu1 %2010  ;;  %2024 = vrot.lane.b32.xlu0 %v1986_v28, %s5474_s30  ;;  %1091 = vst.msk [vmem:[#allocation2 + $0x7c] sm:$0xf] %vm1022_vm6, %v869_v29 }
  0xb1   : > { %v5977_v10 = vpop.permute.xlu0 %3807  ;;  %1736 = vrot.lane.b32.xlu1 %v1645_v45, %s5475_s6 }
  0xb3   : > { %v5981_v15 = vpop.permute.xlu1 %2909  ;;  %2201 = vrot.lane.b32.xlu0 %v5319_v50, %s5476_s7 }
  0xb5   : > { %v5987_v31 = vpop.permute.xlu0 %3809  ;;  %2026 = vrot.lane.b32.xlu1 %v1989_v55, %s5474_s30 }
  0xb6   : > { %v5320_v25 = vld [vmem:[#allocation2 + $0x78] sm:$0xff]  }
  0xb7   : > { %v5991_v12 = vpop.permute.xlu1 %2014  ;;  %v5328_v37 = vld [vmem:[#allocation2 + $0x78] sm:$0xfe]  }
  0xb8   : > { %v5331_v45 = vld [vmem:[#allocation2 + $0x78] sm:$0xff]  }
  0xb9   : > { %v5995_v48 = vpop.permute.xlu0 %2012  ;;  %2203 = vrot.lane.b32.xlu1 %v5320_v25, %s5476_s7 }
  0xbb   : > { %v5997_v42 = vpop.permute.xlu1 %2620 }
  0xbd   : > { %v1721_v14 = vpop.permute.xlu0 %1720 }
  0xbe   : > { %1768 = vst.msk [vmem:[#allocation3 + $0x8] sm:$0xff] %vm6647_vm12, %v1721_v14 }
  0xbf   : > { %v6005_v20 = vpop.permute.xlu1 %3520  ;;  %2058 = vst.msk [vmem:[#allocation3 + $0x8] sm:$0xff] %vm2056_vm13, %v5967_v58  ;;  %v5322_v58 = vld [vmem:[#allocation2 + $0x74] ss:$0 sps:$4 sm:$0x11]  }
  0xc0   : > { %2235 = vst.msk [vmem:[#allocation3 + $0x8] sm:$0xff] %vm2233_vm14, %v5920_v30  ;;  %v6031_v30 = vld [vmem:[%s6644_s3] ss:$0 sm:$0xff]  ;;  %v2530_v57 = vshll.u32 %v5322_v58, 16  ;;  %v5323_v58 = vld [vmem:[#allocation2 + $0x78] sm:$0xff]  }
  0xc1   : > { %v6034_v38 = vadd.f32 %v6031_v30, %v476_v44  ;;  %v2619_v43 = vpop.permute.xlu0 %2618  ;;  %v516_v60 = vadd.f32 %v6031_v30, %v477_v52  ;;  %2668 = vst.msk [vmem:[#allocation3 + $0x8] sm:$0xff] %vm2666_vm15, %v5997_v42  ;;  %v306_v44 = vsel %vm5533_vm2, 0, %v305_v16  ;;  %v2537_v16 = vshll.u32 %v5323_v58, 16 }
  0xc2   : > { %v2532_v7 = vrot.slane %v2530_v57, 1  ;;  %2667 = vst.msk [vmem:[#allocation3] sm:$0xff] %vm2666_vm15, %v2619_v43  ;;  %307 = vst [vmem:[#allocation2 + $0x84] sm:$0x1] %v306_v44  ;;  %v5335_v57 = vld [vmem:[#allocation2 + $0x78] sm:$0xff]  }
  0xc3   : > { %v1723_v39 = vpop.permute.xlu1 %1722  ;;  %2957 = vst.msk [vmem:[#allocation3 + $0x8] sm:$0xff] %vm2955_vm0, %v5981_v15  ;;  %2956 = vst.msk [vmem:[#allocation3] sm:$0xff] %vm2955_vm0, %v5962_v53  ;;  %v547_v18 = vmax.f32 %v6034_v38, 0.0  ;;  %v548_v34 = vmax.f32 %v516_v60, 0.0  ;;  %v308_v53 = vld [vmem:[#allocation2 + $0x90] sm:$0x1] }
  0xc4   : > { %1769 = vst.msk [vmem:[#allocation3 + $0x10] sm:$0xff] %vm6647_vm12, %v1723_v39  ;;  %v309_v59 = vsel %vm5533_vm2, 0, %v308_v53  ;;  %v2539_v0 = vrot.slane %v2537_v16, 1  ;;  %v3423_v29 = vshrl.u32 %v5335_v57, 16 }
  0xc5   : > { %2059 = vst.msk [vmem:[#allocation3 + $0x10] sm:$0xff] %vm2056_vm13, %v5995_v48  ;;  %v2527_v48 = vrot.slane %v2525_v56, 1  ;;  %v3519_v14 = vpop.permute.xlu0 %3518  ;;  %v4968_v23 = vpack.c.bf16 %v548_v34, %v548_v34  ;;  %310 = vst [vmem:[#allocation2 + $0x90] sm:$0x1] %v309_v59  ;;  %v5086_v59 = vld [vmem:[%s5575_s25 + $0x60] sm:$0xff]  }
  0xc6   : > { %2236 = vst.msk [vmem:[#allocation3 + $0x10] sm:$0xff] %vm2233_vm14, %v5948_v13  ;;  %v5366_v13 = vld [vmem:[#allocation2 + $0x3c] sm:$0xff]  }
  0xc7   : > { %v1725_v9 = vpop.permute.xlu1 %1724  ;;  %v2528_v42 = vor.u32 %v2527_v48, %v2523_v51  ;;  %3135 = vst.msk [vmem:[#allocation3 + $0x8] sm:$0xff] %vm6649_vm1, %v5944_v46  ;;  %3134 = vst.msk [vmem:[#allocation3] sm:$0xff] %vm6649_vm1, %v5941_v2  ;;  %v362_v46 = vsel %vm5540_vm4, 0, %v361_v61  ;;  %v364_v2 = vld [vmem:[#allocation2 + $0x98] sm:$0x1]  ;;  %v880_v62 = vshrl.u32 %v4968_v23, 16 }
  0xc8   : > { %1770 = vst.msk [vmem:[#allocation3 + $0x18] sm:$0xff] %vm6647_vm12, %v1725_v9  ;;  %vm3973_vm12 = vcmask 1043456   ;;  %363 = vst [vmem:[#allocation2 + $0x8c] sm:$0x1] %v362_v46  ;;  %v883_v32 = vshll.u32 %v4968_v23, 16  ;;  %v365_v36 = vsel %vm5540_vm4, 0, %v364_v2  ;;  %v5057_v23 = vunpack.c.l.bf16 %v5085_v6 }
  0xc9   : > { %2060 = vst.msk [vmem:[#allocation3 + $0x18] sm:$0xff] %vm2056_vm13, %v5991_v12  ;;  %v2533_v15 = vsel %vm1525_vm10, %v2528_v42, %v2532_v7  ;;  %v1092_v12 = vld [vmem:[#allocation2 + $0x80] sm:$0x1]  ;;  %5163 = vmatprep.subr.msk.bf16.mxu0 %vm3973_vm12, %v6051_v63  ;;  %v3975_v50 = vsel %vm3973_vm12, %v6051_v63, 0  ;;  %5164 = vmatprep.subr.msk.bf16.mxu1 %vm3973_vm12, %v6051_v63  ;;  %v882_v40 = vrot.slane %v880_v62, 7  ;;  %vm3924_vm12 = vcmask 588800  }
  0xca   : > { %3568 = vst.msk [vmem:[#allocation3 + $0x8] sm:$0xff] %vm3566_vm3, %v6005_v20  ;;  %3567 = vst.msk [vmem:[#allocation3] sm:$0xff] %vm3566_vm3, %v3519_v14  ;;  %v4967_v20 = vpack.c.bf16 %v547_v18, %v547_v18  ;;  %2634 = vrot.lane.b32.xlu0 %v2533_v15, %s5480_s11  ;;  %v1093_v28 = vsel %vm5533_vm2, %v870_v3, %v1092_v12  ;;  %5120 = vmatpush3.bf16.msra.mxu0 %v3975_v50  ;;  %v1095_v47 = vld [vmem:[#allocation2 + $0x84] sm:$0xf]  ;;  %v2535_v51 = vshrl.u32 %v5323_v58, 16 }
  0xcb   : > { %2237 = vst.msk [vmem:[#allocation3 + $0x18] sm:$0xff] %vm2233_vm14, %v5953_v33  ;;  %v2623_v33 = vpop.permute.xlu0 %2622  ;;  %1094 = vst [vmem:[#allocation2 + $0x80] sm:$0x1] %v1093_v28  ;;  %5162 = vmatpush3.bf16.msra.mxu1 %v3975_v50  ;;  %v885_v43 = vor.u32 %v883_v32, %v882_v40  ;;  %v2625_v49 = vpop.permute.xlu1 %2624  ;;  %v887_v56 = vrot.slane %v882_v40, 4  ;;  %v2886_v61 = vrot.slane %v5328_v37, 1  ;;  %v478_v37 = vmul.f32 %v6011_v54, %v5057_v23 }
  0xcc   : > { %1338 = vst.msk [vmem:[#allocation3 + $0x28] sm:$0xff] %vm1332_vm11, %v5366_v13  ;;  %v875_v26 = vshll.u32 %v4967_v20, 16  ;;  %366 = vst [vmem:[#allocation2 + $0x98] sm:$0x1] %v365_v36  ;;  %v2540_v14 = vor.u32 %v2539_v0, %v2535_v51  ;;  %v5341_v2 = vld [vmem:[#allocation2 + $0x78] sm:$0xfe]  }
  0xcd   : > { %3857 = vst.msk [vmem:[#allocation3 + $0x8] sm:$0xff] %vm6648_vm5, %v5987_v31  ;;  %3856 = vst.msk [vmem:[#allocation3] sm:$0xff] %vm6648_vm5, %v5977_v10  ;;  %v2885_v31 = vsel %vm1959_vm9, %v2883_v8, %v2884_v41  ;;  %v872_v10 = vshrl.u32 %v4967_v20, 16  ;;  %v6123_v8 = vld [vmem:[#allocation2 + $0x78] sm:$0xff]   ;;  %v3425_v41 = vshll.u32 %v5335_v57, 16  ;;  %v3783_v50 = vrot.slane %v5341_v2, 1 }
  0xce   : > { %2669 = vst.msk [vmem:[#allocation3 + $0x10] sm:$0xff] %vm2666_vm15, %v2623_v33  ;;  %2923 = vrot.lane.b32.xlu0 %v2885_v31, %s5478_s9  ;;  %2670 = vst.msk [vmem:[#allocation3 + $0x18] sm:$0xff] %vm2666_vm15, %v2625_v49  ;;  %v1647_v36 = vshrl.u32 %v6123_v8, 16 }
  0xcf   : > { %v874_v52 = vrot.slane %v872_v10, 7  ;;  %v2912_v35 = vpop.permute.xlu0 %2911  ;;  %v2914_v9 = vpop.permute.xlu1 %2913  ;;  %v1099_v13 = vld [vmem:[#allocation2 + $0x8c] sm:$0x1]  ;;  %v3427_v53 = vrot.slane %v3425_v41, 1  ;;  %v5351_v41 = vld [vmem:[#allocation2 + $0x78] sm:$0xfe]  }
  0xd0   : > { %2958 = vst.msk [vmem:[#allocation3 + $0x10] sm:$0xff] %vm2955_vm0, %v2912_v35  ;;  %2959 = vst.msk [vmem:[#allocation3 + $0x18] sm:$0xff] %vm2955_vm0, %v2914_v9  ;;  %v1100_v46 = vsel %vm5533_vm2, %v887_v56, %v1099_v13  ;;  %v5058_v35 = vunpack.c.h.bf16 %v5085_v6 }
  0xd1   : > { %v877_v38 = vor.u32 %v875_v26, %v874_v52  ;;  %v878_v39 = vrot.slane %v874_v52, 4  ;;  %1101 = vst [vmem:[#allocation2 + $0x8c] sm:$0x1] %v1100_v46  ;;  %v3428_v33 = vor.u32 %v3427_v53, %v3423_v29  ;;  %v1649_v26 = vshll.u32 %v6123_v8, 16 }
  0xd2   : > { %v5324_v60 = vld [vmem:[#allocation2 + $0x80] ss:$0 sps:$4 sm:$0x11]   ;;  %3101 = vrot.lane.b32.xlu0 %v5331_v45, %s5477_s8  ;;  %v479_v56 = vmul.f32 %v6011_v54, %v5058_v35 }
  0xd3   : > { %v886_v55 = vsel %vm5553_vm7, %v878_v39, %v885_v43  ;;  %v3090_v5 = vpop.permute.xlu0 %3089  ;;  %v1096_v63 = vsel %vm5566_vm8, %v877_v38, %v1095_v47  ;;  %v5329_v3 = vld [vmem:[#allocation2 + $0x80] ss:$0 sps:$4 sm:$0x11]   ;;  %v2542_v48 = vshll.u32 %v5324_v60, 16  ;;  %v3092_v28 = vpop.permute.xlu1 %3091  ;;  %v1651_v51 = vrot.slane %v1649_v26, 1 }
  0xd4   : > { %1098 = vst.msk [vmem:[#allocation2 + $0x88] sm:$0xf] %vm1022_vm6, %v886_v55  ;;  %1097 = vst [vmem:[#allocation2 + $0x84] sm:$0xf] %v1096_v63  ;;  %v2887_v11 = vrot.slane %v5329_v3, 1  ;;  %v3872_v42 = vld [vmem:[#allocation3] sm:$0xff]  ;;  %v517_v60 = vadd.f32 %v6031_v30, %v478_v37  ;;  %v518_v13 = vadd.f32 %v6031_v30, %v479_v56 }
  0xd5   : > { %3136 = vst.msk [vmem:[#allocation3 + $0x10] sm:$0xff] %vm6649_vm1, %v3090_v5  ;;  %v5336_v7 = vld [vmem:[#allocation2 + $0x80] ss:$0 sps:$4 sm:$0x11]   ;;  %v2544_v18 = vrot.slane %v2542_v48, 1  ;;  %5121 = vmatprep.mubr.msk.bf16.mxu0 %vm3924_vm12, %v3872_v42  ;;  %3137 = vst.msk [vmem:[#allocation3 + $0x18] sm:$0xff] %vm6649_vm1, %v3092_v28  ;;  %v1652_v9 = vor.u32 %v1651_v51, %v1647_v36 }
  0xd6   : > { %v3430_v34 = vshll.u32 %v5336_v7, 16  ;;  %v5342_v15 = vld [vmem:[#allocation2 + $0x80] ss:$0 sps:$4 sm:$0x11]   ;;  %v2888_v10 = vsel %vm1959_vm9, %v2886_v61, %v2887_v11  ;;  %v5061_v61 = vunpack.c.l.bf16 %v5086_v59  ;;  %v6148_v63 = vld [vmem:[%s5575_s25 + $0x68] sm:$0xff]   ;;  %v549_v53 = vmax.f32 %v517_v60, 0.0 }
  0xd7   : > { %v3523_v44 = vpop.permute.xlu0 %3522  ;;  %v2545_v12 = vsel %vm1525_vm10, %v2540_v14, %v2544_v18  ;;  %v3784_v21 = vrot.slane %v5342_v15, 1  ;;  %v5345_v40 = vld [vmem:[#allocation2 + $0x80] ss:$0 sps:$4 sm:$0x11]   ;;  %v550_v26 = vmax.f32 %v518_v13, 0.0 }
  0xd8   : > { %3569 = vst.msk [vmem:[#allocation3 + $0x10] sm:$0xff] %vm3566_vm3, %v3523_v44  ;;  %v3432_v20 = vrot.slane %v3430_v34, 1  ;;  %2636 = vrot.lane.b32.xlu1 %v2545_v12, %s5480_s11  ;;  %v1654_v45 = vshll.u32 %v5345_v40, 16  ;;  %v3873_v47 = vld [vmem:[#allocation3 + $0x8] sm:$0xff]  ;;  %v5062_v44 = vunpack.c.h.bf16 %v5086_v59  ;;  %v480_v15 = vmul.f32 %v6011_v54, %v5061_v61 }
  0xd9   : > { %v3785_v43 = vsel %vm1959_vm9, %v3783_v50, %v3784_v21  ;;  %v5339_v49 = vld [vmem:[#allocation2 + $0x8c] ss:$0 sps:$4 sm:$0x11]   ;;  %5122 = vmatmul.mubr.msk.bf16.vlgmr.msra.gmra.mrb[0].mxu0 %vm3924_vm12, %v3873_v47  ;;  %v5352_v46 = vld [vmem:[#allocation2 + $0x80] ss:$0 sps:$4 sm:$0x11]  }
  0xda   : > { %v3433_v32 = vsel %vm1525_vm10, %v3428_v33, %v3432_v20  ;;  %v3442_v57 = vshll.u32 %v5339_v49, 16  ;;  %v5347_v5 = vld [vmem:[#allocation2 + $0x8c] ss:$0 sps:$4 sm:$0x11]   ;;  %v1656_v3 = vrot.slane %v1654_v45, 1  ;;  %v1990_v20 = vrot.slane %v5351_v41, 1 }
  0xdb   : > { %v3812_v31 = vpop.permute.xlu0 %3811  ;;  %v5333_v62 = vld [vmem:[#allocation2 + $0x84] sm:$0xff]   ;;  %3534 = vrot.lane.b32.xlu0 %v3433_v32, %s5481_s12  ;;  %v5350_v6 = vld [vmem:[#allocation2 + $0x8c] ss:$0 sps:$4 sm:$0x11]   ;;  %v3787_v14 = vrot.slane %v5347_v5, 1  ;;  %v3525_v2 = vpop.permute.xlu1 %3524  ;;  %v5065_v33 = vunpack.c.l.bf16 %v6148_v63  ;;  %v1991_v28 = vrot.slane %v5352_v46, 1 }
  0xdc   : > { %3858 = vst.msk [vmem:[#allocation3 + $0x10] sm:$0xff] %vm6648_vm5, %v3812_v31  ;;  %v5338_v52 = vld [vmem:[#allocation2 + $0x84] sm:$0xff]   ;;  %2925 = vrot.lane.b32.xlu1 %v2888_v10, %s5478_s9  ;;  %v3444_v8 = vrot.slane %v3442_v57, 1  ;;  %v1666_v29 = vshll.u32 %v5350_v6, 16  ;;  %v1657_v50 = vsel %vm1525_vm10, %v1652_v9, %v1656_v3  ;;  %v4969_v10 = vpack.c.bf16 %v549_v53, %v549_v53 }
  0xdd   : > { %v5346_v25 = vld [vmem:[#allocation2 + $0x84] sm:$0xfe]   ;;  %v3435_v38 = vshrl.u32 %v5338_v52, 16  ;;  %v3437_v39 = vshll.u32 %v5338_v52, 16  ;;  %3570 = vst.msk [vmem:[#allocation3 + $0x18] sm:$0xff] %vm3566_vm3, %v3525_v2  ;;  %v1992_v52 = vsel %vm1959_vm9, %v1990_v20, %v1991_v28  ;;  %v482_v45 = vmul.f32 %v6011_v54, %v5065_v33 }
  0xde   : > { %v5349_v58 = vld [vmem:[#allocation2 + $0x84] sm:$0xff]   ;;  %v3786_v55 = vrot.slane %v5346_v25, 1  ;;  %v1668_v12 = vrot.slane %v1666_v29, 1  ;;  %v5354_v31 = vld [vmem:[#allocation2 + $0x8c] ss:$0 sps:$4 sm:$0x11]  }
  0xdf   : > { %v3439_v16 = vrot.slane %v3437_v39, 1  ;;  %3823 = vrot.lane.b32.xlu0 %v3785_v43, %s5479_s10  ;;  %v1659_v48 = vshrl.u32 %v5349_v58, 16  ;;  %v1661_v7 = vshll.u32 %v5349_v58, 16  ;;  %v3814_v42 = vpop.permute.xlu0 %3813  ;;  %v5353_v23 = vld [vmem:[#allocation2 + $0x84] sm:$0xfe]   ;;  %v889_v35 = vshrl.u32 %v4969_v10, 16  ;;  %v1727_v25 = vpop.permute.xlu1 %1726 }
  0xe0   : > { %3103 = vrot.lane.b32.xlu1 %v5333_v62, %s5477_s8  ;;  %v3788_v34 = vsel %vm1959_vm9, %v3786_v55, %v3787_v14  ;;  %3859 = vst.msk [vmem:[#allocation3 + $0x18] sm:$0xff] %vm6648_vm5, %v3814_v42  ;;  %v481_v62 = vmul.f32 %v6011_v54, %v5062_v44  ;;  %v5355_v40 = vld [vmem:[#allocation2 + $0x84] sm:$0xff]   ;;  %v892_v59 = vshll.u32 %v4969_v10, 16  ;;  %v519_v58 = vadd.f32 %v6031_v30, %v480_v15  ;;  %v1102_v43 = vld [vmem:[#allocation2 + $0x90] sm:$0xf] }
  0xe1   : > { %v3440_v0 = vor.u32 %v3439_v16, %v3435_v38  ;;  %v1663_v11 = vrot.slane %v1661_v7, 1  ;;  %v5357_v36 = vld [vmem:[#allocation2 + $0x84] sm:$0xff]   ;;  %v1993_v37 = vrot.slane %v5353_v23, 1  ;;  %v1994_v38 = vrot.slane %v5354_v31, 1 }
  0xe2   : > { %v4970_v39 = vpack.c.bf16 %v550_v26, %v550_v26  ;;  %vm6658_vm5 = vcmask 130112   ;;  %v891_v49 = vrot.slane %v889_v35, 7  ;;  %v5358_v51 = vld [vmem:[#allocation2 + $0x8c] ss:$0 sps:$4 sm:$0x11]   ;;  %v2547_v16 = vshrl.u32 %v5357_v36, 16 }
  0xe3   : > { %v3445_v18 = vsel %vm1525_vm10, %v3440_v0, %v3444_v8  ;;  %3825 = vrot.lane.b32.xlu0 %v3788_v34, %s5479_s10  ;;  %v1664_v21 = vor.u32 %v1663_v11, %v1659_v48  ;;  %v2017_v32 = vpop.permute.xlu0 %2016  ;;  %1771 = vst.msk [vmem:[#allocation3 + $0x20] sm:$0xff] %vm6658_vm5, %v1727_v25  ;;  %v2549_v55 = vshll.u32 %v5357_v36, 16  ;;  %v520_v5 = vadd.f32 %v6031_v30, %v481_v62  ;;  %v1106_v48 = vld [vmem:[#allocation2 + $0x98] sm:$0x1]  ;;  %v1729_v7 = vpop.permute.xlu1 %1728  ;;  %v3874_v8 = vld [vmem:[#allocation3 + $0x10] sm:$0xff] }
  0xe4   : > { %3536 = vrot.lane.b32.xlu1 %v3445_v18, %s5481_s12  ;;  %2061 = vst.msk [vmem:[#allocation3 + $0x20] sm:$0xff] %vm2056_vm13, %v2017_v32  ;;  %v897_v56 = vshrl.u32 %v4970_v39, 16  ;;  %v900_v57 = vshll.u32 %v4970_v39, 16  ;;  %v894_v61 = vor.u32 %v892_v59, %v891_v49  ;;  %v895_v0 = vrot.slane %v891_v49, 4  ;;  %v5362_v11 = vld [vmem:[#allocation2 + $0x84] sm:$0xfe]   ;;  %5125 = vmatprep.mubr.msk.bf16.mxu0 %vm3924_vm12, %v3874_v8 }
  0xe5   : > { %v1669_v47 = vsel %vm1525_vm10, %v1664_v21, %v1668_v12  ;;  %v2551_v3 = vrot.slane %v2549_v55, 1  ;;  %v2554_v6 = vshll.u32 %v5358_v51, 16  ;;  %v1995_v9 = vsel %vm1959_vm9, %v1993_v37, %v1994_v38  ;;  %v5363_v29 = vld [vmem:[#allocation2 + $0x8c] ss:$0 sps:$4 sm:$0x11]   ;;  %1772 = vst.msk [vmem:[#allocation3 + $0x28] sm:$0xff] %vm6658_vm5, %v1729_v7 }
  0xe6   : > { %v899_v14 = vrot.slane %v897_v56, 7  ;;  %v6177_v41 = vadd.f32 %v6031_v30, %v482_v45  ;;  %v1103_v13 = vsel %vm5566_vm8, %v894_v61, %v1102_v43  ;;  %v311_v18 = vld [vmem:[#allocation2 + $0x9c] sm:$0x1]  ;;  %v551_v34 = vmax.f32 %v519_v58, 0.0  ;;  %v367_v12 = vld [vmem:[#allocation2 + $0xa4] sm:$0x1] }
  0xe7   : > { %2028 = vrot.lane.b32.xlu0 %v1992_v52, %s5474_s30  ;;  %v2194_v60 = vpop.permute.xlu0 %2193  ;;  %v2552_v42 = vor.u32 %v2551_v3, %v2547_v16  ;;  %v2556_v44 = vrot.slane %v2554_v6, 1  ;;  %1104 = vst [vmem:[#allocation2 + $0x90] sm:$0xf] %v1103_v13  ;;  %v2889_v2 = vrot.slane %v5362_v11, 1  ;;  %v2890_v15 = vrot.slane %v5363_v29, 1  ;;  %v3875_v20 = vld [vmem:[#allocation3 + $0x18] sm:$0xff]  ;;  %v2019_v31 = vpop.permute.xlu1 %2018 }
  0xe8   : > { %1738 = vrot.lane.b32.xlu1 %v1657_v50, %s5475_s6  ;;  %2238 = vst.msk [vmem:[#allocation3 + $0x20] sm:$0xff] %vm2233_vm14, %v2194_v60  ;;  %v902_v46 = vor.u32 %v900_v57, %v899_v14  ;;  %v904_v53 = vrot.slane %v899_v14, 4  ;;  %v312_v50 = vsel %vm5533_vm2, 0, %v311_v18  ;;  %v552_v21 = vmax.f32 %v520_v5, 0.0  ;;  %5126 = vmatmul.mubr.msk.bf16.gmra.mrb[4].mxu0 %vm3924_vm12, %v3875_v20  ;;  %v314_v10 = vld [vmem:[#allocation2 + $0xa8] sm:$0x1] }
  0xe9   : > { %v2557_v33 = vsel %vm1525_vm10, %v2552_v42, %v2556_v44  ;;  %v4971_v28 = vpack.c.bf16 %v551_v34, %v551_v34  ;;  %v370_v26 = vld [vmem:[#allocation2 + $0xb0] sm:$0x1]  ;;  %v2891_v52 = vsel %vm1959_vm9, %v2889_v2, %v2890_v15  ;;  %313 = vst [vmem:[#allocation2 + $0x9c] sm:$0x1] %v312_v50  ;;  %2062 = vst.msk [vmem:[#allocation3 + $0x28] sm:$0xff] %vm2056_vm13, %v2019_v31  ;;  %v5396_v35 = vld [vmem:[#allocation2 + $0x54] sm:$0xff]   ;;  %v5066_v16 = vunpack.c.h.bf16 %v6148_v63 }
  0xea   : > { %v903_v62 = vsel %vm5553_vm7, %v895_v0, %v902_v46  ;;  %v1107_v32 = vsel %vm5533_vm2, %v904_v53, %v1106_v48  ;;  %v4972_v59 = vpack.c.bf16 %v552_v21, %v552_v21  ;;  %v315_v58 = vsel %vm5533_vm2, 0, %v314_v10  ;;  %1340 = vst.msk [vmem:[#allocation3 + $0x38] sm:$0xff] %vm1332_vm11, %v5396_v35  ;;  %v5421_v49 = vld [vmem:[#allocation2 + $0x60] sm:$0xff]   ;;  %v5426_v57 = vld [vmem:[#allocation2 + $0x6c] sm:$0xff]  }
  0xeb   : > { %2205 = vrot.lane.b32.xlu0 %v5355_v40, %s5476_s7  ;;  %v2627_v23 = vpop.permute.xlu0 %2626  ;;  %v368_v40 = vsel %vm5540_vm4, 0, %v367_v12  ;;  %1105 = vst.msk [vmem:[#allocation2 + $0x94] sm:$0xf] %vm1022_vm6, %v903_v62  ;;  %1108 = vst [vmem:[#allocation2 + $0x98] sm:$0x1] %v1107_v32  ;;  %v906_v36 = vshrl.u32 %v4971_v28, 16  ;;  %v2196_v45 = vpop.permute.xlu1 %2195  ;;  %v483_v8 = vmul.f32 %v6011_v54, %v5066_v16 }
  0xec   : > { %1740 = vrot.lane.b32.xlu1 %v1669_v47, %s5475_s6  ;;  %2671 = vst.msk [vmem:[#allocation3 + $0x20] sm:$0xff] %vm2666_vm15, %v2627_v23  ;;  %v909_v25 = vshll.u32 %v4971_v28, 16  ;;  %369 = vst [vmem:[#allocation2 + $0xa4] sm:$0x1] %v368_v40  ;;  %v371_v38 = vsel %vm5540_vm4, 0, %v370_v26  ;;  %v914_v43 = vshrl.u32 %v4972_v59, 16 }
  0xed   : > { %316 = vst [vmem:[#allocation2 + $0xa8] sm:$0x1] %v315_v58  ;;  %v908_v39 = vrot.slane %v906_v36, 7  ;;  %372 = vst [vmem:[#allocation2 + $0xb0] sm:$0x1] %v371_v38  ;;  %v917_v51 = vshll.u32 %v4972_v59, 16  ;;  %v6222_v54 = vadd.f32 %v6031_v30, %v483_v8 }
  0xee   : > { %v317_v47 = vld [vmem:[#allocation2 + $0xb4] sm:$0x1]  ;;  %2239 = vst.msk [vmem:[#allocation3 + $0x28] sm:$0xff] %vm2233_vm14, %v2196_v45  ;;  %v553_v55 = vmax.f32 %v6177_v41, 0.0  ;;  %v916_v61 = vrot.slane %v914_v43, 7  ;;  %vm6659_vm5 = vcmask 589312  }
  0xef   : > { %2638 = vrot.lane.b32.xlu0 %v2557_v33, %s5480_s11  ;;  %v2916_v37 = vpop.permute.xlu0 %2915  ;;  %v318_v56 = vsel %vm5533_vm2, 0, %v317_v47  ;;  %v911_v5 = vor.u32 %v909_v25, %v908_v39  ;;  %1341 = vst.msk [vmem:[#allocation3 + $0x40] sm:$0xff] %vm1332_vm11, %v5421_v49  ;;  %v912_v60 = vrot.slane %v908_v39, 4  ;;  %1342 = vst.msk [vmem:[#allocation3 + $0x48] sm:$0xff] %vm1332_vm11, %v5426_v57  ;;  %v2629_v34 = vpop.permute.xlu1 %2628  ;;  %v554_v32 = vmax.f32 %v6222_v54, 0.0 }
  0xf0   : > { %2030 = vrot.lane.b32.xlu1 %v1995_v9, %s5474_s30  ;;  %2960 = vst.msk [vmem:[#allocation3 + $0x20] sm:$0xff] %vm2955_vm0, %v2916_v37  ;;  %319 = vst [vmem:[#allocation2 + $0xb4] sm:$0x1] %v318_v56  ;;  %v1109_v3 = vld [vmem:[#allocation2 + $0x9c] sm:$0xf]  ;;  %v919_v63 = vor.u32 %v917_v51, %v916_v61  ;;  %v921_v48 = vrot.slane %v916_v61, 4 }
  0xf1   : > { %v1110_v7 = vsel %vm5566_vm8, %v911_v5, %v1109_v3  ;;  %2672 = vst.msk [vmem:[#allocation3 + $0x28] sm:$0xff] %vm2666_vm15, %v2629_v34  ;;  %v5088_v61 = vld [vmem:[%s5575_s25 + $0x70] sm:$0xff]  }
  0xf2   : > { %v5356_v6 = vld [vmem:[#allocation2 + $0x90] sm:$0xff]   ;;  %v5360_v14 = vld [vmem:[#allocation2 + $0x98] ss:$0 sps:$4 sm:$0x11]   ;;  %1111 = vst [vmem:[#allocation2 + $0x9c] sm:$0xf] %v1110_v7  ;;  %v920_v29 = vsel %vm5553_vm7, %v912_v60, %v919_v63 }
  0xf3   : > { %2927 = vrot.lane.b32.xlu0 %v2891_v52, %s5478_s9  ;;  %v3094_v0 = vpop.permute.xlu0 %3093  ;;  %v5359_v9 = vld [vmem:[#allocation2 + $0x90] sm:$0xff]   ;;  %v2566_v44 = vshll.u32 %v5360_v14, 16  ;;  %v5365_v18 = vld [vmem:[#allocation2 + $0x98] ss:$0 sps:$4 sm:$0x11]   ;;  %v2918_v26 = vpop.permute.xlu1 %2917 }
  0xf4   : > { %3138 = vst.msk [vmem:[#allocation3 + $0x20] sm:$0xff] %vm6649_vm1, %v3094_v0  ;;  %2207 = vrot.lane.b32.xlu1 %v5356_v6, %s5476_s7  ;;  %v5364_v11 = vld [vmem:[#allocation2 + $0x90] sm:$0xfe]   ;;  %v2559_v13 = vshrl.u32 %v5359_v9, 16  ;;  %v2561_v42 = vshll.u32 %v5359_v9, 16  ;;  %v2893_v12 = vrot.slane %v5365_v18, 1  ;;  %v4973_v18 = vpack.c.bf16 %v553_v55, %v553_v55 }
  0xf5   : > { %1112 = vst.msk [vmem:[#allocation2 + $0xa0] sm:$0xf] %vm1022_vm6, %v920_v29  ;;  %v2892_v46 = vrot.slane %v5364_v11, 1  ;;  %v5367_v53 = vld [vmem:[#allocation2 + $0x90] sm:$0xff]   ;;  %v2568_v15 = vrot.slane %v2566_v44, 1 }
  0xf6   : > { %v2563_v2 = vrot.slane %v2561_v42, 1  ;;  %v5369_v20 = vld [vmem:[#allocation2 + $0x90] sm:$0xff]   ;;  %v5370_v33 = vld [vmem:[#allocation2 + $0x98] ss:$0 sps:$4 sm:$0x11]   ;;  %2961 = vst.msk [vmem:[#allocation3 + $0x28] sm:$0xff] %vm2955_vm0, %v2918_v26  ;;  %v4974_v26 = vpack.c.bf16 %v554_v32, %v554_v32 }
  0xf7   : > { %v3527_v23 = vpop.permute.xlu0 %3526  ;;  %3105 = vrot.lane.b32.xlu0 %v5367_v53, %s5477_s8  ;;  %v1113_v50 = vld [vmem:[#allocation2 + $0xa4] sm:$0x1]  ;;  %v6225_v21 = vld [vmem:[#allocation2 + $0x90] sm:$0xff]   ;;  %v3447_v31 = vshrl.u32 %v5369_v20, 16  ;;  %v3449_v10 = vshll.u32 %v5369_v20, 16  ;;  %v3454_v62 = vshll.u32 %v5370_v33, 16  ;;  %v2894_v25 = vsel %vm1959_vm9, %v2892_v46, %v2893_v12  ;;  %v3096_v49 = vpop.permute.xlu1 %3095 }
  0xf8   : > { %3571 = vst.msk [vmem:[#allocation3 + $0x20] sm:$0xff] %vm3566_vm3, %v3527_v23  ;;  %v2564_v28 = vor.u32 %v2563_v2, %v2559_v13  ;;  %v1114_v30 = vsel %vm5533_vm2, %v921_v48, %v1113_v50  ;;  %v5373_v35 = vld [vmem:[#allocation2 + $0x90] sm:$0xfe]   ;;  %v5374_v59 = vld [vmem:[#allocation2 + $0x98] ss:$0 sps:$4 sm:$0x11]   ;;  %v5070_v33 = vunpack.c.h.bf16 %v5088_v61 }
  0xf9   : > { %v3451_v40 = vrot.slane %v3449_v10, 1  ;;  %1115 = vst [vmem:[#allocation2 + $0xa4] sm:$0x1] %v1114_v30  ;;  %v3456_v58 = vrot.slane %v3454_v62, 1  ;;  %v1671_v37 = vshrl.u32 %v6225_v21, 16  ;;  %v3789_v43 = vrot.slane %v5373_v35, 1 }
  0xfa   : > { %v2569_v52 = vsel %vm1525_vm10, %v2564_v28, %v2568_v15  ;;  %v3790_v45 = vrot.slane %v5374_v59, 1  ;;  %v1673_v47 = vshll.u32 %v6225_v21, 16  ;;  %v5376_v51 = vld [vmem:[#allocation2 + $0x98] ss:$0 sps:$4 sm:$0x11]   ;;  %3139 = vst.msk [vmem:[#allocation3 + $0x28] sm:$0xff] %vm6649_vm1, %v3096_v49  ;;  %v5069_v15 = vunpack.c.l.bf16 %v5088_v61 }
  0xfb   : > { %v3816_v36 = vpop.permute.xlu0 %3815  ;;  %2640 = vrot.lane.b32.xlu1 %v2569_v52, %s5480_s11  ;;  %v3452_v38 = vor.u32 %v3451_v40, %v3447_v31  ;;  %v1678_v6 = vshll.u32 %v5376_v51, 16  ;;  %v6247_v48 = vld [vmem:[%s5575_s25 + $0x78] sm:$0xff]   ;;  %v3529_v11 = vpop.permute.xlu1 %3528  ;;  %v5381_v28 = vld [vmem:[#allocation2 + $0x90] sm:$0xfe]   ;;  %v923_v62 = vshrl.u32 %v4973_v18, 16  ;;  %v926_v49 = vshll.u32 %v4973_v18, 16 }
  0xfc   : > { %3860 = vst.msk [vmem:[#allocation3 + $0x20] sm:$0xff] %vm6659_vm5, %v3816_v36  ;;  %v5371_v39 = vld [vmem:[#allocation2 + $0x9c] sm:$0xff]   ;;  %v3791_v3 = vsel %vm1959_vm9, %v3789_v43, %v3790_v45  ;;  %v1675_v8 = vrot.slane %v1673_v47, 1  ;;  %v5073_v50 = vunpack.c.l.bf16 %v6247_v48  ;;  %v5382_v10 = vld [vmem:[#allocation2 + $0x98] ss:$0 sps:$4 sm:$0x11]  }
  0xfd   : > { %v6238_v16 = vld [vmem:[#allocation2 + $0x9c] sm:$0xff]   ;;  %v3457_v57 = vsel %vm1525_vm10, %v3452_v38, %v3456_v58  ;;  %v3461_v5 = vshll.u32 %v5371_v39, 16  ;;  %v3459_v0 = vshrl.u32 %v5371_v39, 16  ;;  %v1680_v13 = vrot.slane %v1678_v6, 1  ;;  %3572 = vst.msk [vmem:[#allocation3 + $0x28] sm:$0xff] %vm3566_vm3, %v3529_v11 }
  0xfe   : > { %v5368_v56 = vld [vmem:[#allocation2 + $0x9c] sm:$0xff]   ;;  %3538 = vrot.lane.b32.xlu0 %v3457_v57, %s5481_s12  ;;  %v1683_v9 = vshrl.u32 %v6238_v16, 16  ;;  %v1685_v14 = vshll.u32 %v6238_v16, 16  ;;  %v1676_v21 = vor.u32 %v1675_v8, %v1671_v37  ;;  %v1996_v35 = vrot.slane %v5381_v28, 1  ;;  %v1120_v18 = vld [vmem:[#allocation2 + $0xb0] sm:$0x1] }
  0xff   : > { %v3818_v60 = vpop.permute.xlu0 %3817  ;;  %2929 = vrot.lane.b32.xlu1 %v2894_v25, %s5478_s9  ;;  %v5377_v63 = vld [vmem:[#allocation2 + $0x9c] sm:$0xfe]   ;;  %v3463_v7 = vrot.slane %v3461_v5, 1  ;;  %v1731_v23 = vpop.permute.xlu1 %1730  ;;  %v1997_v59 = vrot.slane %v5382_v10, 1  ;;  %v925_v47 = vrot.slane %v923_v62, 7  ;;  %v931_v57 = vshrl.u32 %v4974_v26, 16 }
 0x100   : > { %v5372_v29 = vld [vmem:[#allocation2 + $0xa4] ss:$0 sps:$4 sm:$0x11]   ;;  %v3792_v44 = vrot.slane %v5377_v63, 1  ;;  %3861 = vst.msk [vmem:[#allocation3 + $0x28] sm:$0xff] %vm6659_vm5, %v3818_v60  ;;  %v1687_v20 = vrot.slane %v1685_v14, 1  ;;  %v1681_v39 = vsel %vm1525_vm10, %v1676_v21, %v1680_v13 }
 0x101   : > { %v5378_v42 = vld [vmem:[#allocation2 + $0xa4] ss:$0 sps:$4 sm:$0x11]   ;;  %v3464_v46 = vor.u32 %v3463_v7, %v3459_v0  ;;  %v3466_v53 = vshll.u32 %v5372_v29, 16  ;;  %vm6660_vm5 = vcmask 130112   ;;  %v5385_v45 = vld [vmem:[#allocation2 + $0x9c] sm:$0xff]   ;;  %v1998_v51 = vsel %vm1959_vm9, %v1996_v35, %v1997_v59 }
 0x102   : > { %3827 = vrot.lane.b32.xlu0 %v3791_v3, %s5479_s10  ;;  %v5380_v2 = vld [vmem:[#allocation2 + $0xa4] ss:$0 sps:$4 sm:$0x11]   ;;  %v3793_v12 = vrot.slane %v5378_v42, 1  ;;  %1773 = vst.msk [vmem:[#allocation3 + $0x30] sm:$0xff] %vm6660_vm5, %v1731_v23  ;;  %v1688_v43 = vor.u32 %v1687_v20, %v1683_v9  ;;  %v5387_v60 = vld [vmem:[#allocation2 + $0x9c] sm:$0xff]   ;;  %v928_v61 = vor.u32 %v926_v49, %v925_v47 }
 0x103   : > { %v2021_v34 = vpop.permute.xlu0 %2020  ;;  %3107 = vrot.lane.b32.xlu1 %v5368_v56, %s5477_s8  ;;  %v3468_v41 = vrot.slane %v3466_v53, 1  ;;  %v1690_v55 = vshll.u32 %v5380_v2, 16  ;;  %v5383_v36 = vld [vmem:[#allocation2 + $0x9c] sm:$0xfe]   ;;  %v1733_v54 = vpop.permute.xlu1 %1732  ;;  %v1116_v5 = vld [vmem:[#allocation2 + $0xa8] sm:$0xf] }
 0x104   : > { %v3794_v31 = vsel %vm1959_vm9, %v3792_v44, %v3793_v12  ;;  %2063 = vst.msk [vmem:[#allocation3 + $0x30] sm:$0xff] %vm2056_vm13, %v2021_v34  ;;  %v5384_v25 = vld [vmem:[#allocation2 + $0xa4] ss:$0 sps:$4 sm:$0x11]   ;;  %v6272_v32 = vld [vmem:[%s6643_s2] ss:$0 sm:$0xff]  ;;  %v1117_v13 = vsel %vm5566_vm8, %v928_v61, %v1116_v5 }
 0x105   : > { %v3469_v52 = vsel %vm1525_vm10, %v3464_v46, %v3468_v41  ;;  %v1692_v40 = vrot.slane %v1690_v55, 1  ;;  %v484_v58 = vmul.f32 %v6272_v32, %v5069_v15  ;;  %v485_v37 = vmul.f32 %v6272_v32, %v5070_v33  ;;  %1774 = vst.msk [vmem:[#allocation3 + $0x38] sm:$0xff] %vm6660_vm5, %v1733_v54  ;;  %v5388_v63 = vld [vmem:[#allocation2 + $0xa4] ss:$0 sps:$4 sm:$0x11]   ;;  %v5437_v59 = vld [vmem:[#allocation2 + $0x78] sm:$0xff]  }
 0x106   : > { %3829 = vrot.lane.b32.xlu0 %v3794_v31, %s5479_s10  ;;  %v486_v38 = vmul.f32 %v6272_v32, %v5073_v50  ;;  %v1999_v16 = vrot.slane %v5383_v36, 1  ;;  %v2000_v56 = vrot.slane %v5384_v25, 1  ;;  %v929_v0 = vrot.slane %v925_v47, 4  ;;  %v6285_v7 = vld [vmem:[%s6644_s3] ss:$0 sm:$0xff]  ;;  %v3876_v31 = vld [vmem:[#allocation3 + $0x20] sm:$0xff] }
 0x107   : > { %v2198_v30 = vpop.permute.xlu0 %2197  ;;  %3540 = vrot.lane.b32.xlu1 %v3469_v52, %s5481_s12  ;;  %v934_v3 = vshll.u32 %v4974_v26, 16  ;;  %v933_v6 = vrot.slane %v931_v57, 7  ;;  %v523_v8 = vadd.f32 %v6285_v7, %v484_v58  ;;  %v524_v9 = vadd.f32 %v6285_v7, %v485_v37  ;;  %v2023_v14 = vpop.permute.xlu1 %2022  ;;  %v373_v34 = vld [vmem:[#allocation2 + $0xbc] sm:$0x1]  ;;  %v320_v46 = vld [vmem:[#allocation2 + $0xc0] sm:$0x1]  ;;  %5129 = vmatprep.mubr.msk.bf16.mxu0 %vm3924_vm12, %v3876_v31 }
 0x108   : > { %2240 = vst.msk [vmem:[#allocation3 + $0x30] sm:$0xff] %vm2233_vm14, %v2198_v30  ;;  %v1693_v29 = vsel %vm1525_vm10, %v1688_v43, %v1692_v40  ;;  %v2571_v42 = vshrl.u32 %v5387_v60, 16  ;;  %v2573_v44 = vshll.u32 %v5387_v60, 16  ;;  %1118 = vst [vmem:[#allocation2 + $0xa8] sm:$0xf] %v1117_v13  ;;  %v2578_v2 = vshll.u32 %v5388_v63, 16 }
 0x109   : > { %2064 = vst.msk [vmem:[#allocation3 + $0x38] sm:$0xff] %vm2056_vm13, %v2023_v14  ;;  %v936_v53 = vor.u32 %v934_v3, %v933_v6  ;;  %v938_v15 = vrot.slane %v933_v6, 4  ;;  %v525_v12 = vadd.f32 %v6285_v7, %v486_v38  ;;  %v2001_v20 = vsel %vm1959_vm9, %v1999_v16, %v2000_v56  ;;  %v5392_v33 = vld [vmem:[#allocation2 + $0x9c] sm:$0xfe]   ;;  %v376_v35 = vld [vmem:[#allocation2 + $0xc8] sm:$0x1] }
 0x10a   : > { %2032 = vrot.lane.b32.xlu0 %v1998_v51, %s5474_s30  ;;  %v2575_v23 = vrot.slane %v2573_v44, 1  ;;  %v5393_v50 = vld [vmem:[#allocation2 + $0xa4] ss:$0 sps:$4 sm:$0x11]   ;;  %v2580_v21 = vrot.slane %v2578_v2, 1  ;;  %v555_v28 = vmax.f32 %v523_v8, 0.0 }
 0x10b   : > { %1742 = vrot.lane.b32.xlu1 %v1681_v39, %s5475_s6  ;;  %v2631_v11 = vpop.permute.xlu0 %2630  ;;  %v937_v41 = vsel %vm5553_vm7, %v929_v0, %v936_v53  ;;  %v1121_v55 = vsel %vm5533_vm2, %v938_v15, %v1120_v18  ;;  %v3877_v10 = vld [vmem:[#allocation3 + $0x28] sm:$0xff]  ;;  %v2895_v30 = vrot.slane %v5392_v33, 1  ;;  %v2896_v52 = vrot.slane %v5393_v50, 1  ;;  %v2200_v54 = vpop.permute.xlu1 %2199  ;;  %1343 = vst.msk [vmem:[#allocation3 + $0x50] sm:$0xff] %vm1332_vm11, %v5437_v59  ;;  %v1123_v5 = vld [vmem:[#allocation2 + $0xb4] sm:$0xf] }
 0x10c   : > { %2673 = vst.msk [vmem:[#allocation3 + $0x30] sm:$0xff] %vm2666_vm15, %v2631_v11  ;;  %v2576_v62 = vor.u32 %v2575_v23, %v2571_v42  ;;  %1122 = vst [vmem:[#allocation2 + $0xb0] sm:$0x1] %v1121_v55  ;;  %v556_v40 = vmax.f32 %v524_v9, 0.0  ;;  %v4975_v36 = vpack.c.bf16 %v555_v28, %v555_v28  ;;  %v374_v25 = vsel %vm5540_vm4, 0, %v373_v34  ;;  %5130 = vmatmul.mubr.msk.bf16.gmra.mrb[8].mxu0 %vm3924_vm12, %v3877_v10  ;;  %v5438_v38 = vld [vmem:[#allocation2 + $0x84] sm:$0xff]  }
 0x10d   : > { %1119 = vst.msk [vmem:[#allocation2 + $0xac] sm:$0xf] %vm1022_vm6, %v937_v41  ;;  %v321_v58 = vsel %vm5533_vm2, 0, %v320_v46  ;;  %v557_v37 = vmax.f32 %v525_v12, 0.0  ;;  %375 = vst [vmem:[#allocation2 + $0xbc] sm:$0x1] %v374_v25  ;;  %v2897_v57 = vsel %vm1959_vm9, %v2895_v30, %v2896_v52  ;;  %v5074_v42 = vunpack.c.h.bf16 %v6247_v48 }
 0x10e   : > { %2209 = vrot.lane.b32.xlu0 %v5385_v45, %s5476_s7  ;;  %v2581_v39 = vsel %vm1525_vm10, %v2576_v62, %v2580_v21  ;;  %v4976_v43 = vpack.c.bf16 %v556_v40, %v556_v40  ;;  %2241 = vst.msk [vmem:[#allocation3 + $0x38] sm:$0xff] %vm2233_vm14, %v2200_v54  ;;  %322 = vst [vmem:[#allocation2 + $0xc0] sm:$0x1] %v321_v58  ;;  %v5439_v45 = vld [vmem:[#allocation2 + $0x90] sm:$0xff]   ;;  %v940_v47 = vshrl.u32 %v4975_v36, 16  ;;  %v943_v49 = vshll.u32 %v4975_v36, 16 }
 0x10f   : > { %1744 = vrot.lane.b32.xlu1 %v1693_v29, %s5475_s6  ;;  %v2920_v26 = vpop.permute.xlu0 %2919  ;;  %v6315_v51 = vpack.c.bf16 %v557_v37, %v557_v37  ;;  %v377_v16 = vsel %vm5540_vm4, 0, %v376_v35  ;;  %1344 = vst.msk [vmem:[#allocation3 + $0x58] sm:$0xff] %vm1332_vm11, %v5438_v38  ;;  %v5440_v56 = vld [vmem:[#allocation2 + $0x9c] sm:$0xff]   ;;  %1345 = vst.msk [vmem:[#allocation3 + $0x60] sm:$0xff] %vm1332_vm11, %v5439_v45  ;;  %v2633_v13 = vpop.permute.xlu1 %2632  ;;  %v487_v28 = vmul.f32 %v6272_v32, %v5074_v42  ;;  %vm6661_vm5 = vcmask 589312  }
 0x110   : > { %2962 = vst.msk [vmem:[#allocation3 + $0x30] sm:$0xff] %vm2955_vm0, %v2920_v26  ;;  %378 = vst [vmem:[#allocation2 + $0xc8] sm:$0x1] %v377_v16  ;;  %v942_v60 = vrot.slane %v940_v47, 7  ;;  %v948_v61 = vshrl.u32 %v4976_v43, 16  ;;  %v951_v0 = vshll.u32 %v4976_v43, 16 }
 0x111   : > { %1346 = vst.msk [vmem:[#allocation3 + $0x68] sm:$0xff] %vm1332_vm11, %v5440_v56  ;;  %v957_v8 = vshrl.u32 %v6315_v51, 16 }
 0x112   : > { %2642 = vrot.lane.b32.xlu0 %v2581_v39, %s5480_s11  ;;  %v945_v63 = vor.u32 %v943_v49, %v942_v60  ;;  %2674 = vst.msk [vmem:[#allocation3 + $0x38] sm:$0xff] %vm2666_vm15, %v2633_v13  ;;  %v946_v2 = vrot.slane %v942_v60, 4  ;;  %v950_v15 = vrot.slane %v948_v61, 7  ;;  %v526_v39 = vadd.f32 %v6285_v7, %v487_v28 }
 0x113   : > { %2034 = vrot.lane.b32.xlu1 %v2001_v20, %s5474_s30  ;;  %v3098_v3 = vpop.permute.xlu0 %3097  ;;  %v5390_v14 = vld [vmem:[#allocation2 + $0xb0] ss:$0 sps:$4 sm:$0x11]   ;;  %v2922_v55 = vpop.permute.xlu1 %2921 }
 0x114   : > { %3140 = vst.msk [vmem:[#allocation3 + $0x30] sm:$0xff] %vm6649_vm1, %v3098_v3  ;;  %v5386_v6 = vld [vmem:[#allocation2 + $0xa8] sm:$0xff]   ;;  %v1124_v29 = vsel %vm5566_vm8, %v945_v63, %v1123_v5  ;;  %v2590_v34 = vshll.u32 %v5390_v14, 16  ;;  %v5395_v46 = vld [vmem:[#allocation2 + $0xb0] ss:$0 sps:$4 sm:$0x11]   ;;  %v953_v41 = vor.u32 %v951_v0, %v950_v15 }
 0x115   : > { %v5389_v9 = vld [vmem:[#allocation2 + $0xa8] sm:$0xff]   ;;  %1125 = vst [vmem:[#allocation2 + $0xb4] sm:$0xf] %v1124_v29  ;;  %v2899_v50 = vrot.slane %v5395_v46, 1  ;;  %v955_v62 = vrot.slane %v950_v15, 4  ;;  %2963 = vst.msk [vmem:[#allocation3 + $0x38] sm:$0xff] %vm2955_vm0, %v2922_v55 }
 0x116   : > { %2931 = vrot.lane.b32.xlu0 %v2897_v57, %s5478_s9  ;;  %v5394_v11 = vld [vmem:[#allocation2 + $0xa8] sm:$0xfe]   ;;  %v2583_v44 = vshrl.u32 %v5389_v9, 16  ;;  %v2585_v18 = vshll.u32 %v5389_v9, 16  ;;  %v2592_v23 = vrot.slane %v2590_v34, 1  ;;  %v954_v52 = vsel %vm5553_vm7, %v946_v2, %v953_v41 }
 0x117   : > { %2211 = vrot.lane.b32.xlu1 %v5386_v6, %s5476_s7  ;;  %v5397_v53 = vld [vmem:[#allocation2 + $0xa8] sm:$0xff]   ;;  %v2898_v33 = vrot.slane %v5394_v11, 1  ;;  %v5400_v21 = vld [vmem:[#allocation2 + $0xb0] ss:$0 sps:$4 sm:$0x11]   ;;  %v3531_v31 = vpop.permute.xlu0 %3530  ;;  %v3100_v38 = vpop.permute.xlu1 %3099  ;;  %v6346_v57 = vrot.slane %v957_v8, 7 }
 0x118   : > { %v5399_v12 = vld [vmem:[#allocation2 + $0xa8] sm:$0xff]   ;;  %v2587_v20 = vrot.slane %v2585_v18, 1  ;;  %v1127_v30 = vld [vmem:[#allocation2 + $0xbc] sm:$0x1]  ;;  %3573 = vst.msk [vmem:[#allocation3 + $0x30] sm:$0xff] %vm3566_vm3, %v3531_v31  ;;  %v3478_v40 = vshll.u32 %v5400_v21, 16 }
 0x119   : > { %v3471_v48 = vshrl.u32 %v5399_v12, 16  ;;  %v3473_v26 = vshll.u32 %v5399_v12, 16  ;;  %v5403_v35 = vld [vmem:[#allocation2 + $0xa8] sm:$0xfe]   ;;  %1126 = vst.msk [vmem:[#allocation2 + $0xb8] sm:$0xf] %vm1022_vm6, %v954_v52  ;;  %v1128_v25 = vsel %vm5533_vm2, %v955_v62, %v1127_v30  ;;  %v2900_v45 = vsel %vm1959_vm9, %v2898_v33, %v2899_v50 }
 0x11a   : > { %3109 = vrot.lane.b32.xlu0 %v5397_v53, %s5477_s8  ;;  %v2588_v10 = vor.u32 %v2587_v20, %v2583_v44  ;;  %v5405_v59 = vld [vmem:[#allocation2 + $0xa8] sm:$0xff]   ;;  %v5404_v54 = vld [vmem:[#allocation2 + $0xb0] ss:$0 sps:$4 sm:$0x11]   ;;  %v3480_v58 = vrot.slane %v3478_v40, 1  ;;  %v3795_v37 = vrot.slane %v5403_v35, 1 }
 0x11b   : > { %v3475_v32 = vrot.slane %v3473_v26, 1  ;;  %1129 = vst [vmem:[#allocation2 + $0xbc] sm:$0x1] %v1128_v25  ;;  %v3820_v43 = vpop.permute.xlu0 %3819  ;;  %v3796_v49 = vrot.slane %v5404_v54, 1  ;;  %3141 = vst.msk [vmem:[#allocation3 + $0x38] sm:$0xff] %vm6649_vm1, %v3100_v38  ;;  %v1697_v56 = vshll.u32 %v5405_v59, 16  ;;  %v3533_v11 = vpop.permute.xlu1 %3532 }
 0x11c   : > { %v2593_v36 = vsel %vm1525_vm10, %v2588_v10, %v2592_v23  ;;  %v5406_v16 = vld [vmem:[#allocation2 + $0xb0] ss:$0 sps:$4 sm:$0x11]   ;;  %3862 = vst.msk [vmem:[#allocation3 + $0x30] sm:$0xff] %vm6661_vm5, %v3820_v43  ;;  %v1695_v61 = vshrl.u32 %v5405_v59, 16  ;;  %v558_v3 = vmax.f32 %v526_v39, 0.0 }
 0x11d   : > { %2644 = vrot.lane.b32.xlu1 %v2593_v36, %s5480_s11  ;;  %v3476_v47 = vor.u32 %v3475_v32, %v3471_v48  ;;  %v1702_v60 = vshll.u32 %v5406_v16, 16  ;;  %v3797_v7 = vsel %vm1959_vm9, %v3795_v37, %v3796_v49  ;;  %v5411_v0 = vld [vmem:[#allocation2 + $0xa8] sm:$0xfe]   ;;  %v1699_v63 = vrot.slane %v1697_v56, 1  ;;  %3574 = vst.msk [vmem:[#allocation3 + $0x38] sm:$0xff] %vm3566_vm3, %v3533_v11 }
 0x11e   : > { %v960_v14 = vshll.u32 %v6315_v51, 16  ;;  %v963_v8 = vrot.slane %v6346_v57, 4  ;;  %v5412_v13 = vld [vmem:[#allocation2 + $0xb0] ss:$0 sps:$4 sm:$0x11]   ;;  %v2002_v42 = vrot.slane %v5411_v0, 1  ;;  %v4978_v12 = vpack.c.bf16 %v558_v3, %v558_v3 }
 0x11f   : > { %v3481_v5 = vsel %vm1525_vm10, %v3476_v47, %v3480_v58  ;;  %v3822_v6 = vpop.permute.xlu0 %3821  ;;  %v1704_v9 = vrot.slane %v1702_v60, 1  ;;  %v1735_v20 = vpop.permute.xlu1 %1734  ;;  %vm6662_vm1 = vcmask 130112   ;;  %v1700_v28 = vor.u32 %v1699_v63, %v1695_v61  ;;  %v1130_v56 = vld [vmem:[#allocation2 + $0xc0] sm:$0xf]  ;;  %v5441_v17 = vld [vmem:[#allocation2 + $0xa8] sm:$0xff]  }
 0x120   : > { %3542 = vrot.lane.b32.xlu0 %v3481_v5, %s5481_s12  ;;  %v5398_v29 = vld [vmem:[#allocation2 + $0xb4] sm:$0xff]   ;;  %3863 = vst.msk [vmem:[#allocation3 + $0x38] sm:$0xff] %vm6661_vm5, %v3822_v6  ;;  %v962_v55 = vor.u32 %v960_v14, %v6346_v57  ;;  %v2003_v26 = vrot.slane %v5412_v13, 1  ;;  %v965_v59 = vshrl.u32 %v4978_v12, 16  ;;  %v968_v16 = vshll.u32 %v4978_v12, 16 }
 0x121   : > { %2933 = vrot.lane.b32.xlu1 %v2900_v45, %s5478_s9  ;;  %v5401_v44 = vld [vmem:[#allocation2 + $0xb4] sm:$0xff]   ;;  %1775 = vst.msk [vmem:[#allocation3 + $0x40] sm:$0xff] %vm6662_vm1, %v1735_v20  ;;  %v1705_v45 = vsel %vm1525_vm10, %v1700_v28, %v1704_v9  ;;  %v1134_v14 = vld [vmem:[#allocation2 + $0xc8] sm:$0x1] }
 0x122   : > { %v5402_v18 = vld [vmem:[#allocation2 + $0xbc] ss:$0 sps:$4 sm:$0x11]   ;;  %v5407_v34 = vld [vmem:[#allocation2 + $0xb4] sm:$0xfe]   ;;  %v3483_v53 = vshrl.u32 %v5401_v44, 16  ;;  %v2004_v25 = vsel %vm1959_vm9, %v2002_v42, %v2003_v26  ;;  %v1131_v60 = vsel %vm5566_vm8, %v962_v55, %v1130_v56 }
 0x123   : > { %v2025_v46 = vpop.permute.xlu0 %2024  ;;  %v3485_v51 = vshll.u32 %v5401_v44, 16  ;;  %v3490_v2 = vshll.u32 %v5402_v18, 16  ;;  %v5408_v15 = vld [vmem:[#allocation2 + $0xbc] ss:$0 sps:$4 sm:$0x11]   ;;  %v3798_v23 = vrot.slane %v5407_v34, 1  ;;  %v1737_v36 = vpop.permute.xlu1 %1736 }
 0x124   : > { %3831 = vrot.lane.b32.xlu0 %v3797_v7, %s5479_s10  ;;  %v5409_v33 = vld [vmem:[#allocation2 + $0xb4] sm:$0xff]   ;;  %v3799_v21 = vrot.slane %v5408_v15, 1  ;;  %v5410_v48 = vld [vmem:[#allocation2 + $0xbc] ss:$0 sps:$4 sm:$0x11]   ;;  %2065 = vst.msk [vmem:[#allocation3 + $0x40] sm:$0xff] %vm2056_vm13, %v2025_v46 }
 0x125   : > { %3111 = vrot.lane.b32.xlu1 %v5398_v29, %s5477_s8  ;;  %v3487_v50 = vrot.slane %v3485_v51, 1  ;;  %v3492_v41 = vrot.slane %v3490_v2, 1  ;;  %v1707_v31 = vshrl.u32 %v5409_v33, 16  ;;  %v1709_v10 = vshll.u32 %v5409_v33, 16  ;;  %v6362_v35 = vld [vmem:[#allocation2 + $0xb4] sm:$0xfe]  }
 0x126   : > { %v3800_v52 = vsel %vm1959_vm9, %v3798_v23, %v3799_v21  ;;  %v1714_v40 = vshll.u32 %v5410_v48, 16  ;;  %v6367_v54 = vld [vmem:[#allocation2 + $0xbc] ss:$0 sps:$4 sm:$0x11]   ;;  %1776 = vst.msk [vmem:[#allocation3 + $0x48] sm:$0xff] %vm6662_vm1, %v1737_v36  ;;  %v2005_v38 = vrot.slane %v6362_v35, 1 }
 0x127   : > { %v2202_v62 = vpop.permute.xlu0 %2201  ;;  %v3488_v30 = vor.u32 %v3487_v50, %v3483_v53  ;;  %v1711_v32 = vrot.slane %v1709_v10, 1  ;;  %v967_v39 = vrot.slane %v965_v59, 7  ;;  %v5417_v43 = vld [vmem:[#allocation2 + $0xb4] sm:$0xff]   ;;  %v2006_v47 = vrot.slane %v6367_v54, 1  ;;  %v2027_v0 = vpop.permute.xlu1 %2026  ;;  %1132 = vst [vmem:[#allocation2 + $0xc0] sm:$0xf] %v1131_v60 }
 0x128   : > { %2242 = vst.msk [vmem:[#allocation3 + $0x40] sm:$0xff] %vm2233_vm14, %v2202_v62  ;;  %3833 = vrot.lane.b32.xlu0 %v3800_v52, %s5479_s10  ;;  %v1716_v37 = vrot.slane %v1714_v40, 1  ;;  %v5415_v49 = vld [vmem:[#allocation2 + $0xb4] sm:$0xff]   ;;  %v2595_v7 = vshrl.u32 %v5417_v43, 16  ;;  %v2597_v61 = vshll.u32 %v5417_v43, 16  ;;  %v3878_v29 = vld [vmem:[#allocation3 + $0x30] sm:$0xff] }
 0x129   : > { %v3493_v58 = vsel %vm1525_vm10, %v3488_v30, %v3492_v41  ;;  %v1712_v5 = vor.u32 %v1711_v32, %v1707_v31  ;;  %v970_v3 = vor.u32 %v968_v16, %v967_v39  ;;  %v5418_v6 = vld [vmem:[#allocation2 + $0xbc] ss:$0 sps:$4 sm:$0x11]   ;;  %v972_v63 = vrot.slane %v967_v39, 4  ;;  %2066 = vst.msk [vmem:[#allocation3 + $0x48] sm:$0xff] %vm2056_vm13, %v2027_v0  ;;  %5133 = vmatprep.mubr.msk.bf16.mxu0 %vm3924_vm12, %v3878_v29  ;;  %v3879_v34 = vld [vmem:[#allocation3 + $0x38] sm:$0xff] }
 0x12a   : > { %3544 = vrot.lane.b32.xlu1 %v3493_v58, %s5481_s12  ;;  %v2599_v11 = vrot.slane %v2597_v61, 1  ;;  %v2602_v42 = vshll.u32 %v5418_v6, 16  ;;  %v5422_v18 = vld [vmem:[#allocation2 + $0xb4] sm:$0xfe]   ;;  %v323_v2 = vld [vmem:[#allocation2 + $0xcc] sm:$0x1]  ;;  %5134 = vmatmul.mubr.msk.bf16.gmra.mrb[12].mxu0 %vm3924_vm12, %v3879_v34  ;;  %v2007_v48 = vsel %vm1959_vm9, %v2005_v38, %v2006_v47 }
 0x12b   : > { %v971_v13 = vsel %vm5553_vm7, %v963_v8, %v970_v3  ;;  %v1135_v44 = vsel %vm5533_vm2, %v972_v63, %v1134_v14  ;;  %v1717_v46 = vsel %vm1525_vm10, %v1712_v5, %v1716_v37  ;;  %v5423_v51 = vld [vmem:[#allocation2 + $0xbc] ss:$0 sps:$4 sm:$0x11]   ;;  %v2901_v8 = vrot.slane %v5422_v18, 1  ;;  %v379_v12 = vld [vmem:[#allocation2 + $0xd4] sm:$0x1]  ;;  %v2204_v21 = vpop.permute.xlu1 %2203 }
 0x12c   : > { %2036 = vrot.lane.b32.xlu0 %v2004_v25, %s5474_s30  ;;  %1133 = vst.msk [vmem:[#allocation2 + $0xc4] sm:$0xf] %vm1022_vm6, %v971_v13  ;;  %v2600_v53 = vor.u32 %v2599_v11, %v2595_v7  ;;  %1136 = vst [vmem:[#allocation2 + $0xc8] sm:$0x1] %v1135_v44  ;;  %v2604_v57 = vrot.slane %v2602_v42, 1  ;;  %v324_v15 = vsel %vm5533_vm2, 0, %v323_v2 }
 0x12d   : > { %v5442_v23 = vld [vmem:[#allocation2 + $0xb4] sm:$0xff]   ;;  %v2902_v33 = vrot.slane %v5423_v51, 1  ;;  %325 = vst [vmem:[#allocation2 + $0xcc] sm:$0x1] %v324_v15  ;;  %v380_v50 = vsel %vm5540_vm4, 0, %v379_v12  ;;  %1347 = vst.msk [vmem:[#allocation3 + $0x70] sm:$0xff] %vm1332_vm11, %v5441_v17 }
 0x12e   : > { %1746 = vrot.lane.b32.xlu1 %v1705_v45, %s5475_s6  ;;  %v2605_v41 = vsel %vm1525_vm10, %v2600_v53, %v2604_v57  ;;  %381 = vst [vmem:[#allocation2 + $0xd4] sm:$0x1] %v380_v50  ;;  %1348 = vst.msk [vmem:[#allocation3 + $0x78] sm:$0xff] %vm1332_vm11, %v5442_v23  ;;  %vm6663_vm4 = vcmask 458112  }
 0x12f   : > { %2243 = vst.msk [vmem:[#allocation3 + $0x48] sm:$0xff] %vm2233_vm14, %v2204_v21  ;;  %v2903_v55 = vsel %vm1959_vm9, %v2901_v8, %v2902_v33  ;;  %vm6665_vm7 = vmmov %vm6663_vm4 }
 0x130   : > { %2213 = vrot.lane.b32.xlu0 %v5415_v49, %s5476_s7 }
 0x132   : > { %1748 = vrot.lane.b32.xlu1 %v1717_v46, %s5475_s6 }
 0x133   : > { %v5416_v28 = vld [vmem:[#allocation2 + $0xc0] sm:$0xff]   ;;  %v5420_v10 = vld [vmem:[#allocation2 + $0xc8] ss:$0 sps:$4 sm:$0x11]  }
 0x134   : > { %2646 = vrot.lane.b32.xlu0 %v2605_v41, %s5480_s11  ;;  %v5419_v31 = vld [vmem:[#allocation2 + $0xc0] sm:$0xff]   ;;  %v2614_v52 = vshll.u32 %v5420_v10, 16  ;;  %v5425_v40 = vld [vmem:[#allocation2 + $0xc8] ss:$0 sps:$4 sm:$0x11]  }
 0x135   : > { %v5424_v26 = vld [vmem:[#allocation2 + $0xc0] sm:$0xfe]   ;;  %v2607_v62 = vshrl.u32 %v5419_v31, 16  ;;  %v2609_v30 = vshll.u32 %v5419_v31, 16  ;;  %v1197_v59 = vld [vmem:[#allocation2 + $0xcc] sm:$0xf] }
 0x136   : > { %2038 = vrot.lane.b32.xlu1 %v2007_v48, %s5474_s30  ;;  %v5427_v35 = vld [vmem:[#allocation2 + $0xc0] sm:$0xff]   ;;  %v2616_v32 = vrot.slane %v2614_v52, 1  ;;  %v2904_v25 = vrot.slane %v5424_v26, 1  ;;  %v1198_v54 = vsel %vm5566_vm8, %v5582_v24, %v1197_v59  ;;  %v2905_v38 = vrot.slane %v5425_v40, 1  ;;  %v1201_v49 = vld [vmem:[#allocation2 + $0xd4] sm:$0x1] }
 0x137   : > { %v2611_v36 = vrot.slane %v2609_v30, 1  ;;  %v5429_v58 = vld [vmem:[#allocation2 + $0xc0] sm:$0xff]   ;;  %1199 = vst [vmem:[#allocation2 + $0xcc] sm:$0xf] %v1198_v54  ;;  %v1202_v22 = vsel %vm5533_vm2, %v1159_v27, %v1201_v49  ;;  %vm6664_vm2 = vmmov %vm6661_vm5 }
 0x138   : > { %2935 = vrot.lane.b32.xlu0 %v2903_v55, %s5478_s9  ;;  %v5430_v39 = vld [vmem:[#allocation2 + $0xc8] ss:$0 sps:$4 sm:$0x11]   ;;  %v3495_v45 = vshrl.u32 %v5429_v58, 16  ;;  %v3497_v47 = vshll.u32 %v5429_v58, 16  ;;  %v2906_v19 = vsel %vm1959_vm9, %v2904_v25, %v2905_v38  ;;  %vm6666_vm8 = vmmov %vm6664_vm2 }
 0x139   : > { %v2612_v43 = vor.u32 %v2611_v36, %v2607_v62  ;;  %v3502_v16 = vshll.u32 %v5430_v39, 16  ;;  %v5433_v24 = vld [vmem:[#allocation2 + $0xc0] sm:$0xfe]   ;;  %1203 = vst [vmem:[#allocation2 + $0xd4] sm:$0x1] %v1202_v22  ;;  %vm6667_vm5 = vmmov %vm6662_vm1 }
 0x13a   : > { %2215 = vrot.lane.b32.xlu1 %v5416_v28, %s5476_s7  ;;  %v3499_v60 = vrot.slane %v3497_v47, 1  ;;  %v5434_v7 = vld [vmem:[#allocation2 + $0xc8] ss:$0 sps:$4 sm:$0x11]   ;;  %v3801_v1 = vrot.slane %v5433_v24, 1  ;;  %s6479_s7 = scalar_lea.vmem %s6645_s4, %s4945_s22  ;;  %s4609_s22 = sshll.u32 %s6688_s18, 1 }
 0x13b   : > { %v2617_v5 = vsel %vm1525_vm10, %v2612_v43, %v2616_v32  ;;  %v3504_v0 = vrot.slane %v3502_v16, 1  ;;  %v3802_v27 = vrot.slane %v5434_v7, 1 }
 0x13c   : > { %v2635_v9 = vpop.permute.xlu0 %2634  ;;  %3113 = vrot.lane.b32.xlu0 %v5427_v35, %s5477_s8  ;;  %v3500_v3 = vor.u32 %v3499_v60, %v3495_v45 }
 0x13d   : > { %2675 = vst.msk [vmem:[#allocation3 + $0x40] sm:$0xff] %vm2666_vm15, %v2635_v9  ;;  %v3803_v29 = vsel %vm1959_vm9, %v3801_v1, %v3802_v27 }
 0x13e   : > { %2648 = vrot.lane.b32.xlu1 %v2617_v5, %s5480_s11  ;;  %v3505_v63 = vsel %vm1525_vm10, %v3500_v3, %v3504_v0  ;;  %v5428_v9 = vld [vmem:[#allocation2 + $0xcc] sm:$0xff]  }
 0x13f   : > { %v5431_v11 = vld [vmem:[#allocation2 + $0xcc] sm:$0xff]  }
 0x140   : > { %v2924_v20 = vpop.permute.xlu0 %2923  ;;  %3546 = vrot.lane.b32.xlu0 %v3505_v63, %s5481_s12  ;;  %v5435_v13 = vld [vmem:[#allocation2 + $0xcc] sm:$0xfe]   ;;  %v5432_v42 = vld [vmem:[#allocation2 + $0xd4] ss:$0 sps:$4 sm:$0x11]   ;;  %v3507_v44 = vshrl.u32 %v5431_v11, 16 }
 0x141   : > { %2964 = vst.msk [vmem:[#allocation3 + $0x40] sm:$0xff] %vm2955_vm0, %v2924_v20  ;;  %v3509_v18 = vshll.u32 %v5431_v11, 16  ;;  %v5436_v34 = vld [vmem:[#allocation2 + $0xd4] ss:$0 sps:$4 sm:$0x11]   ;;  %v3514_v51 = vshll.u32 %v5432_v42, 16 }
 0x142   : > { %2937 = vrot.lane.b32.xlu1 %v2906_v19, %s5478_s9  ;;  %v3804_v15 = vrot.slane %v5435_v13, 1  ;;  %v3805_v12 = vrot.slane %v5436_v34, 1 }
 0x143   : > { %v3511_v2 = vrot.slane %v3509_v18, 1  ;;  %v3516_v17 = vrot.slane %v3514_v51, 1 }
 0x144   : > { %v3102_v4 = vpop.permute.xlu0 %3101  ;;  %3835 = vrot.lane.b32.xlu0 %v3803_v29, %s5479_s10  ;;  %v3806_v50 = vsel %vm1959_vm9, %v3804_v15, %v3805_v12  ;;  %vm6668_vm9 = vmmov %vm6663_vm4 }
 0x145   : > { %3142 = vst.msk [vmem:[#allocation3 + $0x40] sm:$0xff] %vm6663_vm4, %v3102_v4  ;;  %v3512_v8 = vor.u32 %v3511_v2, %v3507_v44 }
 0x146   : > { %3115 = vrot.lane.b32.xlu1 %v5428_v9, %s5477_s8 }
 0x147   : > { %v3517_v33 = vsel %vm1525_vm10, %v3512_v8, %v3516_v17  ;;  %vm6669_vm10 = vmmov %vm6663_vm4 }
 0x148   : > { %vm6670_vm4 = vmmov %vm6664_vm2 }
 0x14a   : > { %v2637_v37 = vpop.permute.xlu1 %2636  ;;  %3548 = vrot.lane.b32.xlu1 %v3517_v33, %s5481_s12 }
 0x14b   : > { %2676 = vst.msk [vmem:[#allocation3 + $0x48] sm:$0xff] %vm2666_vm15, %v2637_v37 }
 0x14d   : > { %v3535_v56 = vpop.permute.xlu0 %3534 }
 0x14e   : > { %v2926_v61 = vpop.permute.xlu1 %2925  ;;  %3575 = vst.msk [vmem:[#allocation3 + $0x40] sm:$0xff] %vm3566_vm3, %v3535_v56  ;;  %3837 = vrot.lane.b32.xlu1 %v3806_v50, %s5479_s10  ;;  %s266_s10 = scalar_lea.vmem %s6646_s5, %s4609_s22 }
 0x14f   : > { %2965 = vst.msk [vmem:[#allocation3 + $0x48] sm:$0xff] %vm2955_vm0, %v2926_v61 }
 0x151   : > { %v3824_v6 = vpop.permute.xlu0 %3823 }
 0x152   : > { %v3104_v14 = vpop.permute.xlu1 %3103  ;;  %3864 = vst.msk [vmem:[#allocation3 + $0x40] sm:$0xff] %vm6664_vm2, %v3824_v6 }
 0x153   : > { %3143 = vst.msk [vmem:[#allocation3 + $0x48] sm:$0xff] %vm6665_vm7, %v3104_v14  ;;  %vm6671_vm7 = vmmov %vm6662_vm1 }
 0x155   : > { %v3826_v53 = vpop.permute.xlu0 %3825 }
 0x156   : > { %v3537_v46 = vpop.permute.xlu1 %3536 }
 0x157   : > { %3576 = vst.msk [vmem:[#allocation3 + $0x48] sm:$0xff] %vm3566_vm3, %v3537_v46 }
 0x158   : > { %3865 = vst.msk [vmem:[#allocation3 + $0x48] sm:$0xff] %vm6666_vm8, %v3826_v53  ;;  %vm6672_vm8 = vmmov %vm6662_vm1 }
 0x159   : > { %v3880_v57 = vld [vmem:[#allocation3 + $0x40] sm:$0xff]  ;;  %v2029_v23 = vpop.permute.xlu0 %2028 }
 0x15a   : > { %v1739_v20 = vpop.permute.xlu1 %1738  ;;  %5137 = vmatprep.mubr.msk.bf16.mxu1 %vm3924_vm12, %v3880_v57 }
 0x15b   : > { %1777 = vst.msk [vmem:[#allocation3 + $0x50] sm:$0xff] %vm6667_vm5, %v1739_v20  ;;  %vm6673_vm5 = vmmov %vm6668_vm9 }
 0x15c   : > { %2067 = vst.msk [vmem:[#allocation3 + $0x50] sm:$0xff] %vm2056_vm13, %v2029_v23 }
 0x15d   : > { %v2206_v21 = vpop.permute.xlu0 %2205 }
 0x15e   : > { %v1741_v41 = vpop.permute.xlu1 %1740  ;;  %2244 = vst.msk [vmem:[#allocation3 + $0x50] sm:$0xff] %vm2233_vm14, %v2206_v21 }
 0x15f   : > { %1778 = vst.msk [vmem:[#allocation3 + $0x58] sm:$0xff] %vm6662_vm1, %v1741_v41  ;;  %v3881_v48 = vld [vmem:[#allocation3 + $0x48] sm:$0xff]  ;;  %vm6674_vm1 = vmmov %vm6673_vm5 }
 0x160   : > { %5138 = vmatmul.mubr.msk.bf16.vlgmr.msra.gmra.mrb[0].mxu1 %vm3924_vm12, %v3881_v48 }
 0x161   : > { %v2639_v55 = vpop.permute.xlu0 %2638 }
 0x162   : > { %v2031_v4 = vpop.permute.xlu1 %2030  ;;  %2677 = vst.msk [vmem:[#allocation3 + $0x50] sm:$0xff] %vm2666_vm15, %v2639_v55 }
 0x163   : > { %2068 = vst.msk [vmem:[#allocation3 + $0x58] sm:$0xff] %vm2056_vm13, %v2031_v4 }
 0x165   : > { %v2928_v28 = vpop.permute.xlu0 %2927 }
 0x166   : > { %2966 = vst.msk [vmem:[#allocation3 + $0x50] sm:$0xff] %vm2955_vm0, %v2928_v28  ;;  %v2208_v31 = vpop.permute.xlu1 %2207 }
 0x167   : > { %2245 = vst.msk [vmem:[#allocation3 + $0x58] sm:$0xff] %vm2233_vm14, %v2208_v31 }
 0x169   : > { %v3106_v10 = vpop.permute.xlu0 %3105 }
 0x16a   : > { %3144 = vst.msk [vmem:[#allocation3 + $0x50] sm:$0xff] %vm6668_vm9, %v3106_v10  ;;  %vm6675_vm9 = vmmov %vm6664_vm2 }
 0x16d   : > { %v2641_v26 = vpop.permute.xlu1 %2640 }
 0x16e   : > { %2678 = vst.msk [vmem:[#allocation3 + $0x58] sm:$0xff] %vm2666_vm15, %v2641_v26 }
 0x170   : > { %v3539_v30 = vpop.permute.xlu0 %3538 }
 0x171   : > { %v2930_v62 = vpop.permute.xlu1 %2929  ;;  %3577 = vst.msk [vmem:[#allocation3 + $0x50] sm:$0xff] %vm3566_vm3, %v3539_v30 }
 0x172   : > { %2967 = vst.msk [vmem:[#allocation3 + $0x58] sm:$0xff] %vm2955_vm0, %v2930_v62 }
 0x174   : > { %v3828_v40 = vpop.permute.xlu0 %3827 }
 0x175   : > { %v3108_v52 = vpop.permute.xlu1 %3107  ;;  %3866 = vst.msk [vmem:[#allocation3 + $0x50] sm:$0xff] %vm6670_vm4, %v3828_v40  ;;  %vm6677_vm4 = vmmov %vm6671_vm7 }
 0x176   : > { %3145 = vst.msk [vmem:[#allocation3 + $0x58] sm:$0xff] %vm6669_vm10, %v3108_v52  ;;  %vm6676_vm10 = vmmov %vm6664_vm2 }
 0x178   : > { %v3830_v35 = vpop.permute.xlu0 %3829 }
 0x179   : > { %v3541_v59 = vpop.permute.xlu1 %3540 }
 0x17a   : > { %3578 = vst.msk [vmem:[#allocation3 + $0x58] sm:$0xff] %vm3566_vm3, %v3541_v59 }
 0x17b   : > { %3867 = vst.msk [vmem:[#allocation3 + $0x58] sm:$0xff] %vm6664_vm2, %v3830_v35  ;;  %vm6678_vm2 = vmmov %vm6677_vm4 }
 0x17c   : > { %v2033_v36 = vpop.permute.xlu0 %2032  ;;  %v3882_v32 = vld [vmem:[#allocation3 + $0x50] sm:$0xff] }
 0x17d   : > { %v1743_v25 = vpop.permute.xlu1 %1742  ;;  %5141 = vmatprep.mubr.msk.bf16.mxu1 %vm3924_vm12, %v3882_v32 }
 0x17e   : > { %1779 = vst.msk [vmem:[#allocation3 + $0x60] sm:$0xff] %vm6671_vm7, %v1743_v25  ;;  %vm6679_vm7 = vmmov %vm6674_vm1 }
 0x17f   : > { %2069 = vst.msk [vmem:[#allocation3 + $0x60] sm:$0xff] %vm2056_vm13, %v2033_v36 }
 0x180   : > { %v2210_v54 = vpop.permute.xlu0 %2209 }
 0x181   : > { %v1745_v58 = vpop.permute.xlu1 %1744  ;;  %2246 = vst.msk [vmem:[#allocation3 + $0x60] sm:$0xff] %vm2233_vm14, %v2210_v54 }
 0x182   : > { %1780 = vst.msk [vmem:[#allocation3 + $0x68] sm:$0xff] %vm6672_vm8, %v1745_v58  ;;  %v3883_v37 = vld [vmem:[#allocation3 + $0x58] sm:$0xff] }
 0x183   : > { %5142 = vmatmul.mubr.msk.bf16.gmra.mrb[4].mxu1 %vm3924_vm12, %v3883_v37 }
 0x184   : > { %v2643_v39 = vpop.permute.xlu0 %2642 }
 0x185   : > { %v2035_v38 = vpop.permute.xlu1 %2034  ;;  %2679 = vst.msk [vmem:[#allocation3 + $0x60] sm:$0xff] %vm2666_vm15, %v2643_v39 }
 0x186   : > { %2070 = vst.msk [vmem:[#allocation3 + $0x68] sm:$0xff] %vm2056_vm13, %v2035_v38 }
 0x188   : > { %v2932_v43 = vpop.permute.xlu0 %2931 }
 0x189   : > { %2968 = vst.msk [vmem:[#allocation3 + $0x60] sm:$0xff] %vm2955_vm0, %v2932_v43  ;;  %v2212_v45 = vpop.permute.xlu1 %2211 }
 0x18a   : > { %2247 = vst.msk [vmem:[#allocation3 + $0x68] sm:$0xff] %vm2233_vm14, %v2212_v45 }
 0x18c   : > { %v3110_v47 = vpop.permute.xlu0 %3109 }
 0x18d   : > { %3146 = vst.msk [vmem:[#allocation3 + $0x60] sm:$0xff] %vm6673_vm5, %v3110_v47 }
 0x18f   : > { %v2645_v49 = vpop.permute.xlu1 %2644 }
 0x190   : > { %2680 = vst.msk [vmem:[#allocation3 + $0x68] sm:$0xff] %vm2666_vm15, %v2645_v49 }
 0x192   : > { %v3543_v22 = vpop.permute.xlu0 %3542 }
 0x193   : > { %v2934_v16 = vpop.permute.xlu1 %2933  ;;  %3579 = vst.msk [vmem:[#allocation3 + $0x60] sm:$0xff] %vm3566_vm3, %v3543_v22 }
 0x194   : > { %2969 = vst.msk [vmem:[#allocation3 + $0x68] sm:$0xff] %vm2955_vm0, %v2934_v16 }
 0x196   : > { %v3832_v56 = vpop.permute.xlu0 %3831 }
 0x197   : > { %v3112_v24 = vpop.permute.xlu1 %3111  ;;  %3868 = vst.msk [vmem:[#allocation3 + $0x60] sm:$0xff] %vm6675_vm9, %v3832_v56 }
 0x198   : > { %3147 = vst.msk [vmem:[#allocation3 + $0x68] sm:$0xff] %vm6674_vm1, %v3112_v24 }
 0x19a   : > { %v3834_v5 = vpop.permute.xlu0 %3833 }
 0x19c   : > { %v3545_v60 = vpop.permute.xlu1 %3544 }
 0x19d   : > { %3580 = vst.msk [vmem:[#allocation3 + $0x68] sm:$0xff] %vm3566_vm3, %v3545_v60 }
 0x19e   : > { %v3884_v7 = vld [vmem:[#allocation3 + $0x60] sm:$0xff]  ;;  %3869 = vst.msk [vmem:[#allocation3 + $0x68] sm:$0xff] %vm6676_vm10, %v3834_v5  ;;  %v2037_v61 = vpop.permute.xlu0 %2036 }
 0x19f   : > { %5145 = vmatprep.mubr.msk.bf16.mxu1 %vm3924_vm12, %v3884_v7 }
 0x1a0   : > { %v1747_v0 = vpop.permute.xlu1 %1746 }
 0x1a1   : > { %1781 = vst.msk [vmem:[#allocation3 + $0x70] sm:$0xff] %vm6677_vm4, %v1747_v0 }
 0x1a2   : > { %2071 = vst.msk [vmem:[#allocation3 + $0x70] sm:$0xff] %vm2056_vm13, %v2037_v61  ;;  %v2214_v3 = vpop.permute.xlu0 %2213 }
 0x1a3   : > { %2248 = vst.msk [vmem:[#allocation3 + $0x70] sm:$0xff] %vm2233_vm14, %v2214_v3 }
 0x1a4   : > { %v1749_v9 = vpop.permute.xlu1 %1748 }
 0x1a5   : > { %1782 = vst.msk [vmem:[#allocation3 + $0x78] sm:$0xff] %vm6678_vm2, %v1749_v9  ;;  %v3885_v42 = vld [vmem:[#allocation3 + $0x68] sm:$0xff] }
 0x1a6   : > { %5146 = vmatmul.mubr.msk.bf16.gmra.mrb[8].mxu1 %vm3924_vm12, %v3885_v42  ;;  %v2647_v53 = vpop.permute.xlu0 %2646 }
 0x1a7   : > { %2681 = vst.msk [vmem:[#allocation3 + $0x70] sm:$0xff] %vm2666_vm15, %v2647_v53 }
 0x1a8   : > { %v2039_v15 = vpop.permute.xlu1 %2038 }
 0x1a9   : > { %2072 = vst.msk [vmem:[#allocation3 + $0x78] sm:$0xff] %vm2056_vm13, %v2039_v15  ;;  %vm6680_vm13 = vmmov %vm6674_vm1 }
 0x1aa   : > { %v2936_v50 = vpop.permute.xlu0 %2935 }
 0x1ab   : > { %2970 = vst.msk [vmem:[#allocation3 + $0x70] sm:$0xff] %vm2955_vm0, %v2936_v50 }
 0x1ac   : > { %v5123_v19 = vpop.f32.mrb[0].mxu0  ;;  %v2216_v4 = vpop.permute.xlu1 %2215 }
 0x1ad   : > { %v4981_v1 = vpack.c.bf16 %v5123_v19, %v5123_v19  ;;  %v4011_v27 = vpop.f32.mrb[1].mxu0  ;;  %v4369_v11 = vmul.f32 %v5123_v19, %v5123_v19  ;;  %v4301_v2 = vsel %vm1332_vm11, %v5123_v19, 0.0  ;;  %2249 = vst.msk [vmem:[#allocation3 + $0x78] sm:$0xff] %vm2233_vm14, %v2216_v4  ;;  %vm6681_vm14 = vmmov %vm6675_vm9 }
 0x1ae   : > { %v4979_v6 = vpack.c.bf16 %v4011_v27, %v4011_v27  ;;  %v4367_v63 = vmul.f32 %v4011_v27, %v4011_v27  ;;  %v5124_v14 = vpop.f32.mrb[2].mxu0  ;;  %v4298_v44 = vsel %vm1332_vm11, %v4011_v27, 0.0  ;;  %v3114_v28 = vpop.permute.xlu0 %3113 }
 0x1af   : > { %4268 = vst.msk [vmem:[%s6479_s7 + $0x8] sm:$0xf] %vm1022_vm6, %v4981_v1  ;;  %v4982_v29 = vpack.c.bf16 %v5124_v14, %v5124_v14  ;;  %v4014_v13 = vpop.f32.mrb[3].mxu0  ;;  %v4370_v57 = vmul.f32 %v5124_v14, %v5124_v14  ;;  %v4402_v23 = vsel %vm1332_vm11, %v4369_v11, 0.0  ;;  %v4303_v33 = vsel %vm1332_vm11, %v5124_v14, 0.0 }
 0x1b0   : > { %4266 = vst.msk [vmem:[%s6479_s7] sm:$0xf] %vm1022_vm6, %v4979_v6  ;;  %v4980_v18 = vpack.c.bf16 %v4014_v13, %v4014_v13  ;;  %v4299_v34 = vsel %vm1332_vm11, %v4014_v13, 0.0  ;;  %v4368_v46 = vmul.f32 %v4014_v13, %v4014_v13  ;;  %v4399_v17 = vsel %vm1332_vm11, %v4367_v63, 0.0  ;;  %v2649_v31 = vpop.permute.xlu1 %2648 }
 0x1b1   : > { %4269 = vst.msk [vmem:[%s6479_s7 + $0xc] sm:$0xf] %vm1022_vm6, %v4982_v29  ;;  %v4300_v51 = vadd.f32 %v4299_v34, %v4298_v44  ;;  %v4404_v48 = vsel %vm1332_vm11, %v4370_v57, 0.0 }
 0x1b2   : > { %4267 = vst.msk [vmem:[%s6479_s7 + $0x4] sm:$0xf] %vm1022_vm6, %v4980_v18  ;;  %v4400_v8 = vsel %vm1332_vm11, %v4368_v46, 0.0  ;;  %v3547_v36 = vpop.permute.xlu0 %3546 }
 0x1b3   : > { %v4302_v12 = vadd.f32 %v4301_v2, %v4300_v51  ;;  %v4401_v20 = vadd.f32 %v4400_v8, %v4399_v17  ;;  %3148 = vst.msk [vmem:[#allocation3 + $0x70] sm:$0xff] %vm6679_vm7, %v3114_v28 }
 0x1b4   : > { %2682 = vst.msk [vmem:[#allocation3 + $0x78] sm:$0xff] %vm2666_vm15, %v2649_v31  ;;  %v2938_v59 = vpop.permute.xlu1 %2937  ;;  %vm6682_vm15 = vmmov %vm6675_vm9 }
 0x1b5   : > { %v4403_v41 = vadd.f32 %v4402_v23, %v4401_v20  ;;  %v4304_v21 = vadd.f32 %v4303_v33, %v4302_v12  ;;  %2971 = vst.msk [vmem:[#allocation3 + $0x78] sm:$0xff] %vm2955_vm0, %v2938_v59 }
 0x1b6   : > { %3581 = vst.msk [vmem:[#allocation3 + $0x70] sm:$0xff] %vm3566_vm3, %v3547_v36  ;;  %v3836_v16 = vpop.permute.xlu0 %3835 }
 0x1b7   : > { %v4405_v55 = vadd.f32 %v4404_v48, %v4403_v41  ;;  %3870 = vst.msk [vmem:[#allocation3 + $0x70] sm:$0xff] %vm6681_vm14, %v3836_v16 }
 0x1b8   : > { %v3116_v49 = vpop.permute.xlu1 %3115 }
 0x1b9   : > { %3149 = vst.msk [vmem:[#allocation3 + $0x78] sm:$0xff] %vm6680_vm13, %v3116_v49 }
 0x1bb   : > { %v5127_v10 = vpop.f32.mrb[4].mxu0 }
 0x1bc   : > { %v4985_v26 = vpack.c.bf16 %v5127_v10, %v5127_v10  ;;  %v4027_v62 = vpop.f32.mrb[5].mxu0  ;;  %v4373_v54 = vmul.f32 %v5127_v10, %v5127_v10  ;;  %v4309_v22 = vsel %vm1332_vm11, %v5127_v10, 0.0  ;;  %v3549_v27 = vpop.permute.xlu1 %3548 }
 0x1bd   : > { %v4983_v30 = vpack.c.bf16 %v4027_v62, %v4027_v62  ;;  %v4305_v52 = vsel %vm1332_vm11, %v4027_v62, 0.0  ;;  %v4371_v40 = vmul.f32 %v4027_v62, %v4027_v62  ;;  %v5128_v35 = vpop.f32.mrb[6].mxu0  ;;  %3582 = vst.msk [vmem:[#allocation3 + $0x78] sm:$0xff] %vm3566_vm3, %v3549_v27 }
 0x1be   : > { %4272 = vst.msk [vmem:[%s6479_s7 + $0x18] sm:$0xf] %vm1022_vm6, %v4985_v26  ;;  %v4306_v32 = vadd.f32 %v4305_v52, %v4304_v21  ;;  %v4986_v25 = vpack.c.bf16 %v5128_v35, %v5128_v35  ;;  %v4030_v37 = vpop.f32.mrb[7].mxu0  ;;  %v4374_v24 = vmul.f32 %v5128_v35, %v5128_v35  ;;  %v4410_v7 = vsel %vm1332_vm11, %v4373_v54, 0.0  ;;  %v3886_v6 = vld [vmem:[#allocation3 + $0x70] sm:$0xff] }
 0x1bf   : > { %4270 = vst.msk [vmem:[%s6479_s7 + $0x10] sm:$0xf] %vm1022_vm6, %v4983_v30  ;;  %v4406_v58 = vsel %vm1332_vm11, %v4371_v40, 0.0  ;;  %v4984_v39 = vpack.c.bf16 %v4030_v37, %v4030_v37  ;;  %v4307_v43 = vsel %vm1332_vm11, %v4030_v37, 0.0  ;;  %v4372_v45 = vmul.f32 %v4030_v37, %v4030_v37  ;;  %5149 = vmatprep.mubr.msk.bf16.mxu1 %vm3924_vm12, %v3886_v6 }
 0x1c0   : > { %v4407_v38 = vadd.f32 %v4406_v58, %v4405_v55  ;;  %4273 = vst.msk [vmem:[%s6479_s7 + $0x1c] sm:$0xf] %vm1022_vm6, %v4986_v25  ;;  %v4308_v47 = vadd.f32 %v4307_v43, %v4306_v32  ;;  %v4311_v61 = vsel %vm1332_vm11, %v5128_v35, 0.0  ;;  %v4412_v3 = vsel %vm1332_vm11, %v4374_v24, 0.0  ;;  %v3838_v63 = vpop.permute.xlu1 %3837 }
 0x1c1   : > { %4271 = vst.msk [vmem:[%s6479_s7 + $0x14] sm:$0xf] %vm1022_vm6, %v4984_v39  ;;  %v4408_v56 = vsel %vm1332_vm11, %v4372_v45, 0.0 }
 0x1c2   : > { %v4310_v5 = vadd.f32 %v4309_v22, %v4308_v47  ;;  %v4409_v60 = vadd.f32 %v4408_v56, %v4407_v38  ;;  %3871 = vst.msk [vmem:[#allocation3 + $0x78] sm:$0xff] %vm6682_vm15, %v3838_v63 }
 0x1c4   : > { %v4411_v0 = vadd.f32 %v4410_v7, %v4409_v60  ;;  %v4312_v19 = vadd.f32 %v4311_v61, %v4310_v5 }
 0x1c6   : > { %v4413_v1 = vadd.f32 %v4412_v3, %v4411_v0 }
 0x1c9   : > { %v3887_v14 = vld [vmem:[#allocation3 + $0x78] sm:$0xff] }
 0x1ca   : > { %5150 = vmatmul.mubr.msk.bf16.gmra.mrb[12].mxu1 %vm3924_vm12, %v3887_v14 }
 0x1df   : > { %v5131_v9 = vpop.f32.mrb[8].mxu0 }
 0x1e0   : > { %v4989_v11 = vpack.c.bf16 %v5131_v9, %v5131_v9  ;;  %v4043_v29 = vpop.f32.mrb[9].mxu0  ;;  %v4377_v57 = vmul.f32 %v5131_v9, %v5131_v9  ;;  %v4317_v20 = vsel %vm1332_vm11, %v5131_v9, 0.0 }
 0x1e1   : > { %v4987_v13 = vpack.c.bf16 %v4043_v29, %v4043_v29  ;;  %v4313_v42 = vsel %vm1332_vm11, %v4043_v29, 0.0  ;;  %v4375_v44 = vmul.f32 %v4043_v29, %v4043_v29  ;;  %v5132_v18 = vpop.f32.mrb[10].mxu0 }
 0x1e2   : > { %4276 = vst.msk [vmem:[%s6479_s7 + $0x28] sm:$0xf] %vm1022_vm6, %v4989_v11  ;;  %v4314_v34 = vadd.f32 %v4313_v42, %v4312_v19  ;;  %v4990_v46 = vpack.c.bf16 %v5132_v18, %v5132_v18  ;;  %v4046_v53 = vpop.f32.mrb[11].mxu0  ;;  %v4378_v23 = vmul.f32 %v5132_v18, %v5132_v18  ;;  %v4319_v41 = vsel %vm1332_vm11, %v5132_v18, 0.0 }
 0x1e3   : > { %4274 = vst.msk [vmem:[%s6479_s7 + $0x20] sm:$0xf] %vm1022_vm6, %v4987_v13  ;;  %v4414_v51 = vsel %vm1332_vm11, %v4375_v44, 0.0  ;;  %v4988_v2 = vpack.c.bf16 %v4046_v53, %v4046_v53  ;;  %v4315_v17 = vsel %vm1332_vm11, %v4046_v53, 0.0  ;;  %v4376_v12 = vmul.f32 %v4046_v53, %v4046_v53 }
 0x1e4   : > { %v4415_v8 = vadd.f32 %v4414_v51, %v4413_v1  ;;  %4277 = vst.msk [vmem:[%s6479_s7 + $0x2c] sm:$0xf] %vm1022_vm6, %v4990_v46  ;;  %v4316_v15 = vadd.f32 %v4315_v17, %v4314_v34  ;;  %v4418_v48 = vsel %vm1332_vm11, %v4377_v57, 0.0  ;;  %v4420_v28 = vsel %vm1332_vm11, %v4378_v23, 0.0 }
 0x1e5   : > { %4275 = vst.msk [vmem:[%s6479_s7 + $0x24] sm:$0xf] %vm1022_vm6, %v4988_v2  ;;  %v4416_v50 = vsel %vm1332_vm11, %v4376_v12, 0.0 }
 0x1e6   : > { %v4318_v33 = vadd.f32 %v4317_v20, %v4316_v15  ;;  %v4417_v21 = vadd.f32 %v4416_v50, %v4415_v8 }
 0x1e8   : > { %v4320_v4 = vadd.f32 %v4319_v41, %v4318_v33  ;;  %v4419_v55 = vadd.f32 %v4418_v48, %v4417_v21 }
 0x1ea   : > { %v4421_v31 = vadd.f32 %v4420_v28, %v4419_v55 }
 0x1fd   : > { %v5135_v10 = vpop.f32.mrb[12].mxu0 }
 0x1fe   : > { %v4993_v26 = vpack.c.bf16 %v5135_v10, %v5135_v10  ;;  %v4059_v62 = vpop.f32.mrb[13].mxu0  ;;  %v4381_v37 = vmul.f32 %v5135_v10, %v5135_v10  ;;  %v4325_v45 = vsel %vm1332_vm11, %v5135_v10, 0.0 }
 0x1ff   : > { %v4991_v30 = vpack.c.bf16 %v4059_v62, %v4059_v62  ;;  %v4321_v52 = vsel %vm1332_vm11, %v4059_v62, 0.0  ;;  %v4379_v40 = vmul.f32 %v4059_v62, %v4059_v62  ;;  %v5136_v35 = vpop.f32.mrb[14].mxu0 }
 0x200   : > { %4280 = vst.msk [vmem:[%s6479_s7 + $0x38] sm:$0xf] %vm1022_vm6, %v4993_v26  ;;  %v4322_v59 = vadd.f32 %v4321_v52, %v4320_v4  ;;  %v4994_v36 = vpack.c.bf16 %v5136_v35, %v5136_v35  ;;  %v4062_v32 = vpop.f32.mrb[15].mxu0  ;;  %v4382_v47 = vmul.f32 %v5136_v35, %v5136_v35  ;;  %v4327_v22 = vsel %vm1332_vm11, %v5136_v35, 0.0 }
 0x201   : > { %4278 = vst.msk [vmem:[%s6479_s7 + $0x30] sm:$0xf] %vm1022_vm6, %v4991_v30  ;;  %v4422_v25 = vsel %vm1332_vm11, %v4379_v40, 0.0  ;;  %v4992_v54 = vpack.c.bf16 %v4062_v32, %v4062_v32  ;;  %v4323_v58 = vsel %vm1332_vm11, %v4062_v32, 0.0  ;;  %v4380_v43 = vmul.f32 %v4062_v32, %v4062_v32 }
 0x202   : > { %v4423_v38 = vadd.f32 %v4422_v25, %v4421_v31  ;;  %4281 = vst.msk [vmem:[%s6479_s7 + $0x3c] sm:$0xf] %vm1022_vm6, %v4994_v36  ;;  %v4324_v39 = vadd.f32 %v4323_v58, %v4322_v59  ;;  %v4426_v56 = vsel %vm1332_vm11, %v4381_v37, 0.0  ;;  %v4428_v7 = vsel %vm1332_vm11, %v4382_v47, 0.0 }
 0x203   : > { %4279 = vst.msk [vmem:[%s6479_s7 + $0x34] sm:$0xf] %vm1022_vm6, %v4992_v54  ;;  %v4424_v16 = vsel %vm1332_vm11, %v4380_v43, 0.0 }
 0x204   : > { %v4326_v49 = vadd.f32 %v4325_v45, %v4324_v39  ;;  %v4425_v24 = vadd.f32 %v4424_v16, %v4423_v38 }
 0x206   : > { %v4328_v5 = vadd.f32 %v4327_v22, %v4326_v49  ;;  %v4427_v60 = vadd.f32 %v4426_v56, %v4425_v24 }
 0x208   : > { %v4429_v61 = vadd.f32 %v4428_v7, %v4427_v60 }
 0x233   : > { %v5139_v0 = vpop.f32.mrb[0].mxu1 }
 0x234   : > { %v4997_v19 = vpack.c.bf16 %v5139_v0, %v5139_v0  ;;  %v4075_v3 = vpop.f32.mrb[1].mxu1  ;;  %v4385_v44 = vmul.f32 %v5139_v0, %v5139_v0  ;;  %v4333_v53 = vsel %vm1332_vm11, %v5139_v0, 0.0 }
 0x235   : > { %v4995_v1 = vpack.c.bf16 %v4075_v3, %v4075_v3  ;;  %v4329_v27 = vsel %vm1332_vm11, %v4075_v3, 0.0  ;;  %v4383_v6 = vmul.f32 %v4075_v3, %v4075_v3  ;;  %v5140_v63 = vpop.f32.mrb[2].mxu1 }
 0x236   : > { %4284 = vst.msk [vmem:[%s6479_s7 + $0x48] sm:$0xf] %vm1022_vm6, %v4997_v19  ;;  %v4330_v14 = vadd.f32 %v4329_v27, %v4328_v5  ;;  %v4998_v9 = vpack.c.bf16 %v5140_v63, %v5140_v63  ;;  %v4078_v11 = vpop.f32.mrb[3].mxu1  ;;  %v4386_v51 = vmul.f32 %v5140_v63, %v5140_v63  ;;  %v4335_v57 = vsel %vm1332_vm11, %v5140_v63, 0.0 }
 0x237   : > { %4282 = vst.msk [vmem:[%s6479_s7 + $0x40] sm:$0xf] %vm1022_vm6, %v4995_v1  ;;  %v4430_v29 = vsel %vm1332_vm11, %v4383_v6, 0.0  ;;  %v4996_v13 = vpack.c.bf16 %v4078_v11, %v4078_v11  ;;  %v4331_v42 = vsel %vm1332_vm11, %v4078_v11, 0.0  ;;  %v4384_v46 = vmul.f32 %v4078_v11, %v4078_v11 }
 0x238   : > { %v4431_v18 = vadd.f32 %v4430_v29, %v4429_v61  ;;  %4285 = vst.msk [vmem:[%s6479_s7 + $0x4c] sm:$0xf] %vm1022_vm6, %v4998_v9  ;;  %v4332_v34 = vadd.f32 %v4331_v42, %v4330_v14  ;;  %v4434_v15 = vsel %vm1332_vm11, %v4385_v44, 0.0  ;;  %v4436_v23 = vsel %vm1332_vm11, %v4386_v51, 0.0 }
 0x239   : > { %4283 = vst.msk [vmem:[%s6479_s7 + $0x44] sm:$0xf] %vm1022_vm6, %v4996_v13  ;;  %v4432_v17 = vsel %vm1332_vm11, %v4384_v46, 0.0 }
 0x23a   : > { %v4334_v2 = vadd.f32 %v4333_v53, %v4332_v34  ;;  %v4433_v8 = vadd.f32 %v4432_v17, %v4431_v18 }
 0x23c   : > { %v4336_v12 = vadd.f32 %v4335_v57, %v4334_v2  ;;  %v4435_v20 = vadd.f32 %v4434_v15, %v4433_v8 }
 0x23e   : > { %v4437_v33 = vadd.f32 %v4436_v23, %v4435_v20 }
 0x256   : > { %v5143_v50 = vpop.f32.mrb[4].mxu1 }
 0x257   : > { %v5001_v41 = vpack.c.bf16 %v5143_v50, %v5143_v50  ;;  %v4091_v21 = vpop.f32.mrb[5].mxu1  ;;  %v4389_v40 = vmul.f32 %v5143_v50, %v5143_v50  ;;  %v4341_v32 = vsel %vm1332_vm11, %v5143_v50, 0.0 }
 0x258   : > { %v4999_v48 = vpack.c.bf16 %v4091_v21, %v4091_v21  ;;  %v4337_v4 = vsel %vm1332_vm11, %v4091_v21, 0.0  ;;  %v4387_v55 = vmul.f32 %v4091_v21, %v4091_v21  ;;  %v5144_v28 = vpop.f32.mrb[6].mxu1 }
 0x259   : > { %4288 = vst.msk [vmem:[%s6479_s7 + $0x58] sm:$0xf] %vm1022_vm6, %v5001_v41  ;;  %v4338_v31 = vadd.f32 %v4337_v4, %v4336_v12  ;;  %v5002_v10 = vpack.c.bf16 %v5144_v28, %v5144_v28  ;;  %v4094_v26 = vpop.f32.mrb[7].mxu1  ;;  %v4390_v25 = vmul.f32 %v5144_v28, %v5144_v28  ;;  %v4343_v37 = vsel %vm1332_vm11, %v5144_v28, 0.0 }
 0x25a   : > { %4286 = vst.msk [vmem:[%s6479_s7 + $0x50] sm:$0xf] %vm1022_vm6, %v4999_v48  ;;  %v4438_v62 = vsel %vm1332_vm11, %v4387_v55, 0.0  ;;  %v5000_v30 = vpack.c.bf16 %v4094_v26, %v4094_v26  ;;  %v4339_v52 = vsel %vm1332_vm11, %v4094_v26, 0.0  ;;  %v4388_v36 = vmul.f32 %v4094_v26, %v4094_v26 }
 0x25b   : > { %v4439_v35 = vadd.f32 %v4438_v62, %v4437_v33  ;;  %4289 = vst.msk [vmem:[%s6479_s7 + $0x5c] sm:$0xf] %vm1022_vm6, %v5002_v10  ;;  %v4340_v59 = vadd.f32 %v4339_v52, %v4338_v31  ;;  %v4442_v39 = vsel %vm1332_vm11, %v4389_v40, 0.0  ;;  %v4444_v47 = vsel %vm1332_vm11, %v4390_v25, 0.0 }
 0x25c   : > { %4287 = vst.msk [vmem:[%s6479_s7 + $0x54] sm:$0xf] %vm1022_vm6, %v5000_v30  ;;  %v4440_v58 = vsel %vm1332_vm11, %v4388_v36, 0.0 }
 0x25d   : > { %v4342_v54 = vadd.f32 %v4341_v32, %v4340_v59  ;;  %v4441_v38 = vadd.f32 %v4440_v58, %v4439_v35 }
 0x25f   : > { %v4344_v43 = vadd.f32 %v4343_v37, %v4342_v54  ;;  %v4443_v45 = vadd.f32 %v4442_v39, %v4441_v38 }
 0x261   : > { %v4445_v49 = vadd.f32 %v4444_v47, %v4443_v45 }
 0x279   : > { %v5147_v16 = vpop.f32.mrb[8].mxu1 }
 0x27a   : > { %v5005_v22 = vpack.c.bf16 %v5147_v16, %v5147_v16  ;;  %v4107_v24 = vpop.f32.mrb[9].mxu1  ;;  %v4393_v6 = vmul.f32 %v5147_v16, %v5147_v16  ;;  %v4349_v11 = vsel %vm1332_vm11, %v5147_v16, 0.0 }
 0x27b   : > { %v5003_v56 = vpack.c.bf16 %v4107_v24, %v4107_v24  ;;  %v4345_v5 = vsel %vm1332_vm11, %v4107_v24, 0.0  ;;  %v4391_v60 = vmul.f32 %v4107_v24, %v4107_v24  ;;  %v5148_v7 = vpop.f32.mrb[10].mxu1 }
 0x27c   : > { %4292 = vst.msk [vmem:[%s6479_s7 + $0x68] sm:$0xf] %vm1022_vm6, %v5005_v22  ;;  %v4346_v61 = vadd.f32 %v4345_v5, %v4344_v43  ;;  %v5006_v0 = vpack.c.bf16 %v5148_v7, %v5148_v7  ;;  %v4110_v19 = vpop.f32.mrb[11].mxu1  ;;  %v4394_v29 = vmul.f32 %v5148_v7, %v5148_v7  ;;  %v4351_v44 = vsel %vm1332_vm11, %v5148_v7, 0.0 }
 0x27d   : > { %4290 = vst.msk [vmem:[%s6479_s7 + $0x60] sm:$0xf] %vm1022_vm6, %v5003_v56  ;;  %v4446_v3 = vsel %vm1332_vm11, %v4391_v60, 0.0  ;;  %v5004_v1 = vpack.c.bf16 %v4110_v19, %v4110_v19  ;;  %v4347_v27 = vsel %vm1332_vm11, %v4110_v19, 0.0  ;;  %v4392_v9 = vmul.f32 %v4110_v19, %v4110_v19 }
 0x27e   : > { %v4447_v63 = vadd.f32 %v4446_v3, %v4445_v49  ;;  %4293 = vst.msk [vmem:[%s6479_s7 + $0x6c] sm:$0xf] %vm1022_vm6, %v5006_v0  ;;  %v4348_v14 = vadd.f32 %v4347_v27, %v4346_v61  ;;  %v4450_v34 = vsel %vm1332_vm11, %v4393_v6, 0.0  ;;  %v4452_v51 = vsel %vm1332_vm11, %v4394_v29, 0.0 }
 0x27f   : > { %4291 = vst.msk [vmem:[%s6479_s7 + $0x64] sm:$0xf] %vm1022_vm6, %v5004_v1  ;;  %v4448_v42 = vsel %vm1332_vm11, %v4392_v9, 0.0 }
 0x280   : > { %v4350_v13 = vadd.f32 %v4349_v11, %v4348_v14  ;;  %v4449_v18 = vadd.f32 %v4448_v42, %v4447_v63 }
 0x282   : > { %v4352_v46 = vadd.f32 %v4351_v44, %v4350_v13  ;;  %v4451_v53 = vadd.f32 %v4450_v34, %v4449_v18 }
 0x284   : > { %v4453_v2 = vadd.f32 %v4452_v51, %v4451_v53 }
 0x29d   : > { %v5151_v17 = vpop.f32.mrb[12].mxu1 }
 0x29e   : > { %v5009_v57 = vpack.c.bf16 %v5151_v17, %v5151_v17  ;;  %v4123_v8 = vpop.f32.mrb[13].mxu1  ;;  %v4397_v55 = vmul.f32 %v5151_v17, %v5151_v17  ;;  %v4357_v26 = vsel %vm1332_vm11, %v5151_v17, 0.0 }
 0x29f   : > { %v5007_v15 = vpack.c.bf16 %v4123_v8, %v4123_v8  ;;  %v4353_v12 = vsel %vm1332_vm11, %v4123_v8, 0.0  ;;  %v4395_v20 = vmul.f32 %v4123_v8, %v4123_v8  ;;  %v5152_v23 = vpop.f32.mrb[14].mxu1 }
 0x2a0   : > { %4296 = vst.msk [vmem:[%s6479_s7 + $0x78] sm:$0xf] %vm1022_vm6, %v5009_v57  ;;  %v4354_v33 = vadd.f32 %v4353_v12, %v4352_v46  ;;  %v5010_v50 = vpack.c.bf16 %v5152_v23, %v5152_v23  ;;  %v4126_v41 = vpop.f32.mrb[15].mxu1  ;;  %v4398_v62 = vmul.f32 %v5152_v23, %v5152_v23  ;;  %v4359_v40 = vsel %vm1332_vm11, %v5152_v23, 0.0 }
 0x2a1   : > { %4294 = vst.msk [vmem:[%s6479_s7 + $0x70] sm:$0xf] %vm1022_vm6, %v5007_v15  ;;  %v4454_v21 = vsel %vm1332_vm11, %v4395_v20, 0.0  ;;  %v5008_v48 = vpack.c.bf16 %v4126_v41, %v4126_v41  ;;  %v4355_v4 = vsel %vm1332_vm11, %v4126_v41, 0.0  ;;  %v4396_v10 = vmul.f32 %v4126_v41, %v4126_v41 }
 0x2a2   : > { %v4455_v28 = vadd.f32 %v4454_v21, %v4453_v2  ;;  %4297 = vst.msk [vmem:[%s6479_s7 + $0x7c] sm:$0xf] %vm1022_vm6, %v5010_v50  ;;  %v4356_v31 = vadd.f32 %v4355_v4, %v4354_v33  ;;  %v4458_v59 = vsel %vm1332_vm11, %v4397_v55, 0.0  ;;  %v4460_v25 = vsel %vm1332_vm11, %v4398_v62, 0.0 }
 0x2a3   : > { %4295 = vst.msk [vmem:[%s6479_s7 + $0x74] sm:$0xf] %vm1022_vm6, %v5008_v48  ;;  %v4456_v52 = vsel %vm1332_vm11, %v4396_v10, 0.0  ;;  %vm4468_vm6 = vcmask 1040384   ;;  %vm4470_vm11 = vcmask 58368  }
 0x2a4   : > { %v4358_v30 = vadd.f32 %v4357_v26, %v4356_v31  ;;  %v4457_v35 = vadd.f32 %v4456_v52, %v4455_v28 }
 0x2a6   : > { %v4360_v36 = vadd.f32 %v4359_v40, %v4358_v30  ;;  %v4459_v32 = vadd.f32 %v4458_v59, %v4457_v35 }
 0x2a8   : > { %v4361_v54 = vrot.slane %v4360_v36, 4  ;;  %v4461_v58 = vadd.f32 %v4460_v25, %v4459_v32 }
 0x2aa   : > { %v4362_v37 = vadd.f32 %v4361_v54, %v4360_v36  ;;  %v4462_v38 = vrot.slane %v4461_v58, 4 }
 0x2ac   : > { %v4363_v39 = vrot.slane %v4362_v37, 2  ;;  %v4463_v43 = vadd.f32 %v4462_v38, %v4461_v58 }
 0x2ae   : > { %v4364_v45 = vadd.f32 %v4363_v39, %v4362_v37  ;;  %v4464_v47 = vrot.slane %v4463_v43, 2 }
 0x2b0   : > { %v4365_v49 = vrot.slane %v4364_v45, 1  ;;  %v4465_v16 = vadd.f32 %v4464_v47, %v4463_v43 }
 0x2b2   : > { %v4466_v22 = vrot.slane %v4465_v16, 1  ;;  %v4366_v24 = vadd.f32 %v4365_v49, %v4364_v45 }
 0x2b4   : > { %v4467_v56 = vadd.f32 %v4466_v22, %v4465_v16 }
 0x2b6   : > { %v4469_v5 = vsel %vm4468_vm6, %v4366_v24, %v4467_v56 }
 0x2b7   : > { %4471 = vst.msk [vmem:[%s266_s10] sm:$0x3] %vm4470_vm11, %v4469_v5 }
 0x2b8 PF: > { %s16_s20 = sadd.s32 1, %s5471_s20   ;;  %s6683_s18 = smov %s5467_s19 }
 0x2b9   : > { %p13_p5 = scmp.ge.s32.totalorder %s16_s20, 4   ;;  %s6684_s19 = smov %s6686_s21 }
 0x2bb   :  { %15 = sbr.rel (!%p13_p5) target bundleno = 2 (0x2), region = 84 }

</bundles_post_ra>
